<compile_context>
chip_gen: v5e
topology: v5e:2x2
jax: 0.10.0
libtpu: 0.0.40
codegen_flags: <defaults>
</compile_context>

<pallas_src>
import functools

import jax
import jax.numpy as jnp
from jax.experimental import pallas as pl
from jax.experimental.pallas import tpu as pltpu

_NUM_GROUPS = 32
_GN_EPS = 1e-6


def _make_compiler_params():
    kwargs = dict(dimension_semantics=("parallel",))
    try:
        cap = int(pltpu.get_tpu_info().vmem_capacity_bytes)
        # leave headroom for double buffering; fits v7x (64 MiB) and v5e/v6e (128 MiB)
        kwargs["vmem_limit_bytes"] = min((cap * 3) // 4, 96 * 1024 * 1024)
    except Exception:
        pass
    return pltpu.CompilerParams(**kwargs)


_COMPILER_PARAMS = _make_compiler_params()


# ----------------------------------------------------------------------------
# In-kernel helpers (traced inline into the fused kernel body)
# ----------------------------------------------------------------------------
def _group_broadcast_sum(v, num_groups):
    """(1, C) per-channel sums -> (1, C) where each lane holds its group's sum.

    Log-step lane roll tree (VPU/XLU) instead of an M=1 matmul against a
    (C, C) group mask.  Requires channels-per-group to be a power of two.
    """
    c = v.shape[-1]
    cpg = c // num_groups
    step = 1
    while step < cpg:
        left = jnp.roll(v, -step, axis=1)    # left[i]  = v[i + step]
        right = jnp.roll(v, step, axis=1)    # right[i] = v[i - step]
        lane = jax.lax.broadcasted_iota(jnp.int32, v.shape, 1)
        v = v + jnp.where(lane % (2 * step) < step, left, right)
        step *= 2
    return v


def _gn_silu(x2d, gamma, beta, num_groups, eps):
    """GroupNorm(num_groups, affine) + x*sigmoid(x) on an (H*W, C) f32 slab."""
    hw, c = x2d.shape
    cpg = c // num_groups
    s1 = jnp.sum(x2d, axis=0, keepdims=True)           # (1, C)
    s2 = jnp.sum(x2d * x2d, axis=0, keepdims=True)     # (1, C)
    inv_cnt = 1.0 / float(hw * cpg)
    mean = _group_broadcast_sum(s1, num_groups) * inv_cnt
    ex2 = _group_broadcast_sum(s2, num_groups) * inv_cnt
    var = jnp.maximum(ex2 - mean * mean, 0.0)           # clamp: guards rsqrt vs cancellation
    inv = jax.lax.rsqrt(var + eps)                       # EUP
    y = (x2d - mean) * (inv * gamma) + beta
    return y * (1.0 / (1.0 + jnp.exp(-y)))               # nonlinearity: x * sigmoid(x)


def _conv3x3(h2d, w_ref, *, H, W, Wp):
    """3x3 same-padding conv of an (H*W, Cin) bf16 slab against w_ref (9, Cin, Cout).

    The 9 taps shift the zero-padded *input* slab (bf16 sublane shifts) and the
    full (H*Wp, Cout) block is accumulated in f32; the width padding is stripped
    once at the end with an 8-aligned slice, so the f32 output is never sliced
    at unaligned offsets.
    """
    c = h2d.shape[-1]
    cout = w_ref.shape[-1]
    h3d = h2d.reshape(H, W, c)
    # Zero padding: width W -> Wp on the right, plus 2*Wp zero rows above/below.
    wpad = jnp.zeros((H, Wp - W, c), h2d.dtype)
    interior = jnp.concatenate([h3d, wpad], axis=1).reshape(H * Wp, c)
    zrows = jnp.zeros((2 * Wp, c), h2d.dtype)
    slab = jnp.concatenate([zrows, interior, zrows], axis=0)   # ((H+4)*Wp, c)

    acc = jnp.zeros((H * Wp, cout), jnp.float32)
    for dy in range(3):
        for dx in range(3):
            off = (dy + 1) * Wp + dx - 1                        # input-side shift
            lhs = slab[off:off + H * Wp, :]
            acc = acc + jnp.dot(lhs, w_ref[3 * dy + dx],
                                preferred_element_type=jnp.float32)
    # Strip the width padding (sublane-aligned since W % 8 == 0).
    return acc.reshape(H, Wp, cout)[:, :W, :].reshape(H * W, cout)


# ----------------------------------------------------------------------------
# Fused ResnetBlock kernel (one grid step == one sample)
# ----------------------------------------------------------------------------
def _resnet_block_kernel(x_ref, t_ref, g1_ref, b1_ref, w1_ref, bc1_ref,
                         tw_ref, tb_ref, g2_ref, b2_ref, w2_ref, bc2_ref,
                         *rest, H, W, Wp, num_groups, eps, use_nin):
    if use_nin:
        sw_ref, sb_ref, o_ref = rest
    else:
        (o_ref,) = rest

    x2d = x_ref[0].astype(jnp.float32)                      # (H*W, Cin)

    # --- norm1 + nonlinearity ---
    h = _gn_silu(x2d, g1_ref[...], b1_ref[...], num_groups, eps)

    # --- conv1 (3x3, pad 1) + bias + temb projection (fused epilogue) ---
    h = _conv3x3(h.astype(jnp.bfloat16), w1_ref, H=H, W=W, Wp=Wp)
    t = t_ref[0].astype(jnp.float32)                         # (1, T)
    t = t * (1.0 / (1.0 + jnp.exp(-t)))                      # nonlinearity(temb)
    tvec = jnp.dot(t.astype(jnp.bfloat16), tw_ref[...],
                   preferred_element_type=jnp.float32) + tb_ref[...]
    h = h + bc1_ref[...] + tvec                              # (H*W, Cout)

    # --- norm2 + nonlinearity ---
    h = _gn_silu(h, g2_ref[...], b2_ref[...], num_groups, eps)

    # TODO(synk): Dropout is identity here (deterministic / eval-mode forward).

    # --- conv2 (3x3, pad 1) + bias ---
    h = _conv3x3(h.astype(jnp.bfloat16), w2_ref, H=H, W=W, Wp=Wp) + bc2_ref[...]

    # --- shortcut (1x1 conv if Cin != Cout) + residual add ---
    if use_nin:
        short = jnp.dot(x2d.astype(jnp.bfloat16), sw_ref[...],
                        preferred_element_type=jnp.float32) + sb_ref[...]
    else:
        short = x2d
    o_ref[0] = (h + short).astype(o_ref.dtype)


# ----------------------------------------------------------------------------
# ResnetBlock forward (NCHW in / NCHW out, like the PyTorch module)
# ----------------------------------------------------------------------------
def resnet_block_forward(x_nchw, temb, params):
    n, cin, h, w = x_nchw.shape
    cout = params["w1"].shape[-1]
    t_ch = params["tw"].shape[0]
    use_nin = "sw" in params      # static (pytree structure only)

    if w % 8 != 0:
        raise NotImplementedError("spatial width must be a multiple of 8 (vreg sublane tiling)")
    for c in (cin, cout):
        cpg = c // _NUM_GROUPS
        if cpg * _NUM_GROUPS != c or (cpg & (cpg - 1)) != 0:
            raise NotImplementedError("channels must be 32 * 2^k for the roll-tree GroupNorm")

    wp = ((w + 2 + 15) // 16) * 16     # padded width: multiple of 16 (bf16 sublane packing)

    x_flat = jnp.transpose(x_nchw, (0, 2, 3, 1)).reshape(n, h * w, cin).astype(jnp.float32)
    temb3 = temb.reshape(n, 1, t_ch).astype(jnp.float32)

    kernel = functools.partial(_resnet_block_kernel, H=h, W=w, Wp=wp,
                               num_groups=_NUM_GROUPS, eps=_GN_EPS, use_nin=use_nin)

    in_specs = [
        pl.BlockSpec((1, h * w, cin), lambda i: (i, 0, 0)),      # x (per sample)
        pl.BlockSpec((1, 1, t_ch), lambda i: (i, 0, 0)),         # temb (per sample)
        pl.BlockSpec((1, cin), lambda i: (0, 0)),                # norm1 gamma
        pl.BlockSpec((1, cin), lambda i: (0, 0)),                # norm1 beta
        pl.BlockSpec((9, cin, cout), lambda i: (0, 0, 0)),       # conv1 weight
        pl.BlockSpec((1, cout), lambda i: (0, 0)),               # conv1 bias
        pl.BlockSpec((t_ch, cout), lambda i: (0, 0)),            # temb_proj weight
        pl.BlockSpec((1, cout), lambda i: (0, 0)),               # temb_proj bias
        pl.BlockSpec((1, cout), lambda i: (0, 0)),               # norm2 gamma
        pl.BlockSpec((1, cout), lambda i: (0, 0)),               # norm2 beta
        pl.BlockSpec((9, cout, cout), lambda i: (0, 0, 0)),      # conv2 weight
        pl.BlockSpec((1, cout), lambda i: (0, 0)),               # conv2 bias
    ]
    args = [x_flat, temb3,
            params["g1"], params["b1"],
            params["w1"].astype(jnp.bfloat16), params["bc1"],
            params["tw"].astype(jnp.bfloat16), params["tb"],
            params["g2"], params["b2"],
            params["w2"].astype(jnp.bfloat16), params["bc2"]]
    if use_nin:
        in_specs += [pl.BlockSpec((cin, cout), lambda i: (0, 0)),   # nin_shortcut weight
                     pl.BlockSpec((1, cout), lambda i: (0, 0))]     # nin_shortcut bias
        args += [params["sw"].astype(jnp.bfloat16), params["sb"]]

    out = pl.pallas_call(
        kernel,
        out_shape=jax.ShapeDtypeStruct((n, h * w, cout), jnp.float32),
        grid=(n,),
        in_specs=in_specs,
        out_specs=pl.BlockSpec((1, h * w, cout), lambda i: (i, 0, 0)),
        compiler_params=_COMPILER_PARAMS,
    )(*args)

    return jnp.transpose(out.reshape(n, h, w, cout), (0, 3, 1, 2))   # back to NCHW


# ----------------------------------------------------------------------------
# Synthetic deterministic parameters & plain-JAX reference
# ----------------------------------------------------------------------------
def init_params(key, cin, cout, temb_ch):
    ks = jax.random.split(key, 12)
    p = {
        "g1": 1.0 + 0.1 * jax.random.normal(ks[0], (1, cin), jnp.float32),
        "b1": 0.1 * jax.random.normal(ks[1], (1, cin), jnp.float32),
        "w1": jax.random.normal(ks[2], (9, cin, cout), jnp.float32) * (2.0 / (9 * cin)) ** 0.5,
        "bc1": 0.02 * jax.random.normal(ks[3], (1, cout), jnp.float32),
        "tw": jax.random.normal(ks[4], (temb_ch, cout), jnp.float32) * (1.0 / temb_ch) ** 0.5,
        "tb": 0.02 * jax.random.normal(ks[5], (1, cout), jnp.float32),
        "g2": 1.0 + 0.1 * jax.random.normal(ks[6], (1, cout), jnp.float32),
        "b2": 0.1 * jax.random.normal(ks[7], (1, cout), jnp.float32),
        "w2": jax.random.normal(ks[8], (9, cout, cout), jnp.float32) * (2.0 / (9 * cout)) ** 0.5,
        "bc2": 0.02 * jax.random.normal(ks[9], (1, cout), jnp.float32),
    }
    if cin != cout:  # nin_shortcut (1x1 conv), use_conv_shortcut=False path
        p["sw"] = jax.random.normal(ks[10], (cin, cout), jnp.float32) * (1.0 / cin) ** 0.5
        p["sb"] = 0.02 * jax.random.normal(ks[11], (1, cout), jnp.float32)
    return p


def _reference_forward(x_nchw, temb, params):
    x = jnp.transpose(x_nchw, (0, 2, 3, 1)).astype(jnp.float32)
    n, h, w, cin = x.shape

    def gn_silu_ref(a, g, b):
        nn_, hh, ww, cc = a.shape
        cpg = cc // _NUM_GROUPS
        ag = a.reshape(nn_, hh, ww, _NUM_GROUPS, cpg)
        mean = jnp.mean(ag, axis=(1, 2, 4), keepdims=True)
        var = jnp.mean((ag - mean) ** 2, axis=(1, 2, 4), keepdims=True)
        an = ((ag - mean) * jax.lax.rsqrt(var + _GN_EPS)).reshape(nn_, hh, ww, cc)
        an = an * g.reshape(1, 1, 1, cc) + b.reshape(1, 1, 1, cc)
        return (an * jax.nn.sigmoid(an)).astype(jnp.bfloat16)

    def conv3x3_ref(a, w9, b):
        wt = w9.reshape(3, 3, w9.shape[1], w9.shape[2]).astype(jnp.bfloat16)  # HWIO
        out = jax.lax.conv_general_dilated(
            a.astype(jnp.bfloat16), wt, window_strides=(1, 1), padding="SAME",
            dimension_numbers=("NHWC", "HWIO", "NHWC"),
            preferred_element_type=jnp.float32)
        return out + b.reshape(1, 1, 1, -1)

    hh = gn_silu_ref(x, params["g1"], params["b1"])
    hh = conv3x3_ref(hh, params["w1"], params["bc1"])
    tact = temb * jax.nn.sigmoid(temb)
    tvec = jnp.dot(tact.astype(jnp.bfloat16), params["tw"].astype(jnp.bfloat16),
                   preferred_element_type=jnp.float32) + params["tb"]
    hh = hh + tvec[:, None, None, :]
    hh = gn_silu_ref(hh, params["g2"], params["b2"])
    hh = conv3x3_ref(hh, params["w2"], params["bc2"])
    if "sw" in params:
        cout = params["sw"].shape[-1]
        sc = jnp.dot(x.reshape(-1, cin).astype(jnp.bfloat16),
                     params["sw"].astype(jnp.bfloat16),
                     preferred_element_type=jnp.float32).reshape(n, h, w, cout)
        sc = sc + params["sb"].reshape(1, 1, 1, -1)
    else:
        sc = x
    return jnp.transpose(sc + hh, (0, 3, 1, 2))


if __name__ == "__main__":
    key = jax.random.PRNGKey(0)
    k_p, k_x, k_t = jax.random.split(key, 3)

    # ResnetBlock(in_channels=32, out_channels=64, conv_shortcut=False,
    #             dropout=0.0, temb_channels=128); batch=2, 16x16 spatial
    N, CIN, COUT, H, W, TCH = 2, 32, 64, 16, 16, 128
    params = init_params(k_p, CIN, COUT, TCH)
    x = jax.random.normal(k_x, (N, CIN, H, W), jnp.float32)
    temb = jax.random.normal(k_t, (N, TCH), jnp.float32)

    fwd = jax.jit(resnet_block_forward)
    out = fwd(x, temb, params)
    jax.block_until_ready(out)

    assert out.shape == (N, COUT, H, W)
    assert bool(jnp.all(jnp.isfinite(out)))

    ref = _reference_forward(x, temb, params)
    err = float(jnp.max(jnp.abs(out - ref)))
    assert err < 5e-2, f"max abs err vs reference too large: {err}"

    print("KERNEL_OK")
</pallas_src>

<mosaic_0001>
module attributes {stable_mosaic.version = 11 : i64} {
  func.func @_resnet_block_kernel(%arg0: i32, %arg1: memref<1x256x32xf32, #tpu.memory_space<vmem>>, %arg2: memref<1x1x128xf32, #tpu.memory_space<vmem>>, %arg3: memref<1x32xf32, #tpu.memory_space<vmem>>, %arg4: memref<1x32xf32, #tpu.memory_space<vmem>>, %arg5: memref<9x32x64xbf16, #tpu.memory_space<vmem>>, %arg6: memref<1x64xf32, #tpu.memory_space<vmem>>, %arg7: memref<128x64xbf16, #tpu.memory_space<vmem>>, %arg8: memref<1x64xf32, #tpu.memory_space<vmem>>, %arg9: memref<1x64xf32, #tpu.memory_space<vmem>>, %arg10: memref<1x64xf32, #tpu.memory_space<vmem>>, %arg11: memref<9x64x64xbf16, #tpu.memory_space<vmem>>, %arg12: memref<1x64xf32, #tpu.memory_space<vmem>>, %arg13: memref<32x64xbf16, #tpu.memory_space<vmem>>, %arg14: memref<1x64xf32, #tpu.memory_space<vmem>>, %arg15: memref<1x256x64xf32, #tpu.memory_space<vmem>>) attributes {dimension_semantics = [#tpu.dimension_semantics<parallel>], iteration_bounds = array<i64: 2>, scalar_prefetch = 0 : i64, scratch_operands = 0 : i64, tpu.core_type = #tpu.core_type<tc>, window_params = [{transform_indices = @transform_0, window_bounds = array<i64: 1, 256, 32>}, {transform_indices = @transform_1, window_bounds = array<i64: 1, 1, 128>}, {pipeline_mode = #tpu.pipeline_mode<synchronous>, transform_indices = @transform_2, window_bounds = array<i64: 1, 32>}, {pipeline_mode = #tpu.pipeline_mode<synchronous>, transform_indices = @transform_3, window_bounds = array<i64: 1, 32>}, {pipeline_mode = #tpu.pipeline_mode<synchronous>, transform_indices = @transform_4, window_bounds = array<i64: 9, 32, 64>}, {pipeline_mode = #tpu.pipeline_mode<synchronous>, transform_indices = @transform_5, window_bounds = array<i64: 1, 64>}, {pipeline_mode = #tpu.pipeline_mode<synchronous>, transform_indices = @transform_6, window_bounds = array<i64: 128, 64>}, {pipeline_mode = #tpu.pipeline_mode<synchronous>, transform_indices = @transform_7, window_bounds = array<i64: 1, 64>}, {pipeline_mode = #tpu.pipeline_mode<synchronous>, transform_indices = @transform_8, window_bounds = array<i64: 1, 64>}, {pipeline_mode = #tpu.pipeline_mode<synchronous>, transform_indices = @transform_9, window_bounds = array<i64: 1, 64>}, {pipeline_mode = #tpu.pipeline_mode<synchronous>, transform_indices = @transform_10, window_bounds = array<i64: 9, 64, 64>}, {pipeline_mode = #tpu.pipeline_mode<synchronous>, transform_indices = @transform_11, window_bounds = array<i64: 1, 64>}, {pipeline_mode = #tpu.pipeline_mode<synchronous>, transform_indices = @transform_12, window_bounds = array<i64: 32, 64>}, {pipeline_mode = #tpu.pipeline_mode<synchronous>, transform_indices = @transform_13, window_bounds = array<i64: 1, 64>}, {transform_indices = @transform_14, window_bounds = array<i64: 1, 256, 64>}]} {
    %c0 = arith.constant 0 : index
    %c0_0 = arith.constant 0 : index
    %c0_1 = arith.constant 0 : index
    %0 = vector.load %arg1[%c0, %c0_0, %c0_1] : memref<1x256x32xf32, #tpu.memory_space<vmem>>, vector<1x256x32xf32>
    %1 = vector.shape_cast %0 : vector<1x256x32xf32> to vector<256x32xf32>
    %c0_2 = arith.constant 0 : index
    %c0_3 = arith.constant 0 : index
    %2 = vector.load %arg3[%c0_2, %c0_3] : memref<1x32xf32, #tpu.memory_space<vmem>>, vector<1x32xf32>
    %c0_4 = arith.constant 0 : index
    %c0_5 = arith.constant 0 : index
    %3 = vector.load %arg4[%c0_4, %c0_5] : memref<1x32xf32, #tpu.memory_space<vmem>>, vector<1x32xf32>
    %cst = arith.constant dense<0.000000e+00> : vector<32xf32>
    %4 = vector.multi_reduction <add>, %1, %cst [0] : vector<256x32xf32> to vector<32xf32>
    %5 = vector.shape_cast %4 : vector<32xf32> to vector<1x32xf32>
    %6 = arith.mulf %1, %1 : vector<256x32xf32>
    %cst_6 = arith.constant dense<0.000000e+00> : vector<32xf32>
    %7 = vector.multi_reduction <add>, %6, %cst_6 [0] : vector<256x32xf32> to vector<32xf32>
    %8 = vector.shape_cast %7 : vector<32xf32> to vector<1x32xf32>
    %cst_7 = arith.constant 3.906250e-03 : f32
    %9 = vector.broadcast %cst_7 : f32 to vector<1x32xf32>
    %10 = arith.mulf %5, %9 : vector<1x32xf32>
    %cst_8 = arith.constant 3.906250e-03 : f32
    %11 = vector.broadcast %cst_8 : f32 to vector<1x32xf32>
    %12 = arith.mulf %8, %11 : vector<1x32xf32>
    %13 = arith.mulf %10, %10 : vector<1x32xf32>
    %14 = arith.subf %12, %13 : vector<1x32xf32>
    %cst_9 = arith.constant 0.000000e+00 : f32
    %15 = vector.broadcast %cst_9 : f32 to vector<1x32xf32>
    %16 = arith.maximumf %14, %15 : vector<1x32xf32>
    %cst_10 = arith.constant 9.99999997E-7 : f32
    %17 = vector.broadcast %cst_10 : f32 to vector<1x32xf32>
    %18 = arith.addf %16, %17 : vector<1x32xf32>
    %19 = math.rsqrt %18 : vector<1x32xf32>
    %20 = vector.broadcast %10 : vector<1x32xf32> to vector<256x32xf32>
    %21 = arith.subf %1, %20 : vector<256x32xf32>
    %22 = arith.mulf %19, %2 : vector<1x32xf32>
    %23 = vector.broadcast %22 : vector<1x32xf32> to vector<256x32xf32>
    %24 = arith.mulf %21, %23 : vector<256x32xf32>
    %25 = vector.broadcast %3 : vector<1x32xf32> to vector<256x32xf32>
    %26 = arith.addf %24, %25 : vector<256x32xf32>
    %cst_11 = arith.constant 0.000000e+00 : f32
    %27 = vector.broadcast %cst_11 : f32 to vector<256x32xf32>
    %28 = arith.subf %27, %26 : vector<256x32xf32>
    %29 = math.exp %28 : vector<256x32xf32>
    %cst_12 = arith.constant 1.000000e+00 : f32
    %30 = vector.broadcast %cst_12 : f32 to vector<256x32xf32>
    %31 = arith.addf %30, %29 : vector<256x32xf32>
    %cst_13 = arith.constant 1.000000e+00 : f32
    %32 = vector.broadcast %cst_13 : f32 to vector<256x32xf32>
    %33 = arith.divf %32, %31 : vector<256x32xf32>
    %34 = arith.mulf %26, %33 : vector<256x32xf32>
    %35 = arith.truncf %34 : vector<256x32xf32> to vector<256x32xbf16>
    %36 = vector.shape_cast %35 : vector<256x32xbf16> to vector<16x16x32xbf16>
    %cst_14 = arith.constant 0.000000e+00 : bf16
    %37 = vector.broadcast %cst_14 : bf16 to vector<16x16x32xbf16>
    %38 = tpu.concatenate %36, %37 in 1 : vector<16x16x32xbf16>, vector<16x16x32xbf16> -> vector<16x32x32xbf16>
    %39 = vector.shape_cast %38 : vector<16x32x32xbf16> to vector<512x32xbf16>
    %cst_15 = arith.constant 0.000000e+00 : bf16
    %40 = vector.broadcast %cst_15 : bf16 to vector<64x32xbf16>
    %41 = tpu.concatenate %40, %39, %40 in 0 : vector<64x32xbf16>, vector<512x32xbf16>, vector<64x32xbf16> -> vector<640x32xbf16>
    %cst_16 = arith.constant 0.000000e+00 : f32
    %42 = vector.broadcast %cst_16 : f32 to vector<512x64xf32>
    %43 = vector.extract_strided_slice %41 {offsets = [31, 0], sizes = [512, 32], strides = [1, 1]} : vector<640x32xbf16> to vector<512x32xbf16>
    %c0_17 = arith.constant 0 : index
    %c0_18 = arith.constant 0 : index
    %c0_19 = arith.constant 0 : index
    %44 = vector.load %arg5[%c0_17, %c0_18, %c0_19] : memref<9x32x64xbf16, #tpu.memory_space<vmem>>, vector<1x32x64xbf16>
    %45 = vector.shape_cast %44 : vector<1x32x64xbf16> to vector<32x64xbf16>
    %cst_20 = arith.constant dense<0.000000e+00> : vector<512x64xf32>
    %46 = tpu.matmul %43, %45, %cst_20 {dimension_numbers = #tpu.dot_dimension_numbers<[1], [0], [0], [1], [0, 0, 1, 1], [], []>} : vector<512x32xbf16>, vector<32x64xbf16>, vector<512x64xf32> -> vector<512x64xf32>
    %47 = arith.addf %42, %46 : vector<512x64xf32>
    %48 = vector.extract_strided_slice %41 {offsets = [32, 0], sizes = [512, 32], strides = [1, 1]} : vector<640x32xbf16> to vector<512x32xbf16>
    %c1 = arith.constant 1 : index
    %c0_21 = arith.constant 0 : index
    %c0_22 = arith.constant 0 : index
    %49 = vector.load %arg5[%c1, %c0_21, %c0_22] : memref<9x32x64xbf16, #tpu.memory_space<vmem>>, vector<1x32x64xbf16>
    %50 = vector.shape_cast %49 : vector<1x32x64xbf16> to vector<32x64xbf16>
    %cst_23 = arith.constant dense<0.000000e+00> : vector<512x64xf32>
    %51 = tpu.matmul %48, %50, %cst_23 {dimension_numbers = #tpu.dot_dimension_numbers<[1], [0], [0], [1], [0, 0, 1, 1], [], []>} : vector<512x32xbf16>, vector<32x64xbf16>, vector<512x64xf32> -> vector<512x64xf32>
    %52 = arith.addf %47, %51 : vector<512x64xf32>
    %53 = vector.extract_strided_slice %41 {offsets = [33, 0], sizes = [512, 32], strides = [1, 1]} : vector<640x32xbf16> to vector<512x32xbf16>
    %c2 = arith.constant 2 : index
    %c0_24 = arith.constant 0 : index
    %c0_25 = arith.constant 0 : index
    %54 = vector.load %arg5[%c2, %c0_24, %c0_25] : memref<9x32x64xbf16, #tpu.memory_space<vmem>>, vector<1x32x64xbf16>
    %55 = vector.shape_cast %54 : vector<1x32x64xbf16> to vector<32x64xbf16>
    %cst_26 = arith.constant dense<0.000000e+00> : vector<512x64xf32>
    %56 = tpu.matmul %53, %55, %cst_26 {dimension_numbers = #tpu.dot_dimension_numbers<[1], [0], [0], [1], [0, 0, 1, 1], [], []>} : vector<512x32xbf16>, vector<32x64xbf16>, vector<512x64xf32> -> vector<512x64xf32>
    %57 = arith.addf %52, %56 : vector<512x64xf32>
    %58 = vector.extract_strided_slice %41 {offsets = [63, 0], sizes = [512, 32], strides = [1, 1]} : vector<640x32xbf16> to vector<512x32xbf16>
    %c3 = arith.constant 3 : index
    %c0_27 = arith.constant 0 : index
    %c0_28 = arith.constant 0 : index
    %59 = vector.load %arg5[%c3, %c0_27, %c0_28] : memref<9x32x64xbf16, #tpu.memory_space<vmem>>, vector<1x32x64xbf16>
    %60 = vector.shape_cast %59 : vector<1x32x64xbf16> to vector<32x64xbf16>
    %cst_29 = arith.constant dense<0.000000e+00> : vector<512x64xf32>
    %61 = tpu.matmul %58, %60, %cst_29 {dimension_numbers = #tpu.dot_dimension_numbers<[1], [0], [0], [1], [0, 0, 1, 1], [], []>} : vector<512x32xbf16>, vector<32x64xbf16>, vector<512x64xf32> -> vector<512x64xf32>
    %62 = arith.addf %57, %61 : vector<512x64xf32>
    %63 = vector.extract_strided_slice %41 {offsets = [64, 0], sizes = [512, 32], strides = [1, 1]} : vector<640x32xbf16> to vector<512x32xbf16>
    %c4 = arith.constant 4 : index
    %c0_30 = arith.constant 0 : index
    %c0_31 = arith.constant 0 : index
    %64 = vector.load %arg5[%c4, %c0_30, %c0_31] : memref<9x32x64xbf16, #tpu.memory_space<vmem>>, vector<1x32x64xbf16>
    %65 = vector.shape_cast %64 : vector<1x32x64xbf16> to vector<32x64xbf16>
    %cst_32 = arith.constant dense<0.000000e+00> : vector<512x64xf32>
    %66 = tpu.matmul %63, %65, %cst_32 {dimension_numbers = #tpu.dot_dimension_numbers<[1], [0], [0], [1], [0, 0, 1, 1], [], []>} : vector<512x32xbf16>, vector<32x64xbf16>, vector<512x64xf32> -> vector<512x64xf32>
    %67 = arith.addf %62, %66 : vector<512x64xf32>
    %68 = vector.extract_strided_slice %41 {offsets = [65, 0], sizes = [512, 32], strides = [1, 1]} : vector<640x32xbf16> to vector<512x32xbf16>
    %c5 = arith.constant 5 : index
    %c0_33 = arith.constant 0 : index
    %c0_34 = arith.constant 0 : index
    %69 = vector.load %arg5[%c5, %c0_33, %c0_34] : memref<9x32x64xbf16, #tpu.memory_space<vmem>>, vector<1x32x64xbf16>
    %70 = vector.shape_cast %69 : vector<1x32x64xbf16> to vector<32x64xbf16>
    %cst_35 = arith.constant dense<0.000000e+00> : vector<512x64xf32>
    %71 = tpu.matmul %68, %70, %cst_35 {dimension_numbers = #tpu.dot_dimension_numbers<[1], [0], [0], [1], [0, 0, 1, 1], [], []>} : vector<512x32xbf16>, vector<32x64xbf16>, vector<512x64xf32> -> vector<512x64xf32>
    %72 = arith.addf %67, %71 : vector<512x64xf32>
    %73 = vector.extract_strided_slice %41 {offsets = [95, 0], sizes = [512, 32], strides = [1, 1]} : vector<640x32xbf16> to vector<512x32xbf16>
    %c6 = arith.constant 6 : index
    %c0_36 = arith.constant 0 : index
    %c0_37 = arith.constant 0 : index
    %74 = vector.load %arg5[%c6, %c0_36, %c0_37] : memref<9x32x64xbf16, #tpu.memory_space<vmem>>, vector<1x32x64xbf16>
    %75 = vector.shape_cast %74 : vector<1x32x64xbf16> to vector<32x64xbf16>
    %cst_38 = arith.constant dense<0.000000e+00> : vector<512x64xf32>
    %76 = tpu.matmul %73, %75, %cst_38 {dimension_numbers = #tpu.dot_dimension_numbers<[1], [0], [0], [1], [0, 0, 1, 1], [], []>} : vector<512x32xbf16>, vector<32x64xbf16>, vector<512x64xf32> -> vector<512x64xf32>
    %77 = arith.addf %72, %76 : vector<512x64xf32>
    %78 = vector.extract_strided_slice %41 {offsets = [96, 0], sizes = [512, 32], strides = [1, 1]} : vector<640x32xbf16> to vector<512x32xbf16>
    %c7 = arith.constant 7 : index
    %c0_39 = arith.constant 0 : index
    %c0_40 = arith.constant 0 : index
    %79 = vector.load %arg5[%c7, %c0_39, %c0_40] : memref<9x32x64xbf16, #tpu.memory_space<vmem>>, vector<1x32x64xbf16>
    %80 = vector.shape_cast %79 : vector<1x32x64xbf16> to vector<32x64xbf16>
    %cst_41 = arith.constant dense<0.000000e+00> : vector<512x64xf32>
    %81 = tpu.matmul %78, %80, %cst_41 {dimension_numbers = #tpu.dot_dimension_numbers<[1], [0], [0], [1], [0, 0, 1, 1], [], []>} : vector<512x32xbf16>, vector<32x64xbf16>, vector<512x64xf32> -> vector<512x64xf32>
    %82 = arith.addf %77, %81 : vector<512x64xf32>
    %83 = vector.extract_strided_slice %41 {offsets = [97, 0], sizes = [512, 32], strides = [1, 1]} : vector<640x32xbf16> to vector<512x32xbf16>
    %c8 = arith.constant 8 : index
    %c0_42 = arith.constant 0 : index
    %c0_43 = arith.constant 0 : index
    %84 = vector.load %arg5[%c8, %c0_42, %c0_43] : memref<9x32x64xbf16, #tpu.memory_space<vmem>>, vector<1x32x64xbf16>
    %85 = vector.shape_cast %84 : vector<1x32x64xbf16> to vector<32x64xbf16>
    %cst_44 = arith.constant dense<0.000000e+00> : vector<512x64xf32>
    %86 = tpu.matmul %83, %85, %cst_44 {dimension_numbers = #tpu.dot_dimension_numbers<[1], [0], [0], [1], [0, 0, 1, 1], [], []>} : vector<512x32xbf16>, vector<32x64xbf16>, vector<512x64xf32> -> vector<512x64xf32>
    %87 = arith.addf %82, %86 : vector<512x64xf32>
    %88 = vector.shape_cast %87 : vector<512x64xf32> to vector<16x32x64xf32>
    %89 = vector.extract_strided_slice %88 {offsets = [0, 0, 0], sizes = [16, 16, 64], strides = [1, 1, 1]} : vector<16x32x64xf32> to vector<16x16x64xf32>
    %90 = vector.shape_cast %89 : vector<16x16x64xf32> to vector<256x64xf32>
    %c0_45 = arith.constant 0 : index
    %c0_46 = arith.constant 0 : index
    %c0_47 = arith.constant 0 : index
    %91 = vector.load %arg2[%c0_45, %c0_46, %c0_47] : memref<1x1x128xf32, #tpu.memory_space<vmem>>, vector<1x1x128xf32>
    %92 = vector.shape_cast %91 : vector<1x1x128xf32> to vector<1x128xf32>
    %cst_48 = arith.constant 0.000000e+00 : f32
    %93 = vector.broadcast %cst_48 : f32 to vector<1x128xf32>
    %94 = arith.subf %93, %92 : vector<1x128xf32>
    %95 = math.exp %94 : vector<1x128xf32>
    %cst_49 = arith.constant 1.000000e+00 : f32
    %96 = vector.broadcast %cst_49 : f32 to vector<1x128xf32>
    %97 = arith.addf %96, %95 : vector<1x128xf32>
    %cst_50 = arith.constant 1.000000e+00 : f32
    %98 = vector.broadcast %cst_50 : f32 to vector<1x128xf32>
    %99 = arith.divf %98, %97 : vector<1x128xf32>
    %100 = arith.mulf %92, %99 : vector<1x128xf32>
    %101 = arith.truncf %100 : vector<1x128xf32> to vector<1x128xbf16>
    %c0_51 = arith.constant 0 : index
    %c0_52 = arith.constant 0 : index
    %102 = vector.load %arg7[%c0_51, %c0_52] : memref<128x64xbf16, #tpu.memory_space<vmem>>, vector<128x64xbf16>
    %cst_53 = arith.constant dense<0.000000e+00> : vector<1x64xf32>
    %103 = tpu.matmul %101, %102, %cst_53 {dimension_numbers = #tpu.dot_dimension_numbers<[1], [0], [0], [1], [0, 0, 1, 1], [], []>} : vector<1x128xbf16>, vector<128x64xbf16>, vector<1x64xf32> -> vector<1x64xf32>
    %c0_54 = arith.constant 0 : index
    %c0_55 = arith.constant 0 : index
    %104 = vector.load %arg8[%c0_54, %c0_55] : memref<1x64xf32, #tpu.memory_space<vmem>>, vector<1x64xf32>
    %105 = arith.addf %103, %104 : vector<1x64xf32>
    %c0_56 = arith.constant 0 : index
    %c0_57 = arith.constant 0 : index
    %106 = vector.load %arg6[%c0_56, %c0_57] : memref<1x64xf32, #tpu.memory_space<vmem>>, vector<1x64xf32>
    %107 = vector.broadcast %106 : vector<1x64xf32> to vector<256x64xf32>
    %108 = arith.addf %90, %107 : vector<256x64xf32>
    %109 = vector.broadcast %105 : vector<1x64xf32> to vector<256x64xf32>
    %110 = arith.addf %108, %109 : vector<256x64xf32>
    %c0_58 = arith.constant 0 : index
    %c0_59 = arith.constant 0 : index
    %111 = vector.load %arg9[%c0_58, %c0_59] : memref<1x64xf32, #tpu.memory_space<vmem>>, vector<1x64xf32>
    %c0_60 = arith.constant 0 : index
    %c0_61 = arith.constant 0 : index
    %112 = vector.load %arg10[%c0_60, %c0_61] : memref<1x64xf32, #tpu.memory_space<vmem>>, vector<1x64xf32>
    %cst_62 = arith.constant dense<0.000000e+00> : vector<64xf32>
    %113 = vector.multi_reduction <add>, %110, %cst_62 [0] : vector<256x64xf32> to vector<64xf32>
    %114 = vector.shape_cast %113 : vector<64xf32> to vector<1x64xf32>
    %115 = arith.mulf %110, %110 : vector<256x64xf32>
    %cst_63 = arith.constant dense<0.000000e+00> : vector<64xf32>
    %116 = vector.multi_reduction <add>, %115, %cst_63 [0] : vector<256x64xf32> to vector<64xf32>
    %117 = vector.shape_cast %116 : vector<64xf32> to vector<1x64xf32>
    %118 = vector.extract_strided_slice %114 {offsets = [0, 1], sizes = [1, 63], strides = [1, 1]} : vector<1x64xf32> to vector<1x63xf32>
    %119 = vector.extract_strided_slice %114 {offsets = [0, 0], sizes = [1, 1], strides = [1, 1]} : vector<1x64xf32> to vector<1x1xf32>
    %120 = tpu.concatenate %118, %119 in 1 : vector<1x63xf32>, vector<1x1xf32> -> vector<1x64xf32>
    %121 = vector.extract_strided_slice %114 {offsets = [0, 63], sizes = [1, 1], strides = [1, 1]} : vector<1x64xf32> to vector<1x1xf32>
    %122 = vector.extract_strided_slice %114 {offsets = [0, 0], sizes = [1, 63], strides = [1, 1]} : vector<1x64xf32> to vector<1x63xf32>
    %123 = tpu.concatenate %121, %122 in 1 : vector<1x1xf32>, vector<1x63xf32> -> vector<1x64xf32>
    %124 = tpu.iota {dimensions = array<i32: 1>} : vector<1x64xi32>
    %c2_i32 = arith.constant 2 : i32
    %c0_i32 = arith.constant 0 : i32
    %125 = arith.cmpi eq, %c2_i32, %c0_i32 : i32
    %c1_i32 = arith.constant 1 : i32
    %126 = arith.select %125, %c1_i32, %c2_i32 : i32
    %127 = vector.broadcast %126 : i32 to vector<1x64xi32>
    %128 = arith.remsi %124, %127 : vector<1x64xi32>
    %c0_i32_64 = arith.constant 0 : i32
    %129 = vector.broadcast %c0_i32_64 : i32 to vector<1x64xi32>
    %130 = arith.cmpi ne, %128, %129 : vector<1x64xi32>
    %c0_i32_65 = arith.constant 0 : i32
    %131 = vector.broadcast %c0_i32_65 : i32 to vector<1x64xi32>
    %132 = arith.cmpi slt, %128, %131 : vector<1x64xi32>
    %c0_i32_66 = arith.constant 0 : i32
    %133 = arith.cmpi slt, %126, %c0_i32_66 : i32
    %134 = vector.broadcast %133 : i1 to vector<1x64xi1>
    %135 = vector.broadcast %134 : vector<1x64xi1> to vector<1x64xi1>
    %136 = arith.xori %132, %135 : vector<1x64xi1>
    %137 = arith.andi %136, %130 : vector<1x64xi1>
    %138 = vector.broadcast %126 : i32 to vector<1x64xi32>
    %139 = arith.addi %128, %138 : vector<1x64xi32>
    %140 = arith.select %137, %139, %128 : vector<1x64xi1>, vector<1x64xi32>
    %c1_i32_67 = arith.constant 1 : i32
    %141 = vector.broadcast %c1_i32_67 : i32 to vector<1x64xi32>
    %142 = arith.cmpi slt, %140, %141 : vector<1x64xi32>
    %143 = arith.select %142, %120, %123 : vector<1x64xi1>, vector<1x64xf32>
    %144 = arith.addf %114, %143 : vector<1x64xf32>
    %cst_68 = arith.constant 0.001953125 : f32
    %145 = vector.broadcast %cst_68 : f32 to vector<1x64xf32>
    %146 = arith.mulf %144, %145 : vector<1x64xf32>
    %147 = vector.extract_strided_slice %117 {offsets = [0, 1], sizes = [1, 63], strides = [1, 1]} : vector<1x64xf32> to vector<1x63xf32>
    %148 = vector.extract_strided_slice %117 {offsets = [0, 0], sizes = [1, 1], strides = [1, 1]} : vector<1x64xf32> to vector<1x1xf32>
    %149 = tpu.concatenate %147, %148 in 1 : vector<1x63xf32>, vector<1x1xf32> -> vector<1x64xf32>
    %150 = vector.extract_strided_slice %117 {offsets = [0, 63], sizes = [1, 1], strides = [1, 1]} : vector<1x64xf32> to vector<1x1xf32>
    %151 = vector.extract_strided_slice %117 {offsets = [0, 0], sizes = [1, 63], strides = [1, 1]} : vector<1x64xf32> to vector<1x63xf32>
    %152 = tpu.concatenate %150, %151 in 1 : vector<1x1xf32>, vector<1x63xf32> -> vector<1x64xf32>
    %153 = tpu.iota {dimensions = array<i32: 1>} : vector<1x64xi32>
    %c2_i32_69 = arith.constant 2 : i32
    %c0_i32_70 = arith.constant 0 : i32
    %154 = arith.cmpi eq, %c2_i32_69, %c0_i32_70 : i32
    %c1_i32_71 = arith.constant 1 : i32
    %155 = arith.select %154, %c1_i32_71, %c2_i32_69 : i32
    %156 = vector.broadcast %155 : i32 to vector<1x64xi32>
    %157 = arith.remsi %153, %156 : vector<1x64xi32>
    %c0_i32_72 = arith.constant 0 : i32
    %158 = vector.broadcast %c0_i32_72 : i32 to vector<1x64xi32>
    %159 = arith.cmpi ne, %157, %158 : vector<1x64xi32>
    %c0_i32_73 = arith.constant 0 : i32
    %160 = vector.broadcast %c0_i32_73 : i32 to vector<1x64xi32>
    %161 = arith.cmpi slt, %157, %160 : vector<1x64xi32>
    %c0_i32_74 = arith.constant 0 : i32
    %162 = arith.cmpi slt, %155, %c0_i32_74 : i32
    %163 = vector.broadcast %162 : i1 to vector<1x64xi1>
    %164 = vector.broadcast %163 : vector<1x64xi1> to vector<1x64xi1>
    %165 = arith.xori %161, %164 : vector<1x64xi1>
    %166 = arith.andi %165, %159 : vector<1x64xi1>
    %167 = vector.broadcast %155 : i32 to vector<1x64xi32>
    %168 = arith.addi %157, %167 : vector<1x64xi32>
    %169 = arith.select %166, %168, %157 : vector<1x64xi1>, vector<1x64xi32>
    %c1_i32_75 = arith.constant 1 : i32
    %170 = vector.broadcast %c1_i32_75 : i32 to vector<1x64xi32>
    %171 = arith.cmpi slt, %169, %170 : vector<1x64xi32>
    %172 = arith.select %171, %149, %152 : vector<1x64xi1>, vector<1x64xf32>
    %173 = arith.addf %117, %172 : vector<1x64xf32>
    %cst_76 = arith.constant 0.001953125 : f32
    %174 = vector.broadcast %cst_76 : f32 to vector<1x64xf32>
    %175 = arith.mulf %173, %174 : vector<1x64xf32>
    %176 = arith.mulf %146, %146 : vector<1x64xf32>
    %177 = arith.subf %175, %176 : vector<1x64xf32>
    %cst_77 = arith.constant 0.000000e+00 : f32
    %178 = vector.broadcast %cst_77 : f32 to vector<1x64xf32>
    %179 = arith.maximumf %177, %178 : vector<1x64xf32>
    %cst_78 = arith.constant 9.99999997E-7 : f32
    %180 = vector.broadcast %cst_78 : f32 to vector<1x64xf32>
    %181 = arith.addf %179, %180 : vector<1x64xf32>
    %182 = math.rsqrt %181 : vector<1x64xf32>
    %183 = vector.broadcast %146 : vector<1x64xf32> to vector<256x64xf32>
    %184 = arith.subf %110, %183 : vector<256x64xf32>
    %185 = arith.mulf %182, %111 : vector<1x64xf32>
    %186 = vector.broadcast %185 : vector<1x64xf32> to vector<256x64xf32>
    %187 = arith.mulf %184, %186 : vector<256x64xf32>
    %188 = vector.broadcast %112 : vector<1x64xf32> to vector<256x64xf32>
    %189 = arith.addf %187, %188 : vector<256x64xf32>
    %cst_79 = arith.constant 0.000000e+00 : f32
    %190 = vector.broadcast %cst_79 : f32 to vector<256x64xf32>
    %191 = arith.subf %190, %189 : vector<256x64xf32>
    %192 = math.exp %191 : vector<256x64xf32>
    %cst_80 = arith.constant 1.000000e+00 : f32
    %193 = vector.broadcast %cst_80 : f32 to vector<256x64xf32>
    %194 = arith.addf %193, %192 : vector<256x64xf32>
    %cst_81 = arith.constant 1.000000e+00 : f32
    %195 = vector.broadcast %cst_81 : f32 to vector<256x64xf32>
    %196 = arith.divf %195, %194 : vector<256x64xf32>
    %197 = arith.mulf %189, %196 : vector<256x64xf32>
    %198 = arith.truncf %197 : vector<256x64xf32> to vector<256x64xbf16>
    %199 = vector.shape_cast %198 : vector<256x64xbf16> to vector<16x16x64xbf16>
    %cst_82 = arith.constant 0.000000e+00 : bf16
    %200 = vector.broadcast %cst_82 : bf16 to vector<16x16x64xbf16>
    %201 = tpu.concatenate %199, %200 in 1 : vector<16x16x64xbf16>, vector<16x16x64xbf16> -> vector<16x32x64xbf16>
    %202 = vector.shape_cast %201 : vector<16x32x64xbf16> to vector<512x64xbf16>
    %cst_83 = arith.constant 0.000000e+00 : bf16
    %203 = vector.broadcast %cst_83 : bf16 to vector<64x64xbf16>
    %204 = tpu.concatenate %203, %202, %203 in 0 : vector<64x64xbf16>, vector<512x64xbf16>, vector<64x64xbf16> -> vector<640x64xbf16>
    %cst_84 = arith.constant 0.000000e+00 : f32
    %205 = vector.broadcast %cst_84 : f32 to vector<512x64xf32>
    %206 = vector.extract_strided_slice %204 {offsets = [31, 0], sizes = [512, 64], strides = [1, 1]} : vector<640x64xbf16> to vector<512x64xbf16>
    %c0_85 = arith.constant 0 : index
    %c0_86 = arith.constant 0 : index
    %c0_87 = arith.constant 0 : index
    %207 = vector.load %arg11[%c0_85, %c0_86, %c0_87] : memref<9x64x64xbf16, #tpu.memory_space<vmem>>, vector<1x64x64xbf16>
    %208 = vector.shape_cast %207 : vector<1x64x64xbf16> to vector<64x64xbf16>
    %cst_88 = arith.constant dense<0.000000e+00> : vector<512x64xf32>
    %209 = tpu.matmul %206, %208, %cst_88 {dimension_numbers = #tpu.dot_dimension_numbers<[1], [0], [0], [1], [0, 0, 1, 1], [], []>} : vector<512x64xbf16>, vector<64x64xbf16>, vector<512x64xf32> -> vector<512x64xf32>
    %210 = arith.addf %205, %209 : vector<512x64xf32>
    %211 = vector.extract_strided_slice %204 {offsets = [32, 0], sizes = [512, 64], strides = [1, 1]} : vector<640x64xbf16> to vector<512x64xbf16>
    %c1_89 = arith.constant 1 : index
    %c0_90 = arith.constant 0 : index
    %c0_91 = arith.constant 0 : index
    %212 = vector.load %arg11[%c1_89, %c0_90, %c0_91] : memref<9x64x64xbf16, #tpu.memory_space<vmem>>, vector<1x64x64xbf16>
    %213 = vector.shape_cast %212 : vector<1x64x64xbf16> to vector<64x64xbf16>
    %cst_92 = arith.constant dense<0.000000e+00> : vector<512x64xf32>
    %214 = tpu.matmul %211, %213, %cst_92 {dimension_numbers = #tpu.dot_dimension_numbers<[1], [0], [0], [1], [0, 0, 1, 1], [], []>} : vector<512x64xbf16>, vector<64x64xbf16>, vector<512x64xf32> -> vector<512x64xf32>
    %215 = arith.addf %210, %214 : vector<512x64xf32>
    %216 = vector.extract_strided_slice %204 {offsets = [33, 0], sizes = [512, 64], strides = [1, 1]} : vector<640x64xbf16> to vector<512x64xbf16>
    %c2_93 = arith.constant 2 : index
    %c0_94 = arith.constant 0 : index
    %c0_95 = arith.constant 0 : index
    %217 = vector.load %arg11[%c2_93, %c0_94, %c0_95] : memref<9x64x64xbf16, #tpu.memory_space<vmem>>, vector<1x64x64xbf16>
    %218 = vector.shape_cast %217 : vector<1x64x64xbf16> to vector<64x64xbf16>
    %cst_96 = arith.constant dense<0.000000e+00> : vector<512x64xf32>
    %219 = tpu.matmul %216, %218, %cst_96 {dimension_numbers = #tpu.dot_dimension_numbers<[1], [0], [0], [1], [0, 0, 1, 1], [], []>} : vector<512x64xbf16>, vector<64x64xbf16>, vector<512x64xf32> -> vector<512x64xf32>
    %220 = arith.addf %215, %219 : vector<512x64xf32>
    %221 = vector.extract_strided_slice %204 {offsets = [63, 0], sizes = [512, 64], strides = [1, 1]} : vector<640x64xbf16> to vector<512x64xbf16>
    %c3_97 = arith.constant 3 : index
    %c0_98 = arith.constant 0 : index
    %c0_99 = arith.constant 0 : index
    %222 = vector.load %arg11[%c3_97, %c0_98, %c0_99] : memref<9x64x64xbf16, #tpu.memory_space<vmem>>, vector<1x64x64xbf16>
    %223 = vector.shape_cast %222 : vector<1x64x64xbf16> to vector<64x64xbf16>
    %cst_100 = arith.constant dense<0.000000e+00> : vector<512x64xf32>
    %224 = tpu.matmul %221, %223, %cst_100 {dimension_numbers = #tpu.dot_dimension_numbers<[1], [0], [0], [1], [0, 0, 1, 1], [], []>} : vector<512x64xbf16>, vector<64x64xbf16>, vector<512x64xf32> -> vector<512x64xf32>
    %225 = arith.addf %220, %224 : vector<512x64xf32>
    %226 = vector.extract_strided_slice %204 {offsets = [64, 0], sizes = [512, 64], strides = [1, 1]} : vector<640x64xbf16> to vector<512x64xbf16>
    %c4_101 = arith.constant 4 : index
    %c0_102 = arith.constant 0 : index
    %c0_103 = arith.constant 0 : index
    %227 = vector.load %arg11[%c4_101, %c0_102, %c0_103] : memref<9x64x64xbf16, #tpu.memory_space<vmem>>, vector<1x64x64xbf16>
    %228 = vector.shape_cast %227 : vector<1x64x64xbf16> to vector<64x64xbf16>
    %cst_104 = arith.constant dense<0.000000e+00> : vector<512x64xf32>
    %229 = tpu.matmul %226, %228, %cst_104 {dimension_numbers = #tpu.dot_dimension_numbers<[1], [0], [0], [1], [0, 0, 1, 1], [], []>} : vector<512x64xbf16>, vector<64x64xbf16>, vector<512x64xf32> -> vector<512x64xf32>
    %230 = arith.addf %225, %229 : vector<512x64xf32>
    %231 = vector.extract_strided_slice %204 {offsets = [65, 0], sizes = [512, 64], strides = [1, 1]} : vector<640x64xbf16> to vector<512x64xbf16>
    %c5_105 = arith.constant 5 : index
    %c0_106 = arith.constant 0 : index
    %c0_107 = arith.constant 0 : index
    %232 = vector.load %arg11[%c5_105, %c0_106, %c0_107] : memref<9x64x64xbf16, #tpu.memory_space<vmem>>, vector<1x64x64xbf16>
    %233 = vector.shape_cast %232 : vector<1x64x64xbf16> to vector<64x64xbf16>
    %cst_108 = arith.constant dense<0.000000e+00> : vector<512x64xf32>
    %234 = tpu.matmul %231, %233, %cst_108 {dimension_numbers = #tpu.dot_dimension_numbers<[1], [0], [0], [1], [0, 0, 1, 1], [], []>} : vector<512x64xbf16>, vector<64x64xbf16>, vector<512x64xf32> -> vector<512x64xf32>
    %235 = arith.addf %230, %234 : vector<512x64xf32>
    %236 = vector.extract_strided_slice %204 {offsets = [95, 0], sizes = [512, 64], strides = [1, 1]} : vector<640x64xbf16> to vector<512x64xbf16>
    %c6_109 = arith.constant 6 : index
    %c0_110 = arith.constant 0 : index
    %c0_111 = arith.constant 0 : index
    %237 = vector.load %arg11[%c6_109, %c0_110, %c0_111] : memref<9x64x64xbf16, #tpu.memory_space<vmem>>, vector<1x64x64xbf16>
    %238 = vector.shape_cast %237 : vector<1x64x64xbf16> to vector<64x64xbf16>
    %cst_112 = arith.constant dense<0.000000e+00> : vector<512x64xf32>
    %239 = tpu.matmul %236, %238, %cst_112 {dimension_numbers = #tpu.dot_dimension_numbers<[1], [0], [0], [1], [0, 0, 1, 1], [], []>} : vector<512x64xbf16>, vector<64x64xbf16>, vector<512x64xf32> -> vector<512x64xf32>
    %240 = arith.addf %235, %239 : vector<512x64xf32>
    %241 = vector.extract_strided_slice %204 {offsets = [96, 0], sizes = [512, 64], strides = [1, 1]} : vector<640x64xbf16> to vector<512x64xbf16>
    %c7_113 = arith.constant 7 : index
    %c0_114 = arith.constant 0 : index
    %c0_115 = arith.constant 0 : index
    %242 = vector.load %arg11[%c7_113, %c0_114, %c0_115] : memref<9x64x64xbf16, #tpu.memory_space<vmem>>, vector<1x64x64xbf16>
    %243 = vector.shape_cast %242 : vector<1x64x64xbf16> to vector<64x64xbf16>
    %cst_116 = arith.constant dense<0.000000e+00> : vector<512x64xf32>
    %244 = tpu.matmul %241, %243, %cst_116 {dimension_numbers = #tpu.dot_dimension_numbers<[1], [0], [0], [1], [0, 0, 1, 1], [], []>} : vector<512x64xbf16>, vector<64x64xbf16>, vector<512x64xf32> -> vector<512x64xf32>
    %245 = arith.addf %240, %244 : vector<512x64xf32>
    %246 = vector.extract_strided_slice %204 {offsets = [97, 0], sizes = [512, 64], strides = [1, 1]} : vector<640x64xbf16> to vector<512x64xbf16>
    %c8_117 = arith.constant 8 : index
    %c0_118 = arith.constant 0 : index
    %c0_119 = arith.constant 0 : index
    %247 = vector.load %arg11[%c8_117, %c0_118, %c0_119] : memref<9x64x64xbf16, #tpu.memory_space<vmem>>, vector<1x64x64xbf16>
    %248 = vector.shape_cast %247 : vector<1x64x64xbf16> to vector<64x64xbf16>
    %cst_120 = arith.constant dense<0.000000e+00> : vector<512x64xf32>
    %249 = tpu.matmul %246, %248, %cst_120 {dimension_numbers = #tpu.dot_dimension_numbers<[1], [0], [0], [1], [0, 0, 1, 1], [], []>} : vector<512x64xbf16>, vector<64x64xbf16>, vector<512x64xf32> -> vector<512x64xf32>
    %250 = arith.addf %245, %249 : vector<512x64xf32>
    %251 = vector.shape_cast %250 : vector<512x64xf32> to vector<16x32x64xf32>
    %252 = vector.extract_strided_slice %251 {offsets = [0, 0, 0], sizes = [16, 16, 64], strides = [1, 1, 1]} : vector<16x32x64xf32> to vector<16x16x64xf32>
    %253 = vector.shape_cast %252 : vector<16x16x64xf32> to vector<256x64xf32>
    %c0_121 = arith.constant 0 : index
    %c0_122 = arith.constant 0 : index
    %254 = vector.load %arg12[%c0_121, %c0_122] : memref<1x64xf32, #tpu.memory_space<vmem>>, vector<1x64xf32>
    %255 = vector.broadcast %254 : vector<1x64xf32> to vector<256x64xf32>
    %256 = arith.addf %253, %255 : vector<256x64xf32>
    %257 = arith.truncf %1 : vector<256x32xf32> to vector<256x32xbf16>
    %c0_123 = arith.constant 0 : index
    %c0_124 = arith.constant 0 : index
    %258 = vector.load %arg13[%c0_123, %c0_124] : memref<32x64xbf16, #tpu.memory_space<vmem>>, vector<32x64xbf16>
    %cst_125 = arith.constant dense<0.000000e+00> : vector<256x64xf32>
    %259 = tpu.matmul %257, %258, %cst_125 {dimension_numbers = #tpu.dot_dimension_numbers<[1], [0], [0], [1], [0, 0, 1, 1], [], []>} : vector<256x32xbf16>, vector<32x64xbf16>, vector<256x64xf32> -> vector<256x64xf32>
    %c0_126 = arith.constant 0 : index
    %c0_127 = arith.constant 0 : index
    %260 = vector.load %arg14[%c0_126, %c0_127] : memref<1x64xf32, #tpu.memory_space<vmem>>, vector<1x64xf32>
    %261 = vector.broadcast %260 : vector<1x64xf32> to vector<256x64xf32>
    %262 = arith.addf %259, %261 : vector<256x64xf32>
    %263 = arith.addf %256, %262 : vector<256x64xf32>
    %c0_128 = arith.constant 0 : index
    %c0_129 = arith.constant 0 : index
    %c0_130 = arith.constant 0 : index
    %264 = vector.load %arg15[%c0_128, %c0_129, %c0_130] : memref<1x256x64xf32, #tpu.memory_space<vmem>>, vector<1x256x64xf32>
    %265 = vector.shape_cast %264 : vector<1x256x64xf32> to vector<256x64xf32>
    %266 = vector.shape_cast %263 : vector<256x64xf32> to vector<1x256x64xf32>
    tpu.vector_store %arg15[%c0_128, %c0_129, %c0_130], %266 {strides = array<i32>} : memref<1x256x64xf32, #tpu.memory_space<vmem>>, vector<1x256x64xf32>,
    return
  }
  func.func @transform_0(%arg0: i32) -> (i32, i32, i32) {
    %c0_i32 = arith.constant 0 : i32
    %c0_i32_0 = arith.constant 0 : i32
    %c0_i32_1 = arith.constant 0 : i32
    return %arg0, %c0_i32, %c0_i32_0 : i32, i32, i32
  }
  func.func @transform_1(%arg0: i32) -> (i32, i32, i32) {
    %c0_i32 = arith.constant 0 : i32
    %c0_i32_0 = arith.constant 0 : i32
    %c0_i32_1 = arith.constant 0 : i32
    return %arg0, %c0_i32, %c0_i32_0 : i32, i32, i32
  }
  func.func @transform_2(%arg0: i32) -> (i32, i32) {
    %c0_i32 = arith.constant 0 : i32
    %c0_i32_0 = arith.constant 0 : i32
    %c0_i32_1 = arith.constant 0 : i32
    return %c0_i32, %c0_i32_0 : i32, i32
  }
  func.func @transform_3(%arg0: i32) -> (i32, i32) {
    %c0_i32 = arith.constant 0 : i32
    %c0_i32_0 = arith.constant 0 : i32
    %c0_i32_1 = arith.constant 0 : i32
    return %c0_i32, %c0_i32_0 : i32, i32
  }
  func.func @transform_4(%arg0: i32) -> (i32, i32, i32) {
    %c0_i32 = arith.constant 0 : i32
    %c0_i32_0 = arith.constant 0 : i32
    %c0_i32_1 = arith.constant 0 : i32
    %c0_i32_2 = arith.constant 0 : i32
    return %c0_i32, %c0_i32_0, %c0_i32_1 : i32, i32, i32
  }
  func.func @transform_5(%arg0: i32) -> (i32, i32) {
    %c0_i32 = arith.constant 0 : i32
    %c0_i32_0 = arith.constant 0 : i32
    %c0_i32_1 = arith.constant 0 : i32
    return %c0_i32, %c0_i32_0 : i32, i32
  }
  func.func @transform_6(%arg0: i32) -> (i32, i32) {
    %c0_i32 = arith.constant 0 : i32
    %c0_i32_0 = arith.constant 0 : i32
    %c0_i32_1 = arith.constant 0 : i32
    return %c0_i32, %c0_i32_0 : i32, i32
  }
  func.func @transform_7(%arg0: i32) -> (i32, i32) {
    %c0_i32 = arith.constant 0 : i32
    %c0_i32_0 = arith.constant 0 : i32
    %c0_i32_1 = arith.constant 0 : i32
    return %c0_i32, %c0_i32_0 : i32, i32
  }
  func.func @transform_8(%arg0: i32) -> (i32, i32) {
    %c0_i32 = arith.constant 0 : i32
    %c0_i32_0 = arith.constant 0 : i32
    %c0_i32_1 = arith.constant 0 : i32
    return %c0_i32, %c0_i32_0 : i32, i32
  }
  func.func @transform_9(%arg0: i32) -> (i32, i32) {
    %c0_i32 = arith.constant 0 : i32
    %c0_i32_0 = arith.constant 0 : i32
    %c0_i32_1 = arith.constant 0 : i32
    return %c0_i32, %c0_i32_0 : i32, i32
  }
  func.func @transform_10(%arg0: i32) -> (i32, i32, i32) {
    %c0_i32 = arith.constant 0 : i32
    %c0_i32_0 = arith.constant 0 : i32
    %c0_i32_1 = arith.constant 0 : i32
    %c0_i32_2 = arith.constant 0 : i32
    return %c0_i32, %c0_i32_0, %c0_i32_1 : i32, i32, i32
  }
  func.func @transform_11(%arg0: i32) -> (i32, i32) {
    %c0_i32 = arith.constant 0 : i32
    %c0_i32_0 = arith.constant 0 : i32
    %c0_i32_1 = arith.constant 0 : i32
    return %c0_i32, %c0_i32_0 : i32, i32
  }
  func.func @transform_12(%arg0: i32) -> (i32, i32) {
    %c0_i32 = arith.constant 0 : i32
    %c0_i32_0 = arith.constant 0 : i32
    %c0_i32_1 = arith.constant 0 : i32
    return %c0_i32, %c0_i32_0 : i32, i32
  }
  func.func @transform_13(%arg0: i32) -> (i32, i32) {
    %c0_i32 = arith.constant 0 : i32
    %c0_i32_0 = arith.constant 0 : i32
    %c0_i32_1 = arith.constant 0 : i32
    return %c0_i32, %c0_i32_0 : i32, i32
  }
  func.func @transform_14(%arg0: i32) -> (i32, i32, i32) {
    %c0_i32 = arith.constant 0 : i32
    %c0_i32_0 = arith.constant 0 : i32
    %c0_i32_1 = arith.constant 0 : i32
    return %arg0, %c0_i32, %c0_i32_0 : i32, i32, i32
  }
}

</mosaic_0001>

<bundles_post_ra>
// kernel: resnet_block_forward.1
= control target key start
LH: loop header
LB: loop body
LE: loop exit
PB: predicated region body
PF: predicated region fallthrough
CT: control target
= control target key end

     0   :  { %s14129_s0 = inlined_call_operand.vmem [shape: f32[2,256,32], index: 0, kind: input, shape index: {}]   ;;  %s14130_s1 = inlined_call_operand.vmem [shape: f32[2,1,128], index: 1, kind: input, shape index: {}]   ;;  %s14131_s2 = inlined_call_operand.vmem [shape: f32[1,32], index: 2, kind: input, shape index: {}]   ;;  %s14132_s3 = inlined_call_operand.vmem [shape: f32[1,32], index: 3, kind: input, shape index: {}]   ;;  %s14133_s4 = inlined_call_operand.vmem [shape: bf16[9,32,64], index: 4, kind: input, shape index: {}]   ;;  %s14134_s5 = inlined_call_operand.vmem [shape: f32[1,64], index: 5, kind: input, shape index: {}]   ;;  %s14135_s6 = inlined_call_operand.vmem [shape: bf16[128,64], index: 6, kind: input, shape index: {}]   ;;  %s14136_s7 = inlined_call_operand.vmem [shape: f32[1,64], index: 7, kind: input, shape index: {}]   ;;  %s14137_s8 = inlined_call_operand.vmem [shape: f32[1,64], index: 8, kind: input, shape index: {}]   ;;  %s14138_s9 = inlined_call_operand.vmem [shape: f32[1,64], index: 9, kind: input, shape index: {}]   ;;  %s14139_s10 = inlined_call_operand.vmem [shape: bf16[9,64,64], index: 10, kind: input, shape index: {}]   ;;  %s14140_s11 = inlined_call_operand.vmem [shape: f32[1,64], index: 11, kind: input, shape index: {}]   ;;  %s14141_s12 = inlined_call_operand.vmem [shape: bf16[32,64], index: 12, kind: input, shape index: {}]   ;;  %s14142_s13 = inlined_call_operand.vmem [shape: f32[1,64], index: 13, kind: input, shape index: {}]   ;;  %s14143_s14 = inlined_call_operand.hbm [shape: f32[2,256,64], index: 14, kind: output, shape index: {}]  }
   0x1   :  { %14331 = sst [smem:[#allocation114_spill]] %s14129_s0 }
   0x2   :  { %14332 = sst [smem:[#allocation115_spill]] %s14130_s1 }
   0x3   :  { %19 = vsyncpa [#allocation3], 0 }
   0x4   :  { %21 = vsyncpa [#allocation3 + $0x1], 0  ;;  %s8868_s29 = smov 0   ;;  %s8870_s30 = smov 0  }
   0x5   :  { %s8872_s15 = smov 0   ;;  %s8874_s16 = smov 0  }
   0x6 LB: > { %14333 = sst [smem:[#allocation5_spill]] %s8780_s15  ;;  %s8889_s17 = sadd.s32 4294967295, %s8784_s16   ;;  %s8784_s16 = sphi %s8874_s16, %s14934_s16   ;;  %s8780_s15 = sphi %s8872_s15, %s14931_s15   ;;  %s8776_s30 = sphi %s8870_s30, %s14933_s30   ;;  %s8772_s29 = sphi %s8868_s29, %s14932_s29  }
   0x7   : > { %s7431_s18 = sadd.s32 4294967294, %s8784_s16   ;;  %s8893_s19 = sadd.s32 1, %s8784_s16  }
   0x8   : > { %s338_s20 = sadd.s32 1, %s8780_s15  ;;  %s335_s21 = ssub.s32 %s8784_s16, %s8893_s19 }
   0x9   : > { %p348_p0 = scmp.ne.s32.totalorder %s8780_s15, %s8776_s30  ;;  %p336_p1 = scmp.eq.s32.totalorder %s335_s21, 0 }
   0xa   : > { %p349_p2 = scmp.eq.s32.totalorder %s8889_s17, 1  ;;  %p354_p3 = scmp.ne.s32.totalorder %s8776_s30, %s8772_s29 }
   0xb   : > { %p355_p4 = scmp.eq.s32.totalorder %s7431_s18, 1  ;;  %p7434_p7 = scmp.ge.s32.totalorder %s8784_s16, 1 }
   0xc   : > { %s8904_s22 = scalar_select %p336_p1, %s8780_s15, %s338_s20  }
   0xd   : > { %p8906_p5 = por %p349_p2, %p348_p0  ;;  %p8910_p6 = por %p355_p4, %p354_p3 }
   0xe   : > { %14334 = sst [smem:[#allocation6_spill]] %s8904_s22  ;;  %p423_p8 = scmp.lt.s32.totalorder %s8784_s16, 3 }
  0x10   : > { %p424_p9 = pnand %p7434_p7, %p423_p8 }
  0x12   : > { %427 = sbr.rel (%p424_p9) target bundleno = 3608 (0xe18), region = 76 }
  0x17   : > { %v8291_v0 = vld [vmem:[%s14133_s4 + $0x18] sm:$0xff]  ;;  %p472_p10 = scmp.lt.s32.totalorder %s8889_s17, 1  ;;  %v8290_v1 = vld [vmem:[%s14133_s4 + $0x10] sm:$0xff]  ;;  %v8289_v2 = vld [vmem:[%s14133_s4 + $0x8] sm:$0xff]  ;;  %vm14262_vm0 = vcmask 261120   ;;  %s14337_s0 = sld [smem:[#allocation114_spill]] }
  0x18   : > { %1630 = vmatpush.bf16.msra.mxu0 %v8291_v0  ;;  %8353 = vmatpush.bf16.msra.mxu1 %v8291_v0  ;;  %v14155_v12 = vmov 0   ;;  %s14643_s1 = sld [smem:[#allocation115_spill]]  ;;  %s8787_s27 = smov 65  }
  0x19   : > { %s8924_s18 = scalar_select %p472_p10, %s8889_s17, 1  ;;  %8354 = vmatpush.bf16.msra.mxu3 %v8291_v0 }
  0x1a   : > { %s8790_s20 = smov 63  }
  0x1b   : > { %s8287_s22 = sshll.u32 %s8924_s18, 8 }
  0x1c   : > { %1631 = vmatpush.bf16.msra.mxu0 %v8290_v1  ;;  %8355 = vmatpush.bf16.msra.mxu1 %v8290_v1 }
  0x1d   : > { %s8933_s15 = scalar_lea.vmem %s14337_s0, %s8287_s22  ;;  %8356 = vmatpush.bf16.msra.mxu3 %v8290_v1 }
  0x1e   : > { %v8936_v3 = vld [vmem:[%s8933_s15] sm:$0xff]  ;;  %v8939_v4 = vld [vmem:[%s8933_s15 + $0x8] sm:$0xff]  ;;  %v8942_v5 = vld [vmem:[%s8933_s15 + $0x10] sm:$0xff]  ;;  %s479_s28 = scalar_lea.vmem %s14643_s1, %s8924_s18  ;;  %s8789_s18 = smov 1  }
  0x1f   : > { %v8945_v6 = vld [vmem:[%s8933_s15 + $0x18] sm:$0xff]  ;;  %v516_v7 = vsel %vm14262_vm0, %v8936_v3, 0.0  ;;  %v517_v8 = vsel %vm14262_vm0, %v8939_v4, 0.0  ;;  %v519_v9 = vsel %vm14262_vm0, %v8942_v5, 0.0  ;;  %v8954_v10 = vld [vmem:[%s8933_s15 + $0x20] sm:$0xff]  ;;  %1632 = vmatmul.bf16.vlgmr.msra.gmra.mxu0 %v14155_v12  ;;  %1717 = vmatmul.bf16.vlgmr.msra.gmra.mxu1 %v14155_v12  ;;  %v8961_v14 = vld [vmem:[%s8933_s15 + $0x28] sm:$0xff]  ;;  %v585_v25 = vmul.f32 %v8936_v3, %v8936_v3 }
  0x20   : > { %2000 = vmatpush.bf16.msrb.mxu1 %v8289_v2  ;;  %v518_v11 = vadd.f32 %v517_v8, %v516_v7  ;;  %v521_v13 = vsel %vm14262_vm0, %v8945_v6, 0.0  ;;  %v523_v16 = vsel %vm14262_vm0, %v8954_v10, 0.0  ;;  %v8966_v17 = vld [vmem:[%s8933_s15 + $0x30] sm:$0xff]  ;;  %v525_v19 = vsel %vm14262_vm0, %v8961_v14, 0.0  ;;  %v8971_v20 = vld [vmem:[%s8933_s15 + $0x38] sm:$0xff]  ;;  %v489_v23 = vld [vmem:[%s8933_s15 + $0x40] sm:$0xff] }
  0x21   : > { %v527_v22 = vsel %vm14262_vm0, %v8966_v17, 0.0  ;;  %v529_v26 = vsel %vm14262_vm0, %v8971_v20, 0.0  ;;  %v586_v27 = vmul.f32 %v8939_v4, %v8939_v4  ;;  %v587_v28 = vmul.f32 %v8942_v5, %v8942_v5  ;;  %v490_v29 = vld [vmem:[%s8933_s15 + $0x48] sm:$0xff]  ;;  %v491_v33 = vld [vmem:[%s8933_s15 + $0x50] sm:$0xff]  ;;  %v492_v40 = vld [vmem:[%s8933_s15 + $0x58] sm:$0xff] }
  0x22   : > { %v520_v15 = vadd.f32 %v519_v9, %v518_v11  ;;  %v531_v31 = vsel %vm14262_vm0, %v489_v23, 0.0  ;;  %v588_v32 = vmul.f32 %v8945_v6, %v8945_v6  ;;  %v617_v35 = vsel %vm14262_vm0, %v585_v25, 0.0  ;;  %v493_v46 = vld [vmem:[%s8933_s15 + $0x60] sm:$0xff]  ;;  %v494_v52 = vld [vmem:[%s8933_s15 + $0x68] sm:$0xff]  ;;  %v495_v58 = vld [vmem:[%s8933_s15 + $0x70] sm:$0xff] }
  0x23   : > { %v533_v36 = vsel %vm14262_vm0, %v490_v29, 0.0  ;;  %v589_v37 = vmul.f32 %v8954_v10, %v8954_v10  ;;  %v618_v38 = vsel %vm14262_vm0, %v586_v27, 0.0  ;;  %v620_v39 = vsel %vm14262_vm0, %v587_v28, 0.0  ;;  %v496_v0 = vld [vmem:[%s8933_s15 + $0x78] sm:$0xff]  ;;  %v497_v11 = vld [vmem:[%s8933_s15 + $0x80] sm:$0xff]  ;;  %v499_v27 = vld [vmem:[%s8933_s15 + $0x90] sm:$0xff] }
  0x24   : > { %v522_v18 = vadd.f32 %v521_v13, %v520_v15  ;;  %v619_v42 = vadd.f32 %v618_v38, %v617_v35  ;;  %v535_v43 = vsel %vm14262_vm0, %v491_v33, 0.0  ;;  %v590_v44 = vmul.f32 %v8961_v14, %v8961_v14 }
  0x25   : > { %v622_v45 = vsel %vm14262_vm0, %v588_v32, 0.0  ;;  %v537_v49 = vsel %vm14262_vm0, %v492_v40, 0.0  ;;  %v591_v50 = vmul.f32 %v8966_v17, %v8966_v17  ;;  %v624_v51 = vsel %vm14262_vm0, %v589_v37, 0.0 }
  0x26   : > { %v524_v21 = vadd.f32 %v523_v16, %v522_v18  ;;  %v621_v48 = vadd.f32 %v620_v39, %v619_v42  ;;  %v539_v55 = vsel %vm14262_vm0, %v493_v46, 0.0  ;;  %v592_v56 = vmul.f32 %v8971_v20, %v8971_v20  ;;  %v9030_v39 = vld [vmem:[%s8933_s15 + $0xa0] sm:$0xff] }
  0x27   : > { %v626_v57 = vsel %vm14262_vm0, %v590_v44, 0.0  ;;  %v541_v61 = vsel %vm14262_vm0, %v494_v52, 0.0  ;;  %v593_v62 = vmul.f32 %v489_v23, %v489_v23  ;;  %v628_v63 = vsel %vm14262_vm0, %v591_v50, 0.0 }
  0x28   : > { %v526_v24 = vadd.f32 %v525_v19, %v524_v21  ;;  %v623_v54 = vadd.f32 %v622_v45, %v621_v48  ;;  %v543_v7 = vsel %vm14262_vm0, %v495_v58, 0.0  ;;  %v594_v8 = vmul.f32 %v490_v29, %v490_v29  ;;  %v498_v21 = vld [vmem:[%s8933_s15 + $0x88] sm:$0xff] }
  0x29   : > { %v630_v9 = vsel %vm14262_vm0, %v592_v56, 0.0  ;;  %v545_v16 = vsel %vm14262_vm0, %v496_v0, 0.0  ;;  %v595_v18 = vmul.f32 %v491_v33, %v491_v33  ;;  %v632_v19 = vsel %vm14262_vm0, %v593_v62, 0.0  ;;  %v500_v33 = vld [vmem:[%s8933_s15 + $0x98] sm:$0xff]  ;;  %v9035_v45 = vld [vmem:[%s8933_s15 + $0xa8] sm:$0xff] }
  0x2a   : > { %v528_v30 = vadd.f32 %v527_v22, %v526_v24  ;;  %v625_v60 = vadd.f32 %v624_v51, %v623_v54  ;;  %v547_v24 = vsel %vm14262_vm0, %v497_v11, 0.0  ;;  %v596_v25 = vmul.f32 %v492_v40, %v492_v40  ;;  %v9041_v51 = vld [vmem:[%s8933_s15 + $0xb0] sm:$0xff] }
  0x2b   : > { %v636_v32 = vsel %vm14262_vm0, %v595_v18, 0.0  ;;  %v598_v37 = vmul.f32 %v494_v52, %v494_v52  ;;  %v553_v42 = vsel %vm14262_vm0, %v500_v33, 0.0  ;;  %v555_v48 = vsel %vm14262_vm0, %v9030_v39, 0.0 }
  0x2c   : > { %v530_v34 = vadd.f32 %v529_v26, %v528_v30  ;;  %v627_v2 = vadd.f32 %v626_v57, %v625_v60  ;;  %v634_v26 = vsel %vm14262_vm0, %v594_v8, 0.0  ;;  %v549_v30 = vsel %vm14262_vm0, %v498_v21, 0.0  ;;  %v9047_v57 = vld [vmem:[%s8933_s15 + $0xb8] sm:$0xff] }
  0x2d   : > { %v638_v38 = vsel %vm14262_vm0, %v596_v25, 0.0  ;;  %v642_v50 = vsel %vm14262_vm0, %v598_v37, 0.0  ;;  %v557_v54 = vsel %vm14262_vm0, %v9035_v45, 0.0  ;;  %v559_v60 = vsel %vm14262_vm0, %v9041_v51, 0.0 }
  0x2e   : > { %v532_v41 = vadd.f32 %v531_v31, %v530_v34  ;;  %v629_v15 = vadd.f32 %v628_v63, %v627_v2  ;;  %v597_v31 = vmul.f32 %v493_v46, %v493_v46  ;;  %v9053_v63 = vld [vmem:[%s8933_s15 + $0xc0] sm:$0xff]  ;;  %v561_v2 = vsel %vm14262_vm0, %v9047_v57, 0.0 }
  0x2f   : > { %1637 = vmatmul.bf16.gmra.mxu0 %v14155_v12 }
  0x30   : > { %v534_v47 = vadd.f32 %v533_v36, %v532_v41  ;;  %v631_v23 = vadd.f32 %v630_v9, %v629_v15  ;;  %v551_v36 = vsel %vm14262_vm0, %v499_v27, 0.0  ;;  %v640_v44 = vsel %vm14262_vm0, %v597_v31, 0.0  ;;  %v9059_v9 = vld [vmem:[%s8933_s15 + $0xc8] sm:$0xff] }
  0x31   : > { %v563_v15 = vsel %vm14262_vm0, %v9053_v63, 0.0 }
  0x32   : > { %v536_v53 = vadd.f32 %v535_v43, %v534_v47  ;;  %v633_v29 = vadd.f32 %v632_v19, %v631_v23  ;;  %v599_v43 = vmul.f32 %v495_v58, %v495_v58  ;;  %v9065_v19 = vld [vmem:[%s8933_s15 + $0xd0] sm:$0xff]  ;;  %v565_v23 = vsel %vm14262_vm0, %v9059_v9, 0.0 }
  0x34   : > { %v538_v59 = vadd.f32 %v537_v49, %v536_v53  ;;  %v635_v35 = vadd.f32 %v634_v26, %v633_v29  ;;  %v600_v49 = vmul.f32 %v496_v0, %v496_v0  ;;  %v644_v56 = vsel %vm14262_vm0, %v599_v43, 0.0  ;;  %v9073_v26 = vld [vmem:[%s8933_s15 + $0xd8] sm:$0xff] }
  0x35   : > { %v567_v29 = vsel %vm14262_vm0, %v9065_v19, 0.0  ;;  %v608_v43 = vmul.f32 %v9047_v57, %v9047_v57 }
  0x36   : > { %v540_v1 = vadd.f32 %v539_v55, %v538_v59  ;;  %v637_v41 = vadd.f32 %v636_v32, %v635_v35  ;;  %v601_v55 = vmul.f32 %v497_v11, %v497_v11  ;;  %v646_v62 = vsel %vm14262_vm0, %v600_v49, 0.0  ;;  %v9081_v32 = vld [vmem:[%s8933_s15 + $0xe0] sm:$0xff] }
  0x37   : > { %v569_v35 = vsel %vm14262_vm0, %v9073_v26, 0.0 }
  0x38   : > { %v542_v13 = vadd.f32 %v541_v61, %v540_v1  ;;  %v639_v47 = vadd.f32 %v638_v38, %v637_v41  ;;  %v602_v61 = vmul.f32 %v498_v21, %v498_v21  ;;  %v648_v8 = vsel %vm14262_vm0, %v601_v55, 0.0  ;;  %v9089_v38 = vld [vmem:[%s8933_s15 + $0xe8] sm:$0xff] }
  0x39   : > { %v573_v49 = vsel %vm14262_vm0, %v9089_v38, 0.0 }
  0x3a   : > { %v544_v22 = vadd.f32 %v543_v7, %v542_v13  ;;  %v641_v53 = vadd.f32 %v640_v44, %v639_v47  ;;  %v603_v7 = vmul.f32 %v499_v27, %v499_v27  ;;  %v650_v18 = vsel %vm14262_vm0, %v602_v61, 0.0 }
  0x3c   : > { %v546_v28 = vadd.f32 %v545_v16, %v544_v22  ;;  %v643_v59 = vadd.f32 %v642_v50, %v641_v53  ;;  %v604_v16 = vmul.f32 %v500_v33, %v500_v33  ;;  %v652_v25 = vsel %vm14262_vm0, %v603_v7, 0.0  ;;  %v512_v53 = vld [vmem:[%s8933_s15 + $0xf8] sm:$0xff] }
  0x3d   : > { %v609_v50 = vmul.f32 %v9053_v63, %v9053_v63 }
  0x3e   : > { %v548_v34 = vadd.f32 %v547_v24, %v546_v28  ;;  %v645_v1 = vadd.f32 %v644_v56, %v643_v59  ;;  %v605_v24 = vmul.f32 %v9030_v39, %v9030_v39  ;;  %v654_v31 = vsel %vm14262_vm0, %v604_v16, 0.0 }
  0x3f   : > { %v662_v59 = vsel %vm14262_vm0, %v608_v43, 0.0  ;;  %v613_v16 = vmul.f32 %v9081_v32, %v9081_v32 }
  0x40   : > { %v550_v40 = vadd.f32 %v549_v30, %v548_v34  ;;  %v647_v13 = vadd.f32 %v646_v62, %v645_v1  ;;  %v606_v30 = vmul.f32 %v9035_v45, %v9035_v45  ;;  %v656_v37 = vsel %vm14262_vm0, %v605_v24, 0.0 }
  0x41   : > { %v577_v62 = vsel %vm14262_vm0, %v512_v53, 0.0  ;;  %v664_v1 = vsel %vm14262_vm0, %v609_v50, 0.0 }
  0x42   : > { %v552_v46 = vadd.f32 %v551_v36, %v550_v40  ;;  %v649_v22 = vadd.f32 %v648_v8, %v647_v13  ;;  %v607_v36 = vmul.f32 %v9041_v51, %v9041_v51  ;;  %v658_v44 = vsel %vm14262_vm0, %v606_v30, 0.0 }
  0x43   : > { %v612_v8 = vmul.f32 %v9073_v26, %v9073_v26 }
  0x44   : > { %v554_v52 = vadd.f32 %v553_v42, %v552_v46  ;;  %v651_v28 = vadd.f32 %v650_v18, %v649_v22  ;;  %v571_v42 = vsel %vm14262_vm0, %v9081_v32, 0.0  ;;  %v511_v46 = vld [vmem:[%s8933_s15 + $0xf0] sm:$0xff] }
  0x45   : > { %v575_v56 = vsel %vm14262_vm0, %v511_v46, 0.0  ;;  %v670_v24 = vsel %vm14262_vm0, %v612_v8, 0.0 }
  0x46   : > { %v556_v58 = vadd.f32 %v555_v48, %v554_v52  ;;  %v653_v34 = vadd.f32 %v652_v25, %v651_v28  ;;  %v660_v52 = vsel %vm14262_vm0, %v607_v36, 0.0  ;;  %v615_v28 = vmul.f32 %v511_v46, %v511_v46 }
  0x48   : > { %v558_v0 = vadd.f32 %v557_v54, %v556_v58  ;;  %v655_v41 = vadd.f32 %v654_v31, %v653_v34  ;;  %v610_v58 = vmul.f32 %v9059_v9, %v9059_v9  ;;  %v676_v36 = vsel %vm14262_vm0, %v615_v28, 0.0 }
  0x4a   : > { %v560_v11 = vadd.f32 %v559_v60, %v558_v0  ;;  %v657_v48 = vadd.f32 %v656_v37, %v655_v41  ;;  %v611_v0 = vmul.f32 %v9065_v19, %v9065_v19 }
  0x4c   : > { %v562_v21 = vadd.f32 %v561_v2, %v560_v11  ;;  %v659_v55 = vadd.f32 %v658_v44, %v657_v48  ;;  %v666_v11 = vsel %vm14262_vm0, %v610_v58, 0.0  ;;  %v668_v18 = vsel %vm14262_vm0, %v611_v0, 0.0 }
  0x4e   : > { %v564_v27 = vadd.f32 %v563_v15, %v562_v21  ;;  %v661_v61 = vadd.f32 %v660_v52, %v659_v55 }
  0x50   : > { %v566_v33 = vadd.f32 %v565_v23, %v564_v27  ;;  %v663_v7 = vadd.f32 %v662_v59, %v661_v61  ;;  %v614_v23 = vmul.f32 %v9089_v38, %v9089_v38 }
  0x52   : > { %v568_v40 = vadd.f32 %v567_v29, %v566_v33  ;;  %v665_v15 = vadd.f32 %v664_v1, %v663_v7  ;;  %v672_v29 = vsel %vm14262_vm0, %v613_v16, 0.0  ;;  %v616_v33 = vmul.f32 %v512_v53, %v512_v53  ;;  %v513_v7 = vld [vmem:[%s14131_s2] sm:$0x1] }
  0x53   : > { %v674_v34 = vsel %vm14262_vm0, %v614_v23, 0.0  ;;  %v9144_v23 = vld [vmem:[%s14132_s3] ss:$0 sm:$0xff] }
  0x54   : > { %v570_v47 = vadd.f32 %v569_v35, %v568_v40  ;;  %v667_v22 = vadd.f32 %v666_v11, %v665_v15  ;;  %v678_v41 = vsel %vm14262_vm0, %v616_v33, 0.0 }
  0x56   : > { %v572_v54 = vadd.f32 %v571_v42, %v570_v47  ;;  %v669_v27 = vadd.f32 %v668_v18, %v667_v22 }
  0x58   : > { %v574_v60 = vadd.f32 %v573_v49, %v572_v54  ;;  %v671_v31 = vadd.f32 %v670_v24, %v669_v27 }
  0x5a   : > { %v576_v2 = vadd.f32 %v575_v56, %v574_v60  ;;  %v673_v35 = vadd.f32 %v672_v29, %v671_v31 }
  0x5c   : > { %v578_v13 = vadd.f32 %v577_v62, %v576_v2  ;;  %v675_v40 = vadd.f32 %v674_v34, %v673_v35 }
  0x5e   : > { %v579_v21 = vrot.slane %v578_v13, 4  ;;  %v677_v42 = vadd.f32 %v676_v36, %v675_v40 }
  0x60   : > { %v580_v25 = vadd.f32 %v579_v21, %v578_v13  ;;  %v679_v44 = vadd.f32 %v678_v41, %v677_v42 }
  0x62   : > { %v581_v30 = vrot.slane %v580_v25, 2  ;;  %v680_v47 = vrot.slane %v679_v44, 4 }
  0x64   : > { %v582_v37 = vadd.f32 %v581_v30, %v580_v25  ;;  %v681_v46 = vadd.f32 %v680_v47, %v679_v44 }
  0x66   : > { %v583_v43 = vrot.slane %v582_v37, 1  ;;  %v682_v49 = vrot.slane %v681_v46, 2 }
  0x68   : > { %v584_v48 = vadd.f32 %v583_v43, %v582_v37  ;;  %v683_v50 = vadd.f32 %v682_v49, %v681_v46 }
  0x6a   : > { %v9124_v52 = vmul.f32 0.00390625, %v584_v48  ;;  %v684_v53 = vrot.slane %v683_v50, 1 }
  0x6c   : > { %v685_v54 = vadd.f32 %v684_v53, %v683_v50  ;;  %v688_v55 = vmul.f32 %v9124_v52, %v9124_v52  ;;  %v702_v13 = vsub.f32 %v8936_v3, %v9124_v52  ;;  %v703_v15 = vsub.f32 %v8939_v4, %v9124_v52 }
  0x6d   : > { %v722_v18 = vsub.f32 %v9030_v39, %v9124_v52  ;;  %v723_v21 = vsub.f32 %v9035_v45, %v9124_v52  ;;  %v704_v29 = vsub.f32 %v8942_v5, %v9124_v52  ;;  %v705_v30 = vsub.f32 %v8945_v6, %v9124_v52 }
  0x6e   : > { %v687_v56 = vmul.f32 0.00390625, %v685_v54  ;;  %v724_v31 = vsub.f32 %v9041_v51, %v9124_v52  ;;  %v725_v33 = vsub.f32 %v9047_v57, %v9124_v52 }
  0x70   : > { %v689_v58 = vsub.f32 %v687_v56, %v688_v55 }
  0x72   : > { %v690_v59 = vmax.f32 %v689_v58, 0.0 }
  0x74   : > { %v691_v60 = vadd.f32 1e-06, %v690_v59 }
  0x76   : > { %8410 = vrsqrt.f32 %v691_v60  ;;  %vm698_vm1 = vweird.f32 %v691_v60 }
  0x7c   : > { %v8411_v61 = vpop.eup %8410 }
  0x7d   : > { %v693_v62 = vmul.f32 %v8411_v61, %v691_v60  ;;  %vm699_vm2 = vweird.f32 %v8411_v61 }
  0x7e   : > { %vm700_vm3 = vmor %vm698_vm1, %vm699_vm2 }
  0x7f   : > { %v694_v0 = vmul.f32 %v8411_v61, %v693_v62 }
  0x81   : > { %v695_v1 = vmul.f32 0.5, %v694_v0 }
  0x83   : > { %v696_v2 = vsub.f32 1.5, %v695_v1 }
  0x85   : > { %v697_v8 = vmul.f32 %v8411_v61, %v696_v2 }
  0x87   : > { %v701_v11 = vsel %vm700_vm3, %v8411_v61, %v697_v8 }
  0x88   : > { %v734_v16 = vmul.f32 %v701_v11, %v513_v7 }
  0x8a   : > { %v9139_v22 = vperm.slane %v734_v16, 0 }
  0x8c   : > { %v736_v24 = vmul.f32 %v9139_v22, %v702_v13  ;;  %v737_v3 = vmul.f32 %v9139_v22, %v703_v15  ;;  %v756_v4 = vmul.f32 %v9139_v22, %v722_v18  ;;  %v757_v25 = vmul.f32 %v9139_v22, %v723_v21 }
  0x8d   : > { %v738_v40 = vmul.f32 %v9139_v22, %v704_v29  ;;  %v739_v5 = vmul.f32 %v9139_v22, %v705_v30  ;;  %v758_v6 = vmul.f32 %v9139_v22, %v724_v31  ;;  %v759_v41 = vmul.f32 %v9139_v22, %v725_v33 }
  0x8e   : > { %v9151_v39 = vadd.f32 %v9144_v23, %v736_v24  ;;  %v9154_v45 = vadd.f32 %v9144_v23, %v737_v3  ;;  %v9157_v27 = vadd.f32 %v9144_v23, %v756_v4  ;;  %v9160_v28 = vadd.f32 %v9144_v23, %v757_v25 }
  0x8f   : > { %v9179_v44 = vadd.f32 %v9144_v23, %v738_v40  ;;  %v9182_v47 = vadd.f32 %v9144_v23, %v739_v5  ;;  %v9185_v48 = vadd.f32 %v9144_v23, %v758_v6  ;;  %v9188_v46 = vadd.f32 %v9144_v23, %v759_v41 }
  0x90   : > { %v803_v34 = vsub.f32 0.0, %v9151_v39  ;;  %v804_v35 = vsub.f32 0.0, %v9154_v45  ;;  %v823_v36 = vsub.f32 0.0, %v9157_v27  ;;  %v824_v37 = vsub.f32 0.0, %v9160_v28 }
  0x91   : > { %v805_v50 = vsub.f32 0.0, %v9179_v44  ;;  %v806_v53 = vsub.f32 0.0, %v9182_v47  ;;  %v825_v56 = vsub.f32 0.0, %v9185_v48  ;;  %v826_v58 = vsub.f32 0.0, %v9188_v46 }
  0x92   : > { %v835_v51 = vmul.f32 1.442695, %v803_v34  ;;  %v837_v42 = vmul.f32 1.442695, %v804_v35  ;;  %v875_v43 = vmul.f32 1.442695, %v823_v36 }
  0x93   : > { %v877_v57 = vmul.f32 1.442695, %v824_v37  ;;  %v839_v54 = vmul.f32 1.442695, %v805_v50  ;;  %v841_v55 = vmul.f32 1.442695, %v806_v53 }
  0x94   : > { %8412 = vpow2.f32 %v835_v51  ;;  %v879_v62 = vmul.f32 1.442695, %v825_v56  ;;  %v881_v2 = vmul.f32 1.442695, %v826_v58 }
  0x95   : > { %8414 = vpow2.f32 %v837_v42 }
  0x96   : > { %8416 = vpow2.f32 %v875_v43 }
  0x97   : > { %8418 = vpow2.f32 %v877_v57 }
  0x98   : > { %8420 = vpow2.f32 %v839_v54 }
  0x99   : > { %8422 = vpow2.f32 %v841_v55 }
  0x9a   : > { %v8413_v59 = vpop.eup %8412 }
  0x9b   : > { %v8415_v60 = vpop.eup %8414  ;;  %v899_v61 = vadd.f32 1.0, %v8413_v59 }
  0x9c   : > { %v1718_v49 = vpop.f32.mrf.mxu1  ;;  %v8417_v0 = vpop.eup %8416  ;;  %v900_v1 = vadd.f32 1.0, %v8415_v60 }
  0x9d   : > { %v8419_v8 = vpop.eup %8418  ;;  %8424 = vrcp.f32 %v899_v61  ;;  %v9194_v13 = vadd.f32 1.0, %v8417_v0  ;;  %v940_v18 = vand.u32 2147483647, %v899_v61  ;;  %v942_v21 = vand.u32 2147483648, %v899_v61 }
  0x9e   : > { %8426 = vrcp.f32 %v900_v1  ;;  %v8421_v11 = vpop.eup %8420  ;;  %v9196_v15 = vadd.f32 1.0, %v8419_v8  ;;  %v955_v3 = vand.u32 2147483647, %v900_v1  ;;  %v957_v4 = vand.u32 2147483648, %v900_v1 }
  0x9f   : > { %8428 = vpow2.f32 %v879_v62  ;;  %v8423_v16 = vpop.eup %8422  ;;  %v9198_v24 = vadd.f32 1.0, %v8421_v11  ;;  %vm936_vm4 = vweird.f32 %v899_v61  ;;  %vm951_vm5 = vweird.f32 %v900_v1 }
  0xa0   : > { %8430 = vpow2.f32 %v881_v2  ;;  %v9202_v29 = vadd.f32 1.0, %v8423_v16  ;;  %vm9205_vm6 = vcmp.eq.f32.partialorder %v940_v18, 8.507059e+37  ;;  %v943_v34 = vor.u32 1.1754944e-38, %v942_v21 }
  0xa1   : > { %8432 = vrcp.f32 %v9194_v13  ;;  %v1240_v35 = vand.u32 2147483647, %v9194_v13  ;;  %vm9210_vm7 = vcmp.eq.f32.partialorder %v955_v3, 8.507059e+37  ;;  %v958_v5 = vor.u32 1.1754944e-38, %v957_v4 }
  0xa2   : > { %8434 = vrcp.f32 %v9196_v15  ;;  %v1242_v6 = vand.u32 2147483648, %v9194_v13  ;;  %vm1236_vm9 = vweird.f32 %v9194_v13  ;;  %vm1251_vm10 = vweird.f32 %v9196_v15 }
  0xa3   : > { %v8425_v25 = vpop.eup %8424  ;;  %8436 = vrcp.f32 %v9198_v24  ;;  %v1255_v57 = vand.u32 2147483647, %v9196_v15  ;;  %vm9220_vm12 = vcmp.eq.f32.partialorder %v1240_v35, 8.507059e+37  ;;  %v1257_v55 = vand.u32 2147483648, %v9196_v15 }
  0xa4   : > { %v1719_v7 = vpop.f32.mrf.mxu1  ;;  %v8427_v30 = vpop.eup %8426  ;;  %v932_v31 = vmul.f32 %v8425_v25, %v899_v61  ;;  %vm937_vm8 = vweird.f32 %v8425_v25  ;;  %8438 = vrcp.f32 %v9202_v29  ;;  %v1243_v60 = vor.u32 1.1754944e-38, %v1242_v6 }
  0xa5   : > { %v8429_v36 = vpop.eup %8428  ;;  %v947_v37 = vmul.f32 %v8427_v30, %v900_v1  ;;  %vm952_vm11 = vweird.f32 %v8427_v30  ;;  %vm9228_vm13 = vmor %vm936_vm4, %vm937_vm8  ;;  %vm9247_vm2 = vcmp.eq.f32.partialorder %v1255_v57, 8.507059e+37  ;;  %v972_v54 = vand.u32 2147483648, %v9198_v24 }
  0xa6   : > { %v8431_v41 = vpop.eup %8430  ;;  %v933_v51 = vsub.f32 1.0, %v932_v31  ;;  %v9233_v0 = vadd.f32 1.0, %v8429_v36  ;;  %vm9237_vm14 = vmor %vm951_vm5, %vm952_vm11  ;;  %vm966_vm5 = vweird.f32 %v9198_v24 }
  0xa7   : > { %v8433_v42 = vpop.eup %8432  ;;  %v948_v43 = vsub.f32 1.0, %v947_v37  ;;  %v9243_v18 = vadd.f32 1.0, %v8431_v41  ;;  %v973_v1 = vor.u32 1.1754944e-38, %v972_v54 }
  0xa8   : > { %v8435_v49 = vpop.eup %8434  ;;  %v934_v50 = vmul.f32 %v8425_v25, %v933_v51  ;;  %v1232_v53 = vmul.f32 %v8433_v42, %v9194_v13  ;;  %vm1237_vm15 = vweird.f32 %v8433_v42  ;;  %8440 = vrcp.f32 %v9233_v0 }
  0xa9   : > { %v9225_v56 = vpop.eup %8436  ;;  %v949_v59 = vmul.f32 %v8427_v30, %v948_v43  ;;  %v1247_v62 = vmul.f32 %v8435_v49, %v9196_v15  ;;  %vm1252_vm1 = vweird.f32 %v8435_v49  ;;  %vm9259_vm3 = vmor %vm1236_vm9, %vm1237_vm15  ;;  %v1258_v13 = vor.u32 1.1754944e-38, %v1257_v55 }
  0xaa   : > { %v935_v2 = vadd.f32 %v8425_v25, %v934_v50  ;;  %v1233_v8 = vsub.f32 1.0, %v1232_v53  ;;  %v962_v61 = vmul.f32 %v9225_v56, %v9198_v24  ;;  %v9251_v31 = vpop.eup %8438  ;;  %vm9270_vm4 = vmor %vm1251_vm10, %vm1252_vm1  ;;  %8442 = vrcp.f32 %v9243_v18 }
  0xab   : > { %v950_v11 = vadd.f32 %v8427_v30, %v949_v59  ;;  %v1248_v16 = vsub.f32 1.0, %v1247_v62  ;;  %v977_v15 = vmul.f32 %v9251_v31, %v9202_v29  ;;  %v970_v55 = vand.u32 2147483647, %v9198_v24 }
  0xac   : > { %v939_v21 = vsel %vm9228_vm13, %v8425_v25, %v935_v2  ;;  %v1234_v3 = vmul.f32 %v8433_v42, %v1233_v8  ;;  %v963_v4 = vsub.f32 1.0, %v962_v61  ;;  %vm981_vm9 = vweird.f32 %v9202_v29 }
  0xad   : > { %v944_v35 = vsel %vm9205_vm6, %v943_v34, %v939_v21  ;;  %v954_v36 = vsel %vm9237_vm14, %v8427_v30, %v950_v11  ;;  %v1249_v25 = vmul.f32 %v8435_v49, %v1248_v16  ;;  %vm967_vm6 = vweird.f32 %v9225_v56 }
  0xae   : > { %v959_v6 = vsel %vm9210_vm7, %v958_v5, %v954_v36  ;;  %v1411_v41 = vmul.f32 %v944_v35, %v9151_v39  ;;  %v1235_v51 = vadd.f32 %v8433_v42, %v1234_v3  ;;  %v964_v5 = vmul.f32 %v9225_v56, %v963_v4  ;;  %v9291_v58 = vpop.eup %8440  ;;  %vm9302_vm7 = vmor %vm966_vm5, %vm967_vm6 }
  0xaf   : > { %v1412_v33 = vmul.f32 %v959_v6, %v9154_v45  ;;  %v1250_v34 = vadd.f32 %v8435_v49, %v1249_v25  ;;  %vm9306_vm8 = vcmp.eq.f32.partialorder %v970_v55, 8.507059e+37  ;;  %v1262_v21 = vmul.f32 %v9291_v58, %v9233_v0 }
  0xb0   : > { %v1443_v40 = vpack.c.bf16 %v1411_v41, %v1411_v41  ;;  %v1239_v39 = vsel %vm9259_vm3, %v8433_v42, %v1235_v51  ;;  %v8443_v7 = vpop.eup %8442  ;;  %v985_v24 = vand.u32 2147483647, %v9202_v29  ;;  %vm982_vm10 = vweird.f32 %v9251_v31 }
  0xb1   : > { %v1444_v43 = vpack.c.bf16 %v1412_v33, %v1412_v33  ;;  %v1244_v57 = vsel %vm9220_vm12, %v1243_v60, %v1239_v39  ;;  %v1254_v45 = vsel %vm9270_vm4, %v8435_v49, %v1250_v34  ;;  %v978_v60 = vsub.f32 1.0, %v977_v15  ;;  %vm9335_vm13 = vmor %vm981_vm9, %vm982_vm10 }
  0xb2   : > { %v1507_v50 = vunpack.c.l.b16 %v1443_v40  ;;  %v1259_v53 = vsel %vm9247_vm2, %v1258_v13, %v1254_v45  ;;  %v1431_v42 = vmul.f32 %v1244_v57, %v9157_v27  ;;  %v965_v49 = vadd.f32 %v9225_v56, %v964_v5 }
  0xb3   : > { %v1508_v59 = vunpack.c.l.b16 %v1444_v43  ;;  %v1432_v62 = vmul.f32 %v1259_v53, %v9160_v28  ;;  %v979_v16 = vmul.f32 %v9251_v31, %v978_v60  ;;  %v987_v35 = vand.u32 2147483648, %v9202_v29 }
  0xb4   : > { %v1463_v2 = vpack.c.bf16 %v1431_v42, %v1431_v42  ;;  %v969_v4 = vsel %vm9302_vm7, %v9225_v56, %v965_v49  ;;  %v1263_v36 = vsub.f32 1.0, %v1262_v21  ;;  %vm1266_vm11 = vweird.f32 %v9233_v0 }
  0xb5   : > { %v9296_v8 = vpack.c.b16 %v1508_v59, %v1507_v50  ;;  %v1464_v61 = vpack.c.bf16 %v1432_v62, %v1432_v62  ;;  %vm1267_vm12 = vweird.f32 %v9291_v58  ;;  %v1277_v25 = vmul.f32 %v8443_v7, %v9243_v18 }
  0xb6   : > { %v1527_v11 = vunpack.c.l.b16 %v1463_v2  ;;  %v980_v6 = vadd.f32 %v9251_v31, %v979_v16  ;;  %v1264_v41 = vmul.f32 %v9291_v58, %v1263_v36  ;;  %v1270_v51 = vand.u32 2147483647, %v9233_v0  ;;  %vm9345_vm2 = vmor %vm1266_vm11, %vm1267_vm12 }
  0xb7   : > { %7450 = vmatmul.msk.bf16.gmra.mxu0 %vm14262_vm0, %v9296_v8  ;;  %v1528_v3 = vunpack.c.l.b16 %v1464_v61  ;;  %v1272_v56 = vand.u32 2147483648, %v9233_v0  ;;  %vm9339_vm14 = vcmp.eq.f32.partialorder %v985_v24, 8.507059e+37  ;;  %v1278_v33 = vsub.f32 1.0, %v1277_v25 }
  0xb8   : > { %vm1281_vm15 = vweird.f32 %v9243_v18  ;;  %vm1282_vm1 = vweird.f32 %v8443_v7  ;;  %v1265_v34 = vadd.f32 %v9291_v58, %v1264_v41  ;;  %v1285_v29 = vand.u32 2147483647, %v9243_v18 }
  0xb9   : > { %v9322_v37 = vpack.c.b16 %v1528_v3, %v1527_v11  ;;  %v1287_v40 = vand.u32 2147483648, %v9243_v18  ;;  %v706_v39 = vsub.f32 %v8954_v10, %v9124_v52  ;;  %v988_v5 = vor.u32 1.1754944e-38, %v987_v35  ;;  %vm9364_vm4 = vmor %vm1281_vm15, %vm1282_vm1 }
  0xba   : > { %v1279_v15 = vmul.f32 %v8443_v7, %v1278_v33  ;;  %v707_v43 = vsub.f32 %v8961_v14, %v9124_v52  ;;  %v726_v57 = vsub.f32 %v9053_v63, %v9124_v52  ;;  %v984_v45 = vsel %vm9335_vm13, %v9251_v31, %v980_v6 }
  0xbb   : > { %7460 = vmatmul.msk.bf16.gmra.mxu1 %vm14262_vm0, %v9322_v37  ;;  %vm9360_vm3 = vcmp.eq.f32.partialorder %v1270_v51, 8.507059e+37  ;;  %v1273_v18 = vor.u32 1.1754944e-38, %v1272_v56  ;;  %v740_v10 = vmul.f32 %v9139_v22, %v706_v39  ;;  %v1269_v14 = vsel %vm9345_vm2, %v9291_v58, %v1265_v34 }
  0xbc   : > { %v1280_v63 = vadd.f32 %v8443_v7, %v1279_v15  ;;  %v1288_v42 = vor.u32 1.1754944e-38, %v1287_v40  ;;  %v741_v55 = vmul.f32 %v9139_v22, %v707_v43  ;;  %vm1286_vm5 = vcmp.eq.f32.partialorder %v1285_v29, 8.507059e+37 }
  0xbd   : > { %v9374_v31 = vadd.f32 %v9144_v23, %v740_v10  ;;  %v727_v59 = vsub.f32 %v9059_v9, %v9124_v52  ;;  %v760_v62 = vmul.f32 %v9139_v22, %v726_v57  ;;  %v974_v54 = vsel %vm9306_vm8, %v973_v1, %v969_v4 }
  0xbe   : > { %v1284_v60 = vsel %vm9364_vm4, %v8443_v7, %v1280_v63  ;;  %v9384_v58 = vadd.f32 %v9144_v23, %v741_v55  ;;  %v989_v2 = vsel %vm9339_vm14, %v988_v5, %v984_v45  ;;  %v1274_v49 = vsel %vm9360_vm3, %v1273_v18, %v1269_v14 }
  0xbf   : > { %v807_v61 = vsub.f32 0.0, %v9374_v31  ;;  %v761_v9 = vmul.f32 %v9139_v22, %v727_v59  ;;  %v1289_v27 = vsel %vm1286_vm5, %v1288_v42, %v1284_v60  ;;  %v9394_v28 = vadd.f32 %v9144_v23, %v760_v62 }
  0xc0   : > { %v808_v11 = vsub.f32 0.0, %v9384_v58  ;;  %v1413_v7 = vmul.f32 %v974_v54, %v9179_v44  ;;  %v1414_v3 = vmul.f32 %v989_v2, %v9182_v47  ;;  %v1433_v1 = vmul.f32 %v1274_v49, %v9185_v48  ;;  %v8297_v48 = vld [vmem:[%s14133_s4 + $0x48] sm:$0xff] }
  0xc1   : > { %v843_v16 = vmul.f32 1.442695, %v807_v61  ;;  %v9398_v21 = vadd.f32 %v9144_v23, %v761_v9  ;;  %v827_v4 = vsub.f32 0.0, %v9394_v28  ;;  %v1434_v35 = vmul.f32 %v1289_v27, %v9188_v46  ;;  %v8288_v46 = vld [vmem:[%s14133_s4] sm:$0xff]  ;;  %2705 = vmatpush.bf16.msrb.mxu0 %v8297_v48 }
  0xc2   : > { %v845_v24 = vmul.f32 1.442695, %v808_v11  ;;  %v1445_v6 = vpack.c.bf16 %v1413_v7, %v1413_v7  ;;  %v1446_v41 = vpack.c.bf16 %v1414_v3, %v1414_v3  ;;  %v1465_v51 = vpack.c.bf16 %v1433_v1, %v1433_v1  ;;  %2001 = vmatpush.bf16.msrb.mxu1 %v8288_v46 }
  0xc3   : > { %8444 = vpow2.f32 %v843_v16  ;;  %v828_v36 = vsub.f32 0.0, %v9398_v21  ;;  %v883_v44 = vmul.f32 1.442695, %v827_v4  ;;  %v1466_v47 = vpack.c.bf16 %v1434_v35, %v1434_v35 }
  0xc4   : > { %8446 = vpow2.f32 %v845_v24  ;;  %v1509_v13 = vunpack.c.l.b16 %v1445_v6  ;;  %v1510_v33 = vunpack.c.l.b16 %v1446_v41  ;;  %v1529_v34 = vunpack.c.l.b16 %v1465_v51 }
  0xc5   : > { %v885_v25 = vmul.f32 1.442695, %v828_v36  ;;  %8448 = vpow2.f32 %v883_v44  ;;  %v1530_v29 = vunpack.c.l.b16 %v1466_v47  ;;  %v730_v39 = vsub.f32 %v9081_v32, %v9124_v52 }
  0xc6   : > { %v731_v5 = vsub.f32 %v9089_v38, %v9124_v52  ;;  %v9425_v10 = vpack.c.b16 %v1510_v33, %v1509_v13  ;;  %v708_v4 = vsub.f32 %v8966_v17, %v9124_v52  ;;  %v709_v35 = vsub.f32 %v8971_v20, %v9124_v52 }
  0xc7   : > { %1645 = vmatmul.bf16.gmra.mxu0 %v14155_v12  ;;  %8450 = vpow2.f32 %v885_v25  ;;  %v9427_v14 = vpack.c.b16 %v1530_v29, %v1529_v34  ;;  %v764_v32 = vmul.f32 %v9139_v22, %v730_v39  ;;  %v728_v51 = vsub.f32 %v9065_v19, %v9124_v52 }
  0xc8   : > { %v765_v38 = vmul.f32 %v9139_v22, %v731_v5  ;;  %v742_v17 = vmul.f32 %v9139_v22, %v708_v4  ;;  %v729_v20 = vsub.f32 %v9073_v26, %v9124_v52  ;;  %v743_v26 = vmul.f32 %v9139_v22, %v709_v35 }
  0xc9   : > { %v8445_v56 = vpop.eup %8444  ;;  %v9445_v2 = vadd.f32 %v9144_v23, %v764_v32 }
  0xca   : > { %v8447_v30 = vpop.eup %8446  ;;  %v903_v0 = vadd.f32 1.0, %v8445_v56  ;;  %v9448_v49 = vadd.f32 %v9144_v23, %v765_v38  ;;  %v9501_v39 = vadd.f32 %v9144_v23, %v742_v17 }
  0xcb   : > { %1725 = vmatmul.bf16.gmra.mxu1 %v14155_v12  ;;  %v9413_v40 = vadd.f32 1.0, %v8447_v30  ;;  %v8449_v15 = vpop.eup %8448  ;;  %v831_v16 = vsub.f32 0.0, %v9445_v2 }
  0xcc   : > { %8452 = vrcp.f32 %v903_v0  ;;  %v1000_v57 = vand.u32 2147483647, %v903_v0  ;;  %v1002_v45 = vand.u32 2147483648, %v903_v0  ;;  %v9421_v18 = vadd.f32 1.0, %v8449_v15 }
  0xcd   : > { %v8451_v43 = vpop.eup %8450  ;;  %8454 = vrcp.f32 %v9413_v40  ;;  %v1017_v50 = vand.u32 2147483648, %v9413_v40  ;;  %vm996_vm6 = vweird.f32 %v903_v0  ;;  %vm1011_vm7 = vweird.f32 %v9413_v40 }
  0xce   : > { %v9423_v53 = vadd.f32 1.0, %v8451_v43  ;;  %v1015_v63 = vand.u32 2147483647, %v9413_v40  ;;  %8456 = vrcp.f32 %v9421_v18  ;;  %vm9434_vm8 = vcmp.eq.f32.partialorder %v1000_v57, 8.507059e+37 }
  0xcf   : > { %v1003_v55 = vor.u32 1.1754944e-38, %v1002_v45  ;;  %v9438_v59 = vor.u32 1.1754944e-38, %v1017_v50  ;;  %vm1296_vm9 = vweird.f32 %v9421_v18  ;;  %v1300_v54 = vand.u32 2147483647, %v9421_v18 }
  0xd0   : > { %8458 = vrcp.f32 %v9423_v53  ;;  %v1302_v60 = vand.u32 2147483648, %v9421_v18  ;;  %vm1311_vm10 = vweird.f32 %v9423_v53  ;;  %v1315_v27 = vand.u32 2147483647, %v9423_v53 }
  0xd1   : > { %v1317_v11 = vand.u32 2147483648, %v9423_v53  ;;  %v832_v3 = vsub.f32 0.0, %v9448_v49  ;;  %vm9462_vm13 = vcmp.eq.f32.partialorder %v1015_v63, 8.507059e+37  ;;  %vm9470_vm14 = vcmp.eq.f32.partialorder %v1300_v54, 8.507059e+37 }
  0xd2   : > { %v8453_v62 = vpop.eup %8452  ;;  %v891_v6 = vmul.f32 1.442695, %v831_v16  ;;  %v9506_v43 = vadd.f32 %v9144_v23, %v743_v26  ;;  %v762_v57 = vmul.f32 %v9139_v22, %v728_v51  ;;  %v1303_v50 = vor.u32 1.1754944e-38, %v1302_v60 }
  0xd3   : > { %v9450_v61 = vpop.eup %8454  ;;  %v992_v9 = vmul.f32 %v8453_v62, %v903_v0  ;;  %vm997_vm11 = vweird.f32 %v8453_v62  ;;  %v893_v41 = vmul.f32 1.442695, %v832_v3  ;;  %v809_v38 = vsub.f32 0.0, %v9501_v39 }
  0xd4   : > { %v1007_v7 = vmul.f32 %v9450_v61, %v9413_v40  ;;  %vm1012_vm12 = vweird.f32 %v9450_v61  ;;  %v8457_v36 = vpop.eup %8456  ;;  %vm9484_vm15 = vmor %vm996_vm6, %vm997_vm11  ;;  %8460 = vpow2.f32 %v891_v6  ;;  %vm1316_vm6 = vcmp.eq.f32.partialorder %v1315_v27, 8.507059e+37 }
  0xd5   : > { %v993_v1 = vsub.f32 1.0, %v992_v9  ;;  %v1292_v46 = vmul.f32 %v8457_v36, %v9421_v18  ;;  %vm1297_vm1 = vweird.f32 %v8457_v36  ;;  %8462 = vpow2.f32 %v893_v41  ;;  %vm9496_vm2 = vmor %vm1011_vm7, %vm1012_vm12 }
  0xd6   : > { %v1008_v44 = vsub.f32 1.0, %v1007_v7  ;;  %v8459_v47 = vpop.eup %8458  ;;  %vm9514_vm4 = vmor %vm1296_vm9, %vm1297_vm1  ;;  %v1318_v18 = vor.u32 1.1754944e-38, %v1317_v11  ;;  %v763_v7 = vmul.f32 %v9139_v22, %v729_v20 }
  0xd7   : > { %7451 = vmatmul.msk.bf16.gmra.mxu0 %vm14262_vm0, %v9425_v10  ;;  %v994_v48 = vmul.f32 %v8453_v62, %v993_v1  ;;  %v1307_v30 = vmul.f32 %v8459_v47, %v9423_v53  ;;  %v1293_v33 = vsub.f32 1.0, %v1292_v46  ;;  %vm1312_vm3 = vweird.f32 %v8459_v47 }
  0xd8   : > { %v1009_v19 = vmul.f32 %v9450_v61, %v1008_v44  ;;  %vm9524_vm5 = vmor %vm1311_vm10, %vm1312_vm3  ;;  %v847_v53 = vmul.f32 1.442695, %v809_v38  ;;  %v9534_v1 = vadd.f32 %v9144_v23, %v762_v57  ;;  %v9549_v51 = vadd.f32 %v9144_v23, %v763_v7 }
  0xd9   : > { %v995_v13 = vadd.f32 %v8453_v62, %v994_v48  ;;  %v1308_v29 = vsub.f32 1.0, %v1307_v30  ;;  %v1294_v15 = vmul.f32 %v8457_v36, %v1293_v33 }
  0xda   : > { %v1010_v34 = vadd.f32 %v9450_v61, %v1009_v19  ;;  %v8461_v54 = vpop.eup %8460  ;;  %v829_v41 = vsub.f32 0.0, %v9534_v1  ;;  %v830_v19 = vsub.f32 0.0, %v9549_v51 }
  0xdb   : > { %7461 = vmatmul.msk.bf16.gmra.mxu1 %vm14262_vm0, %v9427_v14  ;;  %v999_v5 = vsel %vm9484_vm15, %v8453_v62, %v995_v13  ;;  %v1309_v32 = vmul.f32 %v8459_v47, %v1308_v29  ;;  %v1295_v62 = vadd.f32 %v8457_v36, %v1294_v15  ;;  %v8463_v16 = vpop.eup %8462  ;;  %v927_v3 = vadd.f32 1.0, %v8461_v54 }
  0xdc   : > { %v1004_v40 = vsel %vm9434_vm8, %v1003_v55, %v999_v5  ;;  %v1014_v63 = vsel %vm9496_vm2, %v9450_v61, %v1010_v34  ;;  %v810_v55 = vsub.f32 0.0, %v9506_v43  ;;  %v928_v4 = vadd.f32 1.0, %v8463_v16 }
  0xdd   : > { %v1415_v60 = vmul.f32 %v1004_v40, %v9374_v31  ;;  %v1310_v9 = vadd.f32 %v8459_v47, %v1309_v32  ;;  %v1299_v61 = vsel %vm9514_vm4, %v8457_v36, %v1295_v62  ;;  %v1019_v11 = vsel %vm9462_vm13, %v9438_v59, %v1014_v63  ;;  %v9564_v62 = vpop.f32.mrf.mxu0 }
  0xde   : > { %v849_v27 = vmul.f32 1.442695, %v810_v55  ;;  %v1304_v35 = vsel %vm9470_vm14, %v1303_v50, %v1299_v61  ;;  %8464 = vrcp.f32 %v927_v3  ;;  %v1416_v36 = vmul.f32 %v1019_v11, %v9384_v58 }
  0xdf   : > { %v1314_v31 = vsel %vm9524_vm5, %v8459_v47, %v1310_v9  ;;  %8466 = vrcp.f32 %v928_v4  ;;  %v1447_v6 = vpack.c.bf16 %v1415_v60, %v1415_v60  ;;  %v1435_v59 = vmul.f32 %v1304_v35, %v9394_v28  ;;  %v8674_v35 = vld [vmem:[%s8933_s15 + $0x40] sm:$0xff] }
  0xe0   : > { %v1319_v44 = vsel %vm1316_vm6, %v1318_v18, %v1314_v31  ;;  %8468 = vpow2.f32 %v847_v53  ;;  %v887_v25 = vmul.f32 1.442695, %v829_v41  ;;  %v1448_v48 = vpack.c.bf16 %v1416_v36, %v1416_v36 }
  0xe1   : > { %v1436_v24 = vmul.f32 %v1319_v44, %v9398_v21  ;;  %8470 = vpow2.f32 %v849_v27  ;;  %v1511_v46 = vunpack.c.l.b16 %v1447_v6  ;;  %v1467_v17 = vpack.c.bf16 %v1435_v59, %v1435_v59  ;;  %v8675_v59 = vld [vmem:[%s8933_s15 + $0x48] sm:$0xff] }
  0xe2   : > { %8472 = vpow2.f32 %v887_v25  ;;  %vm1356_vm7 = vweird.f32 %v927_v3  ;;  %v1362_v21 = vand.u32 2147483648, %v927_v3  ;;  %v1360_v26 = vand.u32 2147483647, %v927_v3 }
  0xe3   : > { %v1468_v20 = vpack.c.bf16 %v1436_v24, %v1436_v24  ;;  %vm1371_vm9 = vweird.f32 %v928_v4  ;;  %v1377_v34 = vand.u32 2147483648, %v928_v4  ;;  %v1375_v29 = vand.u32 2147483647, %v928_v4 }
  0xe4   : > { %v8465_v47 = vpop.eup %8464  ;;  %v1512_v15 = vunpack.c.l.b16 %v1448_v48  ;;  %v889_v45 = vmul.f32 1.442695, %v830_v19  ;;  %v1363_v38 = vor.u32 1.1754944e-38, %v1362_v21  ;;  %vm1361_vm12 = vcmp.eq.f32.partialorder %v1360_v26, 8.507059e+37 }
  0xe5   : > { %v8467_v58 = vpop.eup %8466  ;;  %v1352_v56 = vmul.f32 %v8465_v47, %v927_v3  ;;  %vm1357_vm8 = vweird.f32 %v8465_v47  ;;  %v1378_v18 = vor.u32 1.1754944e-38, %v1377_v34  ;;  %v1531_v55 = vunpack.c.l.b16 %v1467_v17 }
  0xe6   : > { %v8469_v28 = vpop.eup %8468  ;;  %v1367_v30 = vmul.f32 %v8467_v58, %v928_v4  ;;  %vm1372_vm10 = vweird.f32 %v8467_v58  ;;  %vm9559_vm11 = vmor %vm1356_vm7, %vm1357_vm8  ;;  %v1532_v54 = vunpack.c.l.b16 %v1468_v20  ;;  %vm1376_vm14 = vcmp.eq.f32.partialorder %v1375_v29, 8.507059e+37 }
  0xe7   : > { %1653 = vmatmul.bf16.gmra.mxu0 %v14155_v12  ;;  %v8471_v13 = vpop.eup %8470  ;;  %v1353_v33 = vsub.f32 1.0, %v1352_v56  ;;  %v9553_v5 = vadd.f32 1.0, %v8469_v28  ;;  %vm1373_vm13 = vmor %vm1371_vm9, %vm1372_vm10  ;;  %v9569_v9 = vpack.c.b16 %v1512_v15, %v1511_v46  ;;  %v710_v44 = vsub.f32 %v8674_v35, %v9124_v52 }
  0xe8   : > { %v1368_v0 = vsub.f32 1.0, %v1367_v30  ;;  %v9555_v40 = vadd.f32 1.0, %v8471_v13  ;;  %v8473_v50 = vpop.eup %8472  ;;  %v9579_v4 = vpack.c.b16 %v1532_v54, %v1531_v55  ;;  %v711_v24 = vsub.f32 %v8675_v59, %v9124_v52 }
  0xe9   : > { %v1354_v57 = vmul.f32 %v8465_v47, %v1353_v33  ;;  %8474 = vrcp.f32 %v9553_v5  ;;  %v9573_v16 = vadd.f32 1.0, %v8473_v50  ;;  %vm1026_vm15 = vweird.f32 %v9553_v5  ;;  %v9606_v33 = vpop.f32.mrf.mxu0 }
  0xea   : > { %v1369_v63 = vmul.f32 %v8467_v58, %v1368_v0  ;;  %8476 = vrcp.f32 %v9555_v40  ;;  %v1030_v41 = vand.u32 2147483647, %v9553_v5  ;;  %v1032_v25 = vand.u32 2147483648, %v9553_v5 }
  0xeb   : > { %1733 = vmatmul.bf16.gmra.mxu1 %v14155_v12  ;;  %v1355_v42 = vadd.f32 %v8465_v47, %v1354_v57  ;;  %8478 = vpow2.f32 %v889_v45  ;;  %vm1041_vm1 = vweird.f32 %v9555_v40  ;;  %v744_v17 = vmul.f32 %v9139_v22, %v710_v44  ;;  %v9715_v44 = vld [vmem:[%s14132_s3] ss:$0 sm:$0xff] }
  0xec   : > { %v1370_v60 = vadd.f32 %v8467_v58, %v1369_v63  ;;  %8480 = vrcp.f32 %v9573_v16  ;;  %v745_v28 = vmul.f32 %v9139_v22, %v711_v24  ;;  %v1045_v13 = vand.u32 2147483647, %v9555_v40 }
  0xed   : > { %v1359_v7 = vsel %vm9559_vm11, %v8465_v47, %v1355_v42  ;;  %v9609_v26 = vadd.f32 %v9144_v23, %v744_v17  ;;  %v1047_v29 = vand.u32 2147483648, %v9555_v40  ;;  %vm1326_vm5 = vweird.f32 %v9573_v16 }
  0xee   : > { %v1364_v61 = vsel %vm1361_vm12, %v1363_v38, %v1359_v7  ;;  %v1374_v3 = vsel %vm1373_vm13, %v8467_v58, %v1370_v60  ;;  %vm9638_vm8 = vcmp.eq.f32.partialorder %v1030_v41, 8.507059e+37  ;;  %v1330_v42 = vand.u32 2147483647, %v9573_v16 }
  0xef   : > { %v1379_v53 = vsel %vm1376_vm14, %v1378_v18, %v1374_v3  ;;  %v1439_v11 = vmul.f32 %v1364_v61, %v9445_v2  ;;  %v9577_v31 = vpop.eup %8474  ;;  %v1332_v18 = vand.u32 2147483648, %v9573_v16  ;;  %v811_v55 = vsub.f32 0.0, %v9609_v26 }
  0xf0   : > { %v1440_v27 = vmul.f32 %v1379_v53, %v9448_v49  ;;  %v9585_v36 = vpop.eup %8476  ;;  %v1022_v2 = vmul.f32 %v9577_v31, %v9553_v5  ;;  %vm1027_vm2 = vweird.f32 %v9577_v31  ;;  %v9636_v5 = vadd.f32 %v9144_v23, %v745_v28 }
  0xf1   : > { %v1471_v6 = vpack.c.bf16 %v1439_v11, %v1439_v11  ;;  %v1037_v47 = vmul.f32 %v9585_v36, %v9555_v40  ;;  %v8479_v48 = vpop.eup %8478  ;;  %vm1042_vm3 = vweird.f32 %v9585_v36  ;;  %vm9621_vm4 = vmor %vm1026_vm15, %vm1027_vm2  ;;  %v1033_v40 = vor.u32 1.1754944e-38, %v1032_v25 }
  0xf2   : > { %v1472_v49 = vpack.c.bf16 %v1440_v27, %v1440_v27  ;;  %v1023_v58 = vsub.f32 1.0, %v1022_v2  ;;  %v926_v19 = vadd.f32 1.0, %v8479_v48  ;;  %v8481_v21 = vpop.eup %8480  ;;  %vm9631_vm6 = vmor %vm1041_vm1, %vm1042_vm3  ;;  %vm9645_vm9 = vcmp.eq.f32.partialorder %v1045_v13, 8.507059e+37 }
  0xf3   : > { %v1535_v46 = vunpack.c.l.b16 %v1471_v6  ;;  %v1038_v56 = vsub.f32 1.0, %v1037_v47  ;;  %v1322_v15 = vmul.f32 %v8481_v21, %v9573_v16  ;;  %vm1327_vm7 = vweird.f32 %v8481_v21  ;;  %v1638_v6 = vpop.f32.mrf.mxu0 }
  0xf4   : > { %v1536_v20 = vunpack.c.l.b16 %v1472_v49  ;;  %v1024_v30 = vmul.f32 %v9577_v31, %v1023_v58  ;;  %8482 = vrcp.f32 %v926_v19  ;;  %v1048_v60 = vor.u32 1.1754944e-38, %v1047_v29  ;;  %vm9657_vm10 = vmor %vm1326_vm5, %vm1327_vm7 }
  0xf5   : > { %v1039_v0 = vmul.f32 %v9585_v36, %v1038_v56  ;;  %v1323_v38 = vsub.f32 1.0, %v1322_v15  ;;  %v812_v53 = vsub.f32 0.0, %v9636_v5  ;;  %v851_v11 = vmul.f32 1.442695, %v811_v55  ;;  %v8677_v55 = vld [vmem:[%s8933_s15 + $0x58] sm:$0xff] }
  0xf6   : > { %v9611_v34 = vpack.c.b16 %v1536_v20, %v1535_v46  ;;  %v1025_v57 = vadd.f32 %v9577_v31, %v1024_v30  ;;  %vm9662_vm11 = vcmp.eq.f32.partialorder %v1330_v42, 8.507059e+37  ;;  %v1347_v24 = vand.u32 2147483648, %v926_v19  ;;  %v8676_v42 = vld [vmem:[%s8933_s15 + $0x50] sm:$0xff]  ;;  %v8293_v20 = vld [vmem:[%s14133_s4 + $0x28] sm:$0xff] }
  0xf7   : > { %7452 = vmatmul.msk.bf16.gmra.mxu0 %vm14262_vm0, %v9569_v9  ;;  %v1040_v50 = vadd.f32 %v9585_v36, %v1039_v0  ;;  %v1324_v7 = vmul.f32 %v8481_v21, %v1323_v38  ;;  %8484 = vpow2.f32 %v851_v11  ;;  %v853_v2 = vmul.f32 1.442695, %v812_v53  ;;  %v8295_v0 = vld [vmem:[%s14133_s4 + $0x38] sm:$0xff]  ;;  %2319 = vmatpush.bf16.msra.mxu1 %v8293_v20 }
  0xf8   : > { %7464 = vmatmul.msk.bf16.vlgmr.msra.gmra.mxu3 %vm14262_vm0, %v9611_v34  ;;  %v1029_v23 = vsel %vm9621_vm4, %v9577_v31, %v1025_v57  ;;  %v1333_v31 = vor.u32 1.1754944e-38, %v1332_v18  ;;  %vm1341_vm12 = vweird.f32 %v926_v19  ;;  %v1345_v25 = vand.u32 2147483647, %v926_v19  ;;  %v8294_v57 = vld [vmem:[%s14133_s4 + $0x30] sm:$0xff]  ;;  %8357 = vmatpush.bf16.msra.mxu2 %v8293_v20 }
  0xf9   : > { %v1044_v61 = vsel %vm9631_vm6, %v9585_v36, %v1040_v50  ;;  %v1325_v27 = vadd.f32 %v8481_v21, %v1324_v7  ;;  %v1034_v16 = vsel %vm9638_vm8, %v1033_v40, %v1029_v23  ;;  %8486 = vpow2.f32 %v853_v2  ;;  %2517 = vmatpush.bf16.msrb.mxu3 %v8295_v0 }
  0xfa   : > { %v8483_v35 = vpop.eup %8482  ;;  %v1049_v36 = vsel %vm9645_vm9, %v1048_v60, %v1044_v61  ;;  %v1417_v47 = vmul.f32 %v1034_v16, %v9501_v39  ;;  %v1348_v56 = vor.u32 1.1754944e-38, %v1347_v24  ;;  %vm1346_vm15 = vcmp.eq.f32.partialorder %v1345_v25, 8.507059e+37 }
  0xfb   : > { %7462 = vmatmul.msk.bf16.gmra.mxu1 %vm14262_vm0, %v9579_v4  ;;  %v1329_v41 = vsel %vm9657_vm10, %v8481_v21, %v1325_v27  ;;  %v1337_v59 = vmul.f32 %v8483_v35, %v926_v19  ;;  %vm1342_vm13 = vweird.f32 %v8483_v35  ;;  %v1418_v48 = vmul.f32 %v1049_v36, %v9506_v43  ;;  %v1639_v13 = vpop.f32.mrf.mxu0 }
  0xfc   : > { %v1334_v46 = vsel %vm9662_vm11, %v1333_v31, %v1329_v41  ;;  %vm9677_vm14 = vmor %vm1341_vm12, %vm1342_vm13  ;;  %v1449_v39 = vpack.c.bf16 %v1417_v47, %v1417_v47  ;;  %v712_v18 = vsub.f32 %v8676_v42, %v9124_v52  ;;  %v713_v40 = vsub.f32 %v8677_v55, %v9124_v52 }
  0xfd   : > { %v1338_v49 = vsub.f32 1.0, %v1337_v59  ;;  %v8485_v17 = vpop.eup %8484  ;;  %v1437_v19 = vmul.f32 %v1334_v46, %v9534_v1  ;;  %v1450_v43 = vpack.c.bf16 %v1418_v48, %v1418_v48  ;;  %2518 = vmatpush.bf16.msrb.mxu3 %v8294_v57  ;;  %v9730_v59 = vrot.slane %v14155_v12, 7 }
  0xfe   : > { %v9682_v21 = vadd.f32 1.0, %v8485_v17  ;;  %v1513_v32 = vunpack.c.l.b16 %v1449_v39  ;;  %v746_v23 = vmul.f32 %v9139_v22, %v712_v18  ;;  %v747_v53 = vmul.f32 %v9139_v22, %v713_v40 }
  0xff   : > { %v1339_v58 = vmul.f32 %v8483_v35, %v1338_v49  ;;  %v8487_v30 = vpop.eup %8486  ;;  %v1469_v50 = vpack.c.bf16 %v1437_v19, %v1437_v19  ;;  %v1514_v38 = vunpack.c.l.b16 %v1450_v43  ;;  %14398 = vst [vmem:[#allocation7_spill] sm:$0xff] %v9730_v59  ;;  %vm14264_vm1 = vsmask.f32 256 }
 0x100   : > { %v9690_v15 = vadd.f32 1.0, %v8487_v30  ;;  %8488 = vrcp.f32 %v9682_v21  ;;  %v9718_v31 = vadd.f32 %v9715_v44, %v746_v23  ;;  %v9722_v16 = vadd.f32 %v9715_v44, %v747_v53  ;;  %v8679_v53 = vld [vmem:[%s8933_s15 + $0x60] sm:$0xff] }
 0x101   : > { %v1340_v28 = vadd.f32 %v8483_v35, %v1339_v58  ;;  %v1533_v60 = vunpack.c.l.b16 %v1469_v50  ;;  %v9705_v61 = vpack.c.b16 %v1514_v38, %v1513_v32  ;;  %vm1056_vm2 = vweird.f32 %v9682_v21 }
 0x102   : > { %8490 = vrcp.f32 %v9690_v15  ;;  %v813_v41 = vsub.f32 0.0, %v9718_v31  ;;  %v814_v25 = vsub.f32 0.0, %v9722_v16  ;;  %vm1071_vm4 = vweird.f32 %v9690_v15 }
 0x103   : > { %v1344_v29 = vsel %vm9677_vm14, %v8483_v35, %v1340_v28  ;;  %v14154_v35 = vshll.u32 %v9296_v8, 16  ;;  %v1077_v28 = vand.u32 2147483648, %v9690_v15  ;;  %v1060_v39 = vand.u32 2147483647, %v9682_v21 }
 0x104   : > { %v1349_v1 = vsel %vm1346_vm15, %v1348_v56, %v1344_v29  ;;  %v855_v47 = vmul.f32 1.442695, %v813_v41  ;;  %v857_v58 = vmul.f32 1.442695, %v814_v25  ;;  %v1062_v56 = vand.u32 2147483648, %v9682_v21 }
 0x105   : > { %v1438_v45 = vmul.f32 %v1349_v1, %v9549_v51  ;;  %v14153_v51 = vshrl.u32 %v9296_v8, 16  ;;  %v1075_v13 = vand.u32 2147483647, %v9690_v15  ;;  %v1078_v1 = vor.u32 1.1754944e-38, %v1077_v28 }
 0x106   : > { %v8489_v54 = vpop.eup %8488  ;;  %8492 = vpow2.f32 %v855_v47  ;;  %v1063_v29 = vor.u32 1.1754944e-38, %v1062_v56  ;;  %vm1061_vm8 = vcmp.eq.f32.partialorder %v1060_v39, 8.507059e+37 }
 0x107   : > { %1661 = vmatmul.bf16.gmra.mxu0 %v14155_v12  ;;  %v1470_v63 = vpack.c.bf16 %v1438_v45, %v1438_v45  ;;  %v1052_v3 = vmul.f32 %v8489_v54, %v9682_v21  ;;  %v1771_v27 = vrot.slane %v14153_v51, 7  ;;  %vm1057_vm3 = vweird.f32 %v8489_v54 }
 0x108   : > { %1757 = vmatmul.bf16.gmra.mxu3 %v14155_v12  ;;  %v8491_v11 = vpop.eup %8490  ;;  %8494 = vpow2.f32 %v857_v58  ;;  %vm9748_vm6 = vmor %vm1056_vm2, %vm1057_vm3  ;;  %vm1076_vm9 = vcmp.eq.f32.partialorder %v1075_v13, 8.507059e+37 }
 0x109   : > { %v1534_v7 = vunpack.c.l.b16 %v1470_v63  ;;  %v1053_v6 = vsub.f32 1.0, %v1052_v3  ;;  %v1067_v2 = vmul.f32 %v8491_v11, %v9690_v15  ;;  %v1774_v24 = vor.u32 %v14154_v35, %v1771_v27 }
 0x10a   : > { %vm1072_vm5 = vweird.f32 %v8491_v11  ;;  %v9770_v40 = vsel %vm14264_vm1, %v1771_v27, %v9730_v59  ;;  %v14149_v3 = vshrl.u32 %v9425_v10, 16 }
 0x10b   : > { %1741 = vmatmul.bf16.gmra.mxu1 %v14155_v12  ;;  %v9724_v36 = vpack.c.b16 %v1534_v7, %v1533_v60  ;;  %v1068_v49 = vsub.f32 1.0, %v1067_v2  ;;  %v1054_v48 = vmul.f32 %v8489_v54, %v1053_v6  ;;  %v9740_v17 = vsel %vm14264_vm1, %v9730_v59, %v1774_v24  ;;  %vm1073_vm7 = vmor %vm1071_vm4, %vm1072_vm5  ;;  %v8680_v6 = vld [vmem:[%s8933_s15 + $0x68] sm:$0xff] }
 0x10c   : > { %v8493_v0 = vpop.eup %8492  ;;  %v715_v27 = vsub.f32 %v8680_v6, %v9124_v52  ;;  %v1779_v24 = vrot.slane %v14149_v3, 7 }
 0x10d   : > { %v1069_v46 = vmul.f32 %v8491_v11, %v1068_v49  ;;  %v1055_v19 = vadd.f32 %v8489_v54, %v1054_v48  ;;  %v9758_v21 = vadd.f32 1.0, %v8493_v0  ;;  %v14150_v49 = vshll.u32 %v9425_v10, 16 }
 0x10e   : > { %v8495_v57 = vpop.eup %8494 }
 0x10f   : > { %v1070_v43 = vadd.f32 %v8491_v11, %v1069_v46  ;;  %v1059_v45 = vsel %vm9748_vm6, %v8489_v54, %v1055_v19  ;;  %v9760_v38 = vadd.f32 1.0, %v8495_v57  ;;  %8496 = vrcp.f32 %v9758_v21 }
 0x110   : > { %v1064_v32 = vsel %vm1061_vm8, %v1063_v29, %v1059_v45  ;;  %v749_v46 = vmul.f32 %v9139_v22, %v715_v27  ;;  %v1782_v58 = vor.u32 %v14150_v49, %v1779_v24  ;;  %vm1086_vm10 = vweird.f32 %v9758_v21 }
 0x111   : > { %v1074_v50 = vsel %vm1073_vm7, %v8491_v11, %v1070_v43  ;;  %v1419_v63 = vmul.f32 %v1064_v32, %v9609_v26  ;;  %8498 = vrcp.f32 %v9760_v38  ;;  %v714_v11 = vsub.f32 %v8679_v53, %v9124_v52 }
 0x112   : > { %v1079_v15 = vsel %vm1076_vm9, %v1078_v1, %v1074_v50  ;;  %v9798_v56 = vadd.f32 %v9715_v44, %v749_v46  ;;  %vm1101_vm12 = vweird.f32 %v9760_v38  ;;  %v9810_v13 = vsel %vm14264_vm1, %v9730_v59, %v1782_v58 }
 0x113   : > { %v1420_v42 = vmul.f32 %v1079_v15, %v9636_v5  ;;  %v1451_v18 = vpack.c.bf16 %v1419_v63, %v1419_v63  ;;  %v748_v48 = vmul.f32 %v9139_v22, %v714_v11  ;;  %14403 = vst [vmem:[#allocation10_spill] sm:$0xff] %v9810_v13  ;;  %v1090_v57 = vand.u32 2147483647, %v9758_v21 }
 0x114   : > { %v816_v43 = vsub.f32 0.0, %v9798_v56  ;;  %v1092_v45 = vand.u32 2147483648, %v9758_v21  ;;  %v1107_v50 = vand.u32 2147483648, %v9760_v38  ;;  %v9843_v46 = vsel %vm14264_vm1, %v1779_v24, %v9730_v59 }
 0x115   : > { %v1452_v55 = vpack.c.bf16 %v1420_v42, %v1420_v42  ;;  %v8497_v54 = vpop.eup %8496  ;;  %v1515_v26 = vunpack.c.l.b16 %v1451_v18  ;;  %v9795_v20 = vadd.f32 %v9715_v44, %v748_v48  ;;  %v1105_v42 = vand.u32 2147483647, %v9760_v38  ;;  %14408 = vst [vmem:[#allocation13_spill] sm:$0xff] %v9843_v46 }
 0x116   : > { %v1082_v7 = vmul.f32 %v8497_v54, %v9758_v21  ;;  %vm1087_vm11 = vweird.f32 %v8497_v54  ;;  %v861_v29 = vmul.f32 1.442695, %v816_v43  ;;  %v1093_v21 = vor.u32 1.1754944e-38, %v1092_v45  ;;  %v8682_v45 = vld [vmem:[%s8933_s15 + $0x78] sm:$0xff] }
 0x117   : > { %7453 = vmatmul.msk.bf16.gmra.mxu0 %vm14262_vm0, %v9705_v61  ;;  %v8499_v60 = vpop.eup %8498  ;;  %v1516_v5 = vunpack.c.l.b16 %v1452_v55  ;;  %v815_v39 = vsub.f32 0.0, %v9795_v20  ;;  %vm9817_vm14 = vmor %vm1086_vm10, %vm1087_vm11  ;;  %v1108_v55 = vor.u32 1.1754944e-38, %v1107_v50  ;;  %vm1091_vm2 = vcmp.eq.f32.partialorder %v1090_v57, 8.507059e+37 }
 0x118   : > { %7561 = vmatmul.msk.bf16.vlgmr.msrb.gmra.mxu3 %vm14262_vm0, %v9740_v17  ;;  %v1097_v23 = vmul.f32 %v8499_v60, %v9760_v38  ;;  %v1083_v25 = vsub.f32 1.0, %v1082_v7  ;;  %vm1102_vm13 = vweird.f32 %v8499_v60  ;;  %vm1106_vm3 = vcmp.eq.f32.partialorder %v1105_v42, 8.507059e+37 }
 0x119   : > { %v9781_v2 = vpack.c.b16 %v1516_v5, %v1515_v26  ;;  %v859_v0 = vmul.f32 1.442695, %v815_v39  ;;  %vm1103_vm15 = vmor %vm1101_vm12, %vm1102_vm13  ;;  %v14147_v24 = vshrl.u32 %v9569_v9, 16  ;;  %v717_v50 = vsub.f32 %v8682_v45, %v9124_v52 }
 0x11a   : > { %v1098_v47 = vsub.f32 1.0, %v1097_v23  ;;  %v1084_v19 = vmul.f32 %v8497_v54, %v1083_v25  ;;  %v14148_v42 = vshll.u32 %v9569_v9, 16 }
 0x11b   : > { %7463 = vmatmul.msk.bf16.gmra.mxu1 %vm14262_vm0, %v9724_v36  ;;  %14401 = vst [vmem:[#allocation8_spill] sm:$0xff] %v9781_v2  ;;  %8500 = vpow2.f32 %v859_v0 }
 0x11c   : > { %v1099_v30 = vmul.f32 %v8499_v60, %v1098_v47  ;;  %v1085_v32 = vadd.f32 %v8497_v54, %v1084_v19  ;;  %8502 = vpow2.f32 %v861_v29  ;;  %v8681_v29 = vld [vmem:[%s8933_s15 + $0x70] sm:$0xff] }
 0x11d   : > { %v716_v57 = vsub.f32 %v8681_v29, %v9124_v52 }
 0x11e   : > { %v1100_v63 = vadd.f32 %v8499_v60, %v1099_v30  ;;  %v1089_v26 = vsel %vm9817_vm14, %v8497_v54, %v1085_v32 }
 0x11f   : > { %v1094_v11 = vsel %vm1091_vm2, %v1093_v21, %v1089_v26  ;;  %v750_v21 = vmul.f32 %v9139_v22, %v716_v57 }
 0x120   : > { %v1104_v5 = vsel %vm1103_vm15, %v8499_v60, %v1100_v63  ;;  %v1421_v25 = vmul.f32 %v1094_v11, %v9718_v31  ;;  %v1787_v63 = vrot.slane %v14147_v24, 7 }
 0x121   : > { %v8501_v7 = vpop.eup %8500  ;;  %v1109_v6 = vsel %vm1106_vm3, %v1108_v55, %v1104_v5  ;;  %v751_v5 = vmul.f32 %v9139_v22, %v717_v50 }
 0x122   : > { %v8503_v23 = vpop.eup %8502  ;;  %v9830_v27 = vadd.f32 1.0, %v8501_v7  ;;  %v1422_v47 = vmul.f32 %v1109_v6, %v9722_v16  ;;  %v1453_v60 = vpack.c.bf16 %v1421_v25, %v1421_v25  ;;  %v9870_v7 = vadd.f32 %v9715_v44, %v750_v21 }
 0x123   : > { %v9832_v38 = vadd.f32 1.0, %v8503_v23  ;;  %v1790_v23 = vor.u32 %v14148_v42, %v1787_v63 }
 0x124   : > { %8504 = vrcp.f32 %v9830_v27  ;;  %v1454_v48 = vpack.c.bf16 %v1422_v47, %v1422_v47  ;;  %v1517_v19 = vunpack.c.l.b16 %v1453_v60  ;;  %v817_v6 = vsub.f32 0.0, %v9870_v7 }
 0x125   : > { %8506 = vrcp.f32 %v9832_v38  ;;  %vm1116_vm4 = vweird.f32 %v9830_v27  ;;  %vm1131_vm6 = vweird.f32 %v9832_v38  ;;  %v1135_v57 = vand.u32 2147483647, %v9832_v38 }
 0x126   : > { %v1518_v30 = vunpack.c.l.b16 %v1454_v48  ;;  %v863_v60 = vmul.f32 1.442695, %v817_v6  ;;  %v9891_v48 = vsel %vm14264_vm1, %v9730_v59, %v1790_v23 }
 0x127   : > { %1669 = vmatmul.bf16.gmra.mxu0 %v14155_v12  ;;  %14411 = vst [vmem:[#allocation16_spill] sm:$0xff] %v9891_v48  ;;  %vm1136_vm11 = vcmp.eq.f32.partialorder %v1135_v57, 8.507059e+37  ;;  %v14145_v57 = vshrl.u32 %v9705_v61, 16 }
 0x128   : > { %7562 = vmatmul.msk.bf16.gmra.mxu3 %vm14262_vm0, %v9770_v40  ;;  %v9860_v32 = vpack.c.b16 %v1518_v30, %v1517_v19  ;;  %v1120_v30 = vand.u32 2147483647, %v9830_v27  ;;  %8508 = vpow2.f32 %v863_v60 }
 0x12a   : > { %v9845_v31 = vpop.eup %8504  ;;  %14409 = vst [vmem:[#allocation14_spill] sm:$0xff] %v9860_v32  ;;  %vm1121_vm10 = vcmp.eq.f32.partialorder %v1120_v30, 8.507059e+37  ;;  %v9928_v30 = vsel %vm14264_vm1, %v1787_v63, %v9730_v59 }
 0x12b   : > { %1749 = vmatmul.bf16.gmra.mxu1 %v14155_v12  ;;  %v9847_v16 = vpop.eup %8506  ;;  %v1112_v43 = vmul.f32 %v9845_v31, %v9830_v27  ;;  %vm1117_vm5 = vweird.f32 %v9845_v31  ;;  %14416 = vst [vmem:[#allocation19_spill] sm:$0xff] %v9928_v30 }
 0x12c   : > { %v1127_v0 = vmul.f32 %v9847_v16, %v9832_v38  ;;  %vm1132_vm7 = vweird.f32 %v9847_v16  ;;  %vm9901_vm8 = vmor %vm1116_vm4, %vm1117_vm5 }
 0x12d   : > { %v1113_v55 = vsub.f32 1.0, %v1112_v43  ;;  %v1137_v43 = vand.u32 2147483648, %v9832_v38  ;;  %vm1133_vm9 = vmor %vm1131_vm6, %vm1132_vm7 }
 0x12e   : > { %v1128_v26 = vsub.f32 1.0, %v1127_v0 }
 0x12f   : > { %v1114_v25 = vmul.f32 %v9845_v31, %v1113_v55  ;;  %v1138_v50 = vor.u32 1.1754944e-38, %v1137_v43 }
 0x130   : > { %v1129_v47 = vmul.f32 %v9847_v16, %v1128_v26  ;;  %v8509_v26 = vpop.eup %8508 }
 0x131   : > { %v9915_v38 = vadd.f32 1.0, %v8509_v26 }
 0x132   : > { %v1130_v29 = vadd.f32 %v9847_v16, %v1129_v47 }
 0x133   : > { %vm1146_vm12 = vweird.f32 %v9915_v38 }
 0x134   : > { %v9783_v41 = vpop.f32.mrf.mxu0  ;;  %v1134_v55 = vsel %vm1133_vm9, %v9847_v16, %v1130_v29 }
 0x135   : > { %14402 = vst [vmem:[#allocation9_spill] sm:$0xff] %v9783_v41 }
 0x137   : > { %7454 = vmatmul.msk.bf16.gmra.mxu0 %vm14262_vm0, %v9781_v2 }
 0x138   : > { %v9800_v28 = vpop.f32.mrf.mxu1  ;;  %7563 = vmatmul.msk.bf16.gmra.mxu3 %vm14262_vm0, %v9810_v13 }
 0x13b   : > { %7473 = vmatmul.msk.bf16.vlgmr.msrb.gmra.mxu1 %vm14262_vm0, %v9730_v59 }
 0x13c   : > { %v9812_v1 = vpop.f32.mrf.mxu0 }
 0x13d   : > { %14404 = vst [vmem:[#allocation11_spill] sm:$0xff] %v9812_v1 }
 0x140   : > { %v9826_v18 = vpop.f32.mrf.mxu1 }
 0x141   : > { %14407 = vst [vmem:[#allocation12_spill] sm:$0xff] %v9826_v18 }
 0x144   : > { %v1646_v53 = vpop.f32.mrf.mxu0 }
 0x145   : > { %v9877_v53 = vadd.f32 %v9715_v44, %v751_v5 }
 0x147   : > { %1677 = vmatmul.bf16.gmra.mxu0 %v14155_v12 }
 0x148   : > { %v1726_v54 = vpop.f32.mrf.mxu1  ;;  %7564 = vmatmul.msk.bf16.gmra.mxu3 %vm14262_vm0, %v9843_v46 }
 0x149   : > { %v818_v54 = vsub.f32 0.0, %v9877_v53 }
 0x14b   : > { %7474 = vmatmul.msk.bf16.gmra.mxu1 %vm14262_vm0, %v9730_v59 }
 0x14c   : > { %v1647_v58 = vpop.f32.mrf.mxu0 }
 0x14d   : > { %v865_v58 = vmul.f32 1.442695, %v818_v54 }
 0x14f   : > { %8510 = vpow2.f32 %v865_v58 }
 0x150   : > { %v1727_v39 = vpop.f32.mrf.mxu1  ;;  %8512 = vrcp.f32 %v9915_v38 }
 0x151   : > { %v1122_v39 = vand.u32 2147483648, %v9830_v27 }
 0x153   : > { %v1123_v27 = vor.u32 1.1754944e-38, %v1122_v39 }
 0x154   : > { %v9862_v15 = vpop.f32.mrf.mxu0 }
 0x155   : > { %14410 = vst [vmem:[#allocation15_spill] sm:$0xff] %v9862_v15  ;;  %v8511_v5 = vpop.eup %8510 }
 0x156   : > { %v9917_v47 = vadd.f32 1.0, %v8511_v5 }
 0x157   : > { %7455 = vmatmul.msk.bf16.gmra.mxu0 %vm14262_vm0, %v9860_v32 }
 0x158   : > { %v9879_v11 = vpop.f32.mrf.mxu1  ;;  %7565 = vmatmul.msk.bf16.gmra.mxu3 %vm14262_vm0, %v9891_v48  ;;  %8514 = vrcp.f32 %v9917_v47  ;;  %vm1161_vm14 = vweird.f32 %v9917_v47 }
 0x15b   : > { %7475 = vmatmul.msk.bf16.gmra.mxu1 %vm14262_vm0, %v9740_v17  ;;  %v1115_v17 = vadd.f32 %v9845_v31, %v1114_v25  ;;  %v1139_v25 = vsel %vm1136_vm11, %v1138_v50, %v1134_v55 }
 0x15c   : > { %v9895_v19 = vpop.f32.mrf.mxu0  ;;  %v1424_v60 = vmul.f32 %v1139_v25, %v9798_v56 }
 0x15d   : > { %14412 = vst [vmem:[#allocation17_spill] sm:$0xff] %v9895_v19  ;;  %v1119_v21 = vsel %vm9901_vm8, %v9845_v31, %v1115_v17 }
 0x15e   : > { %v1124_v6 = vsel %vm1121_vm10, %v1123_v27, %v1119_v21  ;;  %v1456_v58 = vpack.c.bf16 %v1424_v60, %v1424_v60  ;;  %v8683_v27 = vld [vmem:[%s8933_s15 + $0x80] sm:$0xff]  ;;  %v8684_v21 = vld [vmem:[%s8933_s15 + $0x88] sm:$0xff] }
 0x15f   : > { %v1423_v54 = vmul.f32 %v1124_v6, %v9795_v20  ;;  %v9930_v20 = vpop.eup %8512  ;;  %v718_v50 = vsub.f32 %v8683_v27, %v9124_v52  ;;  %v719_v55 = vsub.f32 %v8684_v21, %v9124_v52  ;;  %v14146_v6 = vshll.u32 %v9705_v61, 16 }
 0x160   : > { %v9909_v45 = vpop.f32.mrf.mxu1  ;;  %v9932_v56 = vpop.eup %8514  ;;  %v1520_v17 = vunpack.c.l.b16 %v1456_v58  ;;  %v1142_v29 = vmul.f32 %v9930_v20, %v9915_v38  ;;  %vm1147_vm13 = vweird.f32 %v9930_v20 }
 0x161   : > { %14415 = vst [vmem:[#allocation18_spill] sm:$0xff] %v9909_v45  ;;  %v1455_v16 = vpack.c.bf16 %v1423_v54, %v1423_v54  ;;  %v1157_v63 = vmul.f32 %v9932_v56, %v9917_v47  ;;  %v752_v25 = vmul.f32 %v9139_v22, %v718_v50  ;;  %vm1162_vm15 = vweird.f32 %v9932_v56  ;;  %vm9989_vm2 = vmor %vm1146_vm12, %vm1147_vm13 }
 0x162   : > { %v1143_v54 = vsub.f32 1.0, %v1142_v29  ;;  %vm1163_vm3 = vmor %vm1161_vm14, %vm1162_vm15 }
 0x163   : > { %v1519_v43 = vunpack.c.l.b16 %v1455_v16  ;;  %v1158_v60 = vsub.f32 1.0, %v1157_v63  ;;  %v9958_v16 = vadd.f32 %v9715_v44, %v752_v25  ;;  %v1152_v25 = vand.u32 2147483648, %v9915_v38 }
 0x164   : > { %v1654_v23 = vpop.f32.mrf.mxu0 }
 0x165   : > { %v9948_v26 = vpack.c.b16 %v1520_v17, %v1519_v43  ;;  %v1795_v23 = vrot.slane %v14145_v57, 7  ;;  %v819_v17 = vsub.f32 0.0, %v9958_v16 }
 0x167   : > { %1685 = vmatmul.bf16.gmra.mxu0 %v14155_v12  ;;  %14417 = vst [vmem:[#allocation20_spill] sm:$0xff] %v9948_v26  ;;  %v1798_v58 = vor.u32 %v14146_v6, %v1795_v23  ;;  %v867_v63 = vmul.f32 1.442695, %v819_v17  ;;  %v1165_v17 = vand.u32 2147483647, %v9917_v47 }
 0x168   : > { %v1734_v31 = vpop.f32.mrf.mxu1  ;;  %7566 = vmatmul.msk.bf16.gmra.mxu3 %vm14262_vm0, %v9928_v30 }
 0x169   : > { %v753_v31 = vmul.f32 %v9139_v22, %v719_v55  ;;  %v9979_v27 = vsel %vm14264_vm1, %v9730_v59, %v1798_v58  ;;  %v1150_v55 = vand.u32 2147483647, %v9915_v38  ;;  %8516 = vpow2.f32 %v867_v63 }
 0x16a   : > { %14419 = vst [vmem:[#allocation22_spill] sm:$0xff] %v9979_v27  ;;  %v1153_v38 = vor.u32 1.1754944e-38, %v1152_v25  ;;  %vm1166_vm5 = vcmp.eq.f32.partialorder %v1165_v17, 8.507059e+37 }
 0x16b   : > { %7476 = vmatmul.msk.bf16.gmra.mxu1 %vm14262_vm0, %v9770_v40  ;;  %v8296_v40 = vld [vmem:[%s14133_s4 + $0x40] sm:$0xff]  ;;  %vm1151_vm4 = vcmp.eq.f32.partialorder %v1150_v55, 8.507059e+37 }
 0x16c   : > { %v1655_v39 = vpop.f32.mrf.mxu0  ;;  %2706 = vmatpush.bf16.msrb.mxu0 %v8296_v40  ;;  %v1159_v40 = vmul.f32 %v9932_v56, %v1158_v60 }
 0x16d   : > { %v9965_v39 = vadd.f32 %v9715_v44, %v753_v31 }
 0x16e   : > { %v1160_v58 = vadd.f32 %v9932_v56, %v1159_v40 }
 0x16f   : > { %v820_v29 = vsub.f32 0.0, %v9965_v39 }
 0x170   : > { %v1735_v0 = vpop.f32.mrf.mxu1  ;;  %v1164_v63 = vsel %vm1163_vm3, %v9932_v56, %v1160_v58 }
 0x171   : > { %v1144_v0 = vmul.f32 %v9930_v20, %v1143_v54  ;;  %v869_v50 = vmul.f32 1.442695, %v820_v29  ;;  %v1167_v54 = vand.u32 2147483648, %v9917_v47  ;;  %v8517_v47 = vpop.eup %8516 }
 0x172   : > { %v10005_v6 = vadd.f32 1.0, %v8517_v47  ;;  %v8686_v47 = vld [vmem:[%s8933_s15 + $0x98] sm:$0xff] }
 0x173   : > { %v1145_v60 = vadd.f32 %v9930_v20, %v1144_v0  ;;  %8518 = vpow2.f32 %v869_v50  ;;  %v1168_v57 = vor.u32 1.1754944e-38, %v1167_v54  ;;  %v10020_v54 = vsel %vm14264_vm1, %v1795_v23, %v9730_v59 }
 0x174   : > { %v9950_v5 = vpop.f32.mrf.mxu0  ;;  %8520 = vrcp.f32 %v10005_v6  ;;  %14425 = vst [vmem:[#allocation26_spill] sm:$0xff] %v10020_v54  ;;  %v14151_v23 = vshrl.u32 %v9781_v2, 16  ;;  %vm1176_vm6 = vweird.f32 %v10005_v6 }
 0x175   : > { %14418 = vst [vmem:[#allocation21_spill] sm:$0xff] %v9950_v5  ;;  %v1149_v0 = vsel %vm9989_vm2, %v9930_v20, %v1145_v60  ;;  %v1169_v3 = vsel %vm1166_vm5, %v1168_v57, %v1164_v63 }
 0x176   : > { %v1154_v42 = vsel %vm1151_vm4, %v1153_v38, %v1149_v0  ;;  %v1426_v20 = vmul.f32 %v1169_v3, %v9877_v53  ;;  %v8685_v0 = vld [vmem:[%s8933_s15 + $0x90] sm:$0xff] }
 0x177   : > { %7456 = vmatmul.msk.bf16.gmra.mxu0 %vm14262_vm0, %v9948_v26  ;;  %v1425_v25 = vmul.f32 %v1154_v42, %v9870_v7  ;;  %v720_v63 = vsub.f32 %v8685_v0, %v9124_v52 }
 0x178   : > { %v9967_v43 = vpop.f32.mrf.mxu1  ;;  %7567 = vmatmul.msk.bf16.gmra.mxu3 %vm14262_vm0, %v9979_v27  ;;  %v1458_v57 = vpack.c.bf16 %v1426_v20, %v1426_v20 }
 0x179   : > { %v8519_v50 = vpop.eup %8518 }
 0x17a   : > { %v10007_v49 = vadd.f32 1.0, %v8519_v50  ;;  %v10022_v3 = vpop.eup %8520  ;;  %v1522_v60 = vunpack.c.l.b16 %v1458_v57  ;;  %v721_v50 = vsub.f32 %v8686_v47, %v9124_v52  ;;  %v754_v57 = vmul.f32 %v9139_v22, %v720_v63 }
 0x17b   : > { %7477 = vmatmul.msk.bf16.gmra.mxu1 %vm14262_vm0, %v9810_v13  ;;  %v10003_v40 = vpop.f32.mrf.mxu3  ;;  %v1172_v17 = vmul.f32 %v10022_v3, %v10005_v6  ;;  %vm1177_vm7 = vweird.f32 %v10022_v3 }
 0x17c   : > { %v9983_v21 = vpop.f32.mrf.mxu0  ;;  %8522 = vrcp.f32 %v10007_v49  ;;  %v10047_v0 = vadd.f32 %v9715_v44, %v754_v57  ;;  %vm1191_vm8 = vweird.f32 %v10007_v49  ;;  %vm10078_vm10 = vmor %vm1176_vm6, %vm1177_vm7  ;;  %v1195_v35 = vand.u32 2147483647, %v10007_v49 }
 0x17d   : > { %14420 = vst [vmem:[#allocation23_spill] sm:$0xff] %v9983_v21 }
 0x17e   : > { %v821_v63 = vsub.f32 0.0, %v10047_v0  ;;  %vm1196_vm13 = vcmp.eq.f32.partialorder %v1195_v35, 8.507059e+37 }
 0x180   : > { %v9997_v29 = vpop.f32.mrf.mxu1 }
 0x181   : > { %14423 = vst [vmem:[#allocation24_spill] sm:$0xff] %v9997_v29 }
 0x182   : > { %v10024_v7 = vpop.eup %8522 }
 0x183   : > { %v10014_v55 = vpop.f32.mrf.mxu3  ;;  %v1187_v38 = vmul.f32 %v10024_v7, %v10007_v49  ;;  %vm1192_vm9 = vweird.f32 %v10024_v7 }
 0x184   : > { %v1662_v24 = vpop.f32.mrf.mxu0  ;;  %14424 = vst [vmem:[#allocation25_spill] sm:$0xff] %v10014_v55  ;;  %vm1193_vm11 = vmor %vm1191_vm8, %vm1192_vm9  ;;  %vm2136_vm8 = vsmask.f32 7424 }
 0x185   : > { %v1457_v24 = vpack.c.bf16 %v1425_v25, %v1425_v25 }
 0x187   : > { %1693 = vmatmul.bf16.gmra.mxu0 %v14155_v12  ;;  %v1521_v53 = vunpack.c.l.b16 %v1457_v24  ;;  %v14152_v24 = vshll.u32 %v9781_v2, 16 }
 0x188   : > { %v1742_v56 = vpop.f32.mrf.mxu1  ;;  %7568 = vmatmul.msk.bf16.gmra.mxu3 %vm14262_vm0, %v10020_v54 }
 0x189   : > { %v10037_v25 = vpack.c.b16 %v1522_v60, %v1521_v53  ;;  %v1803_v56 = vrot.slane %v14151_v23, 7  ;;  %v871_v23 = vmul.f32 1.442695, %v821_v63  ;;  %v1197_v63 = vand.u32 2147483648, %v10007_v49 }
 0x18b   : > { %7478 = vmatmul.msk.bf16.gmra.mxu1 %vm14262_vm0, %v9843_v46  ;;  %v1758_v58 = vpop.f32.mrf.mxu3  ;;  %14426 = vst [vmem:[#allocation27_spill] sm:$0xff] %v10037_v25  ;;  %v1806_v53 = vor.u32 %v14152_v24, %v1803_v56  ;;  %8524 = vpow2.f32 %v871_v23  ;;  %v1198_v12 = vor.u32 1.1754944e-38, %v1197_v63 }
 0x18c   : > { %v1663_v42 = vpop.f32.mrf.mxu0  ;;  %v755_v58 = vmul.f32 %v9139_v22, %v721_v50 }
 0x18d   : > { %v1173_v42 = vsub.f32 1.0, %v1172_v17 }
 0x18e   : > { %v10054_v60 = vadd.f32 %v9715_v44, %v755_v58  ;;  %v10068_v44 = vsel %vm14264_vm1, %v9730_v59, %v1806_v53  ;;  %v1180_v58 = vand.u32 2147483647, %v10005_v6 }
 0x18f   : > { %14428 = vst [vmem:[#allocation29_spill] sm:$0xff] %v10068_v44 }
 0x190   : > { %v1743_v31 = vpop.f32.mrf.mxu1  ;;  %v822_v57 = vsub.f32 0.0, %v10054_v60  ;;  %vm1181_vm12 = vcmp.eq.f32.partialorder %v1180_v58, 8.507059e+37 }
 0x191   : > { %v1188_v31 = vsub.f32 1.0, %v1187_v38  ;;  %v1174_v38 = vmul.f32 %v10022_v3, %v1173_v42  ;;  %v8525_v49 = vpop.eup %8524 }
 0x192   : > { %v873_v42 = vmul.f32 1.442695, %v822_v57  ;;  %v917_v55 = vadd.f32 1.0, %v8525_v49 }
 0x193   : > { %v1759_v17 = vpop.f32.mrf.mxu3  ;;  %v1189_v50 = vmul.f32 %v10024_v7, %v1188_v31  ;;  %v1175_v24 = vadd.f32 %v10022_v3, %v1174_v38 }
 0x194   : > { %v10039_v20 = vpop.f32.mrf.mxu0  ;;  %v1182_v17 = vand.u32 2147483648, %v10005_v6  ;;  %8526 = vpow2.f32 %v873_v42  ;;  %vm1206_vm14 = vweird.f32 %v917_v55 }
 0x195   : > { %14427 = vst [vmem:[#allocation28_spill] sm:$0xff] %v10039_v20  ;;  %v1190_v53 = vadd.f32 %v10024_v7, %v1189_v50  ;;  %v1179_v23 = vsel %vm10078_vm10, %v10022_v3, %v1175_v24  ;;  %8528 = vrcp.f32 %v917_v55 }
 0x196   : > { %v1183_v6 = vor.u32 1.1754944e-38, %v1182_v17 }
 0x197   : > { %7457 = vmatmul.msk.bf16.gmra.mxu0 %vm14262_vm0, %v10037_v25  ;;  %v1194_v38 = vsel %vm1193_vm11, %v10024_v7, %v1190_v53 }
 0x198   : > { %v10056_v47 = vpop.f32.mrf.mxu1  ;;  %7569 = vmatmul.msk.bf16.gmra.mxu3 %vm14262_vm0, %v10068_v44  ;;  %v1184_v20 = vsel %vm1181_vm12, %v1183_v6, %v1179_v23  ;;  %v1199_v21 = vsel %vm1196_vm13, %v1198_v12, %v1194_v38  ;;  %v10103_v12 = vsel %vm14264_vm1, %v1803_v56, %v9730_v59  ;;  %v1809_v23 = vshrl.u32 %v9860_v32, 16 }
 0x199   : > { %v1427_v17 = vmul.f32 %v1184_v20, %v9958_v16  ;;  %v1428_v51 = vmul.f32 %v1199_v21, %v9965_v39  ;;  %14436 = vst [vmem:[#allocation34_spill] sm:$0xff] %v10103_v12 }
 0x19a   : > { %v8527_v42 = vpop.eup %8526  ;;  %v1811_v56 = vrot.slane %v1809_v23, 7 }
 0x19b   : > { %7479 = vmatmul.msk.bf16.gmra.mxu1 %vm14262_vm0, %v9891_v48  ;;  %v10092_v50 = vpop.f32.mrf.mxu3  ;;  %v918_v5 = vadd.f32 1.0, %v8527_v42  ;;  %v1459_v35 = vpack.c.bf16 %v1427_v17, %v1427_v17  ;;  %v1460_v24 = vpack.c.bf16 %v1428_v51, %v1428_v51  ;;  %v8529_v58 = vpop.eup %8528  ;;  %v1812_v42 = vshll.u32 %v9860_v32, 16 }
 0x19c   : > { %v10072_v31 = vpop.f32.mrf.mxu0  ;;  %14433 = vst [vmem:[#allocation32_spill] sm:$0xff] %v10092_v50  ;;  %v1202_v20 = vmul.f32 %v8529_v58, %v917_v55  ;;  %vm1207_vm15 = vweird.f32 %v8529_v58 }
 0x19d   : > { %14429 = vst [vmem:[#allocation30_spill] sm:$0xff] %v10072_v31  ;;  %8530 = vrcp.f32 %v918_v5  ;;  %v1523_v16 = vunpack.c.l.b16 %v1459_v35  ;;  %v1524_v39 = vunpack.c.l.b16 %v1460_v24  ;;  %vm1221_vm2 = vweird.f32 %v918_v5  ;;  %vm10125_vm4 = vmor %vm1206_vm14, %vm1207_vm15 }
 0x19e   : > { %v1203_v17 = vsub.f32 1.0, %v1202_v20 }
 0x19f   : > { %v10108_v38 = vpack.c.b16 %v1524_v39, %v1523_v16  ;;  %v1212_v39 = vand.u32 2147483648, %v917_v55 }
 0x1a0   : > { %v10086_v57 = vpop.f32.mrf.mxu1  ;;  %v1204_v24 = vmul.f32 %v8529_v58, %v1203_v17  ;;  %v1227_v17 = vand.u32 2147483648, %v918_v5 }
 0x1a1   : > { %14432 = vst [vmem:[#allocation31_spill] sm:$0xff] %v10086_v57  ;;  %v14434_v57 = vmov 0   ;;  %v1213_v50 = vor.u32 1.1754944e-38, %v1212_v39 }
 0x1a2   : > { %v10147_v39 = vrot.slane %v14434_v57, 1 }
 0x1a3   : > { %v10097_v7 = vpop.f32.mrf.mxu3  ;;  %v8531_v63 = vpop.eup %8530 }
 0x1a4   : > { %v1670_v31 = vpop.f32.mrf.mxu0  ;;  %14435 = vst [vmem:[#allocation33_spill] sm:$0xff] %v10097_v7  ;;  %v1217_v6 = vmul.f32 %v8531_v63, %v918_v5  ;;  %vm1222_vm3 = vweird.f32 %v8531_v63  ;;  %v1225_v7 = vand.u32 2147483647, %v918_v5  ;;  %v1228_v5 = vor.u32 1.1754944e-38, %v1227_v17 }
 0x1a5   : > { %vm10131_vm5 = vmor %vm1221_vm2, %vm1222_vm3  ;;  %14445 = vst [vmem:[#allocation39_spill] sm:$0xff] %v10147_v39 }
 0x1a6   : > { %v1218_v51 = vsub.f32 1.0, %v1217_v6  ;;  %v1210_v6 = vand.u32 2147483647, %v917_v55  ;;  %vm1226_vm7 = vcmp.eq.f32.partialorder %v1225_v7, 8.507059e+37 }
 0x1a7   : > { %1701 = vmatmul.bf16.gmra.mxu0 %v14434_v57 }
 0x1a8   : > { %v1750_v3 = vpop.f32.mrf.mxu1  ;;  %7570 = vmatmul.msk.bf16.gmra.mxu3 %vm14262_vm0, %v10103_v12  ;;  %vm1211_vm6 = vcmp.eq.f32.partialorder %v1210_v6, 8.507059e+37 }
 0x1a9   : > { %v1814_v3 = vor.u32 %v1812_v42, %v1811_v56 }
 0x1ab   : > { %7480 = vmatmul.msk.bf16.gmra.mxu1 %vm14262_vm0, %v9928_v30  ;;  %v2525_v53 = vpop.f32.mrf.mxu3  ;;  %v10121_v16 = vsel %vm14264_vm1, %v9730_v59, %v1814_v3 }
 0x1ac   : > { %v1671_v31 = vpop.f32.mrf.mxu0  ;;  %14438 = vst [vmem:[#allocation36_spill] sm:$0xff] %v10121_v16  ;;  %v1205_v53 = vadd.f32 %v8529_v58, %v1204_v24 }
 0x1ae   : > { %v1209_v55 = vsel %vm10125_vm4, %v8529_v58, %v1205_v53 }
 0x1af   : > { %v1214_v53 = vsel %vm1211_vm6, %v1213_v50, %v1209_v55  ;;  %v10164_v50 = vsel %vm14264_vm1, %v1811_v56, %v9730_v59 }
 0x1b0   : > { %v1751_v21 = vpop.f32.mrf.mxu1  ;;  %v1429_v6 = vmul.f32 %v1214_v53, %v10047_v0  ;;  %14448 = vst [vmem:[#allocation42_spill] sm:$0xff] %v10164_v50 }
 0x1b1   : > { %v1219_v21 = vmul.f32 %v8531_v63, %v1218_v51 }
 0x1b3   : > { %v2526_v31 = vpop.f32.mrf.mxu3 }
 0x1b4   : > { %v10110_v49 = vpop.f32.mrf.mxu0  ;;  %v1220_v31 = vadd.f32 %v8531_v63, %v1219_v21 }
 0x1b5   : > { %14437 = vst [vmem:[#allocation35_spill] sm:$0xff] %v10110_v49 }
 0x1b6   : > { %v1224_v24 = vsel %vm10131_vm5, %v8531_v63, %v1220_v31  ;;  %v1461_v31 = vpack.c.bf16 %v1429_v6, %v1429_v6 }
 0x1b7   : > { %7458 = vmatmul.msk.bf16.gmra.mxu0 %vm14262_vm0, %v10108_v38  ;;  %v1229_v63 = vsel %vm1226_vm7, %v1228_v5, %v1224_v24  ;;  %vm3788_vm7 = vcmask 523264  }
 0x1b8   : > { %v10115_v35 = vpop.f32.mrf.mxu1  ;;  %7571 = vmatmul.msk.bf16.gmra.mxu3 %vm14262_vm0, %v10121_v16  ;;  %v1430_v17 = vmul.f32 %v1229_v63, %v10054_v60  ;;  %v1525_v55 = vunpack.c.l.b16 %v1461_v31 }
 0x1bb   : > { %7481 = vmatmul.msk.bf16.gmra.mxu1 %vm14262_vm0, %v9979_v27  ;;  %v10141_v21 = vpop.f32.mrf.mxu3  ;;  %v2160_v27 = vrot.slane %v1812_v42, 1 }
 0x1bc   : > { %v10123_v20 = vpop.f32.mrf.mxu0  ;;  %14444 = vst [vmem:[#allocation38_spill] sm:$0xff] %v10141_v21  ;;  %v1825_v21 = vshrl.u32 %v10037_v25, 16 }
 0x1bd   : > { %14439 = vst [vmem:[#allocation37_spill] sm:$0xff] %v10123_v20  ;;  %v8292_v20 = vld [vmem:[%s14133_s4 + $0x20] sm:$0xff]  ;;  %v10151_v58 = vsel %vm2136_vm8, %v10147_v39, %v2160_v27  ;;  %v2162_v60 = vor.u32 %v2160_v27, %v1809_v23 }
 0x1be   : > { %8358 = vmatpush.bf16.msra.mxu2 %v8292_v20  ;;  %14446 = vst [vmem:[#allocation40_spill] sm:$0xff] %v10151_v58  ;;  %2320 = vmatpush.bf16.msra.mxu1 %v8292_v20  ;;  %v1462_v20 = vpack.c.bf16 %v1430_v17, %v1430_v17  ;;  %v1820_v17 = vshll.u32 %v9948_v26, 16 }
 0x1bf   : > { %v10173_v63 = vsel %vm2136_vm8, %v2162_v60, %v10147_v39 }
 0x1c0   : > { %v10135_v49 = vpop.f32.mrf.mxu1  ;;  %v1526_v0 = vunpack.c.l.b16 %v1462_v20  ;;  %14449 = vst [vmem:[#allocation43_spill] sm:$0xff] %v10173_v63 }
 0x1c1   : > { %7528 = vmatmul.msk.bf16.vlgmr.msra.gmra.mxu2 %vm14262_vm0, %v10151_v58 }
 0x1c2   : > { %v10169_v53 = vpack.c.b16 %v1526_v0, %v1525_v55  ;;  %v2164_v0 = vrot.slane %v1820_v17, 1 }
 0x1c3   : > { %v10158_v42 = vpop.f32.mrf.mxu3 }
 0x1c4   : > { %v1678_v7 = vpop.f32.mrf.mxu0  ;;  %14447 = vst [vmem:[#allocation41_spill] sm:$0xff] %v10158_v42  ;;  %v1841_v29 = vshrl.u32 %v10169_v53, 16 }
 0x1c5   : > { %v1817_v7 = vshrl.u32 %v9948_v26, 16 }
 0x1c7   : > { %1709 = vmatmul.bf16.gmra.mxu0 %v14434_v57  ;;  %v1819_v56 = vrot.slane %v1817_v7, 7 }
 0x1c8   : > { %v2008_v51 = vpop.f32.mrf.mxu1  ;;  %7572 = vmatmul.msk.bf16.gmra.mxu3 %vm14262_vm0, %v10164_v50 }
 0x1c9   : > { %v1822_v27 = vor.u32 %v1820_v17, %v1819_v56  ;;  %v10212_v17 = vsel %vm14264_vm1, %v1819_v56, %v9730_v59 }
 0x1ca   : > { %14456 = vst [vmem:[#allocation50_spill] sm:$0xff] %v10212_v17 }
 0x1cb   : > { %7482 = vmatmul.msk.bf16.gmra.mxu1 %vm14262_vm0, %v10020_v54  ;;  %v2533_v24 = vpop.f32.mrf.mxu3  ;;  %v10188_v31 = vsel %vm14264_vm1, %v9730_v59, %v1822_v27 }
 0x1cc   : > { %v1679_v3 = vpop.f32.mrf.mxu0  ;;  %14451 = vst [vmem:[#allocation45_spill] sm:$0xff] %v10188_v31 }
 0x1d0   : > { %v2009_v5 = vpop.f32.mrf.mxu1 }
 0x1d1   : > { %7529 = vmatmul.msk.bf16.gmra.mxu2 %vm14262_vm0, %v10173_v63  ;;  %v10200_v5 = vsel %vm2136_vm8, %v10147_v39, %v2164_v0  ;;  %v1828_v63 = vshll.u32 %v10037_v25, 16 }
 0x1d2   : > { %14454 = vst [vmem:[#allocation48_spill] sm:$0xff] %v10200_v5 }
 0x1d3   : > { %v2534_v51 = vpop.f32.mrf.mxu3 }
 0x1d4   : > { %v10175_v6 = vpop.f32.mrf.mxu0 }
 0x1d7   : > { %7459 = vmatmul.msk.bf16.gmra.mxu0 %vm14262_vm0, %v10169_v53 }
 0x1d8   : > { %v10182_v23 = vpop.f32.mrf.mxu1  ;;  %7573 = vmatmul.msk.bf16.gmra.mxu3 %vm14262_vm0, %v10188_v31 }
 0x1d9   : > { %14450 = vst [vmem:[#allocation44_spill] sm:$0xff] %v10182_v23 }
 0x1db   : > { %7483 = vmatmul.msk.bf16.gmra.mxu1 %vm14262_vm0, %v10068_v44  ;;  %v10196_v55 = vpop.f32.mrf.mxu3  ;;  %v1836_v44 = vshll.u32 %v10108_v38, 16 }
 0x1dc   : > { %v10190_v20 = vpop.f32.mrf.mxu0  ;;  %14453 = vst [vmem:[#allocation47_spill] sm:$0xff] %v10196_v55  ;;  %v2166_v55 = vor.u32 %v2164_v0, %v1817_v7 }
 0x1e0   : > { %v10194_v3 = vpop.f32.mrf.mxu1 }
 0x1e1   : > { %14452 = vst [vmem:[#allocation46_spill] sm:$0xff] %v10194_v3  ;;  %7530 = vmatmul.msk.bf16.gmra.mxu2 %vm14262_vm0, %v10200_v5  ;;  %v1827_v5 = vrot.slane %v1825_v21, 7 }
 0x1e3   : > { %v10206_v27 = vpop.f32.mrf.mxu3  ;;  %v1830_v56 = vor.u32 %v1828_v63, %v1827_v5 }
 0x1e4   : > { %v1686_v60 = vpop.f32.mrf.mxu0  ;;  %14455 = vst [vmem:[#allocation49_spill] sm:$0xff] %v10206_v27 }
 0x1e5   : > { %v10233_v7 = vsel %vm14264_vm1, %v9730_v59, %v1830_v56 }
 0x1e6   : > { %14459 = vst [vmem:[#allocation53_spill] sm:$0xff] %v10233_v7 }
 0x1e7   : > { %7605 = vmatmul.msk.bf16.vlgmr.msrb.gmra.mxu0 %vm14262_vm0, %v9296_v8 }
 0x1e8   : > { %v2016_v24 = vpop.f32.mrf.mxu1  ;;  %7574 = vmatmul.msk.bf16.gmra.mxu3 %vm14262_vm0, %v10212_v17 }
 0x1e9   : > { %v10219_v24 = vsel %vm2136_vm8, %v2166_v55, %v10147_v39 }
 0x1ea   : > { %14457 = vst [vmem:[#allocation51_spill] sm:$0xff] %v10219_v24 }
 0x1eb   : > { %7484 = vmatmul.msk.bf16.gmra.mxu1 %vm14262_vm0, %v10103_v12  ;;  %v2541_v42 = vpop.f32.mrf.mxu3 }
 0x1ec   : > { %v1687_v51 = vpop.f32.mrf.mxu0 }
 0x1f0   : > { %v2017_v60 = vpop.f32.mrf.mxu1 }
 0x1f1   : > { %7531 = vmatmul.msk.bf16.gmra.mxu2 %vm14262_vm0, %v10219_v24  ;;  %v2168_v24 = vrot.slane %v1828_v63, 1  ;;  %v10257_v63 = vsel %vm14264_vm1, %v1827_v5, %v9730_v59 }
 0x1f2   : > { %14464 = vst [vmem:[#allocation58_spill] sm:$0xff] %v10257_v63 }
 0x1f3   : > { %v2542_v42 = vpop.f32.mrf.mxu3  ;;  %v2170_v12 = vor.u32 %v2168_v24, %v1825_v21 }
 0x1f4   : > { %v10221_v27 = vpop.f32.mrf.mxu0  ;;  %v10245_v42 = vsel %vm2136_vm8, %v10147_v39, %v2168_v24 }
 0x1f5   : > { %14462 = vst [vmem:[#allocation56_spill] sm:$0xff] %v10245_v42 }
 0x1f7   : > { %2712 = vmatmul.bf16.gmra.mxu0 %v14434_v57 }
 0x1f8   : > { %v10227_v51 = vpop.f32.mrf.mxu1  ;;  %7575 = vmatmul.msk.bf16.gmra.mxu3 %vm14262_vm0, %v10233_v7 }
 0x1f9   : > { %14458 = vst [vmem:[#allocation52_spill] sm:$0xff] %v10227_v51 }
 0x1fb   : > { %7485 = vmatmul.msk.bf16.gmra.mxu1 %vm14262_vm0, %v10121_v16  ;;  %v10241_v60 = vpop.f32.mrf.mxu3 }
 0x1fc   : > { %v10235_v55 = vpop.f32.mrf.mxu0  ;;  %14461 = vst [vmem:[#allocation55_spill] sm:$0xff] %v10241_v60 }
 0x200   : > { %v10239_v0 = vpop.f32.mrf.mxu1 }
 0x201   : > { %14460 = vst [vmem:[#allocation54_spill] sm:$0xff] %v10239_v0  ;;  %7532 = vmatmul.msk.bf16.gmra.mxu2 %vm14262_vm0, %v10245_v42  ;;  %v8303_v42 = vld [vmem:[%s14133_s4 + $0x78] sm:$0xff]  ;;  %v1844_v0 = vshll.u32 %v10169_v53, 16 }
 0x202   : > { %3268 = vmatpush.bf16.msra.mxu3 %v8303_v42 }
 0x203   : > { %v10251_v16 = vpop.f32.mrf.mxu3 }
 0x204   : > { %v1694_v58 = vpop.f32.mrf.mxu0  ;;  %14463 = vst [vmem:[#allocation57_spill] sm:$0xff] %v10251_v16  ;;  %v1833_v16 = vshrl.u32 %v10108_v38, 16 }
 0x207   : > { %7606 = vmatmul.msk.bf16.gmra.mxu0 %vm14262_vm0, %v9425_v10 }
 0x208   : > { %v2024_v56 = vpop.f32.mrf.mxu1  ;;  %7576 = vmatmul.msk.bf16.gmra.mxu3 %vm14262_vm0, %v10257_v63 }
 0x20b   : > { %7486 = vmatmul.msk.bf16.gmra.mxu1 %vm14262_vm0, %v10164_v50  ;;  %v2549_v56 = vpop.f32.mrf.mxu3  ;;  %v10267_v50 = vsel %vm2136_vm8, %v2170_v12, %v10147_v39 }
 0x20c   : > { %v1695_v60 = vpop.f32.mrf.mxu0  ;;  %14465 = vst [vmem:[#allocation59_spill] sm:$0xff] %v10267_v50 }
 0x20d   : > { %v1835_v60 = vrot.slane %v1833_v16, 7 }
 0x20f   : > { %v1838_v21 = vor.u32 %v1836_v44, %v1835_v60 }
 0x210   : > { %v2025_v58 = vpop.f32.mrf.mxu1 }
 0x211   : > { %7533 = vmatmul.msk.bf16.gmra.mxu2 %vm14262_vm0, %v10267_v50  ;;  %v10281_v12 = vsel %vm14264_vm1, %v9730_v59, %v1838_v21  ;;  %v8305_v58 = vld [vmem:[%s14133_s4 + $0x88] sm:$0xff] }
 0x212   : > { %14467 = vst [vmem:[#allocation61_spill] sm:$0xff] %v10281_v12  ;;  %3454 = vmatpush.bf16.msra.mxu0 %v8305_v58 }
 0x213   : > { %v2550_v42 = vpop.f32.mrf.mxu3 }
 0x214   : > { %v10269_v5 = vpop.f32.mrf.mxu0 }
 0x217   : > { %2720 = vmatmul.bf16.gmra.mxu0 %v14434_v57 }
 0x218   : > { %v10275_v24 = vpop.f32.mrf.mxu1  ;;  %7577 = vmatmul.msk.bf16.gmra.mxu3 %vm14262_vm0, %v10281_v12 }
 0x219   : > { %14466 = vst [vmem:[#allocation60_spill] sm:$0xff] %v10275_v24  ;;  %v2172_v24 = vrot.slane %v1836_v44, 1  ;;  %v10308_v44 = vsel %vm14264_vm1, %v1835_v60, %v9730_v59 }
 0x21a   : > { %14472 = vst [vmem:[#allocation66_spill] sm:$0xff] %v10308_v44 }
 0x21b   : > { %7487 = vmatmul.msk.bf16.gmra.mxu1 %vm14262_vm0, %v10188_v31  ;;  %v10292_v42 = vpop.f32.mrf.mxu3  ;;  %v10296_v31 = vsel %vm2136_vm8, %v10147_v39, %v2172_v24 }
 0x21c   : > { %v10286_v56 = vpop.f32.mrf.mxu0  ;;  %14469 = vst [vmem:[#allocation63_spill] sm:$0xff] %v10292_v42 }
 0x21d   : > { %14470 = vst [vmem:[#allocation64_spill] sm:$0xff] %v10296_v31 }
 0x220   : > { %v10290_v50 = vpop.f32.mrf.mxu1 }
 0x221   : > { %14468 = vst [vmem:[#allocation62_spill] sm:$0xff] %v10290_v50  ;;  %7534 = vmatmul.msk.bf16.gmra.mxu2 %vm14262_vm0, %v10296_v31  ;;  %v2174_v50 = vor.u32 %v2172_v24, %v1833_v16 }
 0x223   : > { %v10302_v54 = vpop.f32.mrf.mxu3 }
 0x224   : > { %v1702_v21 = vpop.f32.mrf.mxu0  ;;  %14471 = vst [vmem:[#allocation65_spill] sm:$0xff] %v10302_v54 }
 0x227   : > { %7607 = vmatmul.msk.bf16.gmra.mxu0 %vm14262_vm0, %v9569_v9 }
 0x228   : > { %v2032_v58 = vpop.f32.mrf.mxu1  ;;  %7578 = vmatmul.msk.bf16.gmra.mxu3 %vm14262_vm0, %v10308_v44 }
 0x229   : > { %v10315_v58 = vsel %vm2136_vm8, %v2174_v50, %v10147_v39 }
 0x22a   : > { %14473 = vst [vmem:[#allocation67_spill] sm:$0xff] %v10315_v58 }
 0x22b   : > { %7488 = vmatmul.msk.bf16.gmra.mxu1 %vm14262_vm0, %v10212_v17  ;;  %v2557_v31 = vpop.f32.mrf.mxu3  ;;  %v1843_v17 = vrot.slane %v1841_v29, 7 }
 0x22c   : > { %v1703_v42 = vpop.f32.mrf.mxu0 }
 0x22d   : > { %v1846_v60 = vor.u32 %v1844_v0, %v1843_v17 }
 0x22f   : > { %v10329_v50 = vsel %vm14264_vm1, %v9730_v59, %v1846_v60 }
 0x230   : > { %v2033_v21 = vpop.f32.mrf.mxu1  ;;  %14475 = vst [vmem:[#allocation69_spill] sm:$0xff] %v10329_v50 }
 0x231   : > { %7535 = vmatmul.msk.bf16.gmra.mxu2 %vm14262_vm0, %v10315_v58  ;;  %v2176_v58 = vrot.slane %v1844_v0, 1  ;;  %v10353_v0 = vsel %vm14264_vm1, %v1843_v17, %v9730_v59  ;;  %v1852_v17 = vshll.u32 %v9322_v37, 16 }
 0x232   : > { %14480 = vst [vmem:[#allocation74_spill] sm:$0xff] %v10353_v0 }
 0x233   : > { %v2558_v16 = vpop.f32.mrf.mxu3 }
 0x234   : > { %v10317_v54 = vpop.f32.mrf.mxu0  ;;  %v10341_v16 = vsel %vm2136_vm8, %v10147_v39, %v2176_v58 }
 0x235   : > { %14478 = vst [vmem:[#allocation72_spill] sm:$0xff] %v10341_v16 }
 0x237   : > { %2728 = vmatmul.bf16.gmra.mxu0 %v14434_v57 }
 0x238   : > { %v10323_v42 = vpop.f32.mrf.mxu1  ;;  %7579 = vmatmul.msk.bf16.gmra.mxu3 %vm14262_vm0, %v10329_v50 }
 0x239   : > { %14474 = vst [vmem:[#allocation68_spill] sm:$0xff] %v10323_v42 }
 0x23b   : > { %7489 = vmatmul.msk.bf16.gmra.mxu1 %vm14262_vm0, %v10233_v7  ;;  %v10337_v21 = vpop.f32.mrf.mxu3 }
 0x23c   : > { %v10331_v31 = vpop.f32.mrf.mxu0  ;;  %14477 = vst [vmem:[#allocation71_spill] sm:$0xff] %v10337_v21 }
 0x240   : > { %v10335_v24 = vpop.f32.mrf.mxu1 }
 0x241   : > { %14476 = vst [vmem:[#allocation70_spill] sm:$0xff] %v10335_v24  ;;  %7536 = vmatmul.msk.bf16.gmra.mxu2 %vm14262_vm0, %v10341_v16  ;;  %v2178_v16 = vor.u32 %v2176_v58, %v1841_v29 }
 0x243   : > { %v10347_v7 = vpop.f32.mrf.mxu3 }
 0x244   : > { %v1710_v42 = vpop.f32.mrf.mxu0  ;;  %14479 = vst [vmem:[#allocation73_spill] sm:$0xff] %v10347_v7  ;;  %v2367_v19 = vpop.f32.mrf.mxu2 }
 0x245   : > { %v10360_v19 = vsel %vm2136_vm8, %v2178_v16, %v10147_v39 }
 0x246   : > { %14481 = vst [vmem:[#allocation75_spill] sm:$0xff] %v10360_v19 }
 0x247   : > { %7608 = vmatmul.msk.bf16.gmra.mxu0 %vm14262_vm0, %v9705_v61 }
 0x248   : > { %v2040_v60 = vpop.f32.mrf.mxu1  ;;  %7580 = vmatmul.msk.bf16.gmra.mxu3 %vm14262_vm0, %v10353_v0 }
 0x249   : > { %v1849_v60 = vshrl.u32 %v9322_v37, 16 }
 0x24b   : > { %7490 = vmatmul.msk.bf16.gmra.mxu1 %vm14262_vm0, %v10257_v63  ;;  %v2565_v24 = vpop.f32.mrf.mxu3  ;;  %v1851_v63 = vrot.slane %v1849_v60, 7 }
 0x24c   : > { %v1711_v21 = vpop.f32.mrf.mxu0  ;;  %v2368_v51 = vpop.f32.mrf.mxu2 }
 0x24d   : > { %v1854_v21 = vor.u32 %v1852_v17, %v1851_v63 }
 0x24f   : > { %v10374_v24 = vsel %vm14264_vm1, %v9730_v59, %v1854_v21 }
 0x250   : > { %v2041_v42 = vpop.f32.mrf.mxu1  ;;  %14483 = vst [vmem:[#allocation77_spill] sm:$0xff] %v10374_v24 }
 0x251   : > { %7537 = vmatmul.msk.bf16.gmra.mxu2 %vm14262_vm0, %v10360_v19 }
 0x253   : > { %v2566_v51 = vpop.f32.mrf.mxu3 }
 0x254   : > { %v10362_v7 = vpop.f32.mrf.mxu0  ;;  %v2370_v58 = vpop.f32.mrf.mxu2  ;;  %v2180_v51 = vrot.slane %v1852_v17, 1 }
 0x256   : > { %v2182_v45 = vor.u32 %v2180_v51, %v1849_v60 }
 0x257   : > { %2736 = vmatmul.bf16.gmra.mxu0 %v14434_v57 }
 0x258   : > { %v10368_v29 = vpop.f32.mrf.mxu1  ;;  %7581 = vmatmul.msk.bf16.gmra.mxu3 %vm14262_vm0, %v10374_v24 }
 0x259   : > { %14482 = vst [vmem:[#allocation76_spill] sm:$0xff] %v10368_v29  ;;  %v10386_v29 = vsel %vm2136_vm8, %v10147_v39, %v2180_v51 }
 0x25a   : > { %14486 = vst [vmem:[#allocation80_spill] sm:$0xff] %v10386_v29 }
 0x25b   : > { %7491 = vmatmul.msk.bf16.gmra.mxu1 %vm14262_vm0, %v10281_v12  ;;  %v2568_v19 = vpop.f32.mrf.mxu3 }
 0x25c   : > { %v10376_v16 = vpop.f32.mrf.mxu0  ;;  %v2372_v15 = vpop.f32.mrf.mxu2 }
 0x260   : > { %v10380_v42 = vpop.f32.mrf.mxu1 }
 0x261   : > { %14484 = vst [vmem:[#allocation78_spill] sm:$0xff] %v10380_v42  ;;  %7538 = vmatmul.msk.bf16.gmra.mxu2 %vm14262_vm0, %v10386_v29 }
 0x263   : > { %v2570_v12 = vpop.f32.mrf.mxu3 }
 0x264   : > { %v10382_v30 = vpop.f32.mrf.mxu0  ;;  %v2375_v48 = vpop.f32.mrf.mxu2 }
 0x265   : > { %14485 = vst [vmem:[#allocation79_spill] sm:$0xff] %v10382_v30  ;;  %v10396_v30 = vsel %vm14264_vm1, %v1851_v63, %v9730_v59  ;;  %v10405_v48 = vsel %vm2136_vm8, %v2182_v45, %v10147_v39  ;;  %v1860_v63 = vshll.u32 %v9427_v14, 16 }
 0x266   : > { %14487 = vst [vmem:[#allocation81_spill] sm:$0xff] %v10396_v30 }
 0x267   : > { %7609 = vmatmul.msk.bf16.gmra.mxu0 %vm14262_vm0, %v9781_v2  ;;  %14489 = vst [vmem:[#allocation83_spill] sm:$0xff] %v10405_v48 }
 0x268   : > { %v2048_v21 = vpop.f32.mrf.mxu1  ;;  %7582 = vmatmul.msk.bf16.gmra.mxu3 %vm14262_vm0, %v10396_v30 }
 0x269   : > { %v1857_v21 = vshrl.u32 %v9427_v14, 16 }
 0x26b   : > { %7492 = vmatmul.msk.bf16.gmra.mxu1 %vm14262_vm0, %v10308_v44  ;;  %v2573_v3 = vpop.f32.mrf.mxu3  ;;  %v1859_v44 = vrot.slane %v1857_v21, 7 }
 0x26c   : > { %v10398_v17 = vpop.f32.mrf.mxu0  ;;  %v2376_v1 = vpop.f32.mrf.mxu2 }
 0x26d   : > { %14488 = vst [vmem:[#allocation82_spill] sm:$0xff] %v10398_v17  ;;  %v1862_v17 = vor.u32 %v1860_v63, %v1859_v44 }
 0x26f   : > { %v10416_v45 = vsel %vm14264_vm1, %v9730_v59, %v1862_v17 }
 0x270   : > { %v2049_v42 = vpop.f32.mrf.mxu1  ;;  %14490 = vst [vmem:[#allocation84_spill] sm:$0xff] %v10416_v45 }
 0x271   : > { %7539 = vmatmul.msk.bf16.gmra.mxu2 %vm14262_vm0, %v10405_v48 }
 0x273   : > { %v2574_v1 = vpop.f32.mrf.mxu3 }
 0x274   : > { %v2713_v29 = vpop.f32.mrf.mxu0  ;;  %v2378_v60 = vpop.f32.mrf.mxu2 }
 0x277   : > { %2744 = vmatmul.bf16.gmra.mxu0 %v14434_v57 }
 0x278   : > { %v2051_v42 = vpop.f32.mrf.mxu1  ;;  %7583 = vmatmul.msk.bf16.gmra.mxu3 %vm14262_vm0, %v10416_v45 }
 0x279   : > { %v2052_v3 = vadd.f32 %v2051_v42, %v10175_v6 }
 0x27b   : > { %v2462_v51 = vadd.f32 %v2370_v58, %v2052_v3  ;;  %7493 = vmatmul.msk.bf16.gmra.mxu1 %vm14262_vm0, %v10329_v50  ;;  %v2576_v6 = vpop.f32.mrf.mxu3  ;;  %v2184_v3 = vrot.slane %v1860_v63, 1 }
 0x27c   : > { %v2714_v29 = vpop.f32.mrf.mxu0  ;;  %v2380_v42 = vpop.f32.mrf.mxu2 }
 0x27d   : > { %v10418_v23 = vadd.f32 %v2568_v19, %v2462_v51  ;;  %v10429_v17 = vsel %vm2136_vm8, %v10147_v39, %v2184_v3  ;;  %v2186_v63 = vor.u32 %v2184_v3, %v1857_v21 }
 0x27e   : > { %14492 = vst [vmem:[#allocation86_spill] sm:$0xff] %v10429_v17 }
 0x280   : > { %v2053_v48 = vpop.f32.mrf.mxu1 }
 0x281   : > { %v2054_v41 = vadd.f32 %v2053_v48, %v10190_v20  ;;  %7540 = vmatmul.msk.bf16.gmra.mxu2 %vm14262_vm0, %v10429_v17 }
 0x283   : > { %v2463_v1 = vadd.f32 %v2372_v15, %v2054_v41  ;;  %v2578_v20 = vpop.f32.mrf.mxu3  ;;  %v10439_v41 = vsel %vm14264_vm1, %v1859_v44, %v9730_v59  ;;  %v1868_v44 = vshll.u32 %v9579_v4, 16 }
 0x284   : > { %v10423_v58 = vpop.f32.mrf.mxu0  ;;  %v2383_v48 = vpop.f32.mrf.mxu2  ;;  %14493 = vst [vmem:[#allocation87_spill] sm:$0xff] %v10439_v41 }
 0x285   : > { %14491 = vst [vmem:[#allocation85_spill] sm:$0xff] %v10423_v58  ;;  %v10425_v50 = vadd.f32 %v2570_v12, %v2463_v1  ;;  %v1865_v1 = vshrl.u32 %v9579_v4, 16  ;;  %v10448_v48 = vsel %vm2136_vm8, %v2186_v63, %v10147_v39 }
 0x286   : > { %14495 = vst [vmem:[#allocation89_spill] sm:$0xff] %v10448_v48 }
 0x287   : > { %7610 = vmatmul.msk.bf16.gmra.mxu0 %vm14262_vm0, %v9860_v32  ;;  %v1867_v17 = vrot.slane %v1865_v1, 7 }
 0x288   : > { %v2056_v19 = vpop.f32.mrf.mxu1  ;;  %7584 = vmatmul.msk.bf16.gmra.mxu3 %vm14262_vm0, %v10439_v41 }
 0x28b   : > { %7494 = vmatmul.msk.bf16.gmra.mxu1 %vm14262_vm0, %v10353_v0  ;;  %v2581_v51 = vpop.f32.mrf.mxu3  ;;  %v1870_v0 = vor.u32 %v1868_v44, %v1867_v17 }
 0x28c   : > { %v10441_v15 = vpop.f32.mrf.mxu0  ;;  %v2384_v29 = vpop.f32.mrf.mxu2 }
 0x28d   : > { %14494 = vst [vmem:[#allocation88_spill] sm:$0xff] %v10441_v15  ;;  %v10459_v63 = vsel %vm14264_vm1, %v9730_v59, %v1870_v0 }
 0x28e   : > { %14496 = vst [vmem:[#allocation90_spill] sm:$0xff] %v10459_v63 }
 0x290   : > { %v2057_v12 = vpop.f32.mrf.mxu1 }
 0x291   : > { %7541 = vmatmul.msk.bf16.gmra.mxu2 %vm14262_vm0, %v10448_v48 }
 0x293   : > { %v2582_v3 = vpop.f32.mrf.mxu3 }
 0x294   : > { %v2721_v19 = vpop.f32.mrf.mxu0  ;;  %v2386_v51 = vpop.f32.mrf.mxu2 }
 0x297   : > { %2752 = vmatmul.bf16.gmra.mxu0 %v14434_v57 }
 0x298   : > { %v2059_v12 = vpop.f32.mrf.mxu1  ;;  %7585 = vmatmul.msk.bf16.gmra.mxu3 %vm14262_vm0, %v10459_v63 }
 0x299   : > { %v2060_v21 = vadd.f32 %v2059_v12, %v10221_v27 }
 0x29b   : > { %v2464_v29 = vadd.f32 %v2378_v60, %v2060_v21  ;;  %7495 = vmatmul.msk.bf16.gmra.mxu1 %vm14262_vm0, %v10374_v24  ;;  %v2584_v27 = vpop.f32.mrf.mxu3  ;;  %v2188_v21 = vrot.slane %v1868_v44, 1 }
 0x29c   : > { %v2722_v19 = vpop.f32.mrf.mxu0  ;;  %v2388_v12 = vpop.f32.mrf.mxu2 }
 0x29d   : > { %v10461_v15 = vadd.f32 %v2576_v6, %v2464_v29  ;;  %v10472_v0 = vsel %vm2136_vm8, %v10147_v39, %v2188_v21  ;;  %v2190_v44 = vor.u32 %v2188_v21, %v1865_v1 }
 0x29e   : > { %14498 = vst [vmem:[#allocation92_spill] sm:$0xff] %v10472_v0 }
 0x2a0   : > { %v2061_v48 = vpop.f32.mrf.mxu1 }
 0x2a1   : > { %v2062_v58 = vadd.f32 %v2061_v48, %v10235_v55  ;;  %7542 = vmatmul.msk.bf16.gmra.mxu2 %vm14262_vm0, %v10472_v0 }
 0x2a3   : > { %v2465_v3 = vadd.f32 %v2380_v42, %v2062_v58  ;;  %v2586_v55 = vpop.f32.mrf.mxu3  ;;  %v10482_v42 = vsel %vm14264_vm1, %v1867_v17, %v9730_v59  ;;  %v1876_v17 = vshll.u32 %v9724_v36, 16 }
 0x2a4   : > { %v10466_v60 = vpop.f32.mrf.mxu0  ;;  %v2391_v48 = vpop.f32.mrf.mxu2  ;;  %14499 = vst [vmem:[#allocation93_spill] sm:$0xff] %v10482_v42 }
 0x2a5   : > { %14497 = vst [vmem:[#allocation91_spill] sm:$0xff] %v10466_v60  ;;  %v10468_v24 = vadd.f32 %v2578_v20, %v2465_v3  ;;  %v1873_v3 = vshrl.u32 %v9724_v36, 16  ;;  %v10491_v48 = vsel %vm2136_vm8, %v2190_v44, %v10147_v39 }
 0x2a6   : > { %14501 = vst [vmem:[#allocation95_spill] sm:$0xff] %v10491_v48 }
 0x2a7   : > { %7611 = vmatmul.msk.bf16.gmra.mxu0 %vm14262_vm0, %v9948_v26  ;;  %v1875_v0 = vrot.slane %v1873_v3, 7 }
 0x2a8   : > { %v2064_v6 = vpop.f32.mrf.mxu1  ;;  %7586 = vmatmul.msk.bf16.gmra.mxu3 %vm14262_vm0, %v10482_v42 }
 0x2ab   : > { %7496 = vmatmul.msk.bf16.gmra.mxu1 %vm14262_vm0, %v10396_v30  ;;  %v2589_v29 = vpop.f32.mrf.mxu3  ;;  %v1878_v30 = vor.u32 %v1876_v17, %v1875_v0 }
 0x2ac   : > { %v10484_v58 = vpop.f32.mrf.mxu0  ;;  %v2392_v19 = vpop.f32.mrf.mxu2 }
 0x2ad   : > { %14500 = vst [vmem:[#allocation94_spill] sm:$0xff] %v10484_v58  ;;  %v10504_v44 = vsel %vm14264_vm1, %v9730_v59, %v1878_v30  ;;  %v8301_v30 = vld [vmem:[%s14133_s4 + $0x68] sm:$0xff] }
 0x2ae   : > { %14502 = vst [vmem:[#allocation96_spill] sm:$0xff] %v10504_v44  ;;  %3082 = vmatpush.bf16.msrb.mxu2 %v8301_v30  ;;  %v10545_v30 = vsel %vm14264_vm1, %v1875_v0, %v9730_v59  ;;  %v14212_v0 = vshrl.u32 %v9611_v34, 16 }
 0x2af   : > { %14505 = vst [vmem:[#allocation99_spill] sm:$0xff] %v10545_v30 }
 0x2b0   : > { %v2065_v20 = vpop.f32.mrf.mxu1 }
 0x2b1   : > { %7543 = vmatmul.msk.bf16.gmra.mxu2 %vm14262_vm0, %v10491_v48 }
 0x2b3   : > { %v2590_v21 = vpop.f32.mrf.mxu3 }
 0x2b4   : > { %v2729_v6 = vpop.f32.mrf.mxu0  ;;  %v10498_v29 = vpop.f32.mrf.mxu2 }
 0x2b7   : > { %2760 = vmatmul.bf16.gmra.mxu0 %v14434_v57 }
 0x2b8   : > { %v2067_v20 = vpop.f32.mrf.mxu1  ;;  %7587 = vmatmul.msk.bf16.gmra.mxu3 %vm14262_vm0, %v10504_v44 }
 0x2b9   : > { %v2068_v1 = vadd.f32 %v2067_v20, %v10269_v5 }
 0x2bb   : > { %v2466_v19 = vadd.f32 %v2386_v51, %v2068_v1  ;;  %7497 = vmatmul.msk.bf16.gmra.mxu1 %vm14262_vm0, %v10416_v45  ;;  %v2592_v21 = vpop.f32.mrf.mxu3  ;;  %v2192_v45 = vrot.slane %v1876_v17, 1 }
 0x2bc   : > { %v2730_v6 = vpop.f32.mrf.mxu0  ;;  %v10511_v51 = vpop.f32.mrf.mxu2 }
 0x2bd   : > { %v10506_v58 = vadd.f32 %v2584_v27, %v2466_v19  ;;  %v10522_v27 = vsel %vm2136_vm8, %v10147_v39, %v2192_v45  ;;  %v8687_v19 = vld [vmem:[%s8933_s15 + $0xf0] sm:$0xff]  ;;  %v8688_v6 = vld [vmem:[%s8933_s15 + $0xf8] sm:$0xff] }
 0x2be   : > { %14504 = vst [vmem:[#allocation98_spill] sm:$0xff] %v10522_v27 }
 0x2c0   : > { %v2069_v5 = vpop.f32.mrf.mxu1 }
 0x2c1   : > { %v2070_v20 = vadd.f32 %v2069_v5, %v10286_v56  ;;  %v732_v56 = vsub.f32 %v8687_v19, %v9124_v52  ;;  %v733_v5 = vsub.f32 %v8688_v6, %v9124_v52  ;;  %7544 = vmatmul.msk.bf16.gmra.mxu2 %vm14262_vm0, %v10522_v27  ;;  %v8689_v19 = vld [vmem:[%s14132_s3] ss:$0 sm:$0xff] }
 0x2c3   : > { %v2467_v1 = vadd.f32 %v2388_v12, %v2070_v20  ;;  %v767_v17 = vmul.f32 %v9139_v22, %v733_v5  ;;  %v2594_v20 = vpop.f32.mrf.mxu3 }
 0x2c4   : > { %v10513_v48 = vpop.f32.mrf.mxu0 }
 0x2c5   : > { %14503 = vst [vmem:[#allocation97_spill] sm:$0xff] %v10513_v48  ;;  %v10515_v60 = vadd.f32 %v2586_v55, %v2467_v1  ;;  %v766_v55 = vmul.f32 %v9139_v22, %v732_v56  ;;  %v2399_v1 = vpop.f32.mrf.mxu2  ;;  %v10539_v52 = vadd.f32 %v8689_v19, %v767_v17 }
 0x2c7   : > { %7612 = vmatmul.msk.bf16.gmra.mxu0 %vm14262_vm0, %v10037_v25  ;;  %v10537_v48 = vadd.f32 %v8689_v19, %v766_v55  ;;  %v834_v6 = vsub.f32 0.0, %v10539_v52  ;;  %v2194_v19 = vor.u32 %v2192_v45, %v1873_v3 }
 0x2c8   : > { %v2072_v12 = vpop.f32.mrf.mxu1  ;;  %7588 = vmatmul.msk.bf16.gmra.mxu3 %vm14262_vm0, %v10545_v30 }
 0x2c9   : > { %v833_v22 = vsub.f32 0.0, %v10537_v48  ;;  %v897_v12 = vmul.f32 1.442695, %v834_v6  ;;  %v10561_v25 = vsel %vm2136_vm8, %v2194_v19, %v10147_v39 }
 0x2ca   : > { %14507 = vst [vmem:[#allocation101_spill] sm:$0xff] %v10561_v25 }
 0x2cb   : > { %7498 = vmatmul.msk.bf16.gmra.mxu1 %vm14262_vm0, %v10439_v41  ;;  %v895_v5 = vmul.f32 1.442695, %v833_v22  ;;  %v2597_v17 = vpop.f32.mrf.mxu3  ;;  %v10556_v41 = vrot.slane %v14212_v0, 7 }
 0x2cc   : > { %v10547_v56 = vpop.f32.mrf.mxu0 }
 0x2cd   : > { %14506 = vst [vmem:[#allocation100_spill] sm:$0xff] %v10547_v56  ;;  %8532 = vpow2.f32 %v895_v5  ;;  %v2400_v1 = vpop.f32.mrf.mxu2  ;;  %v1884_v56 = vshll.u32 %v9611_v34, 16 }
 0x2ce   : > { %8534 = vpow2.f32 %v897_v12 }
 0x2cf   : > { %v1886_v45 = vor.u32 %v1884_v56, %v10556_v41 }
 0x2d0   : > { %v2073_v55 = vpop.f32.mrf.mxu1 }
 0x2d1   : > { %7545 = vmatmul.msk.bf16.gmra.mxu2 %vm14262_vm0, %v10561_v25  ;;  %v10575_v19 = vsel %vm14264_vm1, %v9730_v59, %v1886_v45 }
 0x2d2   : > { %14508 = vst [vmem:[#allocation102_spill] sm:$0xff] %v10575_v19 }
 0x2d3   : > { %v8533_v22 = vpop.eup %8532  ;;  %v2598_v55 = vpop.f32.mrf.mxu3 }
 0x2d4   : > { %v2737_v27 = vpop.f32.mrf.mxu0  ;;  %v8535_v6 = vpop.eup %8534  ;;  %v929_v3 = vadd.f32 1.0, %v8533_v22 }
 0x2d5   : > { %v930_v27 = vadd.f32 1.0, %v8535_v6  ;;  %v10568_v17 = vpop.f32.mrf.mxu2 }
 0x2d6   : > { %8536 = vrcp.f32 %v929_v3  ;;  %v1392_v2 = vand.u32 2147483648, %v929_v3  ;;  %vm1386_vm9 = vweird.f32 %v929_v3 }
 0x2d7   : > { %2768 = vmatmul.bf16.gmra.mxu0 %v14434_v57  ;;  %8538 = vrcp.f32 %v930_v27  ;;  %v1407_v18 = vand.u32 2147483648, %v930_v27  ;;  %vm1401_vm12 = vweird.f32 %v930_v27 }
 0x2d8   : > { %v2075_v5 = vpop.f32.mrf.mxu1  ;;  %7589 = vmatmul.msk.bf16.gmra.mxu3 %vm14262_vm0, %v10575_v19 }
 0x2d9   : > { %v2076_v12 = vadd.f32 %v2075_v5, %v10317_v54 }
 0x2db   : > { %v2468_v1 = vadd.f32 %v10498_v29, %v2076_v12  ;;  %7499 = vmatmul.msk.bf16.gmra.mxu1 %vm14262_vm0, %v10459_v63  ;;  %v10582_v29 = vpop.f32.mrf.mxu3 }
 0x2dc   : > { %v2738_v22 = vpop.f32.mrf.mxu0  ;;  %v8537_v54 = vpop.eup %8536 }
 0x2dd   : > { %v10577_v0 = vadd.f32 %v2592_v21, %v2468_v1  ;;  %v8539_v6 = vpop.eup %8538  ;;  %v1382_v55 = vmul.f32 %v8537_v54, %v929_v3  ;;  %v10584_v12 = vpop.f32.mrf.mxu2  ;;  %v2196_v1 = vrot.slane %v1884_v56, 1  ;;  %vm1387_vm10 = vweird.f32 %v8537_v54 }
 0x2de   : > { %v1397_v63 = vmul.f32 %v8539_v6, %v930_v27  ;;  %vm10597_vm11 = vmor %vm1386_vm9, %vm1387_vm10  ;;  %vm1402_vm13 = vweird.f32 %v8539_v6  ;;  %v1405_v56 = vand.u32 2147483647, %v930_v27  ;;  %vm3974_vm9 = vcmask 7168  }
 0x2df   : > { %v1383_v26 = vsub.f32 1.0, %v1382_v55  ;;  %vm1403_vm15 = vmor %vm1401_vm12, %vm1402_vm13  ;;  %vm3966_vm10 = vcmask 515072  }
 0x2e0   : > { %v2077_v5 = vpop.f32.mrf.mxu1  ;;  %v1398_v22 = vsub.f32 1.0, %v1397_v63  ;;  %v1393_v63 = vor.u32 1.1754944e-38, %v1392_v2  ;;  %vm1406_vm2 = vcmp.eq.f32.partialorder %v1405_v56, 8.507059e+37  ;;  %v10612_v2 = vsel %vm14264_vm1, %v10556_v41, %v9730_v59 }
 0x2e1   : > { %v2078_v25 = vadd.f32 %v2077_v5, %v10331_v31  ;;  %v1384_v32 = vmul.f32 %v8537_v54, %v1383_v26  ;;  %v10593_v31 = vsel %vm2136_vm8, %v10147_v39, %v2196_v1  ;;  %v1390_v26 = vand.u32 2147483647, %v929_v3  ;;  %14513 = vst [vmem:[#allocation105_spill] sm:$0xff] %v10612_v2 }
 0x2e2   : > { %v1399_v13 = vmul.f32 %v8539_v6, %v1398_v22  ;;  %14510 = vst [vmem:[#allocation104_spill] sm:$0xff] %v10593_v31  ;;  %7546 = vmatmul.msk.bf16.gmra.mxu2 %vm14262_vm0, %v10593_v31 }
 0x2e3   : > { %v2469_v45 = vadd.f32 %v10511_v51, %v2078_v25  ;;  %v1385_v5 = vadd.f32 %v8537_v54, %v1384_v32  ;;  %v10605_v55 = vpop.f32.mrf.mxu3  ;;  %vm1391_vm14 = vcmp.eq.f32.partialorder %v1390_v26, 8.507059e+37 }
 0x2e4   : > { %v10587_v21 = vpop.f32.mrf.mxu0  ;;  %v1400_v51 = vadd.f32 %v8539_v6, %v1399_v13 }
 0x2e5   : > { %14509 = vst [vmem:[#allocation103_spill] sm:$0xff] %v10587_v21  ;;  %v10589_v46 = vadd.f32 %v2594_v20, %v2469_v45  ;;  %v1389_v32 = vsel %vm10597_vm11, %v8537_v54, %v1385_v5  ;;  %v1408_v45 = vor.u32 1.1754944e-38, %v1407_v18  ;;  %v2407_v22 = vpop.f32.mrf.mxu2 }
 0x2e6   : > { %v1394_v21 = vsel %vm1391_vm14, %v1393_v63, %v1389_v32  ;;  %v1404_v3 = vsel %vm1403_vm15, %v8539_v6, %v1400_v51 }
 0x2e7   : > { %7613 = vmatmul.msk.bf16.gmra.mxu0 %vm14262_vm0, %v10108_v38  ;;  %v1409_v13 = vsel %vm1406_vm2, %v1408_v45, %v1404_v3  ;;  %v1441_v27 = vmul.f32 %v1394_v21, %v10537_v48 }
 0x2e8   : > { %v2080_v20 = vpop.f32.mrf.mxu1  ;;  %v1442_v5 = vmul.f32 %v1409_v13, %v10539_v52  ;;  %7590 = vmatmul.msk.bf16.gmra.mxu3 %vm14262_vm0, %v10612_v2 }
 0x2e9   : > { %v1473_v18 = vpack.c.bf16 %v1441_v27, %v1441_v27  ;;  %v14514_v20 = vshrl.u32 %v9611_v34, 16 }
 0x2ea   : > { %v1474_v6 = vpack.c.bf16 %v1442_v5, %v1442_v5 }
 0x2eb   : > { %7500 = vmatmul.msk.bf16.gmra.mxu1 %vm14262_vm0, %v10482_v42  ;;  %v1537_v25 = vunpack.c.l.b16 %v1473_v18  ;;  %v2605_v51 = vpop.f32.mrf.mxu3  ;;  %v2198_v41 = vor.u32 %v2196_v1, %v14514_v20 }
 0x2ec   : > { %v10615_v54 = vpop.f32.mrf.mxu0  ;;  %v1538_v63 = vunpack.c.l.b16 %v1474_v6 }
 0x2ed   : > { %v2408_v32 = vpop.f32.mrf.mxu2  ;;  %v10628_v45 = vsel %vm2136_vm8, %v2198_v41, %v10147_v39 }
 0x2ee   : > { %v10622_v56 = vpack.c.b16 %v1538_v63, %v1537_v25  ;;  %14515 = vst [vmem:[#allocation106_spill] sm:$0xff] %v10628_v45 }
 0x2f0   : > { %v2081_v26 = vpop.f32.mrf.mxu1  ;;  %v14223_v21 = vshll.u32 %v10622_v56, 16  ;;  %v14222_v52 = vshrl.u32 %v10622_v56, 16 }
 0x2f2   : > { %v10632_v22 = vrot.slane %v14222_v52, 7  ;;  %7547 = vmatmul.msk.bf16.gmra.mxu2 %vm14262_vm0, %v10628_v45 }
 0x2f3   : > { %v2606_v27 = vpop.f32.mrf.mxu3 }
 0x2f4   : > { %v2745_v48 = vpop.f32.mrf.mxu0  ;;  %v2490_v1 = vor.u32 %v10632_v22, %v14223_v21 }
 0x2f5   : > { %v2410_v5 = vpop.f32.mrf.mxu2 }
 0x2f6   : > { %v10646_v6 = vsel %vm14264_vm1, %v9730_v59, %v2490_v1 }
 0x2f7   : > { %2776 = vmatmul.bf16.gmra.mxu0 %v14434_v57  ;;  %14516 = vst [vmem:[#allocation107_spill] sm:$0xff] %v10646_v6 }
 0x2f8   : > { %v2083_v3 = vpop.f32.mrf.mxu1  ;;  %7591 = vmatmul.msk.bf16.gmra.mxu3 %vm14262_vm0, %v10646_v6 }
 0x2f9   : > { %v2084_v13 = vadd.f32 %v2083_v3, %v10362_v7  ;;  %v8302_v3 = vld [vmem:[%s14133_s4 + $0x70] sm:$0xff] }
 0x2fa   : > { %3269 = vmatpush.bf16.msra.mxu3 %v8302_v3  ;;  %v8304_v3 = vld [vmem:[%s14133_s4 + $0x80] sm:$0xff] }
 0x2fb   : > { %v2470_v18 = vadd.f32 %v10568_v17, %v2084_v13  ;;  %7501 = vmatmul.msk.bf16.gmra.mxu1 %vm14262_vm0, %v10504_v44  ;;  %v2608_v7 = vpop.f32.mrf.mxu3  ;;  %3455 = vmatpush.bf16.msra.mxu0 %v8304_v3 }
 0x2fc   : > { %v2746_v25 = vpop.f32.mrf.mxu0 }
 0x2fd   : > { %v10649_v26 = vadd.f32 %v10582_v29, %v2470_v18  ;;  %v10655_v51 = vpop.f32.mrf.mxu2 }
 0x300   : > { %v10653_v63 = vpop.f32.mrf.mxu1 }
 0x303   : > { %v10661_v41 = vpop.f32.mrf.mxu3 }
 0x304   : > { %v10657_v17 = vpop.f32.mrf.mxu0 }
 0x305   : > { %v2415_v32 = vpop.f32.mrf.mxu2 }
 0x307   : > { %7614 = vmatmul.msk.bf16.gmra.mxu0 %vm14262_vm0, %v10169_v53 }
 0x308   : > { %v2088_v20 = vpop.f32.mrf.mxu1 }
 0x30b   : > { %7502 = vmatmul.msk.bf16.gmra.mxu1 %vm14262_vm0, %v10545_v30  ;;  %v2613_v1 = vpop.f32.mrf.mxu3  ;;  %v14520_v30 = vshrl.u32 %v9296_v8, 16 }
 0x30c   : > { %v10665_v29 = vpop.f32.mrf.mxu0 }
 0x30d   : > { %v2416_v13 = vpop.f32.mrf.mxu2 }
 0x310   : > { %v2089_v48 = vpop.f32.mrf.mxu1 }
 0x311   : > { %v8299_v48 = vld [vmem:[%s14133_s4 + $0x58] sm:$0xff] }
 0x312   : > { %2896 = vmatpush.bf16.msrb.mxu1 %v8299_v48 }
 0x313   : > { %v2614_v20 = vpop.f32.mrf.mxu3 }
 0x314   : > { %v2753_v27 = vpop.f32.mrf.mxu0 }
 0x315   : > { %v2418_v32 = vpop.f32.mrf.mxu2 }
 0x317   : > { %2784 = vmatmul.bf16.gmra.mxu0 %v14434_v57 }
 0x318   : > { %v2091_v18 = vpop.f32.mrf.mxu1 }
 0x319   : > { %v2092_v25 = vadd.f32 %v2091_v18, %v9800_v28 }
 0x31b   : > { %v2472_v52 = vadd.f32 %v2410_v5, %v2092_v25  ;;  %7503 = vmatmul.msk.bf16.gmra.mxu1 %vm14262_vm0, %v10575_v19  ;;  %v2616_v13 = vpop.f32.mrf.mxu3 }
 0x31c   : > { %v2754_v21 = vpop.f32.mrf.mxu0 }
 0x31d   : > { %v10677_v1 = vadd.f32 %v2608_v7, %v2472_v52  ;;  %v10684_v5 = vpop.f32.mrf.mxu2 }
 0x320   : > { %v10682_v28 = vpop.f32.mrf.mxu1 }
 0x323   : > { %v10691_v52 = vpop.f32.mrf.mxu3 }
 0x324   : > { %v2756_v27 = vpop.f32.mrf.mxu0 }
 0x325   : > { %v10687_v18 = vadd.f32 %v2756_v27, %v10418_v23  ;;  %v2423_v7 = vpop.f32.mrf.mxu2 }
 0x327   : > { %7615 = vmatmul.msk.bf16.gmra.mxu0 %vm14262_vm0, %v9322_v37 }
 0x328   : > { %v2096_v21 = vpop.f32.mrf.mxu1 }
 0x32b   : > { %7504 = vmatmul.msk.bf16.gmra.mxu1 %vm14262_vm0, %v10612_v2  ;;  %v2621_v3 = vpop.f32.mrf.mxu3 }
 0x32c   : > { %v2758_v25 = vpop.f32.mrf.mxu0 }
 0x32d   : > { %v10696_v20 = vadd.f32 %v2758_v25, %v10425_v50  ;;  %v2424_v45 = vpop.f32.mrf.mxu2 }
 0x330   : > { %v2097_v48 = vpop.f32.mrf.mxu1 }
 0x333   : > { %v2622_v21 = vpop.f32.mrf.mxu3 }
 0x334   : > { %v2761_v6 = vpop.f32.mrf.mxu0 }
 0x335   : > { %v2426_v31 = vpop.f32.mrf.mxu2  ;;  %v14517_v6 = vshll.u32 %v9296_v8, 16 }
 0x337   : > { %2792 = vmatmul.bf16.gmra.mxu0 %v14434_v57  ;;  %v2140_v3 = vrot.slane %v14517_v6, 1 }
 0x338   : > { %v2099_v23 = vpop.f32.mrf.mxu1 }
 0x339   : > { %v2100_v27 = vadd.f32 %v2099_v23, %v9879_v11 }
 0x33b   : > { %v2474_v19 = vadd.f32 %v2418_v32, %v2100_v27  ;;  %7517 = vmatmul.msk.bf16.vlgmr.msra.gmra.mxu1 %vm14262_vm0, %v10147_v39  ;;  %v2624_v25 = vpop.f32.mrf.mxu3 }
 0x33c   : > { %v2762_v7 = vpop.f32.mrf.mxu0 }
 0x33d   : > { %v10702_v2 = vadd.f32 %v2616_v13, %v2474_v19  ;;  %v10706_v48 = vpop.f32.mrf.mxu2  ;;  %v2141_v19 = vsel %vm2136_vm8, %v10147_v39, %v2140_v3 }
 0x340   : > { %v10704_v50 = vpop.f32.mrf.mxu1 }
 0x343   : > { %v10717_v13 = vpop.f32.mrf.mxu3 }
 0x344   : > { %v2764_v45 = vpop.f32.mrf.mxu0 }
 0x345   : > { %v10711_v11 = vadd.f32 %v2764_v45, %v10461_v15  ;;  %v2431_v23 = vpop.f32.mrf.mxu2 }
 0x347   : > { %14518 = vst [vmem:[#allocation108_spill] sm:$0xff] %v10711_v11  ;;  %7616 = vmatmul.msk.bf16.gmra.mxu0 %vm14262_vm0, %v9427_v14  ;;  %v2142_v11 = vor.u32 %v2140_v3, %v14520_v30 }
 0x348   : > { %v2104_v32 = vpop.f32.mrf.mxu1 }
 0x349   : > { %v10728_v44 = vsel %vm2136_vm8, %v2142_v11, %v10147_v39  ;;  %v14521_v11 = vshll.u32 %v9425_v10, 16 }
 0x34b   : > { %7518 = vmatmul.msk.bf16.gmra.mxu1 %vm14262_vm0, %v2141_v19  ;;  %v2629_v6 = vpop.f32.mrf.mxu3 }
 0x34c   : > { %v2766_v27 = vpop.f32.mrf.mxu0 }
 0x34d   : > { %v10721_v21 = vadd.f32 %v2766_v27, %v10468_v24  ;;  %v2432_v15 = vpop.f32.mrf.mxu2 }
 0x34e   : > { %v2144_v15 = vrot.slane %v14521_v11, 1 }
 0x34f   : > { %14519 = vst [vmem:[#allocation109_spill] sm:$0xff] %v10721_v21 }
 0x350   : > { %v2105_v7 = vpop.f32.mrf.mxu1 }
 0x353   : > { %v2630_v23 = vpop.f32.mrf.mxu3 }
 0x354   : > { %v2769_v45 = vpop.f32.mrf.mxu0 }
 0x355   : > { %v2434_v24 = vpop.f32.mrf.mxu2 }
 0x357   : > { %2800 = vmatmul.bf16.gmra.mxu0 %v14434_v57 }
 0x358   : > { %v2107_v32 = vpop.f32.mrf.mxu1 }
 0x359   : > { %v2108_v19 = vadd.f32 %v2107_v32, %v9967_v43  ;;  %v8300_v32 = vld [vmem:[%s14133_s4 + $0x60] sm:$0xff] }
 0x35a   : > { %3083 = vmatpush.bf16.msrb.mxu2 %v8300_v32 }
 0x35b   : > { %v2476_v42 = vadd.f32 %v2426_v31, %v2108_v19  ;;  %7519 = vmatmul.msk.bf16.gmra.mxu1 %vm14262_vm0, %v10728_v44  ;;  %v2632_v30 = vpop.f32.mrf.mxu3 }
 0x35c   : > { %v2770_v27 = vpop.f32.mrf.mxu0 }
 0x35d   : > { %v10733_v7 = vadd.f32 %v2624_v25, %v2476_v42  ;;  %v10737_v3 = vpop.f32.mrf.mxu2  ;;  %v10748_v42 = vsel %vm2136_vm8, %v10147_v39, %v2144_v15  ;;  %v8298_v27 = vld [vmem:[%s14133_s4 + $0x50] sm:$0xff] }
 0x35e   : > { %2897 = vmatpush.bf16.msrb.mxu1 %v8298_v27 }
 0x360   : > { %v10735_v8 = vpop.f32.mrf.mxu1 }
 0x363   : > { %v10750_v25 = vpop.f32.mrf.mxu3 }
 0x364   : > { %v2772_v6 = vpop.f32.mrf.mxu0 }
 0x365   : > { %v10742_v43 = vadd.f32 %v2772_v6, %v10506_v58  ;;  %v2439_v45 = vpop.f32.mrf.mxu2 }
 0x366   : > { %v14524_v45 = vshrl.u32 %v9425_v10, 16 }
 0x367   : > { %14522 = vst [vmem:[#allocation110_spill] sm:$0xff] %v10742_v43  ;;  %7617 = vmatmul.msk.bf16.gmra.mxu0 %vm14262_vm0, %v9579_v4 }
 0x368   : > { %v2112_v31 = vpop.f32.mrf.mxu1  ;;  %v2146_v43 = vor.u32 %v2144_v15, %v14524_v45 }
 0x36b   : > { %7520 = vmatmul.msk.bf16.gmra.mxu1 %vm14262_vm0, %v10748_v42  ;;  %v2637_v6 = vpop.f32.mrf.mxu3 }
 0x36c   : > { %v2774_v58 = vpop.f32.mrf.mxu0 }
 0x36d   : > { %v10758_v19 = vadd.f32 %v2774_v58, %v10515_v60  ;;  %v2440_v11 = vpop.f32.mrf.mxu2  ;;  %v10768_v60 = vsel %vm2136_vm8, %v2146_v43, %v10147_v39 }
 0x36f   : > { %14523 = vst [vmem:[#allocation111_spill] sm:$0xff] %v10758_v19 }
 0x370   : > { %v2113_v23 = vpop.f32.mrf.mxu1 }
 0x373   : > { %v2638_v58 = vpop.f32.mrf.mxu3 }
 0x374   : > { %v2777_v31 = vpop.f32.mrf.mxu0 }
 0x375   : > { %v14525_v31 = vshll.u32 %v9569_v9, 16 }
 0x377   : > { %2808 = vmatmul.bf16.gmra.mxu0 %v14434_v57  ;;  %v2148_v45 = vrot.slane %v14525_v31, 1 }
 0x378   : > { %v2115_v21 = vpop.f32.mrf.mxu1 }
 0x379   : > { %v2116_v32 = vadd.f32 %v2115_v21, %v10056_v47  ;;  %v10786_v21 = vsel %vm2136_vm8, %v10147_v39, %v2148_v45 }
 0x37b   : > { %v2478_v23 = vadd.f32 %v2434_v24, %v2116_v32  ;;  %7521 = vmatmul.msk.bf16.gmra.mxu1 %vm14262_vm0, %v10768_v60 }
 0x37c   : > { %v2778_v27 = vpop.f32.mrf.mxu0 }
 0x37d   : > { %v10773_v6 = vadd.f32 %v2632_v30, %v2478_v23  ;;  %v2442_v27 = vpop.f32.mrf.mxu2 }
 0x380   : > { %v10775_v11 = vpop.f32.mrf.mxu1 }
 0x384   : > { %v2780_v15 = vpop.f32.mrf.mxu0 }
 0x385   : > { %v10780_v19 = vadd.f32 %v2780_v15, %v10577_v0  ;;  %v14528_v0 = vshrl.u32 %v9569_v9, 16 }
 0x387   : > { %14526 = vst [vmem:[#allocation112_spill] sm:$0xff] %v10780_v19  ;;  %7618 = vmatmul.msk.bf16.gmra.mxu0 %vm14262_vm0, %v9724_v36  ;;  %v2150_v58 = vor.u32 %v2148_v45, %v14528_v0  ;;  %v2086_v45 = vadd.f32 %v10653_v63, %v10376_v16  ;;  %v14529_v0 = vshll.u32 %v9705_v61, 16 }
 0x388   : > { %v2120_v47 = vpop.f32.mrf.mxu1 }
 0x389   : > { %v10798_v15 = vsel %vm2136_vm8, %v2150_v58, %v10147_v39  ;;  %v2640_v47 = vpop.f32.mrf.mxu3  ;;  %v2152_v58 = vrot.slane %v14529_v0, 1 }
 0x38b   : > { %7522 = vmatmul.msk.bf16.gmra.mxu1 %vm14262_vm0, %v10786_v21 }
 0x38c   : > { %v2782_v24 = vpop.f32.mrf.mxu0 }
 0x38d   : > { %v10791_v30 = vadd.f32 %v2782_v24, %v10589_v46 }
 0x38f   : > { %14527 = vst [vmem:[#allocation113_spill] sm:$0xff] %v10791_v30 }
 0x390   : > { %v2121_v43 = vpop.f32.mrf.mxu1 }
 0x394   : > { %v2785_v32 = vpop.f32.mrf.mxu0 }
 0x397   : > { %2816 = vmatmul.bf16.gmra.mxu0 %v14434_v57 }
 0x398   : > { %v2123_v23 = vpop.f32.mrf.mxu1 }
 0x399   : > { %v2124_v31 = vadd.f32 %v2123_v23, %v10003_v40  ;;  %v2471_v40 = vadd.f32 %v10584_v12, %v2086_v45 }
 0x39b   : > { %v2480_v19 = vadd.f32 %v2442_v27, %v2124_v31  ;;  %7523 = vmatmul.msk.bf16.gmra.mxu1 %vm14262_vm0, %v10798_v15  ;;  %v2669_v27 = vadd.f32 %v10605_v55, %v2471_v40  ;;  %v14530_v31 = vshll.u32 %v10622_v56, 16 }
 0x39c   : > { %v2786_v46 = vpop.f32.mrf.mxu0 }
 0x39d   : > { %v10803_v24 = vadd.f32 %v2640_v47, %v2480_v19  ;;  %v10819_v19 = vsel %vm2136_vm8, %v10147_v39, %v2152_v58  ;;  %v10828_v12 = vrot.slane %v14530_v31, 1  ;;  %v14531_v46 = vshrl.u32 %v9705_v61, 16 }
 0x39f   : > { %v10833_v47 = vsel %vm2136_vm8, %v10147_v39, %v10828_v12  ;;  %v2154_v45 = vor.u32 %v2152_v58, %v14531_v46  ;;  %v14534_v46 = vld [vmem:[#allocation8_spill] sm:$0xff] }
 0x3a0   : > { %v10805_v43 = vpop.f32.mrf.mxu1  ;;  %7548 = vmatmul.msk.bf16.gmra.mxu2 %vm14262_vm0, %v10833_v47 }
 0x3a1   : > { %v10844_v40 = vsel %vm2136_vm8, %v2154_v45, %v10147_v39  ;;  %v14535_v45 = vshll.u32 %v14534_v46, 16 }
 0x3a4   : > { %v2788_v32 = vpop.f32.mrf.mxu0 }
 0x3a5   : > { %v10812_v30 = vadd.f32 %v2788_v32, %v10649_v26  ;;  %v2004_v32 = vadd.f32 %v10115_v35, %v9564_v62  ;;  %v2006_v35 = vadd.f32 %v10135_v49, %v9606_v33 }
 0x3a7   : > { %7619 = vmatmul.msk.bf16.gmra.mxu0 %vm14262_vm0, %v9611_v34 }
 0x3a8   : > { %v2128_v23 = vpop.f32.mrf.mxu1 }
 0x3a9   : > { %v10849_v23 = vsel %vm14264_vm1, %v10632_v22, %v9730_v59  ;;  %v14533_v22 = vld [vmem:[#allocation10_spill] sm:$0xff] }
 0x3aa   : > { %7592 = vmatmul.msk.bf16.gmra.mxu3 %vm14262_vm0, %v10849_v23 }
 0x3ab   : > { %7524 = vmatmul.msk.bf16.gmra.mxu1 %vm14262_vm0, %v10819_v19 }
 0x3ac   : > { %v2790_v16 = vpop.f32.mrf.mxu0 }
 0x3ad   : > { %v10824_v63 = vadd.f32 %v2790_v16, %v2669_v27 }
 0x3b0   : > { %v2129_v26 = vpop.f32.mrf.mxu1  ;;  %7677 = vmatmul.msk.bf16.vlgmr.msrb.gmra.mxu2 %vm14262_vm0, %v14533_v22 }
 0x3b1   : > { %v14532_v26 = vld [vmem:[#allocation12_spill] sm:$0xff] }
 0x3b2   : > { %v2094_v31 = vadd.f32 %v10682_v28, %v14532_v26  ;;  %v14536_v26 = vld [vmem:[#allocation13_spill] sm:$0xff] }
 0x3b4   : > { %v2793_v55 = vpop.f32.mrf.mxu0 }
 0x3b7   : > { %2824 = vmatmul.bf16.gmra.mxu0 %v14434_v57 }
 0x3b8   : > { %v2322_v0 = vpop.f32.mrf.mxu1 }
 0x3b9   : > { %v10851_v27 = vadd.f32 %v2322_v0, %v2004_v32  ;;  %v2156_v32 = vrot.slane %v14535_v45, 1 }
 0x3ba   : > { %7721 = vmatmul.msk.bf16.vlgmr.msra.gmra.mxu3 %vm14262_vm0, %v9425_v10  ;;  %v14537_v10 = vshrl.u32 %v14534_v46, 16 }
 0x3bb   : > { %7525 = vmatmul.msk.bf16.gmra.mxu1 %vm14262_vm0, %v10844_v40  ;;  %v10875_v49 = vsel %vm2136_vm8, %v10147_v39, %v2156_v32 }
 0x3bc   : > { %v2794_v62 = vpop.f32.mrf.mxu0  ;;  %v2158_v22 = vor.u32 %v2156_v32, %v14537_v10  ;;  %v14541_v32 = vld [vmem:[#allocation46_spill] sm:$0xff] }
 0x3bd   : > { %v2473_v62 = vadd.f32 %v10655_v51, %v2094_v31  ;;  %v8313_v51 = vld [vmem:[%s14135_s6 + $0x38] sm:$0xff] }
 0x3be   : > { %3704 = vmatpush.bf16.msra.mxu1 %v8313_v51  ;;  %v14542_v10 = vld [vmem:[#allocation18_spill] sm:$0xff] }
 0x3bf   : > { %v2671_v28 = vadd.f32 %v10661_v41, %v2473_v62  ;;  %v14538_v41 = vld [vmem:[#allocation9_spill] sm:$0xff] }
 0x3c0   : > { %v2324_v58 = vpop.f32.mrf.mxu1  ;;  %7678 = vmatmul.msk.bf16.gmra.mxu2 %vm14262_vm0, %v14536_v26 }
 0x3c1   : > { %v10859_v16 = vadd.f32 %v2324_v58, %v2006_v35 }
 0x3c4   : > { %v2796_v55 = vpop.f32.mrf.mxu0 }
 0x3c5   : > { %v10868_v0 = vadd.f32 %v2796_v55, %v10677_v1  ;;  %v14539_v55 = vld [vmem:[#allocation44_spill] sm:$0xff] }
 0x3c6   : > { %v2012_v45 = vadd.f32 %v14539_v55, %v14538_v41  ;;  %v2102_v41 = vadd.f32 %v10704_v50, %v14542_v10  ;;  %v14543_v55 = vld [vmem:[#allocation16_spill] sm:$0xff] }
 0x3c7   : > { %7620 = vmatmul.msk.bf16.gmra.mxu0 %vm14262_vm0, %v10622_v56  ;;  %v14546_v10 = vld [vmem:[#allocation52_spill] sm:$0xff] }
 0x3c8   : > { %v2327_v33 = vpop.f32.mrf.mxu1 }
 0x3c9   : > { %v10896_v33 = vsel %vm2136_vm8, %v2158_v22, %v10147_v39 }
 0x3ca   : > { %3275 = vmatmul.bf16.gmra.mxu3 %v14434_v57 }
 0x3cb   : > { %7526 = vmatmul.msk.bf16.gmra.mxu1 %vm14262_vm0, %v10875_v49 }
 0x3cc   : > { %v2798_v1 = vpop.f32.mrf.mxu0 }
 0x3cd   : > { %v10885_v35 = vadd.f32 %v2798_v1, %v2671_v28  ;;  %v14540_v1 = vld [vmem:[#allocation11_spill] sm:$0xff] }
 0x3d0   : > { %v2328_v58 = vpop.f32.mrf.mxu1  ;;  %7679 = vmatmul.msk.bf16.gmra.mxu2 %vm14262_vm0, %v14543_v55 }
 0x3d1   : > { %v2014_v58 = vadd.f32 %v14541_v32, %v14540_v1 }
 0x3d4   : > { %v2801_v31 = vpop.f32.mrf.mxu0 }
 0x3d7   : > { %2832 = vmatmul.bf16.gmra.mxu0 %v14434_v57 }
 0x3d8   : > { %v2330_v62 = vpop.f32.mrf.mxu1 }
 0x3d9   : > { %v10898_v28 = vadd.f32 %v2330_v62, %v2012_v45  ;;  %v2475_v62 = vadd.f32 %v10684_v5, %v2102_v41 }
 0x3da   : > { %7722 = vmatmul.msk.bf16.gmra.mxu3 %vm14262_vm0, %v9569_v9 }
 0x3db   : > { %7527 = vmatmul.msk.bf16.gmra.mxu1 %vm14262_vm0, %v10896_v33  ;;  %v2673_v1 = vadd.f32 %v10691_v52, %v2475_v62  ;;  %v14547_v52 = vld [vmem:[#allocation17_spill] sm:$0xff] }
 0x3dc   : > { %v2802_v51 = vpop.f32.mrf.mxu0 }
 0x3e0   : > { %v2332_v26 = vpop.f32.mrf.mxu1 }
 0x3e1   : > { %v10905_v31 = vadd.f32 %v2332_v26, %v2014_v58  ;;  %v14545_v26 = vld [vmem:[#allocation15_spill] sm:$0xff] }
 0x3e2   : > { %v2020_v41 = vadd.f32 %v14546_v10, %v14545_v26 }
 0x3e4   : > { %v2804_v22 = vpop.f32.mrf.mxu0 }
 0x3e5   : > { %v10912_v45 = vadd.f32 %v2804_v22, %v10702_v2  ;;  %v14544_v2 = vld [vmem:[#allocation19_spill] sm:$0xff]  ;;  %v14548_v22 = vld [vmem:[#allocation54_spill] sm:$0xff] }
 0x3e6   : > { %7680 = vmatmul.msk.bf16.gmra.mxu2 %vm14262_vm0, %v14544_v2  ;;  %v2022_v62 = vadd.f32 %v14548_v22, %v14547_v52  ;;  %v14550_v2 = vld [vmem:[#allocation22_spill] sm:$0xff]  ;;  %v14553_v22 = vld [vmem:[#allocation21_spill] sm:$0xff] }
 0x3e7   : > { %7748 = vmatmul.msk.bf16.vlgmr.msra.gmra.mxu0 %vm14262_vm0, %v10768_v60 }
 0x3e8   : > { %v2335_v51 = vpop.f32.mrf.mxu1 }
 0x3ea   : > { %3283 = vmatmul.bf16.gmra.mxu3 %v14434_v57 }
 0x3eb   : > { %7633 = vmatmul.msk.bf16.vlgmr.msrb.gmra.mxu1 %vm14262_vm0, %v10728_v44 }
 0x3ec   : > { %v2806_v50 = vpop.f32.mrf.mxu0 }
 0x3ed   : > { %v10922_v32 = vadd.f32 %v2806_v50, %v2673_v1  ;;  %v14549_v50 = vld [vmem:[#allocation24_spill] sm:$0xff] }
 0x3f0   : > { %v2336_v58 = vpop.f32.mrf.mxu1 }
 0x3f1   : > { %v2110_v58 = vadd.f32 %v10735_v8, %v14549_v50  ;;  %v8312_v8 = vld [vmem:[%s14135_s6 + $0x30] sm:$0xff]  ;;  %v14555_v50 = vld [vmem:[#allocation23_spill] sm:$0xff] }
 0x3f2   : > { %3705 = vmatpush.bf16.msra.mxu1 %v8312_v8  ;;  %v14558_v8 = vld [vmem:[#allocation29_spill] sm:$0xff] }
 0x3f3   : > { %v2477_v10 = vadd.f32 %v10706_v48, %v2110_v58  ;;  %v14556_v58 = vld [vmem:[#allocation62_spill] sm:$0xff] }
 0x3f4   : > { %v2809_v5 = vpop.f32.mrf.mxu0 }
 0x3f6   : > { %7681 = vmatmul.msk.bf16.gmra.mxu2 %vm14262_vm0, %v14550_v2  ;;  %v2030_v2 = vadd.f32 %v14556_v58, %v14555_v50  ;;  %v14561_v50 = vld [vmem:[#allocation28_spill] sm:$0xff] }
 0x3f7   : > { %7749 = vmatmul.msk.bf16.gmra.mxu0 %vm14262_vm0, %v10786_v21  ;;  %v14562_v58 = vld [vmem:[#allocation68_spill] sm:$0xff] }
 0x3f8   : > { %v2338_v9 = vpop.f32.mrf.mxu1 }
 0x3f9   : > { %v10930_v55 = vadd.f32 %v2338_v9, %v2020_v41  ;;  %v2675_v41 = vadd.f32 %v10717_v13, %v2477_v10 }
 0x3fa   : > { %7723 = vmatmul.msk.bf16.gmra.mxu3 %vm14262_vm0, %v9705_v61  ;;  %v14554_v61 = vld [vmem:[#allocation60_spill] sm:$0xff] }
 0x3fb   : > { %7634 = vmatmul.msk.bf16.gmra.mxu1 %vm14262_vm0, %v10748_v42 }
 0x3fc   : > { %v2810_v44 = vpop.f32.mrf.mxu0 }
 0x3fd   : > { %v14552_v44 = vld [vmem:[#allocation26_spill] sm:$0xff] }
 0x400   : > { %v2340_v51 = vpop.f32.mrf.mxu1 }
 0x401   : > { %v10937_v1 = vadd.f32 %v2340_v51, %v2022_v62  ;;  %v2028_v62 = vadd.f32 %v14554_v61, %v14553_v22  ;;  %v2444_v61 = vpop.f32.mrf.mxu2 }
 0x404   : > { %v2812_v5 = vpop.f32.mrf.mxu0 }
 0x405   : > { %v10944_v26 = vadd.f32 %v2812_v5, %v10733_v7 }
 0x406   : > { %7682 = vmatmul.msk.bf16.gmra.mxu2 %vm14262_vm0, %v14552_v44 }
 0x407   : > { %7750 = vmatmul.msk.bf16.gmra.mxu0 %vm14262_vm0, %v10798_v15 }
 0x408   : > { %v2343_v42 = vpop.f32.mrf.mxu1 }
 0x409   : > { %v14557_v42 = vld [vmem:[#allocation31_spill] sm:$0xff] }
 0x40a   : > { %3291 = vmatmul.bf16.gmra.mxu3 %v14434_v57 }
 0x40b   : > { %7635 = vmatmul.msk.bf16.gmra.mxu1 %vm14262_vm0, %v10768_v60 }
 0x40c   : > { %v2814_v7 = vpop.f32.mrf.mxu0 }
 0x40d   : > { %v10957_v9 = vadd.f32 %v2814_v7, %v2675_v41  ;;  %v2118_v41 = vadd.f32 %v10775_v11, %v14557_v42 }
 0x40f   : > { %14551 = vst [vmem:[#allocation12_spill] sm:$0xff] %v10957_v9  ;;  %v2479_v44 = vadd.f32 %v10737_v3, %v2118_v41  ;;  %v2642_v3 = vpop.f32.mrf.mxu3  ;;  %v14563_v41 = vld [vmem:[#allocation30_spill] sm:$0xff] }
 0x410   : > { %v2344_v48 = vpop.f32.mrf.mxu1 }
 0x414   : > { %v2817_v52 = vpop.f32.mrf.mxu0 }
 0x415   : > { %v2677_v52 = vadd.f32 %v10750_v25, %v2479_v44 }
 0x416   : > { %7683 = vmatmul.msk.bf16.gmra.mxu2 %vm14262_vm0, %v14558_v8  ;;  %v14564_v8 = vld [vmem:[#allocation70_spill] sm:$0xff] }
 0x417   : > { %7751 = vmatmul.msk.bf16.gmra.mxu0 %vm14262_vm0, %v10819_v19 }
 0x418   : > { %v2346_v13 = vpop.f32.mrf.mxu1 }
 0x419   : > { %v10965_v60 = vadd.f32 %v2346_v13, %v2028_v62  ;;  %v14560_v62 = vld [vmem:[#allocation34_spill] sm:$0xff] }
 0x41a   : > { %7724 = vmatmul.msk.bf16.gmra.mxu3 %vm14262_vm0, %v14534_v46 }
 0x41b   : > { %7636 = vmatmul.msk.bf16.gmra.mxu1 %vm14262_vm0, %v10786_v21 }
 0x41c   : > { %v2818_v51 = vpop.f32.mrf.mxu0 }
 0x420   : > { %v2348_v5 = vpop.f32.mrf.mxu1 }
 0x421   : > { %v10972_v10 = vadd.f32 %v2348_v5, %v2030_v2  ;;  %v2036_v2 = vadd.f32 %v14562_v58, %v14561_v50  ;;  %v14567_v58 = vld [vmem:[#allocation14_spill] sm:$0xff] }
 0x423   : > { %v2447_v51 = vpop.f32.mrf.mxu2 }
 0x424   : > { %v2820_v7 = vpop.f32.mrf.mxu0 }
 0x425   : > { %v10979_v48 = vadd.f32 %v2820_v7, %v10773_v6  ;;  %v2038_v7 = vadd.f32 %v14564_v8, %v14563_v41  ;;  %v14569_v41 = vld [vmem:[#allocation42_spill] sm:$0xff] }
 0x426   : > { %7684 = vmatmul.msk.bf16.gmra.mxu2 %vm14262_vm0, %v14560_v62 }
 0x427   : > { %7752 = vmatmul.msk.bf16.gmra.mxu0 %vm14262_vm0, %v10844_v40 }
 0x428   : > { %v2351_v21 = vpop.f32.mrf.mxu1 }
 0x42a   : > { %3299 = vmatmul.bf16.gmra.mxu3 %v14434_v57 }
 0x42b   : > { %7637 = vmatmul.msk.bf16.gmra.mxu1 %vm14262_vm0, %v10798_v15  ;;  %v2448_v42 = vpop.f32.mrf.mxu2 }
 0x42c   : > { %v2822_v11 = vpop.f32.mrf.mxu0 }
 0x42d   : > { %v10989_v22 = vadd.f32 %v2822_v11, %v2677_v52  ;;  %v2645_v5 = vpop.f32.mrf.mxu3  ;;  %v14565_v52 = vld [vmem:[#allocation25_spill] sm:$0xff] }
 0x42e   : > { %v2126_v11 = vadd.f32 %v10805_v43, %v14565_v52  ;;  %v8311_v43 = vld [vmem:[%s14135_s6 + $0x28] sm:$0xff] }
 0x42f   : > { %14559 = vst [vmem:[#allocation10_spill] sm:$0xff] %v10989_v22  ;;  %3706 = vmatpush.bf16.msra.mxu1 %v8311_v43 }
 0x430   : > { %v2352_v6 = vpop.f32.mrf.mxu1 }
 0x431   : > { %v14566_v6 = vld [vmem:[#allocation36_spill] sm:$0xff] }
 0x434   : > { %v2825_v13 = vpop.f32.mrf.mxu0 }
 0x435   : > { %v2646_v13 = vpop.f32.mrf.mxu3 }
 0x436   : > { %7685 = vmatmul.msk.bf16.gmra.mxu2 %vm14262_vm0, %v14566_v6 }
 0x437   : > { %7753 = vmatmul.msk.bf16.gmra.mxu0 %vm14262_vm0, %v10875_v49 }
 0x438   : > { %v2354_v25 = vpop.f32.mrf.mxu1 }
 0x439   : > { %v10997_v46 = vadd.f32 %v2354_v25, %v2036_v2  ;;  %v3085_v2 = vpop.f32.mrf.mxu2 }
 0x43a   : > { %7725 = vmatmul.msk.bf16.gmra.mxu3 %vm14262_vm0, %v14567_v58  ;;  %v14574_v58 = vld [vmem:[#allocation78_spill] sm:$0xff] }
 0x43b   : > { %7638 = vmatmul.msk.bf16.gmra.mxu1 %vm14262_vm0, %v10819_v19  ;;  %v2481_v19 = vadd.f32 %v2444_v61, %v2126_v11 }
 0x43c   : > { %v2826_v15 = vpop.f32.mrf.mxu0 }
 0x43d   : > { %v2679_v25 = vadd.f32 %v2642_v3, %v2481_v19  ;;  %v14570_v3 = vld [vmem:[#allocation35_spill] sm:$0xff] }
 0x440   : > { %v2356_v44 = vpop.f32.mrf.mxu1 }
 0x441   : > { %v11004_v21 = vadd.f32 %v2356_v44, %v2038_v7  ;;  %v3087_v42 = vpop.f32.mrf.mxu2  ;;  %v14571_v44 = vld [vmem:[#allocation76_spill] sm:$0xff] }
 0x442   : > { %v2044_v52 = vadd.f32 %v14571_v44, %v14570_v3  ;;  %v14576_v3 = vld [vmem:[#allocation45_spill] sm:$0xff] }
 0x444   : > { %v2828_v62 = vpop.f32.mrf.mxu0 }
 0x445   : > { %v11011_v51 = vadd.f32 %v2828_v62, %v10803_v24  ;;  %v3271_v24 = vpop.f32.mrf.mxu3 }
 0x446   : > { %7686 = vmatmul.msk.bf16.gmra.mxu2 %vm14262_vm0, %v14569_v41  ;;  %v14575_v41 = vld [vmem:[#allocation32_spill] sm:$0xff] }
 0x447   : > { %7754 = vmatmul.msk.bf16.gmra.mxu0 %vm14262_vm0, %v10896_v33 }
 0x448   : > { %v2359_v50 = vpop.f32.mrf.mxu1 }
 0x449   : > { %v3090_v62 = vpop.f32.mrf.mxu2  ;;  %v14573_v50 = vld [vmem:[#allocation37_spill] sm:$0xff] }
 0x44a   : > { %3307 = vmatmul.bf16.gmra.mxu3 %v14434_v57 }
 0x44b   : > { %7639 = vmatmul.msk.bf16.gmra.mxu1 %vm14262_vm0, %v10844_v40  ;;  %v14572_v40 = vld [vmem:[#allocation40_spill] sm:$0xff] }
 0x44c   : > { %v2830_v15 = vpop.f32.mrf.mxu0 }
 0x44d   : > { %v11022_v5 = vadd.f32 %v2830_v15, %v2679_v25  ;;  %v3273_v7 = vpop.f32.mrf.mxu3  ;;  %v2046_v25 = vadd.f32 %v14574_v58, %v14573_v50  ;;  %v14579_v50 = vld [vmem:[#allocation20_spill] sm:$0xff] }
 0x44f   : > { %14568 = vst [vmem:[#allocation8_spill] sm:$0xff] %v11022_v5 }
 0x450   : > { %v2360_v61 = vpop.f32.mrf.mxu1 }
 0x451   : > { %v3091_v61 = vpop.f32.mrf.mxu2 }
 0x454   : > { %v2833_v8 = vpop.f32.mrf.mxu0 }
 0x455   : > { %v3276_v19 = vpop.f32.mrf.mxu3  ;;  %v2648_v8 = vadd.f32 %v14575_v41, %v10851_v27 }
 0x456   : > { %7687 = vmatmul.msk.bf16.gmra.mxu2 %vm14262_vm0, %v14576_v3 }
 0x457   : > { %7755 = vmatmul.msk.bf16.gmra.mxu0 %vm14262_vm0, %v14572_v40 }
 0x458   : > { %v2362_v11 = vpop.f32.mrf.mxu1 }
 0x459   : > { %v11030_v6 = vadd.f32 %v2362_v11, %v2044_v52  ;;  %v14577_v11 = vld [vmem:[#allocation79_spill] sm:$0xff]  ;;  %v3093_v58 = vpop.f32.mrf.mxu2 }
 0x45a   : > { %v2836_v62 = vadd.f32 %v14577_v11, %v2648_v8  ;;  %7726 = vmatmul.msk.bf16.gmra.mxu3 %vm14262_vm0, %v14579_v50  ;;  %v14582_v50 = vld [vmem:[#allocation50_spill] sm:$0xff] }
 0x45b   : > { %7640 = vmatmul.msk.bf16.gmra.mxu1 %vm14262_vm0, %v10875_v49  ;;  %v14578_v49 = vld [vmem:[#allocation43_spill] sm:$0xff] }
 0x45c   : > { %v2834_v13 = vpop.f32.mrf.mxu0 }
 0x45d   : > { %v3277_v52 = vpop.f32.mrf.mxu3 }
 0x45e   : > { %v14581_v52 = vld [vmem:[#allocation82_spill] sm:$0xff] }
 0x460   : > { %v2364_v43 = vpop.f32.mrf.mxu1 }
 0x461   : > { %v11037_v15 = vadd.f32 %v2364_v43, %v2046_v25  ;;  %v14580_v25 = vld [vmem:[#allocation33_spill] sm:$0xff] }
 0x462   : > { %v2649_v43 = vadd.f32 %v14580_v25, %v10859_v16 }
 0x464   : > { %v3457_v44 = vpop.f32.mrf.mxu0  ;;  %v2837_v11 = vadd.f32 %v14581_v52, %v2649_v43 }
 0x465   : > { %v3279_v41 = vpop.f32.mrf.mxu3 }
 0x466   : > { %7688 = vmatmul.msk.bf16.gmra.mxu2 %vm14262_vm0, %v14582_v50 }
 0x467   : > { %7756 = vmatmul.msk.bf16.gmra.mxu0 %vm14262_vm0, %v14578_v49 }
 0x468   : > { %v2899_v13 = vpop.f32.mrf.mxu1 }
 0x469   : > { %v3027_v19 = vadd.f32 %v2899_v13, %v2836_v62  ;;  %v3095_v13 = vpop.f32.mrf.mxu2 }
 0x46a   : > { %3315 = vmatmul.bf16.gmra.mxu3 %v14434_v57 }
 0x46b   : > { %v3213_v27 = vadd.f32 %v3085_v2, %v3027_v19  ;;  %7641 = vmatmul.msk.bf16.gmra.mxu1 %vm14262_vm0, %v10896_v33  ;;  %v14583_v33 = vld [vmem:[#allocation48_spill] sm:$0xff] }
 0x46c   : > { %v3459_v61 = vpop.f32.mrf.mxu0 }
 0x46d   : > { %v3399_v3 = vadd.f32 %v3271_v24, %v3213_v27  ;;  %v3281_v16 = vpop.f32.mrf.mxu3 }
 0x46f   : > { %v11052_v8 = vadd.f32 %v3457_v44, %v3399_v3  ;;  %v14586_v3 = vld [vmem:[#allocation85_spill] sm:$0xff] }
 0x470   : > { %v2901_v5 = vpop.f32.mrf.mxu1 }
 0x471   : > { %v3028_v62 = vadd.f32 %v2901_v5, %v2837_v11  ;;  %v3098_v44 = vpop.f32.mrf.mxu2  ;;  %v14587_v11 = vld [vmem:[#allocation51_spill] sm:$0xff] }
 0x473   : > { %v3214_v22 = vadd.f32 %v3087_v42, %v3028_v62 }
 0x474   : > { %v3462_v9 = vpop.f32.mrf.mxu0 }
 0x475   : > { %v3400_v2 = vadd.f32 %v3273_v7, %v3214_v22  ;;  %v3284_v42 = vpop.f32.mrf.mxu3  ;;  %v14584_v9 = vld [vmem:[#allocation38_spill] sm:$0xff]  ;;  %v14585_v22 = vld [vmem:[#allocation53_spill] sm:$0xff] }
 0x476   : > { %v2650_v27 = vadd.f32 %v14584_v9, %v10898_v28  ;;  %7689 = vmatmul.msk.bf16.gmra.mxu2 %vm14262_vm0, %v14585_v22 }
 0x477   : > { %v11057_v19 = vadd.f32 %v3459_v61, %v3400_v2  ;;  %7757 = vmatmul.msk.bf16.gmra.mxu0 %vm14262_vm0, %v14583_v33 }
 0x478   : > { %v2904_v24 = vpop.f32.mrf.mxu1  ;;  %v2838_v52 = vadd.f32 %v14586_v3, %v2650_v27  ;;  %v14590_v27 = vld [vmem:[#allocation88_spill] sm:$0xff] }
 0x479   : > { %v3099_v43 = vpop.f32.mrf.mxu2  ;;  %v14589_v24 = vld [vmem:[#allocation41_spill] sm:$0xff] }
 0x47a   : > { %v2651_v44 = vadd.f32 %v14589_v24, %v10905_v31  ;;  %v14592_v24 = vld [vmem:[#allocation56_spill] sm:$0xff] }
 0x47b   : > { %7642 = vmatmul.msk.bf16.gmra.mxu1 %vm14262_vm0, %v14572_v40  ;;  %v14588_v40 = vld [vmem:[#allocation27_spill] sm:$0xff] }
 0x47c   : > { %v3463_v5 = vpop.f32.mrf.mxu0  ;;  %7727 = vmatmul.msk.bf16.gmra.mxu3 %vm14262_vm0, %v14588_v40  ;;  %v2839_v22 = vadd.f32 %v14590_v27, %v2651_v44 }
 0x47d   : > { %v3285_v61 = vpop.f32.mrf.mxu3  ;;  %v8310_v5 = vld [vmem:[%s14135_s6 + $0x20] sm:$0xff] }
 0x47e   : > { %3707 = vmatpush.bf16.msra.mxu1 %v8310_v5 }
 0x480   : > { %v2905_v25 = vpop.f32.mrf.mxu1 }
 0x481   : > { %v3101_v2 = vpop.f32.mrf.mxu2 }
 0x484   : > { %v3465_v7 = vpop.f32.mrf.mxu0 }
 0x485   : > { %v3287_v25 = vpop.f32.mrf.mxu3 }
 0x487   : > { %7758 = vmatmul.msk.bf16.gmra.mxu0 %vm14262_vm0, %v14587_v11 }
 0x488   : > { %v2907_v62 = vpop.f32.mrf.mxu1 }
 0x489   : > { %v3029_v50 = vadd.f32 %v2907_v62, %v2838_v52  ;;  %v3103_v52 = vpop.f32.mrf.mxu2 }
 0x48b   : > { %v3215_v28 = vadd.f32 %v3093_v58, %v3029_v50  ;;  %7643 = vmatmul.msk.bf16.gmra.mxu1 %vm14262_vm0, %v14578_v49  ;;  %v14591_v58 = vld [vmem:[#allocation58_spill] sm:$0xff] }
 0x48c   : > { %v3467_v42 = vpop.f32.mrf.mxu0  ;;  %7690 = vmatmul.msk.bf16.gmra.mxu2 %vm14262_vm0, %v14591_v58  ;;  %3323 = vmatmul.bf16.gmra.mxu3 %v14434_v57 }
 0x48d   : > { %v3401_v43 = vadd.f32 %v3279_v41, %v3215_v28  ;;  %v3289_v62 = vpop.f32.mrf.mxu3 }
 0x48f   : > { %v11080_v9 = vadd.f32 %v3465_v7, %v3401_v43  ;;  %v14593_v43 = vld [vmem:[#allocation47_spill] sm:$0xff] }
 0x490   : > { %v2909_v61 = vpop.f32.mrf.mxu1  ;;  %v2652_v27 = vadd.f32 %v14593_v43, %v10930_v55 }
 0x491   : > { %v3030_v3 = vadd.f32 %v2909_v61, %v2839_v22  ;;  %v3106_v7 = vpop.f32.mrf.mxu2  ;;  %v14595_v61 = vld [vmem:[#allocation91_spill] sm:$0xff] }
 0x493   : > { %v3216_v31 = vadd.f32 %v3095_v13, %v3030_v3  ;;  %v2840_v3 = vadd.f32 %v14595_v61, %v2652_v27 }
 0x494   : > { %v3470_v49 = vpop.f32.mrf.mxu0 }
 0x495   : > { %v3402_v50 = vadd.f32 %v3281_v16, %v3216_v31  ;;  %v3292_v13 = vpop.f32.mrf.mxu3  ;;  %v14594_v16 = vld [vmem:[#allocation61_spill] sm:$0xff]  ;;  %v14596_v31 = vld [vmem:[#allocation59_spill] sm:$0xff] }
 0x497   : > { %v11085_v40 = vadd.f32 %v3467_v42, %v3402_v50  ;;  %7759 = vmatmul.msk.bf16.gmra.mxu0 %vm14262_vm0, %v14592_v24  ;;  %v14597_v50 = vld [vmem:[#allocation49_spill] sm:$0xff] }
 0x498   : > { %v2912_v41 = vpop.f32.mrf.mxu1 }
 0x499   : > { %v3107_v5 = vpop.f32.mrf.mxu2  ;;  %v2653_v41 = vadd.f32 %v14597_v50, %v10937_v1 }
 0x49a   : > { %v14598_v5 = vld [vmem:[#allocation94_spill] sm:$0xff] }
 0x49b   : > { %7644 = vmatmul.msk.bf16.gmra.mxu1 %vm14262_vm0, %v14583_v33  ;;  %v2841_v43 = vadd.f32 %v14598_v5, %v2653_v41 }
 0x49c   : > { %v3471_v44 = vpop.f32.mrf.mxu0  ;;  %7691 = vmatmul.msk.bf16.gmra.mxu2 %vm14262_vm0, %v14594_v16  ;;  %7728 = vmatmul.msk.bf16.gmra.mxu3 %vm14262_vm0, %v10108_v38  ;;  %v14599_v38 = vld [vmem:[#allocation66_spill] sm:$0xff] }
 0x49d   : > { %v3293_v22 = vpop.f32.mrf.mxu3 }
 0x4a0   : > { %v2913_v28 = vpop.f32.mrf.mxu1 }
 0x4a1   : > { %v3109_v33 = vpop.f32.mrf.mxu2 }
 0x4a4   : > { %v3473_v42 = vpop.f32.mrf.mxu0 }
 0x4a5   : > { %v3295_v44 = vpop.f32.mrf.mxu3 }
 0x4a7   : > { %7760 = vmatmul.msk.bf16.gmra.mxu0 %vm14262_vm0, %v14596_v31 }
 0x4a8   : > { %v2915_v58 = vpop.f32.mrf.mxu1 }
 0x4a9   : > { %v3031_v49 = vadd.f32 %v2915_v58, %v2840_v3  ;;  %v3111_v22 = vpop.f32.mrf.mxu2 }
 0x4ab   : > { %v3217_v55 = vadd.f32 %v3101_v2, %v3031_v49  ;;  %7645 = vmatmul.msk.bf16.gmra.mxu1 %vm14262_vm0, %v14587_v11  ;;  %v14600_v11 = vld [vmem:[#allocation64_spill] sm:$0xff] }
 0x4ac   : > { %v3475_v7 = vpop.f32.mrf.mxu0  ;;  %7692 = vmatmul.msk.bf16.gmra.mxu2 %vm14262_vm0, %v14599_v38  ;;  %3331 = vmatmul.bf16.gmra.mxu3 %v14434_v57 }
 0x4ad   : > { %v3403_v13 = vadd.f32 %v3287_v25, %v3217_v55  ;;  %v3297_v1 = vpop.f32.mrf.mxu3  ;;  %v14601_v55 = vld [vmem:[#allocation55_spill] sm:$0xff] }
 0x4af   : > { %v11105_v28 = vadd.f32 %v3473_v42, %v3403_v13  ;;  %v2654_v13 = vadd.f32 %v14601_v55, %v10965_v60 }
 0x4b0   : > { %v2917_v27 = vpop.f32.mrf.mxu1 }
 0x4b1   : > { %v3032_v16 = vadd.f32 %v2917_v27, %v2841_v43  ;;  %v3114_v42 = vpop.f32.mrf.mxu2  ;;  %v14603_v43 = vld [vmem:[#allocation97_spill] sm:$0xff] }
 0x4b2   : > { %v2842_v27 = vadd.f32 %v14603_v43, %v2654_v13 }
 0x4b3   : > { %v3218_v61 = vadd.f32 %v3103_v52, %v3032_v16  ;;  %v14604_v16 = vld [vmem:[#allocation67_spill] sm:$0xff] }
 0x4b4   : > { %v3478_v3 = vpop.f32.mrf.mxu0 }
 0x4b5   : > { %v3404_v2 = vadd.f32 %v3289_v62, %v3218_v61  ;;  %v3300_v52 = vpop.f32.mrf.mxu3  ;;  %v14602_v62 = vld [vmem:[#allocation69_spill] sm:$0xff] }
 0x4b6   : > { %v14605_v3 = vld [vmem:[#allocation57_spill] sm:$0xff] }
 0x4b7   : > { %v11110_v58 = vadd.f32 %v3475_v7, %v3404_v2  ;;  %7761 = vmatmul.msk.bf16.gmra.mxu0 %vm14262_vm0, %v14600_v11  ;;  %v2655_v2 = vadd.f32 %v14605_v3, %v10972_v10 }
 0x4b8   : > { %v2920_v25 = vpop.f32.mrf.mxu1 }
 0x4b9   : > { %v3115_v41 = vpop.f32.mrf.mxu2  ;;  %v8309_v25 = vld [vmem:[%s14135_s6 + $0x18] sm:$0xff] }
 0x4ba   : > { %3708 = vmatpush.bf16.msra.mxu1 %v8309_v25  ;;  %v14606_v41 = vld [vmem:[#allocation100_spill] sm:$0xff] }
 0x4bb   : > { %7646 = vmatmul.msk.bf16.gmra.mxu1 %vm14262_vm0, %v14592_v24 }
 0x4bc   : > { %v3479_v49 = vpop.f32.mrf.mxu0  ;;  %7693 = vmatmul.msk.bf16.gmra.mxu2 %vm14262_vm0, %v14602_v62  ;;  %7729 = vmatmul.msk.bf16.gmra.mxu3 %vm14262_vm0, %v10169_v53  ;;  %v2843_v53 = vadd.f32 %v14606_v41, %v2655_v2  ;;  %v14611_v41 = vld [vmem:[#allocation103_spill] sm:$0xff] }
 0x4bd   : > { %v3301_v5 = vpop.f32.mrf.mxu3 }
 0x4c0   : > { %v2921_v50 = vpop.f32.mrf.mxu1 }
 0x4c1   : > { %v3117_v24 = vpop.f32.mrf.mxu2 }
 0x4c4   : > { %v3481_v7 = vpop.f32.mrf.mxu0 }
 0x4c5   : > { %v3303_v49 = vpop.f32.mrf.mxu3 }
 0x4c7   : > { %7762 = vmatmul.msk.bf16.gmra.mxu0 %vm14262_vm0, %v14604_v16 }
 0x4c8   : > { %v2923_v61 = vpop.f32.mrf.mxu1 }
 0x4c9   : > { %v3033_v38 = vadd.f32 %v2923_v61, %v2842_v27  ;;  %v3119_v62 = vpop.f32.mrf.mxu2  ;;  %v14608_v61 = vld [vmem:[#allocation72_spill] sm:$0xff] }
 0x4cb   : > { %v3219_v60 = vadd.f32 %v3109_v33, %v3033_v38  ;;  %7647 = vmatmul.msk.bf16.gmra.mxu1 %vm14262_vm0, %v14596_v31  ;;  %v14607_v33 = vld [vmem:[#allocation74_spill] sm:$0xff] }
 0x4cc   : > { %v3483_v42 = vpop.f32.mrf.mxu0  ;;  %7694 = vmatmul.msk.bf16.gmra.mxu2 %vm14262_vm0, %v14607_v33  ;;  %3339 = vmatmul.bf16.gmra.mxu3 %v14434_v57  ;;  %v14613_v33 = vld [vmem:[#allocation65_spill] sm:$0xff] }
 0x4cd   : > { %v3405_v52 = vadd.f32 %v3295_v44, %v3219_v60  ;;  %v3305_v5 = vpop.f32.mrf.mxu3  ;;  %v14609_v60 = vld [vmem:[#allocation63_spill] sm:$0xff] }
 0x4ce   : > { %v2656_v25 = vadd.f32 %v14609_v60, %v10997_v46 }
 0x4cf   : > { %v11133_v50 = vadd.f32 %v3481_v7, %v3405_v52 }
 0x4d0   : > { %v2925_v55 = vpop.f32.mrf.mxu1 }
 0x4d1   : > { %v3034_v13 = vadd.f32 %v2925_v55, %v2843_v53  ;;  %v3122_v7 = vpop.f32.mrf.mxu2  ;;  %v2844_v53 = vadd.f32 %v14611_v41, %v2656_v25  ;;  %v14612_v55 = vld [vmem:[#allocation75_spill] sm:$0xff] }
 0x4d3   : > { %v3220_v10 = vadd.f32 %v3111_v22, %v3034_v13 }
 0x4d4   : > { %v3486_v31 = vpop.f32.mrf.mxu0 }
 0x4d5   : > { %v3406_v43 = vadd.f32 %v3297_v1, %v3220_v10  ;;  %v3308_v22 = vpop.f32.mrf.mxu3  ;;  %v14610_v1 = vld [vmem:[#allocation77_spill] sm:$0xff]  ;;  %v2657_v31 = vadd.f32 %v14613_v33, %v11004_v21 }
 0x4d7   : > { %v11138_v27 = vadd.f32 %v3483_v42, %v3406_v43  ;;  %7763 = vmatmul.msk.bf16.gmra.mxu0 %vm14262_vm0, %v14608_v61  ;;  %v2845_v22 = vadd.f32 %v10615_v54, %v2657_v31 }
 0x4d8   : > { %v2928_v44 = vpop.f32.mrf.mxu1 }
 0x4d9   : > { %v3123_v2 = vpop.f32.mrf.mxu2 }
 0x4db   : > { %7648 = vmatmul.msk.bf16.gmra.mxu1 %vm14262_vm0, %v14600_v11 }
 0x4dc   : > { %v3487_v38 = vpop.f32.mrf.mxu0  ;;  %7695 = vmatmul.msk.bf16.gmra.mxu2 %vm14262_vm0, %v14610_v1  ;;  %7730 = vmatmul.msk.bf16.gmra.mxu3 %vm14262_vm0, %v9322_v37  ;;  %v14614_v37 = vld [vmem:[#allocation81_spill] sm:$0xff] }
 0x4dd   : > { %v3309_v52 = vpop.f32.mrf.mxu3 }
 0x4e0   : > { %v2929_v3 = vpop.f32.mrf.mxu1 }
 0x4e1   : > { %v3125_v11 = vpop.f32.mrf.mxu2 }
 0x4e4   : > { %v3489_v42 = vpop.f32.mrf.mxu0 }
 0x4e5   : > { %v3311_v44 = vpop.f32.mrf.mxu3 }
 0x4e7   : > { %7764 = vmatmul.msk.bf16.gmra.mxu0 %vm14262_vm0, %v14612_v55 }
 0x4e8   : > { %v2931_v13 = vpop.f32.mrf.mxu1 }
 0x4e9   : > { %v3035_v10 = vadd.f32 %v2931_v13, %v2844_v53  ;;  %v3127_v60 = vpop.f32.mrf.mxu2  ;;  %v14616_v13 = vld [vmem:[#allocation71_spill] sm:$0xff] }
 0x4eb   : > { %v3221_v46 = vadd.f32 %v3117_v24, %v3035_v10  ;;  %7649 = vmatmul.msk.bf16.gmra.mxu1 %vm14262_vm0, %v14604_v16  ;;  %v14615_v16 = vld [vmem:[#allocation80_spill] sm:$0xff]  ;;  %v2658_v10 = vadd.f32 %v14616_v13, %v11030_v6  ;;  %v14621_v13 = vld [vmem:[#allocation86_spill] sm:$0xff] }
 0x4ec   : > { %v3491_v43 = vpop.f32.mrf.mxu0  ;;  %7696 = vmatmul.msk.bf16.gmra.mxu2 %vm14262_vm0, %v14614_v37  ;;  %3347 = vmatmul.bf16.gmra.mxu3 %v14434_v57 }
 0x4ed   : > { %v3407_v7 = vadd.f32 %v3303_v49, %v3221_v46  ;;  %v3313_v21 = vpop.f32.mrf.mxu3  ;;  %v2846_v46 = vadd.f32 %v10657_v17, %v2658_v10  ;;  %v8308_v17 = vld [vmem:[%s14135_s6 + $0x10] sm:$0xff] }
 0x4ee   : > { %3709 = vmatpush.bf16.msra.mxu1 %v8308_v17 }
 0x4ef   : > { %v11158_v38 = vadd.f32 %v3489_v42, %v3407_v7 }
 0x4f0   : > { %v2933_v3 = vpop.f32.mrf.mxu1 }
 0x4f1   : > { %v3036_v2 = vadd.f32 %v2933_v3, %v2845_v22  ;;  %v3130_v42 = vpop.f32.mrf.mxu2  ;;  %v14619_v3 = vld [vmem:[#allocation73_spill] sm:$0xff] }
 0x4f3   : > { %v3222_v25 = vadd.f32 %v3119_v62, %v3036_v2  ;;  %v2659_v2 = vadd.f32 %v14619_v3, %v11037_v15 }
 0x4f4   : > { %v3494_v1 = vpop.f32.mrf.mxu0 }
 0x4f5   : > { %v3408_v24 = vadd.f32 %v3305_v5, %v3222_v25  ;;  %v3316_v62 = vpop.f32.mrf.mxu3  ;;  %v14617_v5 = vld [vmem:[#allocation84_spill] sm:$0xff] }
 0x4f7   : > { %v11163_v52 = vadd.f32 %v3491_v43, %v3408_v24  ;;  %7765 = vmatmul.msk.bf16.gmra.mxu0 %vm14262_vm0, %v14615_v16  ;;  %v14618_v43 = vld [vmem:[#allocation83_spill] sm:$0xff] }
 0x4f8   : > { %v2936_v49 = vpop.f32.mrf.mxu1 }
 0x4f9   : > { %v3131_v53 = vpop.f32.mrf.mxu2 }
 0x4fb   : > { %7650 = vmatmul.msk.bf16.gmra.mxu1 %vm14262_vm0, %v14608_v61 }
 0x4fc   : > { %v3495_v54 = vpop.f32.mrf.mxu0  ;;  %7697 = vmatmul.msk.bf16.gmra.mxu2 %vm14262_vm0, %v14617_v5  ;;  %7731 = vmatmul.msk.bf16.gmra.mxu3 %vm14262_vm0, %v9427_v14  ;;  %v2847_v14 = vadd.f32 %v10665_v29, %v2659_v2 }
 0x4fd   : > { %v3317_v31 = vpop.f32.mrf.mxu3 }
 0x4fe   : > { %v14622_v31 = vld [vmem:[#allocation90_spill] sm:$0xff] }
 0x500   : > { %v2937_v41 = vpop.f32.mrf.mxu1 }
 0x501   : > { %v3133_v61 = vpop.f32.mrf.mxu2 }
 0x504   : > { %v3497_v33 = vpop.f32.mrf.mxu0 }
 0x505   : > { %v3319_v37 = vpop.f32.mrf.mxu3 }
 0x507   : > { %7766 = vmatmul.msk.bf16.gmra.mxu0 %vm14262_vm0, %v14618_v43 }
 0x508   : > { %v2939_v7 = vpop.f32.mrf.mxu1 }
 0x509   : > { %v3037_v22 = vadd.f32 %v2939_v7, %v2846_v46  ;;  %v3135_v54 = vpop.f32.mrf.mxu2  ;;  %v14623_v7 = vld [vmem:[#allocation89_spill] sm:$0xff] }
 0x50b   : > { %v3223_v6 = vadd.f32 %v3125_v11, %v3037_v22  ;;  %7651 = vmatmul.msk.bf16.gmra.mxu1 %vm14262_vm0, %v14612_v55  ;;  %v14620_v11 = vld [vmem:[#allocation87_spill] sm:$0xff] }
 0x50c   : > { %v3499_v25 = vpop.f32.mrf.mxu0  ;;  %7698 = vmatmul.msk.bf16.gmra.mxu2 %vm14262_vm0, %v14620_v11  ;;  %3355 = vmatmul.bf16.gmra.mxu3 %v14434_v57  ;;  %v14624_v11 = vld [vmem:[#allocation93_spill] sm:$0xff] }
 0x50d   : > { %v3409_v1 = vadd.f32 %v3311_v44, %v3223_v6  ;;  %v3321_v62 = vpop.f32.mrf.mxu3 }
 0x50f   : > { %v11186_v24 = vadd.f32 %v3497_v33, %v3409_v1 }
 0x510   : > { %v2941_v49 = vpop.f32.mrf.mxu1 }
 0x511   : > { %v3038_v42 = vadd.f32 %v2941_v49, %v2847_v14  ;;  %v3138_v10 = vpop.f32.mrf.mxu2 }
 0x513   : > { %v3224_v15 = vadd.f32 %v3127_v60, %v3038_v42 }
 0x514   : > { %v3502_v55 = vpop.f32.mrf.mxu0 }
 0x515   : > { %v3410_v41 = vadd.f32 %v3313_v21, %v3224_v15  ;;  %v3324_v60 = vpop.f32.mrf.mxu3 }
 0x517   : > { %v11191_v53 = vadd.f32 %v3499_v25, %v3410_v41  ;;  %7767 = vmatmul.msk.bf16.gmra.mxu0 %vm14262_vm0, %v14621_v13  ;;  %v14625_v41 = vld [vmem:[#allocation92_spill] sm:$0xff] }
 0x518   : > { %v2944_v44 = vpop.f32.mrf.mxu1 }
 0x519   : > { %v3139_v33 = vpop.f32.mrf.mxu2 }
 0x51b   : > { %7652 = vmatmul.msk.bf16.gmra.mxu1 %vm14262_vm0, %v14615_v16 }
 0x51c   : > { %v3503_v29 = vpop.f32.mrf.mxu0  ;;  %7699 = vmatmul.msk.bf16.gmra.mxu2 %vm14262_vm0, %v14622_v31  ;;  %7732 = vmatmul.msk.bf16.gmra.mxu3 %vm14262_vm0, %v9579_v4  ;;  %v14628_v31 = vld [vmem:[#allocation108_spill] sm:$0xff] }
 0x51d   : > { %v3325_v46 = vpop.f32.mrf.mxu3  ;;  %v14626_v29 = vld [vmem:[#allocation96_spill] sm:$0xff] }
 0x520   : > { %v2945_v5 = vpop.f32.mrf.mxu1 }
 0x521   : > { %v3141_v2 = vpop.f32.mrf.mxu2  ;;  %v14627_v5 = vld [vmem:[#allocation95_spill] sm:$0xff] }
 0x524   : > { %v3505_v21 = vpop.f32.mrf.mxu0 }
 0x525   : > { %v3327_v17 = vpop.f32.mrf.mxu3 }
 0x527   : > { %7768 = vmatmul.msk.bf16.gmra.mxu0 %vm14262_vm0, %v14623_v7 }
 0x528   : > { %v2947_v22 = vpop.f32.mrf.mxu1 }
 0x529   : > { %v3039_v3 = vadd.f32 %v2947_v22, %v10687_v18  ;;  %v3143_v42 = vpop.f32.mrf.mxu2 }
 0x52b   : > { %v3225_v16 = vadd.f32 %v3133_v61, %v3039_v3  ;;  %7653 = vmatmul.msk.bf16.gmra.mxu1 %vm14262_vm0, %v14618_v43  ;;  %v8307_v3 = vld [vmem:[%s14135_s6 + $0x8] sm:$0xff] }
 0x52c   : > { %v3507_v6 = vpop.f32.mrf.mxu0  ;;  %7700 = vmatmul.msk.bf16.gmra.mxu2 %vm14262_vm0, %v14624_v11  ;;  %3363 = vmatmul.bf16.gmra.mxu3 %v14434_v57 }
 0x52d   : > { %v3411_v25 = vadd.f32 %v3319_v37, %v3225_v16  ;;  %v3329_v4 = vpop.f32.mrf.mxu3  ;;  %3710 = vmatpush.bf16.msra.mxu1 %v8307_v3 }
 0x52f   : > { %v11207_v1 = vadd.f32 %v3505_v21, %v3411_v25 }
 0x530   : > { %v2949_v14 = vpop.f32.mrf.mxu1 }
 0x531   : > { %v3040_v49 = vadd.f32 %v2949_v14, %v10696_v20  ;;  %v3146_v37 = vpop.f32.mrf.mxu2 }
 0x533   : > { %v3226_v15 = vadd.f32 %v3135_v54, %v3040_v49  ;;  %v14629_v49 = vld [vmem:[#allocation109_spill] sm:$0xff] }
 0x534   : > { %v3510_v18 = vpop.f32.mrf.mxu0 }
 0x535   : > { %v3412_v55 = vadd.f32 %v3321_v62, %v3226_v15  ;;  %v3332_v54 = vpop.f32.mrf.mxu3 }
 0x537   : > { %v11212_v61 = vadd.f32 %v3507_v6, %v3412_v55  ;;  %7769 = vmatmul.msk.bf16.gmra.mxu0 %vm14262_vm0, %v14625_v41 }
 0x538   : > { %v2952_v43 = vpop.f32.mrf.mxu1 }
 0x539   : > { %v3147_v10 = vpop.f32.mrf.mxu2 }
 0x53b   : > { %7654 = vmatmul.msk.bf16.gmra.mxu1 %vm14262_vm0, %v14621_v13  ;;  %v8321_v13 = vld [vmem:[%s14139_s10 + $0x38] sm:$0xff] }
 0x53c   : > { %v3511_v20 = vpop.f32.mrf.mxu0  ;;  %7701 = vmatmul.msk.bf16.gmra.mxu2 %vm14262_vm0, %v14626_v29  ;;  %7733 = vmatmul.msk.bf16.gmra.mxu3 %vm14262_vm0, %v9724_v36 }
 0x53d   : > { %v3333_v60 = vpop.f32.mrf.mxu3  ;;  %4972 = vmatpush.bf16.msra.mxu2 %v8321_v13  ;;  %v14631_v20 = vld [vmem:[#allocation98_spill] sm:$0xff] }
 0x540   : > { %v2953_v44 = vpop.f32.mrf.mxu1 }
 0x541   : > { %v3149_v46 = vpop.f32.mrf.mxu2 }
 0x544   : > { %v3513_v62 = vpop.f32.mrf.mxu0 }
 0x545   : > { %v3335_v6 = vpop.f32.mrf.mxu3 }
 0x547   : > { %7770 = vmatmul.msk.bf16.gmra.mxu0 %vm14262_vm0, %v14627_v5 }
 0x548   : > { %v2955_v33 = vpop.f32.mrf.mxu1 }
 0x549   : > { %v3041_v21 = vadd.f32 %v2955_v33, %v14628_v31  ;;  %v3151_v11 = vpop.f32.mrf.mxu2  ;;  %v14633_v33 = vld [vmem:[#allocation101_spill] sm:$0xff] }
 0x54b   : > { %v3227_v22 = vadd.f32 %v3141_v2, %v3041_v21  ;;  %7655 = vmatmul.msk.bf16.gmra.mxu1 %vm14262_vm0, %v14623_v7  ;;  %v14630_v2 = vld [vmem:[#allocation99_spill] sm:$0xff]  ;;  %v14634_v21 = vld [vmem:[#allocation110_spill] sm:$0xff] }
 0x54c   : > { %v3515_v16 = vpop.f32.mrf.mxu0  ;;  %7702 = vmatmul.msk.bf16.gmra.mxu2 %vm14262_vm0, %v14630_v2  ;;  %3371 = vmatmul.bf16.gmra.mxu3 %v14434_v57 }
 0x54d   : > { %v3413_v25 = vadd.f32 %v3327_v17, %v3227_v22  ;;  %v3337_v55 = vpop.f32.mrf.mxu3 }
 0x54f   : > { %v11234_v14 = vadd.f32 %v3513_v62, %v3413_v25  ;;  %v14632_v62 = vld [vmem:[#allocation102_spill] sm:$0xff] }
 0x550   : > { %v2957_v36 = vpop.f32.mrf.mxu1 }
 0x551   : > { %v3042_v15 = vadd.f32 %v2957_v36, %v14629_v49  ;;  %v3154_v54 = vpop.f32.mrf.mxu2 }
 0x553   : > { %v3228_v18 = vadd.f32 %v3143_v42, %v3042_v15  ;;  %v14635_v15 = vld [vmem:[#allocation111_spill] sm:$0xff] }
 0x554   : > { %v3518_v7 = vpop.f32.mrf.mxu0 }
 0x555   : > { %v3414_v43 = vadd.f32 %v3329_v4, %v3228_v18  ;;  %v3340_v42 = vpop.f32.mrf.mxu3 }
 0x557   : > { %v11239_v37 = vadd.f32 %v3515_v16, %v3414_v43  ;;  %7771 = vmatmul.msk.bf16.gmra.mxu0 %vm14262_vm0, %v14631_v20  ;;  %v14636_v43 = vld [vmem:[#allocation105_spill] sm:$0xff] }
 0x558   : > { %v2960_v17 = vpop.f32.mrf.mxu1 }
 0x559   : > { %v3155_v29 = vpop.f32.mrf.mxu2 }
 0x55b   : > { %7656 = vmatmul.msk.bf16.gmra.mxu1 %vm14262_vm0, %v14625_v41 }
 0x55c   : > { %v3519_v44 = vpop.f32.mrf.mxu0  ;;  %7703 = vmatmul.msk.bf16.gmra.mxu2 %vm14262_vm0, %v14632_v62  ;;  %7734 = vmatmul.msk.bf16.gmra.mxu3 %vm14262_vm0, %v9611_v34  ;;  %v14638_v62 = vld [vmem:[#allocation107_spill] sm:$0xff] }
 0x55d   : > { %v3341_v60 = vpop.f32.mrf.mxu3  ;;  %v14637_v44 = vld [vmem:[#allocation104_spill] sm:$0xff] }
 0x55e   : > { %v14639_v60 = vld [vmem:[#allocation106_spill] sm:$0xff] }
 0x560   : > { %v2961_v10 = vpop.f32.mrf.mxu1 }
 0x561   : > { %v3157_v22 = vpop.f32.mrf.mxu2 }
 0x564   : > { %v3521_v4 = vpop.f32.mrf.mxu0 }
 0x565   : > { %v3343_v16 = vpop.f32.mrf.mxu3 }
 0x567   : > { %7772 = vmatmul.msk.bf16.gmra.mxu0 %vm14262_vm0, %v14633_v33 }
 0x568   : > { %v2963_v31 = vpop.f32.mrf.mxu1 }
 0x569   : > { %v3043_v13 = vadd.f32 %v2963_v31, %v14634_v21  ;;  %v3159_v2 = vpop.f32.mrf.mxu2  ;;  %v14640_v21 = vld [vmem:[#allocation112_spill] sm:$0xff] }
 0x56b   : > { %v3229_v41 = vadd.f32 %v3149_v46, %v3043_v13  ;;  %7657 = vmatmul.msk.bf16.gmra.mxu1 %vm14262_vm0, %v14627_v5 }
 0x56c   : > { %v3523_v3 = vpop.f32.mrf.mxu0  ;;  %7704 = vmatmul.msk.bf16.gmra.mxu2 %vm14262_vm0, %v14636_v43  ;;  %3379 = vmatmul.bf16.gmra.mxu3 %v14434_v57  ;;  %v14641_v43 = vld [vmem:[#allocation113_spill] sm:$0xff] }
 0x56d   : > { %v3415_v25 = vadd.f32 %v3335_v6, %v3229_v41  ;;  %v3345_v34 = vpop.f32.mrf.mxu3 }
 0x56f   : > { %v11255_v36 = vadd.f32 %v3521_v4, %v3415_v25 }
 0x570   : > { %v2965_v49 = vpop.f32.mrf.mxu1 }
 0x571   : > { %v3044_v18 = vadd.f32 %v2965_v49, %v14635_v15  ;;  %v3162_v6 = vpop.f32.mrf.mxu2 }
 0x573   : > { %v3230_v7 = vadd.f32 %v3151_v11, %v3044_v18 }
 0x574   : > { %v3526_v17 = vpop.f32.mrf.mxu0 }
 0x575   : > { %v3416_v54 = vadd.f32 %v3337_v55, %v3230_v7  ;;  %v3348_v11 = vpop.f32.mrf.mxu3 }
 0x577   : > { %v11260_v46 = vadd.f32 %v3523_v3, %v3416_v54  ;;  %7773 = vmatmul.msk.bf16.gmra.mxu0 %vm14262_vm0, %v14637_v44  ;;  %v8306_v3 = vld [vmem:[%s14135_s6] sm:$0xff] }
 0x578   : > { %v2968_v5 = vpop.f32.mrf.mxu1  ;;  %3711 = vmatpush.bf16.msra.mxu1 %v8306_v3  ;;  %v11313_v3 = vld [vmem:[%s479_s28] sm:$0x1]  ;;  %s8788_s28 = smov 127  }
 0x579   : > { %v3163_v29 = vpop.f32.mrf.mxu2 }
 0x57a   : > { %v14642_v29 = vshrl.u32 %v10622_v56, 16 }
 0x57b   : > { %7658 = vmatmul.msk.bf16.gmra.mxu1 %vm14262_vm0, %v14631_v20 }
 0x57c   : > { %v3527_v42 = vpop.f32.mrf.mxu0  ;;  %7705 = vmatmul.msk.bf16.gmra.mxu2 %vm14262_vm0, %v14638_v62  ;;  %7735 = vmatmul.msk.bf16.gmra.mxu3 %vm14262_vm0, %v10622_v56 }
 0x57d   : > { %v3349_v4 = vpop.f32.mrf.mxu3 }
 0x580   : > { %v2969_v10 = vpop.f32.mrf.mxu1 }
 0x581   : > { %v3165_v41 = vpop.f32.mrf.mxu2 }
 0x584   : > { %v3529_v55 = vpop.f32.mrf.mxu0 }
 0x585   : > { %v3351_v49 = vpop.f32.mrf.mxu3 }
 0x587   : > { %7774 = vmatmul.msk.bf16.gmra.mxu0 %vm14262_vm0, %v14639_v60 }
 0x588   : > { %v2971_v31 = vpop.f32.mrf.mxu1 }
 0x589   : > { %v3045_v13 = vadd.f32 %v2971_v31, %v14640_v21  ;;  %v11282_v54 = vpop.f32.mrf.mxu2 }
 0x58b   : > { %v3231_v20 = vadd.f32 %v3157_v22, %v3045_v13  ;;  %7659 = vmatmul.msk.bf16.gmra.mxu1 %vm14262_vm0, %v14633_v33 }
 0x58c   : > { %v3531_v25 = vpop.f32.mrf.mxu0  ;;  %7706 = vmatmul.msk.bf16.gmra.mxu2 %vm14262_vm0, %v10849_v23  ;;  %3387 = vmatmul.bf16.gmra.mxu3 %v14434_v57 }
 0x58d   : > { %v3417_v15 = vadd.f32 %v3343_v16, %v3231_v20  ;;  %v11286_v22 = vpop.f32.mrf.mxu3 }
 0x58f   : > { %v11279_v18 = vadd.f32 %v3529_v55, %v3417_v15 }
 0x590   : > { %v2973_v7 = vpop.f32.mrf.mxu1 }
 0x591   : > { %v3046_v17 = vadd.f32 %v2973_v7, %v14641_v43  ;;  %v3170_v11 = vpop.f32.mrf.mxu2 }
 0x593   : > { %v3232_v5 = vadd.f32 %v3159_v2, %v3046_v17 }
 0x594   : > { %v3534_v33 = vpop.f32.mrf.mxu0 }
 0x595   : > { %v3418_v6 = vadd.f32 %v3345_v34, %v3232_v5  ;;  %v3356_v10 = vpop.f32.mrf.mxu3  ;;  %v2873_v34 = vor.u32 %v14642_v29, %v10828_v12 }
 0x597   : > { %v11288_v42 = vadd.f32 %v3531_v25, %v3418_v6  ;;  %7775 = vmatmul.msk.bf16.gmra.mxu0 %vm14262_vm0, %v10833_v47  ;;  %v2874_v4 = vsel %vm2136_vm8, %v2873_v34, %v10147_v39 }
 0x598   : > { %v2976_v16 = vpop.f32.mrf.mxu1 }
 0x599   : > { %v3171_v62 = vpop.f32.mrf.mxu2 }
 0x59b   : > { %7660 = vmatmul.msk.bf16.gmra.mxu1 %vm14262_vm0, %v14637_v44 }
 0x59c   : > { %v3535_v2 = vpop.f32.mrf.mxu0  ;;  %7707 = vmatmul.msk.bf16.gmra.mxu2 %vm14262_vm0, %v9730_v59  ;;  %3390 = vmatmul.bf16.gmra.mxu3 %v14434_v57 }
 0x59d   : > { %v3357_v31 = vpop.f32.mrf.mxu3 }
 0x5a0   : > { %v2977_v23 = vpop.f32.mrf.mxu1 }
 0x5a1   : > { %v3173_v13 = vpop.f32.mrf.mxu2 }
 0x5a4   : > { %v3537_v55 = vpop.f32.mrf.mxu0 }
 0x5a5   : > { %v3359_v20 = vpop.f32.mrf.mxu3 }
 0x5a7   : > { %7776 = vmatmul.msk.bf16.gmra.mxu0 %vm14262_vm0, %v2874_v4 }
 0x5a8   : > { %v2979_v21 = vpop.f32.mrf.mxu1 }
 0x5a9   : > { %v3047_v44 = vadd.f32 %v2979_v21, %v10812_v30  ;;  %v3618_v30 = vsub.f32 0.0, %v11313_v3  ;;  %v11321_v17 = vpop.f32.mrf.mxu2 }
 0x5ab   : > { %v3233_v56 = vadd.f32 %v3165_v41, %v3047_v44  ;;  %7661 = vmatmul.msk.bf16.gmra.mxu1 %vm14262_vm0, %v14639_v60  ;;  %v3619_v41 = vmul.f32 1.442695, %v3618_v30 }
 0x5ac   : > { %v11311_v12 = vpop.f32.mrf.mxu0  ;;  %7708 = vmatmul.msk.bf16.gmra.mxu2 %vm14262_vm0, %v9730_v59  ;;  %3395 = vmatmul.bf16.gmra.mxu3 %v14434_v57 }
 0x5ad   : > { %v3419_v25 = vadd.f32 %v3351_v49, %v3233_v56  ;;  %v11325_v5 = vpop.f32.mrf.mxu3  ;;  %8540 = vpow2.f32 %v3619_v41 }
 0x5af   : > { %v11315_v15 = vadd.f32 %v3537_v55, %v3419_v25  ;;  %v8320_v55 = vld [vmem:[%s14139_s10 + $0x30] sm:$0xff] }
 0x5b0   : > { %v2981_v7 = vpop.f32.mrf.mxu1  ;;  %4973 = vmatpush.bf16.msra.mxu2 %v8320_v55 }
 0x5b1   : > { %v11319_v43 = vadd.f32 %v2981_v7, %v10824_v63  ;;  %v3178_v33 = vpop.f32.mrf.mxu2 }
 0x5b3   : > { %v8541_v16 = vpop.eup %8540 }
 0x5b4   : > { %v3542_v60 = vpop.f32.mrf.mxu0  ;;  %v3621_v2 = vadd.f32 1.0, %v8541_v16 }
 0x5b5   : > { %v3364_v6 = vpop.f32.mrf.mxu3 }
 0x5b6   : > { %8542 = vrcp.f32 %v3621_v2  ;;  %vm3627_vm3 = vweird.f32 %v3621_v2  ;;  %v3631_v6 = vand.u32 2147483647, %v3621_v2 }
 0x5b7   : > { %7777 = vmatmul.msk.bf16.gmra.mxu0 %vm14262_vm0, %v10147_v39 }
 0x5b8   : > { %v2984_v49 = vpop.f32.mrf.mxu1  ;;  %vm3632_vm6 = vcmp.eq.f32.partialorder %v3631_v6, 8.507059e+37 }
 0x5b9   : > { %v3179_v10 = vpop.f32.mrf.mxu2 }
 0x5bb   : > { %7662 = vmatmul.msk.bf16.gmra.mxu1 %vm14262_vm0, %v10833_v47 }
 0x5bc   : > { %v3543_v63 = vpop.f32.mrf.mxu0  ;;  %v8543_v31 = vpop.eup %8542 }
 0x5bd   : > { %v3365_v29 = vpop.f32.mrf.mxu3  ;;  %v3623_v30 = vmul.f32 %v8543_v31, %v3621_v2  ;;  %vm3628_vm4 = vweird.f32 %v8543_v31 }
 0x5be   : > { %vm3629_vm5 = vmor %vm3627_vm3, %vm3628_vm4 }
 0x5c0   : > { %v2985_v11 = vpop.f32.mrf.mxu1 }
 0x5c1   : > { %v3181_v47 = vpop.f32.mrf.mxu2 }
 0x5c4   : > { %v3545_v23 = vpop.f32.mrf.mxu0 }
 0x5c5   : > { %v3367_v56 = vpop.f32.mrf.mxu3 }
 0x5c7   : > { %7778 = vmatmul.msk.bf16.gmra.mxu0 %vm14262_vm0, %v10147_v39 }
 0x5c8   : > { %v2987_v34 = vpop.f32.mrf.mxu1 }
 0x5c9   : > { %v3049_v62 = vadd.f32 %v2987_v34, %v10868_v0  ;;  %v3624_v0 = vsub.f32 1.0, %v3623_v30  ;;  %v11345_v60 = vpop.f32.mrf.mxu2 }
 0x5cb   : > { %v3235_v21 = vadd.f32 %v3173_v13, %v3049_v62  ;;  %7663 = vmatmul.msk.bf16.gmra.mxu1 %vm14262_vm0, %v2874_v4  ;;  %v3625_v63 = vmul.f32 %v8543_v31, %v3624_v0  ;;  %v3633_v13 = vand.u32 2147483648, %v3621_v2 }
 0x5cc   : > { %v11339_v44 = vpop.f32.mrf.mxu0 }
 0x5cd   : > { %v3421_v25 = vadd.f32 %v3359_v20, %v3235_v21  ;;  %v11347_v33 = vpop.f32.mrf.mxu3  ;;  %v3626_v20 = vadd.f32 %v8543_v31, %v3625_v63  ;;  %v3634_v10 = vor.u32 1.1754944e-38, %v3633_v13 }
 0x5cf   : > { %v11341_v7 = vadd.f32 %v3545_v23, %v3421_v25  ;;  %v3630_v29 = vsel %vm3629_vm5, %v8543_v31, %v3626_v20 }
 0x5d0   : > { %v11343_v41 = vpop.f32.mrf.mxu1  ;;  %v3635_v62 = vsel %vm3632_vm6, %v3634_v10, %v3630_v29 }
 0x5d1   : > { %v3186_v16 = vpop.f32.mrf.mxu2  ;;  %v3637_v21 = vmul.f32 %v3635_v62, %v11313_v3 }
 0x5d3   : > { %v3638_v0 = vpack.c.bf16 %v3637_v21, %v3637_v21 }
 0x5d4   : > { %v3550_v49 = vpop.f32.mrf.mxu0 }
 0x5d5   : > { %v3372_v23 = vpop.f32.mrf.mxu3 }
 0x5d7   : > { %7779 = vmatmul.msk.bf16.gmra.mxu0 %vm14262_vm0, %v10147_v39 }
 0x5d8   : > { %v2992_v4 = vpop.f32.mrf.mxu1 }
 0x5d9   : > { %v3187_v55 = vpop.f32.mrf.mxu2 }
 0x5db   : > { %7664 = vmatmul.msk.bf16.gmra.mxu1 %vm14262_vm0, %v10147_v39 }
 0x5dc   : > { %v3551_v11 = vpop.f32.mrf.mxu0 }
 0x5dd   : > { %v3373_v30 = vpop.f32.mrf.mxu3 }
 0x5e0   : > { %v2993_v34 = vpop.f32.mrf.mxu1 }
 0x5e1   : > { %v3189_v63 = vpop.f32.mrf.mxu2 }
 0x5e4   : > { %v3553_v25 = vpop.f32.mrf.mxu0 }
 0x5e5   : > { %v3375_v13 = vpop.f32.mrf.mxu3 }
 0x5e8   : > { %v2995_v49 = vpop.f32.mrf.mxu1 }
 0x5e9   : > { %v3051_v2 = vadd.f32 %v2995_v49, %v10912_v45  ;;  %v11361_v6 = vpop.f32.mrf.mxu2 }
 0x5eb   : > { %v3237_v4 = vadd.f32 %v3181_v47, %v3051_v2  ;;  %3712 = vmatmul.bf16.vlgmr.msra.gmra.mxu1 %v3638_v0 }
 0x5ec   : > { %v11355_v16 = vpop.f32.mrf.mxu0 }
 0x5ed   : > { %v3423_v11 = vadd.f32 %v3367_v56, %v3237_v4  ;;  %v11363_v10 = vpop.f32.mrf.mxu3 }
 0x5ef   : > { %v11357_v31 = vadd.f32 %v3553_v25, %v3423_v11 }
 0x5f0   : > { %v11359_v20 = vpop.f32.mrf.mxu1 }
 0x5f1   : > { %v3194_v29 = vpop.f32.mrf.mxu2 }
 0x5f4   : > { %v3558_v3 = vpop.f32.mrf.mxu0 }
 0x5f5   : > { %v3380_v45 = vpop.f32.mrf.mxu3 }
 0x5f8   : > { %v3000_v23 = vpop.f32.mrf.mxu1 }
 0x5f9   : > { %v3195_v47 = vpop.f32.mrf.mxu2 }
 0x5fc   : > { %v3559_v34 = vpop.f32.mrf.mxu0 }
 0x5fd   : > { %v3381_v21 = vpop.f32.mrf.mxu3 }
 0x600   : > { %v3001_v62 = vpop.f32.mrf.mxu1 }
 0x601   : > { %v3197_v25 = vpop.f32.mrf.mxu2 }
 0x604   : > { %v3561_v55 = vpop.f32.mrf.mxu0 }
 0x605   : > { %v3383_v2 = vpop.f32.mrf.mxu3 }
 0x608   : > { %v3003_v30 = vpop.f32.mrf.mxu1 }
 0x609   : > { %v3053_v56 = vadd.f32 %v3003_v30, %v10944_v26  ;;  %v11372_v23 = vpop.f32.mrf.mxu2 }
 0x60b   : > { %v3239_v0 = vadd.f32 %v3189_v63, %v3053_v56 }
 0x60c   : > { %v11366_v49 = vpop.f32.mrf.mxu0 }
 0x60d   : > { %v3425_v4 = vadd.f32 %v3375_v13, %v3239_v0  ;;  %v11374_v34 = vpop.f32.mrf.mxu3 }
 0x60f   : > { %v11368_v11 = vadd.f32 %v3561_v55, %v3425_v4 }
 0x610   : > { %v11370_v3 = vpop.f32.mrf.mxu1 }
 0x611   : > { %14644 = vst [vmem:[#allocation13_spill] sm:$0xff] %v11368_v11  ;;  %v3202_v62 = vpop.f32.mrf.mxu2 }
 0x614   : > { %v3566_v29 = vpop.f32.mrf.mxu0 }
 0x615   : > { %v3388_v21 = vpop.f32.mrf.mxu3 }
 0x618   : > { %v3008_v45 = vpop.f32.mrf.mxu1 }
 0x619   : > { %v3203_v30 = vpop.f32.mrf.mxu2 }
 0x61c   : > { %v3567_v47 = vpop.f32.mrf.mxu0 }
 0x61d   : > { %v3389_v56 = vpop.f32.mrf.mxu3 }
 0x620   : > { %v3009_v26 = vpop.f32.mrf.mxu1 }
 0x621   : > { %v3205_v55 = vpop.f32.mrf.mxu2 }
 0x624   : > { %v3569_v63 = vpop.f32.mrf.mxu0 }
 0x625   : > { %v3391_v59 = vpop.f32.mrf.mxu3 }
 0x628   : > { %v3011_v39 = vpop.f32.mrf.mxu1 }
 0x629   : > { %v3055_v13 = vadd.f32 %v3011_v39, %v10979_v48  ;;  %v11383_v45 = vpop.f32.mrf.mxu2  ;;  %v8317_v48 = vld [vmem:[%s14139_s10 + $0x18] sm:$0xff] }
 0x62a   : > { %5345 = vmatpush.bf16.msrb.mxu3 %v8317_v48  ;;  %v3655_v48 = vld [vmem:[%s14136_s7] sm:$0x1] }
 0x62b   : > { %v3241_v0 = vadd.f32 %v3197_v25, %v3055_v13 }
 0x62c   : > { %v11377_v4 = vpop.f32.mrf.mxu0 }
 0x62d   : > { %v3427_v57 = vadd.f32 %v3383_v2, %v3241_v0  ;;  %v11385_v47 = vpop.f32.mrf.mxu3 }
 0x62e   : > { %14646 = vst [vmem:[#allocation44_spill] sm:$0xff] %v11385_v47 }
 0x62f   : > { %v11379_v29 = vadd.f32 %v3569_v63, %v3427_v57 }
 0x630   : > { %v11381_v11 = vpop.f32.mrf.mxu1 }
 0x631   : > { %14645 = vst [vmem:[#allocation9_spill] sm:$0xff] %v11379_v29  ;;  %v3210_v26 = vpop.f32.mrf.mxu2 }
 0x634   : > { %v3574_v62 = vpop.f32.mrf.mxu0 }
 0x635   : > { %v3396_v56 = vpop.f32.mrf.mxu3 }
 0x638   : > { %v3016_v21 = vpop.f32.mrf.mxu1 }
 0x639   : > { %v3211_v25 = vpop.f32.mrf.mxu2 }
 0x63c   : > { %v3575_v30 = vpop.f32.mrf.mxu0 }
 0x63d   : > { %v3397_v2 = vpop.f32.mrf.mxu3 }
 0x640   : > { %v3017_v39 = vpop.f32.mrf.mxu1 }
 0x644   : > { %v3577_v57 = vpop.f32.mrf.mxu0 }
 0x648   : > { %v3019_v63 = vpop.f32.mrf.mxu1 }
 0x649   : > { %v3057_v13 = vadd.f32 %v3019_v63, %v11011_v51  ;;  %v11403_v51 = vld [vmem:[%s14134_s5] ss:$0 sm:$0xff] }
 0x64b   : > { %v3243_v0 = vadd.f32 %v3205_v55, %v3057_v13  ;;  %v3721_v55 = vadd.f32 %v11403_v51, %v11052_v8  ;;  %v3725_v8 = vadd.f32 %v11403_v51, %v11105_v28 }
 0x64c   : > { %v11391_v62 = vpop.f32.mrf.mxu0 }
 0x64d   : > { %v3429_v29 = vadd.f32 %v3391_v59, %v3243_v0  ;;  %v3724_v0 = vadd.f32 %v11403_v51, %v11085_v40 }
 0x64f   : > { %v11393_v21 = vadd.f32 %v3577_v57, %v3429_v29  ;;  %v3722_v29 = vadd.f32 %v11403_v51, %v11057_v19  ;;  %v3723_v57 = vadd.f32 %v11403_v51, %v11080_v9 }
 0x650   : > { %v11395_v26 = vpop.f32.mrf.mxu1 }
 0x654   : > { %v3582_v30 = vpop.f32.mrf.mxu0 }
 0x658   : > { %v3024_v56 = vpop.f32.mrf.mxu1 }
 0x65c   : > { %v3583_v39 = vpop.f32.mrf.mxu0 }
 0x660   : > { %v3025_v47 = vpop.f32.mrf.mxu1 }
 0x668   : > { %v3713_v25 = vpop.f32.mrf.mxu1 }
 0x669   : > { %v3714_v2 = vadd.f32 %v3713_v25, %v3655_v48  ;;  %v3726_v48 = vadd.f32 %v11403_v51, %v11110_v58  ;;  %v3728_v58 = vadd.f32 %v11403_v51, %v11138_v27  ;;  %v3730_v27 = vadd.f32 %v11403_v51, %v11163_v52 }
 0x66b   : > { %v11405_v59 = vperm.slane %v3714_v2, 0  ;;  %v3727_v2 = vadd.f32 %v11403_v51, %v11133_v50  ;;  %v3729_v50 = vadd.f32 %v11403_v51, %v11158_v38 }
 0x66d   : > { %v11414_v63 = vadd.f32 %v11405_v59, %v3721_v55  ;;  %v11417_v13 = vadd.f32 %v11405_v59, %v3722_v29  ;;  %v11422_v30 = vadd.f32 %v11405_v59, %v3723_v57  ;;  %v11427_v19 = vadd.f32 %v11405_v59, %v3724_v0 }
 0x66e   : > { %v11436_v40 = vadd.f32 %v11405_v59, %v3725_v8  ;;  %v11443_v55 = vadd.f32 %v11405_v59, %v3726_v48  ;;  %v11450_v57 = vadd.f32 %v11405_v59, %v3727_v2  ;;  %v11464_v48 = vadd.f32 %v11405_v59, %v3729_v50 }
 0x66f   : > { %v3789_v9 = vsel %vm3788_vm7, %v11414_v63, 0.0  ;;  %v3790_v56 = vsel %vm3788_vm7, %v11417_v13, 0.0  ;;  %v3792_v25 = vsel %vm3788_vm7, %v11422_v30, 0.0  ;;  %v3794_v29 = vsel %vm3788_vm7, %v11427_v19, 0.0 }
 0x670   : > { %v3715_v47 = vpop.f32.mrf.mxu1  ;;  %v3791_v39 = vadd.f32 %v3790_v56, %v3789_v9  ;;  %v3796_v0 = vsel %vm3788_vm7, %v11436_v40, 0.0  ;;  %v11457_v9 = vadd.f32 %v11405_v59, %v3728_v58  ;;  %v3798_v56 = vsel %vm3788_vm7, %v11443_v55, 0.0 }
 0x671   : > { %v3732_v2 = vadd.f32 %v11403_v51, %v11191_v53  ;;  %v3734_v58 = vadd.f32 %v11403_v51, %v11212_v61  ;;  %v3858_v50 = vmul.f32 %v11414_v63, %v11414_v63  ;;  %v3735_v61 = vadd.f32 %v11403_v51, %v11234_v14 }
 0x672   : > { %v3793_v28 = vadd.f32 %v3792_v25, %v3791_v39  ;;  %v3800_v25 = vsel %vm3788_vm7, %v11450_v57, 0.0  ;;  %v3802_v52 = vsel %vm3788_vm7, %v11457_v9, 0.0 }
 0x674   : > { %v3795_v47 = vadd.f32 %v3794_v29, %v3793_v28  ;;  %v3731_v28 = vadd.f32 %v11403_v51, %v11186_v24  ;;  %v3733_v29 = vadd.f32 %v11403_v51, %v11207_v1  ;;  %v3050_v24 = vadd.f32 %v11343_v41, %v10885_v35 }
 0x675   : > { %v3804_v1 = vsel %vm3788_vm7, %v11464_v48, 0.0  ;;  %v3737_v35 = vadd.f32 %v11403_v51, %v11255_v36  ;;  %v3738_v41 = vadd.f32 %v11403_v51, %v11260_v46 }
 0x676   : > { %v3797_v8 = vadd.f32 %v3796_v0, %v3795_v47  ;;  %v11475_v47 = vadd.f32 %v11405_v59, %v3730_v27  ;;  %v3234_v0 = vadd.f32 %v11282_v54, %v11319_v43  ;;  %v11486_v53 = vadd.f32 %v11405_v59, %v3731_v28 }
 0x677   : > { %v3736_v54 = vadd.f32 %v11403_v51, %v11239_v37  ;;  %v3236_v37 = vadd.f32 %v11321_v17, %v3050_v24  ;;  %v11512_v28 = vadd.f32 %v11405_v59, %v3733_v29 }
 0x678   : > { %v3799_v39 = vadd.f32 %v3798_v56, %v3797_v8  ;;  %v3859_v56 = vmul.f32 %v11417_v13, %v11417_v13  ;;  %v3806_v27 = vsel %vm3788_vm7, %v11475_v47, 0.0  ;;  %v3420_v14 = vadd.f32 %v11286_v22, %v3234_v0 }
 0x679   : > { %v3808_v46 = vsel %vm3788_vm7, %v11486_v53, 0.0  ;;  %v3740_v22 = vadd.f32 %v11403_v51, %v11288_v42  ;;  %v11525_v0 = vadd.f32 %v11405_v59, %v3734_v58  ;;  %v11535_v42 = vadd.f32 %v11405_v59, %v3735_v61 }
 0x67a   : > { %v3801_v38 = vadd.f32 %v3800_v25, %v3799_v39  ;;  %v11503_v39 = vadd.f32 %v11405_v59, %v3732_v2  ;;  %v3860_v25 = vmul.f32 %v11422_v30, %v11422_v30  ;;  %v3890_v2 = vsel %vm3788_vm7, %v3858_v50, 0.0 }
 0x67b   : > { %v3812_v58 = vsel %vm3788_vm7, %v11512_v28, 0.0  ;;  %v3814_v61 = vsel %vm3788_vm7, %v11525_v0, 0.0 }
 0x67c   : > { %v3803_v8 = vadd.f32 %v3802_v52, %v3801_v38  ;;  %v3861_v38 = vmul.f32 %v11427_v19, %v11427_v19  ;;  %v3891_v52 = vsel %vm3788_vm7, %v3859_v56, 0.0  ;;  %v3810_v24 = vsel %vm3788_vm7, %v11503_v39, 0.0 }
 0x67d   : > { %v3892_v29 = vadd.f32 %v3891_v52, %v3890_v2  ;;  %v3893_v50 = vsel %vm3788_vm7, %v3860_v25, 0.0  ;;  %v3606_v56 = vadd.f32 %v11311_v12, %v3420_v14  ;;  %v3741_v25 = vadd.f32 %v11403_v51, %v11315_v15 }
 0x67e   : > { %v3805_v43 = vadd.f32 %v3804_v1, %v3803_v8  ;;  %v3739_v8 = vadd.f32 %v11403_v51, %v11279_v18  ;;  %v3862_v1 = vmul.f32 %v11436_v40, %v11436_v40  ;;  %v3422_v18 = vadd.f32 %v11325_v5, %v3236_v37 }
 0x67f   : > { %v3052_v12 = vadd.f32 %v11359_v20, %v10922_v32  ;;  %v11547_v37 = vadd.f32 %v11405_v59, %v3736_v54  ;;  %v3864_v2 = vmul.f32 %v11450_v57, %v11450_v57  ;;  %v11557_v32 = vadd.f32 %v11405_v59, %v3737_v35 }
 0x680   : > { %v3807_v36 = vadd.f32 %v3806_v27, %v3805_v43  ;;  %v3894_v27 = vadd.f32 %v3893_v50, %v3892_v29  ;;  %v3897_v52 = vsel %vm3788_vm7, %v3862_v1, 0.0  ;;  %v3608_v15 = vadd.f32 %v11339_v44, %v3422_v18  ;;  %v14647_v1 = vld [vmem:[#allocation12_spill] sm:$0xff] }
 0x681   : > { %v3816_v20 = vsel %vm3788_vm7, %v11535_v42, 0.0  ;;  %v3865_v54 = vmul.f32 %v11457_v9, %v11457_v9  ;;  %v3238_v50 = vadd.f32 %v11345_v60, %v3052_v12  ;;  %v11568_v18 = vadd.f32 %v11405_v59, %v3738_v41 }
 0x682   : > { %v3809_v17 = vadd.f32 %v3808_v46, %v3807_v36  ;;  %v3863_v36 = vmul.f32 %v11443_v55, %v11443_v55  ;;  %v3895_v46 = vsel %vm3788_vm7, %v3861_v38, 0.0  ;;  %v3742_v38 = vadd.f32 %v11403_v51, %v3606_v56 }
 0x683   : > { %v3896_v14 = vadd.f32 %v3895_v46, %v3894_v27  ;;  %v3054_v56 = vadd.f32 %v11370_v3, %v14647_v1  ;;  %v3818_v35 = vsel %vm3788_vm7, %v11547_v37, 0.0  ;;  %v3866_v27 = vmul.f32 %v11464_v48, %v11464_v48 }
 0x684   : > { %v3811_v43 = vadd.f32 %v3810_v24, %v3809_v17  ;;  %v3899_v24 = vsel %vm3788_vm7, %v3863_v36, 0.0  ;;  %v3743_v36 = vadd.f32 %v11403_v51, %v11341_v7  ;;  %v3744_v60 = vadd.f32 %v11403_v51, %v3608_v15 }
 0x685   : > { %v3898_v29 = vadd.f32 %v3897_v52, %v3896_v14  ;;  %v11579_v12 = vadd.f32 %v11405_v59, %v3739_v8  ;;  %v3820_v41 = vsel %vm3788_vm7, %v11557_v32, 0.0  ;;  %v3903_v14 = vsel %vm3788_vm7, %v3865_v54, 0.0  ;;  %v14648_v54 = vld [vmem:[#allocation10_spill] sm:$0xff] }
 0x686   : > { %v3813_v5 = vadd.f32 %v3812_v58, %v3811_v43  ;;  %v3901_v58 = vsel %vm3788_vm7, %v3864_v2, 0.0  ;;  %v3240_v2 = vadd.f32 %v11361_v6, %v3054_v56  ;;  %v11589_v15 = vadd.f32 %v11405_v59, %v3740_v22 }
 0x687   : > { %v3900_v44 = vadd.f32 %v3899_v24, %v3898_v29  ;;  %v3822_v8 = vsel %vm3788_vm7, %v11568_v18, 0.0  ;;  %v3905_v29 = vsel %vm3788_vm7, %v3866_v27, 0.0  ;;  %v3824_v22 = vsel %vm3788_vm7, %v11579_v12, 0.0 }
 0x688   : > { %v3815_v17 = vadd.f32 %v3814_v61, %v3813_v5  ;;  %v3867_v5 = vmul.f32 %v11475_v47, %v11475_v47  ;;  %v3424_v61 = vadd.f32 %v11347_v33, %v3238_v50  ;;  %v3056_v33 = vadd.f32 %v11381_v11, %v14648_v54 }
 0x689   : > { %v3902_v3 = vadd.f32 %v3901_v58, %v3900_v44  ;;  %v11601_v50 = vadd.f32 %v11405_v59, %v3741_v25  ;;  %v3869_v1 = vmul.f32 %v11503_v39, %v11503_v39  ;;  %v11611_v11 = vadd.f32 %v11405_v59, %v3742_v38 }
 0x68a   : > { %v3817_v43 = vadd.f32 %v3816_v20, %v3815_v17  ;;  %v3868_v17 = vmul.f32 %v11486_v53, %v11486_v53  ;;  %v3745_v20 = vadd.f32 %v11403_v51, %v11357_v31  ;;  %v3907_v56 = vsel %vm3788_vm7, %v3867_v5, 0.0 }
 0x68b   : > { %v3904_v52 = vadd.f32 %v3903_v14, %v3902_v3  ;;  %v3426_v31 = vadd.f32 %v11363_v10, %v3240_v2  ;;  %v3826_v25 = vsel %vm3788_vm7, %v11589_v15, 0.0  ;;  %v3870_v27 = vmul.f32 %v11512_v28, %v11512_v28  ;;  %v14649_v3 = vld [vmem:[#allocation8_spill] sm:$0xff] }
 0x68c   : > { %v3819_v46 = vadd.f32 %v3818_v35, %v3817_v43  ;;  %v3610_v43 = vadd.f32 %v11355_v16, %v3424_v61  ;;  %v3909_v58 = vsel %vm3788_vm7, %v3868_v17, 0.0  ;;  %v3058_v16 = vadd.f32 %v11395_v26, %v14649_v3 }
 0x68d   : > { %v3906_v24 = vadd.f32 %v3905_v29, %v3904_v52  ;;  %v11622_v5 = vadd.f32 %v11405_v59, %v3743_v36  ;;  %v3828_v38 = vsel %vm3788_vm7, %v11601_v50, 0.0  ;;  %v3871_v14 = vmul.f32 %v11525_v0, %v11525_v0 }
 0x68e   : > { %v3821_v7 = vadd.f32 %v3820_v41, %v3819_v46  ;;  %v3242_v46 = vadd.f32 %v11372_v23, %v3056_v33  ;;  %v3911_v61 = vsel %vm3788_vm7, %v3869_v1, 0.0  ;;  %v3746_v2 = vadd.f32 %v11403_v51, %v3610_v43  ;;  %v14650_v1 = vld [vmem:[#allocation13_spill] sm:$0xff] }
 0x68f   : > { %v3908_v35 = vadd.f32 %v3907_v56, %v3906_v24  ;;  %v3612_v23 = vadd.f32 %v11366_v49, %v3426_v31  ;;  %v11632_v26 = vadd.f32 %v11405_v59, %v3744_v60  ;;  %v3830_v36 = vsel %vm3788_vm7, %v11611_v11, 0.0 }
 0x690   : > { %v3823_v6 = vadd.f32 %v3822_v8, %v3821_v7  ;;  %v3872_v8 = vmul.f32 %v11535_v42, %v11535_v42  ;;  %v3913_v17 = vsel %vm3788_vm7, %v3870_v27, 0.0  ;;  %v3428_v29 = vadd.f32 %v11374_v34, %v3242_v46  ;;  %v14651_v27 = vld [vmem:[#allocation44_spill] sm:$0xff] }
 0x691   : > { %v3910_v10 = vadd.f32 %v3909_v58, %v3908_v35  ;;  %v3244_v54 = vadd.f32 %v11383_v45, %v3058_v16  ;;  %v11642_v49 = vadd.f32 %v11405_v59, %v3745_v20  ;;  %v3832_v60 = vsel %vm3788_vm7, %v11622_v5, 0.0 }
 0x692   : > { %v3825_v44 = vadd.f32 %v3824_v22, %v3823_v6  ;;  %v3873_v24 = vmul.f32 %v11547_v37, %v11547_v37  ;;  %v3915_v22 = vsel %vm3788_vm7, %v3871_v14, 0.0  ;;  %v3747_v56 = vadd.f32 %v11403_v51, %v14650_v1  ;;  %v14652_v14 = vld [vmem:[#allocation9_spill] sm:$0xff] }
 0x693   : > { %v3912_v52 = vadd.f32 %v3911_v61, %v3910_v10  ;;  %v3748_v34 = vadd.f32 %v11403_v51, %v3612_v23  ;;  %v11653_v31 = vadd.f32 %v11405_v59, %v3746_v2  ;;  %v3834_v20 = vsel %vm3788_vm7, %v11632_v26, 0.0 }
 0x694   : > { %v3827_v41 = vadd.f32 %v3826_v25, %v3825_v44  ;;  %v3874_v44 = vmul.f32 %v11557_v32, %v11557_v32  ;;  %v3917_v35 = vsel %vm3788_vm7, %v3872_v8, 0.0  ;;  %v3614_v25 = vadd.f32 %v11377_v4, %v3428_v29 }
 0x695   : > { %v3914_v6 = vadd.f32 %v3913_v17, %v3912_v52  ;;  %v3430_v58 = vadd.f32 %v14651_v27, %v3244_v54  ;;  %v11663_v16 = vadd.f32 %v11405_v59, %v3747_v56  ;;  %v3875_v10 = vmul.f32 %v11568_v18, %v11568_v18 }
 0x696   : > { %v3829_v7 = vadd.f32 %v3828_v38, %v3827_v41  ;;  %v3836_v41 = vsel %vm3788_vm7, %v11642_v49, 0.0  ;;  %v3919_v38 = vsel %vm3788_vm7, %v3873_v24, 0.0  ;;  %v3749_v61 = vadd.f32 %v11403_v51, %v14652_v14 }
 0x697   : > { %v3916_v45 = vadd.f32 %v3915_v22, %v3914_v6  ;;  %v11673_v23 = vadd.f32 %v11405_v59, %v3748_v34  ;;  %v3876_v52 = vmul.f32 %v11579_v12, %v11579_v12  ;;  %v3750_v8 = vadd.f32 %v11403_v51, %v3614_v25 }
 0x698   : > { %v3831_v33 = vadd.f32 %v3830_v36, %v3829_v7  ;;  %v3838_v7 = vsel %vm3788_vm7, %v11653_v31, 0.0  ;;  %v3921_v36 = vsel %vm3788_vm7, %v3874_v44, 0.0  ;;  %v3616_v17 = vadd.f32 %v11391_v62, %v3430_v58  ;;  %v8319_v62 = vld [vmem:[%s14139_s10 + $0x28] sm:$0xff] }
 0x699   : > { %v3918_v3 = vadd.f32 %v3917_v35, %v3916_v45  ;;  %v3840_v6 = vsel %vm3788_vm7, %v11663_v16, 0.0  ;;  %v3923_v24 = vsel %vm3788_vm7, %v3875_v10, 0.0  ;;  %v3751_v22 = vadd.f32 %v11403_v51, %v11393_v21  ;;  %4974 = vmatpush.bf16.msra.mxu2 %v8319_v62 }
 0x69a   : > { %v3833_v43 = vadd.f32 %v3832_v60, %v3831_v33  ;;  %v11683_v33 = vadd.f32 %v11405_v59, %v3749_v61  ;;  %v3877_v60 = vmul.f32 %v11589_v15, %v11589_v15  ;;  %v11696_v34 = vadd.f32 %v11405_v59, %v3750_v8 }
 0x69b   : > { %v3920_v4 = vadd.f32 %v3919_v38, %v3918_v3  ;;  %v3878_v45 = vmul.f32 %v11601_v50, %v11601_v50  ;;  %v3752_v44 = vadd.f32 %v11403_v51, %v3616_v17  ;;  %v11705_v25 = vadd.f32 %v11405_v59, %v3751_v22 }
 0x69c   : > { %v3835_v46 = vadd.f32 %v3834_v20, %v3833_v43  ;;  %v3842_v43 = vsel %vm3788_vm7, %v11673_v23, 0.0  ;;  %v3925_v20 = vsel %vm3788_vm7, %v3876_v52, 0.0  ;;  %v3844_v27 = vsel %vm3788_vm7, %v11683_v33, 0.0 }
 0x69d   : > { %v3922_v54 = vadd.f32 %v3921_v36, %v3920_v4  ;;  %v3879_v58 = vmul.f32 %v11611_v11, %v11611_v11  ;;  %v11713_v10 = vadd.f32 %v11405_v59, %v3752_v44  ;;  %v3846_v51 = vsel %vm3788_vm7, %v11696_v34, 0.0 }
 0x69e   : > { %v3837_v2 = vadd.f32 %v3836_v41, %v3835_v46  ;;  %v3927_v46 = vsel %vm3788_vm7, %v3877_v60, 0.0  ;;  %v3880_v38 = vmul.f32 %v11622_v5, %v11622_v5  ;;  %v3929_v14 = vsel %vm3788_vm7, %v3878_v45, 0.0 }
 0x69f   : > { %v3924_v56 = vadd.f32 %v3923_v24, %v3922_v54  ;;  %v3848_v4 = vsel %vm3788_vm7, %v11705_v25, 0.0  ;;  %v3931_v52 = vsel %vm3788_vm7, %v3879_v58, 0.0  ;;  %v3850_v8 = vsel %vm3788_vm7, %v11713_v10, 0.0 }
 0x6a0   : > { %v3839_v29 = vadd.f32 %v3838_v7, %v3837_v2  ;;  %v3881_v7 = vmul.f32 %v11632_v26, %v11632_v26  ;;  %v3882_v17 = vmul.f32 %v11642_v49, %v11642_v49  ;;  %v3883_v60 = vmul.f32 %v11653_v31, %v11653_v31 }
 0x6a1   : > { %v3926_v35 = vadd.f32 %v3925_v20, %v3924_v56  ;;  %v3884_v56 = vmul.f32 %v11663_v16, %v11663_v16  ;;  %v3885_v20 = vmul.f32 %v11673_v23, %v11673_v23 }
 0x6a2   : > { %v3841_v1 = vadd.f32 %v3840_v6, %v3839_v29  ;;  %v3933_v29 = vsel %vm3788_vm7, %v3880_v38, 0.0  ;;  %v3935_v24 = vsel %vm3788_vm7, %v3881_v7, 0.0  ;;  %v3937_v62 = vsel %vm3788_vm7, %v3882_v17, 0.0 }
 0x6a3   : > { %v3928_v41 = vadd.f32 %v3927_v46, %v3926_v35  ;;  %v3939_v44 = vsel %vm3788_vm7, %v3883_v60, 0.0  ;;  %v3941_v58 = vsel %vm3788_vm7, %v3884_v56, 0.0  ;;  %v3887_v38 = vmul.f32 %v11696_v34, %v11696_v34 }
 0x6a4   : > { %v3843_v21 = vadd.f32 %v3842_v43, %v3841_v1  ;;  %v14653_v17 = vmov 0  }
 0x6a5   : > { %v3930_v2 = vadd.f32 %v3929_v14, %v3928_v41  ;;  %v8316_v41 = vld [vmem:[%s14139_s10 + $0x10] sm:$0xff]  ;;  %v3943_v14 = vsel %vm3788_vm7, %v3885_v20, 0.0 }
 0x6a6   : > { %v3845_v3 = vadd.f32 %v3844_v27, %v3843_v21  ;;  %v3886_v27 = vmul.f32 %v11683_v33, %v11683_v33  ;;  %5346 = vmatpush.bf16.msrb.mxu3 %v8316_v41 }
 0x6a7   : > { %v3932_v36 = vadd.f32 %v3931_v52, %v3930_v2 }
 0x6a8   : > { %v3847_v61 = vadd.f32 %v3846_v51, %v3845_v3  ;;  %v8318_v51 = vld [vmem:[%s14139_s10 + $0x20] sm:$0xff]  ;;  %v3945_v7 = vsel %vm3788_vm7, %v3886_v27, 0.0 }
 0x6a9   : > { %v3934_v6 = vadd.f32 %v3933_v29, %v3932_v36  ;;  %4975 = vmatpush.bf16.msra.mxu2 %v8318_v51  ;;  %v3889_v36 = vmul.f32 %v11713_v10, %v11713_v10 }
 0x6aa   : > { %v3849_v59 = vadd.f32 %v3848_v4, %v3847_v61  ;;  %v3888_v4 = vmul.f32 %v11705_v25, %v11705_v25 }
 0x6ab   : > { %v3936_v1 = vadd.f32 %v3935_v24, %v3934_v6  ;;  %v3951_v60 = vsel %vm3788_vm7, %v3889_v36, 0.0 }
 0x6ac   : > { %v3851_v54 = vadd.f32 %v3850_v8, %v3849_v59  ;;  %v3947_v8 = vsel %vm3788_vm7, %v3887_v38, 0.0  ;;  %4976 = vmatmul.bf16.vlgmr.msra.gmra.mxu2 %v14653_v17 }
 0x6ad   : > { %v3938_v45 = vadd.f32 %v3937_v62, %v3936_v1 }
 0x6ae   : > { %v3852_v22 = vrot.slane %v3851_v54, 4 }
 0x6af   : > { %v3940_v35 = vadd.f32 %v3939_v44, %v3938_v45 }
 0x6b0   : > { %v3853_v43 = vadd.f32 %v3852_v22, %v3851_v54  ;;  %v3949_v54 = vsel %vm3788_vm7, %v3888_v4, 0.0 }
 0x6b1   : > { %v3942_v46 = vadd.f32 %v3941_v58, %v3940_v35 }
 0x6b2   : > { %v3854_v21 = vrot.slane %v3853_v43, 2 }
 0x6b3   : > { %v3944_v61 = vadd.f32 %v3943_v14, %v3942_v46 }
 0x6b4   : > { %v3855_v3 = vadd.f32 %v3854_v21, %v3853_v43  ;;  %v3976_v21 = vlaneseq }
 0x6b5   : > { %v3946_v52 = vadd.f32 %v3945_v7, %v3944_v61 }
 0x6b6   : > { %v3856_v2 = vrot.slane %v3855_v3, 1  ;;  %v3977_v35 = vand.u32 127, %v3976_v21 }
 0x6b7   : > { %v3948_v29 = vadd.f32 %v3947_v8, %v3946_v52 }
 0x6b8   : > { %v3857_v59 = vadd.f32 %v3856_v2, %v3855_v3  ;;  %v3982_v58 = vand.u32 1, %v3977_v35 }
 0x6b9   : > { %v3950_v6 = vadd.f32 %v3949_v54, %v3948_v29 }
 0x6ba   : > { %3968 = vrot.lane.b32.xlu1 %v3857_v59, %s8787_s27  ;;  %3960 = vrot.lane.b32.xlu0 %v3857_v59, %s8788_s28  ;;  %vm3990_vm11 = vcmp.lt.s32.totalorder %v3982_v58, 1  ;;  %v3786_v58 = vld [vmem:[%s14137_s8] sm:$0x1] }
 0x6bb   : > { %v3952_v24 = vadd.f32 %v3951_v60, %v3950_v6 }
 0x6bc   : > { %4981 = vmatmul.bf16.gmra.mxu2 %v14653_v17 }
 0x6bd   : > { %v3953_v22 = vrot.slane %v3952_v24, 4 }
 0x6bf   : > { %v3954_v1 = vadd.f32 %v3953_v22, %v3952_v24 }
 0x6c1   : > { %v3955_v56 = vrot.slane %v3954_v1, 2 }
 0x6c2   : > { %3971 = vrot.lane.b32.xlu1 %v3857_v59, %s8789_s18  ;;  %3963 = vrot.lane.b32.xlu0 %v3857_v59, %s8790_s20 }
 0x6c3   : > { %v3956_v62 = vadd.f32 %v3955_v56, %v3954_v1  ;;  %v8315_v1 = vld [vmem:[%s14139_s10 + $0x8] sm:$0xff] }
 0x6c4   : > { %5347 = vmatpush.bf16.msrb.mxu3 %v8315_v1 }
 0x6c5   : > { %v3957_v43 = vrot.slane %v3956_v62, 1 }
 0x6c7   : > { %v3958_v45 = vadd.f32 %v3957_v43, %v3956_v62  ;;  %v8325_v43 = vld [vmem:[%s14139_s10 + $0x58] sm:$0xff] }
 0x6c8   : > { %5675 = vmatpush.bf16.msrb.mxu1 %v8325_v43 }
 0x6c9   : > { %3995 = vrot.lane.b32.xlu2 %v3958_v45, %s8788_s28 }
 0x6ca   : > { %4005 = vrot.lane.b32.xlu1 %v3958_v45, %s8789_s18  ;;  %4002 = vrot.lane.b32.xlu0 %v3958_v45, %s8787_s27  ;;  %s469_s27 = sand.u32 1, %s8776_s30  }
 0x6cb   : > { %s7435_s25 = sshll.u32 %s469_s27, 8 }
 0x6cc   : > { %s13860_s26 = scalar_lea.vmem [#allocation2], %s7435_s25 }
 0x6d1   : > { %3998 = vrot.lane.b32.xlu2 %v3958_v45, %s8790_s20  ;;  %s7357_s20 = sshll.u32 %s13860_s26, 4  ;;  %s7358_s20 = int_to_ptr.vmem [resolvable:$true] %s7357_s20 }
 0x723   : > { %v3996_v27 = vpop.permute.xlu2 %3995 }
 0x72b   : > { %v3999_v14 = vpop.permute.xlu2 %3998 }
 0x72c   : > { %v3969_v20 = vpop.permute.xlu1 %3968  ;;  %v3961_v44 = vpop.permute.xlu0 %3960  ;;  %v4001_v7 = vsel %vm3966_vm10, %v3996_v27, %v3999_v14 }
 0x734   : > { %v3972_v46 = vpop.permute.xlu1 %3971  ;;  %v3964_v3 = vpop.permute.xlu0 %3963 }
 0x735   : > { %v3975_v41 = vsel %vm3974_vm9, %v3969_v20, %v3972_v46  ;;  %v3967_v51 = vsel %vm3966_vm10, %v3961_v44, %v3964_v3 }
 0x736   : > { %v3991_v38 = vsel %vm3990_vm11, %v3967_v51, %v3975_v41 }
 0x737   : > { %v3992_v61 = vadd.f32 %v3991_v38, %v3857_v59 }
 0x739   : > { %v3993_v52 = vmul.f32 0.001953125, %v3992_v61 }
 0x73b   : > { %v4012_v54 = vmul.f32 %v3993_v52, %v3993_v52  ;;  %v11767_v20 = vperm.slane %v3993_v52, 0 }
 0x73c   : > { %v4006_v2 = vpop.permute.xlu1 %4005  ;;  %v4003_v4 = vpop.permute.xlu0 %4002 }
 0x73d   : > { %v4008_v36 = vsel %vm3974_vm9, %v4003_v4, %v4006_v2  ;;  %v4031_v21 = vsub.f32 %v11436_v40, %v11767_v20  ;;  %v4032_v35 = vsub.f32 %v11443_v55, %v11767_v20  ;;  %v4033_v27 = vsub.f32 %v11450_v57, %v11767_v20 }
 0x73e   : > { %v4009_v8 = vsel %vm3990_vm11, %v4001_v7, %v4008_v36  ;;  %v4034_v3 = vsub.f32 %v11457_v9, %v11767_v20  ;;  %v4035_v41 = vsub.f32 %v11464_v48, %v11767_v20  ;;  %v4036_v40 = vsub.f32 %v11475_v47, %v11767_v20 }
 0x73f   : > { %v4010_v29 = vadd.f32 %v4009_v8, %v3958_v45  ;;  %v4037_v55 = vsub.f32 %v11486_v53, %v11767_v20  ;;  %v4038_v57 = vsub.f32 %v11503_v39, %v11767_v20  ;;  %v4039_v51 = vsub.f32 %v11512_v28, %v11767_v20 }
 0x740   : > { %v4040_v38 = vsub.f32 %v11525_v0, %v11767_v20  ;;  %v4041_v48 = vsub.f32 %v11535_v42, %v11767_v20  ;;  %v4042_v47 = vsub.f32 %v11547_v37, %v11767_v20  ;;  %v4043_v53 = vsub.f32 %v11557_v32, %v11767_v20 }
 0x741   : > { %v4011_v6 = vmul.f32 0.001953125, %v4010_v29  ;;  %v4044_v39 = vsub.f32 %v11568_v18, %v11767_v20  ;;  %v4045_v28 = vsub.f32 %v11579_v12, %v11767_v20  ;;  %v4046_v0 = vsub.f32 %v11589_v15, %v11767_v20  ;;  %v11845_v29 = vld [vmem:[%s14138_s9] ss:$0 sm:$0xff] }
 0x742   : > { %v4047_v61 = vsub.f32 %v11601_v50, %v11767_v20  ;;  %v4048_v42 = vsub.f32 %v11611_v11, %v11767_v20  ;;  %v4049_v37 = vsub.f32 %v11622_v5, %v11767_v20  ;;  %v4050_v32 = vsub.f32 %v11632_v26, %v11767_v20 }
 0x743   : > { %v4013_v60 = vsub.f32 %v4011_v6, %v4012_v54  ;;  %v4051_v18 = vsub.f32 %v11642_v49, %v11767_v20  ;;  %v4052_v12 = vsub.f32 %v11653_v31, %v11767_v20  ;;  %v4053_v15 = vsub.f32 %v11663_v16, %v11767_v20 }
 0x744   : > { %v4054_v50 = vsub.f32 %v11673_v23, %v11767_v20  ;;  %v4055_v11 = vsub.f32 %v11683_v33, %v11767_v20  ;;  %v4056_v5 = vsub.f32 %v11696_v34, %v11767_v20  ;;  %v4057_v26 = vsub.f32 %v11705_v25, %v11767_v20 }
 0x745   : > { %v4014_v24 = vmax.f32 %v4013_v60, 0.0  ;;  %v4058_v49 = vsub.f32 %v11713_v10, %v11767_v20 }
 0x747   : > { %v4015_v22 = vadd.f32 1e-06, %v4014_v24 }
 0x749   : > { %8544 = vrsqrt.f32 %v4015_v22  ;;  %vm4022_vm13 = vweird.f32 %v4015_v22 }
 0x74f   : > { %v8545_v56 = vpop.eup %8544 }
 0x750   : > { %v4017_v59 = vmul.f32 %v8545_v56, %v4015_v22  ;;  %vm4023_vm12 = vweird.f32 %v8545_v56 }
 0x751   : > { %vm4024_vm14 = vmor %vm4022_vm13, %vm4023_vm12 }
 0x752   : > { %v4018_v62 = vmul.f32 %v8545_v56, %v4017_v59 }
 0x754   : > { %v4019_v45 = vmul.f32 0.5, %v4018_v62 }
 0x756   : > { %v4020_v44 = vsub.f32 1.5, %v4019_v45 }
 0x758   : > { %v4021_v46 = vmul.f32 %v8545_v56, %v4020_v44 }
 0x75a   : > { %v4025_v9 = vsel %vm4024_vm14, %v8545_v56, %v4021_v46 }
 0x75b   : > { %v4059_v14 = vmul.f32 %v4025_v9, %v3786_v58 }
 0x75d   : > { %v11812_v2 = vperm.slane %v4059_v14, 0 }
 0x75f   : > { %v4065_v31 = vmul.f32 %v11812_v2, %v4031_v21  ;;  %v4066_v4 = vmul.f32 %v11812_v2, %v4032_v35  ;;  %v4067_v16 = vmul.f32 %v11812_v2, %v4033_v27  ;;  %v4068_v23 = vmul.f32 %v11812_v2, %v4034_v3 }
 0x760   : > { %v4069_v7 = vmul.f32 %v11812_v2, %v4035_v41  ;;  %v4070_v33 = vmul.f32 %v11812_v2, %v4036_v40  ;;  %v4071_v34 = vmul.f32 %v11812_v2, %v4037_v55  ;;  %v4072_v52 = vmul.f32 %v11812_v2, %v4038_v57 }
 0x761   : > { %v4073_v25 = vmul.f32 %v11812_v2, %v4039_v51  ;;  %v4074_v10 = vmul.f32 %v11812_v2, %v4040_v38  ;;  %v4075_v36 = vmul.f32 %v11812_v2, %v4041_v48  ;;  %v4076_v8 = vmul.f32 %v11812_v2, %v4042_v47 }
 0x762   : > { %v4077_v54 = vmul.f32 %v11812_v2, %v4043_v53  ;;  %v4078_v6 = vmul.f32 %v11812_v2, %v4044_v39  ;;  %v4079_v60 = vmul.f32 %v11812_v2, %v4045_v28  ;;  %v4080_v24 = vmul.f32 %v11812_v2, %v4046_v0  ;;  %v8314_v28 = vld [vmem:[%s14139_s10] sm:$0xff]  ;;  %v8324_v0 = vld [vmem:[%s14139_s10 + $0x50] sm:$0xff] }
 0x763   : > { %v4081_v22 = vmul.f32 %v11812_v2, %v4047_v61  ;;  %v4082_v1 = vmul.f32 %v11812_v2, %v4048_v42  ;;  %v4083_v56 = vmul.f32 %v11812_v2, %v4049_v37  ;;  %v4084_v59 = vmul.f32 %v11812_v2, %v4050_v32  ;;  %5348 = vmatpush.bf16.msrb.mxu3 %v8314_v28 }
 0x764   : > { %v4085_v62 = vmul.f32 %v11812_v2, %v4051_v18  ;;  %v4086_v43 = vmul.f32 %v11812_v2, %v4052_v12  ;;  %v4087_v45 = vmul.f32 %v11812_v2, %v4053_v15  ;;  %v4088_v44 = vmul.f32 %v11812_v2, %v4054_v50  ;;  %5676 = vmatpush.bf16.msrb.mxu1 %v8324_v0 }
 0x765   : > { %v4089_v21 = vmul.f32 %v11812_v2, %v4055_v11  ;;  %v4090_v35 = vmul.f32 %v11812_v2, %v4056_v5  ;;  %v4091_v27 = vmul.f32 %v11812_v2, %v4057_v26  ;;  %v4092_v58 = vmul.f32 %v11812_v2, %v4058_v49 }
 0x766   : > { %v11864_v46 = vadd.f32 %v11845_v29, %v4065_v31  ;;  %v11867_v3 = vadd.f32 %v11845_v29, %v4066_v4  ;;  %v11870_v41 = vadd.f32 %v11845_v29, %v4067_v16  ;;  %v11873_v40 = vadd.f32 %v11845_v29, %v4068_v23  ;;  %v14673_v16 = vld [vmem:[#allocation7_spill] sm:$0xff] }
 0x767   : > { %v11876_v55 = vadd.f32 %v11845_v29, %v4069_v7  ;;  %v11879_v57 = vadd.f32 %v11845_v29, %v4070_v33  ;;  %v11882_v51 = vadd.f32 %v11845_v29, %v4071_v34  ;;  %v11885_v38 = vadd.f32 %v11845_v29, %v4072_v52  ;;  %7867 = vmatmul.msk.bf16.vlgmr.msrb.gmra.mxu3 %vm3788_vm7, %v14673_v16 }
 0x768   : > { %v11888_v9 = vadd.f32 %v11845_v29, %v4073_v25  ;;  %v11891_v48 = vadd.f32 %v11845_v29, %v4074_v10  ;;  %v11894_v47 = vadd.f32 %v11845_v29, %v4075_v36  ;;  %v11897_v53 = vadd.f32 %v11845_v29, %v4076_v8  ;;  %v8323_v25 = vld [vmem:[%s14139_s10 + $0x48] sm:$0xff] }
 0x769   : > { %v11900_v14 = vadd.f32 %v11845_v29, %v4077_v54  ;;  %v11903_v39 = vadd.f32 %v11845_v29, %v4078_v6  ;;  %v11912_v61 = vadd.f32 %v11845_v29, %v4079_v60  ;;  %v11915_v42 = vadd.f32 %v11845_v29, %v4080_v24  ;;  %5677 = vmatpush.bf16.msrb.mxu1 %v8323_v25 }
 0x76a   : > { %14654 = vst [vmem:[#allocation11_spill] sm:$0xff] %v11891_v48  ;;  %v11918_v37 = vadd.f32 %v11845_v29, %v4081_v22  ;;  %v11921_v32 = vadd.f32 %v11845_v29, %v4082_v1  ;;  %v11924_v18 = vadd.f32 %v11845_v29, %v4083_v56  ;;  %v11927_v12 = vadd.f32 %v11845_v29, %v4084_v59  ;;  %v14674_v1 = vld [vmem:[#allocation39_spill] sm:$0xff] }
 0x76b   : > { %14655 = vst [vmem:[#allocation46_spill] sm:$0xff] %v11894_v47  ;;  %v11930_v15 = vadd.f32 %v11845_v29, %v4085_v62  ;;  %v11933_v50 = vadd.f32 %v11845_v29, %v4086_v43  ;;  %v11936_v11 = vadd.f32 %v11845_v29, %v4087_v45  ;;  %v11939_v5 = vadd.f32 %v11845_v29, %v4088_v44 }
 0x76c   : > { %14656 = vst [vmem:[#allocation18_spill] sm:$0xff] %v11897_v53  ;;  %v11942_v26 = vadd.f32 %v11845_v29, %v4089_v21  ;;  %v11945_v49 = vadd.f32 %v11845_v29, %v4090_v35  ;;  %v11948_v31 = vadd.f32 %v11845_v29, %v4091_v27  ;;  %v11951_v4 = vadd.f32 %v11845_v29, %v4092_v58 }
 0x76d   : > { %14657 = vst [vmem:[#allocation16_spill] sm:$0xff] %v11900_v14  ;;  %v4029_v23 = vsub.f32 %v11422_v30, %v11767_v20  ;;  %v4030_v7 = vsub.f32 %v11427_v19, %v11767_v20  ;;  %v8322_v19 = vld [vmem:[%s14139_s10 + $0x40] sm:$0xff]  ;;  %v4132_v8 = vsub.f32 0.0, %v11864_v46  ;;  %v4133_v54 = vsub.f32 0.0, %v11867_v3 }
 0x76e   : > { %14658 = vst [vmem:[#allocation19_spill] sm:$0xff] %v11903_v39  ;;  %5678 = vmatpush.bf16.msrb.mxu1 %v8322_v19  ;;  %v4134_v6 = vsub.f32 0.0, %v11870_v41  ;;  %v4135_v24 = vsub.f32 0.0, %v11873_v40  ;;  %v4136_v56 = vsub.f32 0.0, %v11876_v55  ;;  %v4137_v62 = vsub.f32 0.0, %v11879_v57 }
 0x76f   : > { %14659 = vst [vmem:[#allocation15_spill] sm:$0xff] %v11912_v61  ;;  %v4063_v33 = vmul.f32 %v11812_v2, %v4029_v23  ;;  %v4064_v34 = vmul.f32 %v11812_v2, %v4030_v7  ;;  %v4168_v59 = vmul.f32 1.442695, %v4132_v8  ;;  %v4170_v43 = vmul.f32 1.442695, %v4133_v54 }
 0x770   : > { %14660 = vst [vmem:[#allocation52_spill] sm:$0xff] %v11915_v42  ;;  %v4138_v45 = vsub.f32 0.0, %v11882_v51  ;;  %v4172_v44 = vmul.f32 1.442695, %v4134_v6  ;;  %v4139_v21 = vsub.f32 0.0, %v11885_v38  ;;  %v4140_v27 = vsub.f32 0.0, %v11888_v9 }
 0x771   : > { %14661 = vst [vmem:[#allocation17_spill] sm:$0xff] %v11918_v37  ;;  %v11964_v52 = vadd.f32 %v11845_v29, %v4063_v33  ;;  %v11970_v10 = vadd.f32 %v11845_v29, %v4064_v34  ;;  %7923 = vmatmul.msk.bf16.vlgmr.msrb.gmra.mxu1 %vm3788_vm7, %v14674_v1  ;;  %v4174_v35 = vmul.f32 1.442695, %v4135_v24  ;;  %v4176_v58 = vmul.f32 1.442695, %v4136_v56 }
 0x772   : > { %14662 = vst [vmem:[#allocation54_spill] sm:$0xff] %v11921_v32  ;;  %v4141_v28 = vsub.f32 0.0, %v11891_v48  ;;  %v4178_v0 = vmul.f32 1.442695, %v4137_v62  ;;  %v4142_v23 = vsub.f32 0.0, %v11894_v47  ;;  %v4143_v33 = vsub.f32 0.0, %v11897_v53 }
 0x773   : > { %14663 = vst [vmem:[#allocation24_spill] sm:$0xff] %v11924_v18  ;;  %v4130_v30 = vsub.f32 0.0, %v11964_v52  ;;  %v4131_v36 = vsub.f32 0.0, %v11970_v10  ;;  %v4180_v7 = vmul.f32 1.442695, %v4138_v45  ;;  %v4145_v6 = vsub.f32 0.0, %v11903_v39 }
 0x774   : > { %14664 = vst [vmem:[#allocation22_spill] sm:$0xff] %v11927_v12  ;;  %v4182_v34 = vmul.f32 1.442695, %v4139_v21  ;;  %v4184_v19 = vmul.f32 1.442695, %v4140_v27  ;;  %v4147_v45 = vsub.f32 0.0, %v11915_v42 }
 0x775   : > { %14665 = vst [vmem:[#allocation26_spill] sm:$0xff] %v11930_v15  ;;  %v4164_v60 = vmul.f32 1.442695, %v4130_v30  ;;  %v4166_v22 = vmul.f32 1.442695, %v4131_v36  ;;  %v4144_v30 = vsub.f32 0.0, %v11900_v14 }
 0x776   : > { %14666 = vst [vmem:[#allocation21_spill] sm:$0xff] %v11933_v50  ;;  %v4186_v8 = vmul.f32 1.442695, %v4141_v28  ;;  %v4194_v27 = vmul.f32 1.442695, %v4145_v6  ;;  %v4149_v28 = vsub.f32 0.0, %v11921_v32 }
 0x777   : > { %14667 = vst [vmem:[#allocation60_spill] sm:$0xff] %v11936_v11  ;;  %7868 = vmatmul.msk.bf16.gmra.mxu3 %vm3788_vm7, %v14673_v16  ;;  %8546 = vpow2.f32 %v4164_v60  ;;  %v4188_v60 = vmul.f32 1.442695, %v4142_v23  ;;  %v4192_v62 = vmul.f32 1.442695, %v4144_v30  ;;  %v4151_v30 = vsub.f32 0.0, %v11927_v12 }
 0x778   : > { %14668 = vst [vmem:[#allocation23_spill] sm:$0xff] %v11939_v5  ;;  %8548 = vpow2.f32 %v4166_v22  ;;  %v4190_v22 = vmul.f32 1.442695, %v4143_v33 }
 0x779   : > { %14669 = vst [vmem:[#allocation62_spill] sm:$0xff] %v11942_v26  ;;  %8550 = vpow2.f32 %v4168_v59  ;;  %v4146_v59 = vsub.f32 0.0, %v11912_v61 }
 0x77a   : > { %14670 = vst [vmem:[#allocation31_spill] sm:$0xff] %v11945_v49  ;;  %8552 = vpow2.f32 %v4170_v43 }
 0x77b   : > { %14671 = vst [vmem:[#allocation29_spill] sm:$0xff] %v11948_v31  ;;  %8554 = vpow2.f32 %v4172_v44  ;;  %v4196_v33 = vmul.f32 1.442695, %v4146_v59 }
 0x77c   : > { %14672 = vst [vmem:[#allocation34_spill] sm:$0xff] %v11951_v4  ;;  %8556 = vpow2.f32 %v4174_v35  ;;  %v4148_v35 = vsub.f32 0.0, %v11918_v37 }
 0x77d   : > { %v11991_v25 = vpop.eup %8546  ;;  %8558 = vpow2.f32 %v4176_v58 }
 0x77e   : > { %v11994_v36 = vpop.eup %8548  ;;  %8560 = vpow2.f32 %v4178_v0  ;;  %v4200_v6 = vmul.f32 1.442695, %v4148_v35  ;;  %v4028_v35 = vsub.f32 %v11417_v13, %v11767_v20 }
 0x77f   : > { %v8551_v54 = vpop.eup %8550  ;;  %8562 = vpow2.f32 %v4180_v7  ;;  %v4150_v7 = vsub.f32 0.0, %v11924_v18 }
 0x780   : > { %v8553_v24 = vpop.eup %8552  ;;  %8564 = vpow2.f32 %v4182_v34  ;;  %v12001_v44 = vadd.f32 1.0, %v8551_v54  ;;  %v4152_v54 = vsub.f32 0.0, %v11930_v15 }
 0x781   : > { %v8555_v56 = vpop.eup %8554  ;;  %8566 = vpow2.f32 %v4184_v19  ;;  %v12009_v0 = vadd.f32 1.0, %v8553_v24  ;;  %v4198_v19 = vmul.f32 1.442695, %v4147_v45  ;;  %v4153_v24 = vsub.f32 0.0, %v11933_v50 }
 0x782   : > { %v11998_v43 = vpop.eup %8556  ;;  %8568 = vpow2.f32 %v4186_v8  ;;  %v4154_v45 = vsub.f32 0.0, %v11936_v11  ;;  %v4204_v12 = vmul.f32 1.442695, %v4150_v7  ;;  %v4062_v7 = vmul.f32 %v11812_v2, %v4028_v35 }
 0x783   : > { %v12003_v21 = vpop.eup %8558  ;;  %8570 = vpow2.f32 %v4188_v60  ;;  %v4210_v32 = vmul.f32 1.442695, %v4153_v24  ;;  %vm4321_vm2 = vweird.f32 %v12001_v44  ;;  %vm4336_vm6 = vweird.f32 %v12009_v0 }
 0x784   : > { %v12006_v58 = vpop.eup %8560  ;;  %8572 = vpow2.f32 %v4190_v22  ;;  %v4202_v22 = vmul.f32 1.442695, %v4149_v28  ;;  %v8329_v28 = vld [vmem:[%s14139_s10 + $0x78] sm:$0xff] }
 0x785   : > { %v12011_v23 = vpop.eup %8562  ;;  %8574 = vpow2.f32 %v4192_v62  ;;  %v4027_v62 = vsub.f32 %v11414_v63, %v11767_v20  ;;  %v4208_v63 = vmul.f32 1.442695, %v4152_v54  ;;  %5889 = vmatpush.bf16.msrb.mxu0 %v8329_v28  ;;  %v4212_v20 = vmul.f32 1.442695, %v4154_v45  ;;  %v8328_v54 = vld [vmem:[%s14139_s10 + $0x70] sm:$0xff] }
 0x786   : > { %v12014_v34 = vpop.eup %8564  ;;  %8576 = vrcp.f32 %v12001_v44  ;;  %v12067_v45 = vadd.f32 %v11845_v29, %v4062_v7 }
 0x787   : > { %v12018_v8 = vpop.eup %8566  ;;  %8578 = vpow2.f32 %v4194_v27  ;;  %v4206_v27 = vmul.f32 1.442695, %v4151_v30  ;;  %v4061_v15 = vmul.f32 %v11812_v2, %v4027_v62  ;;  %v4156_v2 = vsub.f32 0.0, %v11942_v26 }
 0x788   : > { %v12021_v60 = vpop.eup %8568  ;;  %8580 = vrcp.f32 %v12009_v0  ;;  %v4129_v26 = vsub.f32 0.0, %v12067_v45 }
 0x789   : > { %v12025_v59 = vpop.eup %8570  ;;  %8582 = vpow2.f32 %v4196_v33  ;;  %v4155_v33 = vsub.f32 0.0, %v11939_v5  ;;  %5890 = vmatpush.bf16.msrb.mxu0 %v8328_v54  ;;  %v12064_v62 = vadd.f32 %v11845_v29, %v4061_v15  ;;  %v12080_v15 = vadd.f32 1.0, %v11994_v36 }
 0x78a   : > { %v12030_v18 = vpop.eup %8572  ;;  %8584 = vpow2.f32 %v4198_v19  ;;  %v12048_v19 = vadd.f32 1.0, %v8555_v56  ;;  %v8333_v56 = vld [vmem:[%s14139_s10 + $0x98] sm:$0xff]  ;;  %v4327_v29 = vand.u32 2147483648, %v12001_v44  ;;  %v4162_v14 = vmul.f32 1.442695, %v4129_v26 }
 0x78b   : > { %v12037_v50 = vpop.eup %8574  ;;  %8586 = vpow2.f32 %v4200_v6  ;;  %6093 = vmatpush.bf16.msrb.mxu2 %v8333_v56  ;;  %v4128_v36 = vsub.f32 0.0, %v12064_v62 }
 0x78c   : > { %v12040_v11 = vpop.eup %8576  ;;  %8588 = vpow2.f32 %v4202_v22  ;;  %vm4351_vm12 = vweird.f32 %v12048_v19 }
 0x78d   : > { %v12044_v13 = vpop.eup %8578  ;;  %8590 = vpow2.f32 %v4204_v12  ;;  %v4317_v24 = vmul.f32 %v12040_v11, %v12001_v44  ;;  %v4214_v12 = vmul.f32 1.442695, %v4155_v33  ;;  %v4157_v33 = vsub.f32 0.0, %v11945_v49 }
 0x78e   : > { %v12046_v30 = vpop.eup %8580  ;;  %8592 = vpow2.f32 %v4206_v27  ;;  %v12072_v27 = vadd.f32 1.0, %v11991_v25  ;;  %vm4322_vm15 = vweird.f32 %v12040_v11  ;;  %v4216_v49 = vmul.f32 1.442695, %v4156_v2 }
 0x78f   : > { %v12053_v6 = vpop.eup %8582  ;;  %8594 = vpow2.f32 %v4208_v63  ;;  %v4318_v28 = vsub.f32 1.0, %v4317_v24  ;;  %vm4323_vm3 = vmor %vm4321_vm2, %vm4322_vm15  ;;  %v4328_v2 = vor.u32 1.1754944e-38, %v4327_v29  ;;  %vm4337_vm5 = vweird.f32 %v12046_v30 }
 0x790   : > { %v12058_v22 = vpop.eup %8584  ;;  %8596 = vpow2.f32 %v4210_v32  ;;  %v4332_v32 = vmul.f32 %v12046_v30, %v12009_v0  ;;  %v4160_v61 = vmul.f32 1.442695, %v4128_v36  ;;  %vm4338_vm9 = vmor %vm4336_vm6, %vm4337_vm5  ;;  %vm4291_vm2 = vweird.f32 %v12072_v27 }
 0x791   : > { %v12069_v35 = vpop.eup %8586  ;;  %8598 = vpow2.f32 %v4212_v20  ;;  %v4319_v25 = vmul.f32 %v12040_v11, %v4318_v28  ;;  %v4325_v20 = vand.u32 2147483647, %v12001_v44  ;;  %v4340_v44 = vand.u32 2147483647, %v12009_v0 }
 0x792   : > { %v12076_v63 = vpop.eup %8588  ;;  %8600 = vrcp.f32 %v12048_v19  ;;  %v4333_v54 = vsub.f32 1.0, %v4332_v32  ;;  %v12102_v32 = vadd.f32 1.0, %v11998_v43  ;;  %v4158_v43 = vsub.f32 0.0, %v11948_v31 }
 0x793   : > { %v12084_v7 = vpop.eup %8590  ;;  %8602 = vpow2.f32 %v4214_v12  ;;  %v4320_v5 = vadd.f32 %v12040_v11, %v4319_v25  ;;  %v4342_v12 = vand.u32 2147483648, %v12009_v0  ;;  %vm4326_vm4 = vcmp.eq.f32.partialorder %v4325_v20, 8.507059e+37 }
 0x794   : > { %v12089_v24 = vpop.eup %8592  ;;  %8604 = vrcp.f32 %v12072_v27  ;;  %v4334_v28 = vmul.f32 %v12046_v30, %v4333_v54  ;;  %vm4341_vm10 = vcmp.eq.f32.partialorder %v4340_v44, 8.507059e+37  ;;  %vm4366_vm15 = vweird.f32 %v12102_v32 }
 0x795   : > { %v12093_v56 = vpop.eup %8594  ;;  %8606 = vrcp.f32 %v12080_v15  ;;  %v4324_v25 = vsel %vm4323_vm3, %v12040_v11, %v4320_v5  ;;  %v4218_v5 = vmul.f32 1.442695, %v4157_v33  ;;  %v4343_v20 = vor.u32 1.1754944e-38, %v4342_v12 }
 0x796   : > { %v12099_v37 = vpop.eup %8596  ;;  %8608 = vpow2.f32 %v4216_v49  ;;  %v4329_v39 = vsel %vm4326_vm4, %v4328_v2, %v4324_v25  ;;  %v4335_v29 = vadd.f32 %v12046_v30, %v4334_v28  ;;  %v12131_v33 = vadd.f32 1.0, %v12003_v21 }
 0x797   : > { %14675 = vst [vmem:[#allocation28_spill] sm:$0xff] %v12099_v37  ;;  %v12108_v42 = vpop.eup %8598  ;;  %v4740_v53 = vmul.f32 %v4329_v39, %v11864_v46  ;;  %8610 = vrcp.f32 %v12102_v32  ;;  %v4159_v46 = vsub.f32 0.0, %v11951_v4  ;;  %v4220_v39 = vmul.f32 1.442695, %v4158_v43 }
 0x798   : > { %14676 = vst [vmem:[#allocation68_spill] sm:$0xff] %v12108_v42  ;;  %v12113_v54 = vpop.eup %8600  ;;  %v4339_v49 = vsel %vm4338_vm9, %v12046_v30, %v4335_v29  ;;  %8612 = vpow2.f32 %v4160_v61  ;;  %v8327_v30 = vld [vmem:[%s14139_s10 + $0x68] sm:$0xff]  ;;  %v12154_v29 = vadd.f32 1.0, %v12014_v34  ;;  %v12170_v34 = vadd.f32 1.0, %v12030_v18 }
 0x799   : > { %v12119_v11 = vpop.eup %8602  ;;  %v4772_v36 = vpack.c.bf16 %v4740_v53, %v4740_v53  ;;  %v4347_v26 = vmul.f32 %v12113_v54, %v12048_v19  ;;  %v4344_v0 = vsel %vm4341_vm10, %v4343_v20, %v4339_v49  ;;  %8614 = vpow2.f32 %v4162_v14  ;;  %5891 = vmatpush.bf16.msrb.mxu0 %v8327_v30 }
 0x79a   : > { %14677 = vst [vmem:[#allocation30_spill] sm:$0xff] %v12119_v11  ;;  %v12122_v42 = vpop.eup %8604  ;;  %v4741_v2 = vmul.f32 %v4344_v0, %v11867_v3  ;;  %8616 = vpow2.f32 %v4218_v5  ;;  %v12137_v53 = vadd.f32 1.0, %v12006_v58  ;;  %v12148_v43 = vmul.f32 1.442695, %v4159_v46  ;;  %v8326_v5 = vld [vmem:[%s14139_s10 + $0x60] sm:$0xff] }
 0x79b   : > { %v12127_v28 = vpop.eup %8606  ;;  %v4287_v61 = vmul.f32 %v12122_v42, %v12072_v27  ;;  %v4836_v14 = vunpack.c.l.b16 %v4772_v36  ;;  %v4348_v44 = vsub.f32 1.0, %v4347_v26  ;;  %8618 = vpow2.f32 %v4220_v39 }
 0x79c   : > { %v12134_v12 = vpop.eup %8608  ;;  %v4302_v21 = vmul.f32 %v12127_v28, %v12080_v15  ;;  %v4773_v25 = vpack.c.bf16 %v4741_v2, %v4741_v2  ;;  %v12151_v58 = vadd.f32 1.0, %v12011_v23  ;;  %v12160_v20 = vadd.f32 1.0, %v12018_v8 }
 0x79d   : > { %14678 = vst [vmem:[#allocation70_spill] sm:$0xff] %v12134_v12  ;;  %v12146_v3 = vpop.eup %8610  ;;  %v12163_v49 = vadd.f32 1.0, %v12021_v60  ;;  %8620 = vrcp.f32 %v12131_v33  ;;  %v12167_v23 = vadd.f32 1.0, %v12025_v59  ;;  %v4288_v46 = vsub.f32 1.0, %v4287_v61  ;;  %5892 = vmatpush.bf16.msrb.mxu0 %v8326_v5 }
 0x79e   : > { %v4837_v36 = vunpack.c.l.b16 %v4773_v25  ;;  %v8613_v26 = vpop.eup %8612  ;;  %8622 = vrcp.f32 %v12137_v53  ;;  %v4303_v8 = vsub.f32 1.0, %v4302_v21  ;;  %v4349_v60 = vmul.f32 %v12113_v54, %v4348_v44 }
 0x79f   : > { %v8615_v39 = vpop.eup %8614  ;;  %v12173_v0 = vadd.f32 1.0, %v8613_v26  ;;  %v12181_v25 = vadd.f32 1.0, %v12037_v50  ;;  %8624 = vrcp.f32 %v12151_v58  ;;  %v4362_v59 = vmul.f32 %v12146_v3, %v12102_v32 }
 0x7a0   : > { %v12175_v2 = vpack.c.b16 %v4837_v36, %v4836_v14  ;;  %v12178_v30 = vpop.eup %8616  ;;  %v12184_v18 = vadd.f32 1.0, %v8615_v39  ;;  %v12189_v61 = vadd.f32 1.0, %v12044_v13  ;;  %v12192_v21 = vadd.f32 1.0, %v12053_v6 }
 0x7a1   : > { %14680 = vst [vmem:[#allocation36_spill] sm:$0xff] %v12178_v30  ;;  %v12195_v14 = vadd.f32 1.0, %v12058_v22  ;;  %8626 = vrcp.f32 %v12173_v0  ;;  %v12198_v50 = vpop.eup %8618  ;;  %v12201_v44 = vadd.f32 1.0, %v12069_v35  ;;  %v4289_v5 = vmul.f32 %v12122_v42, %v4288_v46 }
 0x7a2   : > { %14679 = vst [vmem:[#allocation25_spill] sm:$0xff] %v12175_v2  ;;  %8628 = vrcp.f32 %v12184_v18  ;;  %v4297_v13 = vand.u32 2147483648, %v12072_v27  ;;  %v4304_v6 = vmul.f32 %v12127_v28, %v4303_v8  ;;  %v4350_v22 = vadd.f32 %v12113_v54, %v4349_v60 }
 0x7a3   : > { %14681 = vst [vmem:[#allocation14_spill] sm:$0xff] %v12192_v21  ;;  %v12206_v36 = vpop.eup %8620  ;;  %8630 = vrcp.f32 %v12154_v29  ;;  %vm4352_vm11 = vweird.f32 %v12113_v54  ;;  %v12215_v35 = vadd.f32 1.0, %v12076_v63  ;;  %v4357_v46 = vand.u32 2147483648, %v12048_v19 }
 0x7a4   : > { %14682 = vst [vmem:[#allocation42_spill] sm:$0xff] %v12195_v14  ;;  %v12212_v26 = vpop.eup %8622  ;;  %8632 = vrcp.f32 %v12160_v20  ;;  %v4363_v39 = vsub.f32 1.0, %v4362_v59  ;;  %v4355_v8 = vand.u32 2147483647, %v12048_v19  ;;  %v12226_v2 = vadd.f32 %v12122_v42, %v4289_v5  ;;  %vm12234_vm14 = vmor %vm4351_vm12, %vm4352_vm11 }
 0x7a5   : > { %14683 = vst [vmem:[#allocation35_spill] sm:$0xff] %v12198_v50  ;;  %v12223_v60 = vpop.eup %8624  ;;  %vm4292_vm13 = vweird.f32 %v12122_v42  ;;  %v12229_v63 = vor.u32 1.1754944e-38, %v4297_v13  ;;  %v4265_v19 = vand.u32 2147483647, %v12173_v0  ;;  %v12240_v4 = vadd.f32 %v12127_v28, %v4304_v6 }
 0x7a6   : > { %14684 = vst [vmem:[#allocation76_spill] sm:$0xff] %v12201_v44  ;;  %v4354_v5 = vsel %vm12234_vm14, %v12113_v54, %v4350_v22  ;;  %v4267_v12 = vand.u32 2147483648, %v12173_v0  ;;  %v4364_v11 = vmul.f32 %v12146_v3, %v4363_v39  ;;  %v4280_v14 = vand.u32 2147483647, %v12184_v18 }
 0x7a7   : > { %14685 = vst [vmem:[#allocation40_spill] sm:$0xff] %v12215_v35  ;;  %v8627_v31 = vpop.eup %8626  ;;  %v4358_v35 = vor.u32 1.1754944e-38, %v4357_v46  ;;  %vm4356_vm3 = vcmp.eq.f32.partialorder %v4355_v8, 8.507059e+37  ;;  %vm4367_vm4 = vweird.f32 %v12146_v3  ;;  %vm4261_vm5 = vweird.f32 %v12173_v0 }
 0x7a8   : > { %v8629_v13 = vpop.eup %8628  ;;  %v4257_v30 = vmul.f32 %v8627_v31, %v12173_v0  ;;  %v4370_v50 = vand.u32 2147483647, %v12102_v32  ;;  %vm12259_vm6 = vcmp.eq.f32.partialorder %v4265_v19, 8.507059e+37  ;;  %vm4276_vm9 = vweird.f32 %v12184_v18 }
 0x7a9   : > { %v12250_v44 = vpop.eup %8630  ;;  %v4272_v6 = vmul.f32 %v8629_v13, %v12184_v18  ;;  %v4359_v59 = vsel %vm4356_vm3, %v4358_v35, %v4354_v5  ;;  %v4282_v47 = vand.u32 2147483648, %v12184_v18  ;;  %vm4262_vm10 = vweird.f32 %v8627_v31  ;;  %vm12275_vm3 = vmor %vm4366_vm15, %vm4367_vm4 }
 0x7aa   : > { %v12255_v54 = vpop.eup %8632  ;;  %v4258_v22 = vsub.f32 1.0, %v4257_v30  ;;  %v4268_v21 = vor.u32 1.1754944e-38, %v4267_v12  ;;  %v4365_v37 = vadd.f32 %v12146_v3, %v4364_v11  ;;  %vm4277_vm11 = vweird.f32 %v8629_v13  ;;  %vm4263_vm0 = vmor %vm4261_vm5, %vm4262_vm10 }
 0x7ab   : > { %v4273_v39 = vsub.f32 1.0, %v4272_v6  ;;  %vm12266_vm12 = vcmp.eq.f32.partialorder %v4280_v14, 8.507059e+37  ;;  %vm4307_vm14 = vweird.f32 %v12127_v28  ;;  %v4372_v12 = vand.u32 2147483648, %v12102_v32  ;;  %vm4278_vm1 = vmor %vm4276_vm9, %vm4277_vm11 }
 0x7ac   : > { %v4259_v8 = vmul.f32 %v8627_v31, %v4258_v22  ;;  %v4369_v11 = vsel %vm12275_vm3, %v12146_v3, %v4365_v37  ;;  %v4742_v14 = vmul.f32 %v4359_v59, %v11870_v41  ;;  %v4377_v6 = vmul.f32 %v12206_v36, %v12131_v33  ;;  %vm12299_vm5 = vmor %vm4291_vm2, %vm4292_vm13 }
 0x7ad   : > { %v4274_v30 = vmul.f32 %v8629_v13, %v4273_v39  ;;  %v4283_v39 = vor.u32 1.1754944e-38, %v4282_v47  ;;  %vm4306_vm15 = vweird.f32 %v12080_v15  ;;  %vm4371_vm4 = vcmp.eq.f32.partialorder %v4370_v50, 8.507059e+37 }
 0x7ae   : > { %v4260_v5 = vadd.f32 %v8627_v31, %v4259_v8  ;;  %v4373_v48 = vor.u32 1.1754944e-38, %v4372_v12  ;;  %v4774_v37 = vpack.c.bf16 %v4742_v14, %v4742_v14  ;;  %v4378_v3 = vsub.f32 1.0, %v4377_v6  ;;  %vm12334_vm10 = vmor %vm4306_vm15, %vm4307_vm14 }
 0x7af   : > { %v4275_v22 = vadd.f32 %v8629_v13, %v4274_v30  ;;  %v4385_v41 = vand.u32 2147483647, %v12131_v33  ;;  %v4387_v18 = vand.u32 2147483648, %v12131_v33  ;;  %vm4382_vm13 = vweird.f32 %v12206_v36 }
 0x7b0   : > { %v4264_v32 = vsel %vm4263_vm0, %v8627_v31, %v4260_v5  ;;  %v4374_v31 = vsel %vm4371_vm4, %v4373_v48, %v4369_v11  ;;  %v4379_v35 = vmul.f32 %v12206_v36, %v4378_v3  ;;  %v4838_v12 = vunpack.c.l.b16 %v4774_v37 }
 0x7b1   : > { %v4269_v59 = vsel %vm12259_vm6, %v4268_v21, %v4264_v32  ;;  %v4279_v0 = vsel %vm4278_vm1, %v8629_v13, %v4275_v22  ;;  %v4294_v21 = vsel %vm12299_vm5, %v12122_v42, %v12226_v2  ;;  %v14696_v13 = vand.u32 2147483647, %v12072_v27 }
 0x7b2   : > { %v4284_v50 = vsel %vm12266_vm12, %v4283_v39, %v4279_v0  ;;  %v4736_v8 = vmul.f32 %v4269_v59, %v12064_v62  ;;  %v4743_v48 = vmul.f32 %v4374_v31, %v11873_v40  ;;  %vm4381_vm1 = vweird.f32 %v12131_v33 }
 0x7b3   : > { %vm12313_vm0 = vcmp.eq.f32.partialorder %v14696_v13, 8.507059e+37  ;;  %v4737_v30 = vmul.f32 %v4284_v50, %v12067_v45  ;;  %v4392_v42 = vmul.f32 %v12212_v26, %v12137_v53  ;;  %v4380_v2 = vadd.f32 %v12206_v36, %v4379_v35  ;;  %vm4383_vm6 = vmor %vm4381_vm1, %vm4382_vm13 }
 0x7b4   : > { %v4768_v62 = vpack.c.bf16 %v4736_v8, %v4736_v8  ;;  %v4775_v19 = vpack.c.bf16 %v4743_v48, %v4743_v48  ;;  %vm4386_vm2 = vcmp.eq.f32.partialorder %v4385_v41, 8.507059e+37  ;;  %v4388_v5 = vor.u32 1.1754944e-38, %v4387_v18 }
 0x7b5   : > { %v4769_v27 = vpack.c.bf16 %v4737_v30, %v4737_v30  ;;  %v4393_v45 = vsub.f32 1.0, %v4392_v42  ;;  %vm4397_vm9 = vweird.f32 %v12212_v26  ;;  %v4384_v14 = vsel %vm4383_vm6, %v12206_v36, %v4380_v2 }
 0x7b6   : > { %v4832_v40 = vunpack.c.l.b16 %v4768_v62  ;;  %v4839_v11 = vunpack.c.l.b16 %v4775_v19  ;;  %v4402_v6 = vand.u32 2147483648, %v12137_v53  ;;  %v4407_v22 = vmul.f32 %v12223_v60, %v12151_v58 }
 0x7b7   : > { %v4833_v33 = vunpack.c.l.b16 %v4769_v27  ;;  %v4389_v37 = vsel %vm4386_vm2, %v4388_v5, %v4384_v14  ;;  %v4394_v3 = vmul.f32 %v12212_v26, %v4393_v45  ;;  %v4400_v36 = vand.u32 2147483647, %v12137_v53 }
 0x7b8   : > { %v12338_v32 = vpack.c.b16 %v4839_v11, %v4838_v12  ;;  %v4309_v59 = vsel %vm12334_vm10, %v12127_v28, %v12240_v4  ;;  %v14701_v0 = vand.u32 2147483647, %v12080_v15  ;;  %v4408_v47 = vsub.f32 1.0, %v4407_v22 }
 0x7b9   : > { %v12342_v41 = vpack.c.b16 %v4833_v33, %v4832_v40  ;;  %v14702_v31 = vand.u32 2147483648, %v12080_v15  ;;  %v4395_v50 = vadd.f32 %v12212_v26, %v4394_v3  ;;  %vm4396_vm12 = vweird.f32 %v12137_v53 }
 0x7ba   : > { %vm4311_vm11 = vcmp.eq.f32.partialorder %v14701_v0, 8.507059e+37  ;;  %v4744_v8 = vmul.f32 %v4389_v37, %v11876_v55  ;;  %v4299_v28 = vsel %vm12313_vm0, %v12229_v63, %v4294_v21  ;;  %vm4398_vm14 = vmor %vm4396_vm12, %vm4397_vm9  ;;  %v4403_v15 = vor.u32 1.1754944e-38, %v4402_v6 }
 0x7bb   : > { %v4313_v18 = vor.u32 1.1754944e-38, %v14702_v31  ;;  %7836 = vmatmul.msk.bf16.gmra.mxu2 %vm3788_vm7, %v12342_v41  ;;  %v5108_v13 = vshll.u32 %v12342_v41, 16  ;;  %v5105_v4 = vshrl.u32 %v12342_v41, 16  ;;  %v4399_v53 = vsel %vm4398_vm14, %v12212_v26, %v4395_v50 }
 0x7bc   : > { %vm4401_vm3 = vcmp.eq.f32.partialorder %v4400_v36, 8.507059e+37  ;;  %v4409_v55 = vmul.f32 %v12223_v60, %v4408_v47  ;;  %8634 = vpow2.f32 %v12148_v43  ;;  %v12370_v19 = vadd.f32 1.0, %v12084_v7 }
 0x7bd   : > { %v4314_v48 = vsel %vm4311_vm11, %v4313_v18, %v4309_v59  ;;  %v5487_v30 = vrot.slane %v5108_v13, 1  ;;  %v12367_v35 = vrot.slane %v5105_v4, 7  ;;  %v4404_v62 = vsel %vm4401_vm3, %v4403_v15, %v4399_v53 }
 0x7be   : > { %8636 = vrcp.f32 %v12163_v49  ;;  %v4776_v63 = vpack.c.bf16 %v4744_v8, %v4744_v8  ;;  %vm4412_vm15 = vweird.f32 %v12223_v60  ;;  %v4738_v46 = vmul.f32 %v4299_v28, %v11964_v52 }
 0x7bf   : > { %v5488_v26 = vsel %vm2136_vm8, %v14674_v1, %v5487_v30  ;;  %v5110_v21 = vor.u32 %v5108_v13, %v12367_v35  ;;  %v4739_v43 = vmul.f32 %v4314_v48, %v11970_v10  ;;  %v4745_v12 = vmul.f32 %v4404_v62, %v11879_v57 }
 0x7c0   : > { %7924 = vmatmul.msk.bf16.gmra.mxu1 %vm3788_vm7, %v5488_v26  ;;  %v4410_v7 = vadd.f32 %v12223_v60, %v4409_v55  ;;  %vm4411_vm4 = vweird.f32 %v12151_v58  ;;  %v4415_v42 = vand.u32 2147483647, %v12151_v58  ;;  %v12385_v27 = vadd.f32 1.0, %v12089_v24 }
 0x7c1   : > { %8638 = vrcp.f32 %v12167_v23  ;;  %vm14703_vm5 = vsmask.f32 256  ;;  %vm12390_vm0 = vmor %vm4411_vm4, %vm4412_vm15  ;;  %v4417_v57 = vand.u32 2147483648, %v12151_v58  ;;  %v4777_v2 = vpack.c.bf16 %v4745_v12, %v4745_v12 }
 0x7c2   : > { %v5111_v52 = vsel %vm14703_vm5, %v14673_v16, %v5110_v21  ;;  %v4840_v5 = vunpack.c.l.b16 %v4776_v63  ;;  %v4414_v24 = vsel %vm12390_vm0, %v12223_v60, %v4410_v7  ;;  %v4422_v40 = vmul.f32 %v12250_v44, %v12154_v29  ;;  %v12402_v11 = vpop.eup %8634 }
 0x7c3   : > { %7869 = vmatmul.msk.bf16.gmra.mxu3 %vm3788_vm7, %v5111_v52  ;;  %7979 = vmatmul.msk.bf16.vlgmr.msrb.gmra.mxu0 %vm3788_vm7, %v5111_v52  ;;  %8640 = vrcp.f32 %v12170_v34  ;;  %v4770_v45 = vpack.c.bf16 %v4738_v46, %v4738_v46  ;;  %v4771_v33 = vpack.c.bf16 %v4739_v43, %v4739_v43  ;;  %v4418_v58 = vor.u32 1.1754944e-38, %v4417_v57 }
 0x7c4   : > { %v12405_v14 = vpop.eup %8636  ;;  %v4841_v6 = vunpack.c.l.b16 %v4777_v2  ;;  %vm4416_vm1 = vcmp.eq.f32.partialorder %v4415_v42, 8.507059e+37  ;;  %v4423_v22 = vsub.f32 1.0, %v4422_v40  ;;  %v4437_v39 = vmul.f32 %v12255_v54, %v12160_v20 }
 0x7c5   : > { %v4419_v37 = vsel %vm4416_vm1, %v4418_v58, %v4414_v24  ;;  %vm4427_vm13 = vweird.f32 %v12250_v44  ;;  %v4430_v60 = vand.u32 2147483647, %v12154_v29  ;;  %v4432_v3 = vand.u32 2147483648, %v12154_v29 }
 0x7c6   : > { %v12412_v36 = vpack.c.b16 %v4841_v6, %v4840_v5  ;;  %v4424_v59 = vmul.f32 %v12250_v44, %v4423_v22  ;;  %v4746_v0 = vmul.f32 %v4419_v37, %v11882_v51  ;;  %v4438_v47 = vsub.f32 1.0, %v4437_v39  ;;  %v14708_v39 = vld [vmem:[#allocation11_spill] sm:$0xff] }
 0x7c7   : > { %v12416_v31 = vpop.eup %8638  ;;  %v5489_v18 = vor.u32 %v5487_v30, %v5105_v4  ;;  %v4834_v50 = vunpack.c.l.b16 %v4770_v45  ;;  %v4835_v8 = vunpack.c.l.b16 %v4771_v33  ;;  %v4452_v13 = vmul.f32 %v12405_v14, %v12163_v49 }
 0x7c8   : > { %v4425_v28 = vadd.f32 %v12250_v44, %v4424_v59  ;;  %vm4426_vm2 = vweird.f32 %v12154_v29  ;;  %v4445_v15 = vand.u32 2147483647, %v12160_v20  ;;  %v4447_v48 = vand.u32 2147483648, %v12160_v20 }
 0x7c9   : > { %v12424_v53 = vpop.eup %8640  ;;  %vm4428_vm6 = vmor %vm4426_vm2, %vm4427_vm13  ;;  %v4433_v51 = vor.u32 1.1754944e-38, %v4432_v3  ;;  %v4439_v4 = vmul.f32 %v12255_v54, %v4438_v47  ;;  %vm4442_vm9 = vweird.f32 %v12255_v54  ;;  %v4453_v55 = vsub.f32 1.0, %v4452_v13 }
 0x7ca   : > { %v4429_v30 = vsel %vm4428_vm6, %v12250_v44, %v4425_v28  ;;  %vm4431_vm10 = vcmp.eq.f32.partialorder %v4430_v60, 8.507059e+37  ;;  %v4778_v62 = vpack.c.bf16 %v4746_v0, %v4746_v0  ;;  %vm4441_vm11 = vweird.f32 %v12160_v20 }
 0x7cb   : > { %4989 = vmatmul.bf16.gmra.mxu2 %v14653_v17  ;;  %v4434_v29 = vsel %vm4431_vm10, %v4433_v51, %v4429_v30  ;;  %v4440_v63 = vadd.f32 %v12255_v54, %v4439_v4  ;;  %v4454_v26 = vmul.f32 %v12405_v14, %v4453_v55  ;;  %vm4457_vm12 = vweird.f32 %v12405_v14  ;;  %vm4443_vm14 = vmor %vm4441_vm11, %vm4442_vm9 }
 0x7cc   : > { %8642 = vrcp.f32 %v12181_v25  ;;  %vm4446_vm3 = vcmp.eq.f32.partialorder %v4445_v15, 8.507059e+37  ;;  %v4448_v21 = vor.u32 1.1754944e-38, %v4447_v48  ;;  %vm4456_vm15 = vweird.f32 %v12163_v49  ;;  %v14709_v48 = vld [vmem:[#allocation28_spill] sm:$0xff] }
 0x7cd   : > { %v4747_v44 = vmul.f32 %v4434_v29, %v11885_v38  ;;  %v4444_v20 = vsel %vm4443_vm14, %v12255_v54, %v4440_v63  ;;  %v4455_v46 = vadd.f32 %v12405_v14, %v4454_v26  ;;  %v4460_v43 = vand.u32 2147483647, %v12163_v49  ;;  %vm12448_vm4 = vmor %vm4456_vm15, %vm4457_vm12 }
 0x7ce   : > { %v12444_v12 = vsel %vm2136_vm8, %v5489_v18, %v14674_v1  ;;  %v12446_v7 = vpack.c.b16 %v4835_v8, %v4834_v50  ;;  %v4449_v42 = vsel %vm4446_vm3, %v4448_v21, %v4444_v20  ;;  %v4462_v10 = vand.u32 2147483648, %v12163_v49  ;;  %v14711_v20 = vld [vmem:[#allocation14_spill] sm:$0xff] }
 0x7cf   : > { %v4779_v38 = vpack.c.bf16 %v4747_v44, %v4747_v44  ;;  %v4842_v57 = vunpack.c.l.b16 %v4778_v62  ;;  %v4459_v54 = vsel %vm12448_vm4, %v12405_v14, %v4455_v46  ;;  %v4748_v2 = vmul.f32 %v4449_v42, %v11888_v9  ;;  %v14712_v42 = vld [vmem:[#allocation46_spill] sm:$0xff]  ;;  %vm14722_vm4 = vmmov %vm14703_vm5 }
 0x7d0   : > { %v12458_v5 = vadd.f32 1.0, %v12093_v56  ;;  %8644 = vrcp.f32 %v12189_v61  ;;  %7925 = vmatmul.msk.bf16.gmra.mxu1 %vm3788_vm7, %v12444_v12  ;;  %v4463_v24 = vor.u32 1.1754944e-38, %v4462_v10  ;;  %v4467_v49 = vmul.f32 %v12416_v31, %v12167_v23  ;;  %v14713_v10 = vld [vmem:[#allocation68_spill] sm:$0xff] }
 0x7d1   : > { %v5112_v40 = vsel %vm14703_vm5, %v12367_v35, %v14673_v16  ;;  %v4843_v45 = vunpack.c.l.b16 %v4779_v38  ;;  %vm4461_vm0 = vcmp.eq.f32.partialorder %v4460_v43, 8.507059e+37  ;;  %v4780_v33 = vpack.c.bf16 %v4748_v2, %v4748_v2  ;;  %v14715_v2 = vld [vmem:[#allocation18_spill] sm:$0xff] }
 0x7d2   : > { %v12468_v9 = vpop.eup %8642  ;;  %v5113_v56 = vshrl.u32 %v12446_v7, 16  ;;  %v4464_v58 = vsel %vm4461_vm0, %v4463_v24, %v4459_v54  ;;  %v4468_v14 = vsub.f32 1.0, %v4467_v49  ;;  %v4482_v6 = vmul.f32 %v12424_v53, %v12170_v34  ;;  %v14716_v49 = vld [vmem:[#allocation42_spill] sm:$0xff] }
 0x7d3   : > { %7870 = vmatmul.msk.bf16.gmra.mxu3 %vm3788_vm7, %v5112_v40  ;;  %7980 = vmatmul.msk.bf16.gmra.mxu0 %vm3788_vm7, %v5112_v40  ;;  %v12475_v22 = vpack.c.b16 %v4843_v45, %v4842_v57  ;;  %v4749_v35 = vmul.f32 %v4464_v58, %v14708_v39  ;;  %vm4471_vm1 = vweird.f32 %v12167_v23  ;;  %vm4472_vm13 = vweird.f32 %v12416_v31  ;;  %v14714_v57 = vld [vmem:[#allocation35_spill] sm:$0xff] }
 0x7d4   : > { %v4469_v37 = vmul.f32 %v12416_v31, %v4468_v14  ;;  %v4475_v60 = vand.u32 2147483647, %v12167_v23  ;;  %v4477_v3 = vand.u32 2147483648, %v12167_v23  ;;  %v4483_v59 = vsub.f32 1.0, %v4482_v6  ;;  %vm4473_vm6 = vmor %vm4471_vm1, %vm4472_vm13  ;;  %v14717_v6 = vld [vmem:[#allocation76_spill] sm:$0xff] }
 0x7d5   : > { %v4781_v0 = vpack.c.bf16 %v4749_v35, %v4749_v35  ;;  %v4844_v47 = vunpack.c.l.b16 %v4780_v33  ;;  %vm4487_vm2 = vweird.f32 %v12424_v53  ;;  %v4490_v18 = vand.u32 2147483647, %v12170_v34 }
 0x7d6   : > { %v12485_v50 = vpop.eup %8644  ;;  %v4470_v8 = vadd.f32 %v12416_v31, %v4469_v37  ;;  %v4484_v13 = vmul.f32 %v12424_v53, %v4483_v59  ;;  %v4492_v28 = vand.u32 2147483648, %v12170_v34  ;;  %v4497_v15 = vmul.f32 %v12468_v9, %v12181_v25 }
 0x7d7   : > { %v12493_v51 = vadd.f32 1.0, %v14709_v48  ;;  %v5116_v4 = vshll.u32 %v12446_v7, 16  ;;  %v4845_v55 = vunpack.c.l.b16 %v4781_v0  ;;  %vm4486_vm9 = vweird.f32 %v12170_v34  ;;  %v14721_v0 = vld [vmem:[#allocation40_spill] sm:$0xff] }
 0x7d8   : > { %v4474_v30 = vsel %vm4473_vm6, %v12416_v31, %v4470_v8  ;;  %v4478_v62 = vor.u32 1.1754944e-38, %v4477_v3  ;;  %v4485_v29 = vadd.f32 %v12424_v53, %v4484_v13  ;;  %v4498_v63 = vsub.f32 1.0, %v4497_v15  ;;  %vm4488_vm11 = vmor %vm4486_vm9, %vm4487_vm2  ;;  %v14720_v3 = vld [vmem:[#allocation30_spill] sm:$0xff] }
 0x7d9   : > { %v12505_v26 = vrot.slane %v5113_v56, 7  ;;  %vm4476_vm10 = vcmp.eq.f32.partialorder %v4475_v60, 8.507059e+37  ;;  %vm4491_vm12 = vcmp.eq.f32.partialorder %v4490_v18, 8.507059e+37  ;;  %v4493_v21 = vor.u32 1.1754944e-38, %v4492_v28 }
 0x7da   : > { %v12509_v23 = vpack.c.b16 %v4845_v55, %v4844_v47  ;;  %v4479_v44 = vsel %vm4476_vm10, %v4478_v62, %v4474_v30  ;;  %v4489_v34 = vsel %vm4488_vm11, %v12424_v53, %v4485_v29  ;;  %v4499_v31 = vmul.f32 %v12468_v9, %v4498_v63  ;;  %v14724_v62 = vld [vmem:[#allocation70_spill] sm:$0xff]  ;;  %v14725_v63 = vld [vmem:[#allocation16_spill] sm:$0xff] }
 0x7db   : > { %8646 = vrcp.f32 %v14711_v20  ;;  %7837 = vmatmul.msk.bf16.gmra.mxu2 %vm3788_vm7, %v12446_v7  ;;  %v12516_v46 = vrot.slane %v5116_v4, 1  ;;  %v4494_v43 = vsel %vm4491_vm12, %v4493_v21, %v4489_v34  ;;  %v4750_v52 = vmul.f32 %v4479_v44, %v14712_v42 }
 0x7dc   : > { %14710 = vst [vmem:[#allocation37_spill] sm:$0xff] %v12509_v23  ;;  %v12520_v38 = vadd.f32 1.0, %v14713_v10  ;;  %v12523_v54 = vadd.f32 1.0, %v14714_v57  ;;  %v4751_v53 = vmul.f32 %v4494_v43, %v14715_v2  ;;  %v4500_v24 = vadd.f32 %v12468_v9, %v4499_v31  ;;  %v14726_v31 = vld [vmem:[#allocation36_spill] sm:$0xff] }
 0x7dd   : > { %8648 = vrcp.f32 %v14716_v49  ;;  %v5118_v40 = vor.u32 %v5116_v4, %v12505_v26  ;;  %v4782_v45 = vpack.c.bf16 %v4750_v52, %v4750_v52  ;;  %vm4502_vm14 = vweird.f32 %v12468_v9 }
 0x7de   : > { %v4783_v33 = vpack.c.bf16 %v4751_v53, %v4751_v53  ;;  %vm4501_vm3 = vweird.f32 %v12181_v25  ;;  %v4505_v58 = vand.u32 2147483647, %v12181_v25  ;;  %v4507_v14 = vand.u32 2147483648, %v12181_v25 }
 0x7df   : > { %8650 = vrcp.f32 %v14717_v6  ;;  %v12537_v39 = vsel %vm2136_vm8, %v14674_v1, %v12516_v46  ;;  %v4846_v35 = vunpack.c.l.b16 %v4782_v45  ;;  %vm12539_vm15 = vmor %vm4501_vm3, %vm4502_vm14  ;;  %v4512_v60 = vmul.f32 %v12485_v50, %v12189_v61 }
 0x7e0   : > { %v12546_v59 = vadd.f32 1.0, %v14720_v3  ;;  %v12549_v25 = vadd.f32 1.0, %v12402_v11  ;;  %8652 = vrcp.f32 %v14721_v0  ;;  %7926 = vmatmul.msk.bf16.gmra.mxu1 %vm3788_vm7, %v12537_v39  ;;  %v4504_v47 = vsel %vm12539_vm15, %v12468_v9, %v4500_v24  ;;  %vm14729_vm14 = vmmov %vm14722_vm4 }
 0x7e1   : > { %v12557_v18 = vpop.eup %8646  ;;  %v12561_v8 = vsel %vm14722_vm4, %v14673_v16, %v5118_v40  ;;  %v4847_v13 = vunpack.c.l.b16 %v4783_v33  ;;  %v4508_v28 = vor.u32 1.1754944e-38, %v4507_v14  ;;  %v4513_v15 = vsub.f32 1.0, %v4512_v60  ;;  %v14727_v60 = vld [vmem:[#allocation19_spill] sm:$0xff] }
 0x7e2   : > { %8654 = vrcp.f32 %v12523_v54  ;;  %vm4506_vm5 = vcmp.eq.f32.partialorder %v4505_v58, 8.507059e+37  ;;  %vm4517_vm0 = vweird.f32 %v12485_v50  ;;  %v4520_v11 = vand.u32 2147483647, %v12189_v61 }
 0x7e3   : > { %7871 = vmatmul.msk.bf16.gmra.mxu3 %vm3788_vm7, %v12561_v8  ;;  %7981 = vmatmul.msk.bf16.gmra.mxu0 %vm3788_vm7, %v12561_v8  ;;  %v12570_v9 = vpop.eup %8648  ;;  %v12572_v48 = vpack.c.b16 %v4847_v13, %v4846_v35  ;;  %v4509_v4 = vsel %vm4506_vm5, %v4508_v28, %v4504_v47  ;;  %v4514_v55 = vmul.f32 %v12485_v50, %v4513_v15  ;;  %v4522_v30 = vand.u32 2147483648, %v12189_v61 }
 0x7e4   : > { %v12577_v29 = vadd.f32 1.0, %v14724_v62  ;;  %8656 = vrcp.f32 %v12370_v19  ;;  %v4752_v21 = vmul.f32 %v4509_v4, %v14725_v63  ;;  %v4527_v44 = vmul.f32 %v12557_v18, %v14711_v20 }
 0x7e5   : > { %14723 = vst [vmem:[#allocation78_spill] sm:$0xff] %v12572_v48  ;;  %v12583_v34 = vpop.eup %8650  ;;  %v12586_v43 = vadd.f32 1.0, %v14726_v31  ;;  %8658 = vrcp.f32 %v12385_v27  ;;  %v4515_v42 = vadd.f32 %v12485_v50, %v4514_v55  ;;  %vm4516_vm1 = vweird.f32 %v12189_v61 }
 0x7e6   : > { %v12591_v52 = vpop.eup %8652  ;;  %v4715_v10 = vand.u32 2147483647, %v12523_v54  ;;  %8660 = vrcp.f32 %v12549_v25  ;;  %vm4518_vm13 = vmor %vm4516_vm1, %vm4517_vm0  ;;  %v4523_v57 = vor.u32 1.1754944e-38, %v4522_v30  ;;  %v4528_v2 = vsub.f32 1.0, %v4527_v44 }
 0x7e7   : > { %v4519_v53 = vsel %vm4518_vm13, %v12485_v50, %v4515_v42  ;;  %vm4521_vm2 = vcmp.eq.f32.partialorder %v4520_v11, 8.507059e+37  ;;  %v4784_v24 = vpack.c.bf16 %v4752_v21, %v4752_v21  ;;  %v4537_v40 = vand.u32 2147483648, %v14711_v20 }
 0x7e8   : > { %v12599_v45 = vpop.eup %8654  ;;  %v4524_v61 = vsel %vm4521_vm2, %v4523_v57, %v4519_v53  ;;  %v4529_v33 = vmul.f32 %v12557_v18, %v4528_v2  ;;  %vm4532_vm6 = vweird.f32 %v12557_v18  ;;  %v4535_v58 = vand.u32 2147483647, %v14711_v20  ;;  %v14728_v57 = vld [vmem:[#allocation15_spill] sm:$0xff] }
 0x7e9   : > { %8662 = vrcp.f32 %v12458_v5  ;;  %v4717_v14 = vand.u32 2147483648, %v12523_v54  ;;  %v4730_v35 = vand.u32 2147483647, %v12549_v25  ;;  %v4732_v50 = vand.u32 2147483648, %v12549_v25 }
 0x7ea   : > { %v12608_v37 = vpop.eup %8656  ;;  %v4753_v3 = vmul.f32 %v4524_v61, %v14727_v60  ;;  %v4530_v47 = vadd.f32 %v12557_v18, %v4529_v33  ;;  %vm4531_vm9 = vweird.f32 %v14711_v20  ;;  %v4542_v13 = vmul.f32 %v12570_v9, %v14716_v49 }
 0x7eb   : > { %v12615_v28 = vpop.eup %8658  ;;  %v12619_v15 = vmul.f32 %v12599_v45, %v12523_v54  ;;  %4997 = vmatmul.bf16.gmra.mxu2 %v14653_v17  ;;  %v5493_v11 = vor.u32 %v12516_v46, %v5113_v56  ;;  %v4848_v4 = vunpack.c.l.b16 %v4784_v24  ;;  %vm4533_vm10 = vmor %vm4531_vm9, %vm4532_vm6  ;;  %v4538_v20 = vor.u32 1.1754944e-38, %v4537_v40 }
 0x7ec   : > { %v12627_v55 = vpop.eup %8660  ;;  %v4785_v30 = vpack.c.bf16 %v4753_v3, %v4753_v3  ;;  %v4534_v62 = vsel %vm4533_vm10, %v12557_v18, %v4530_v47  ;;  %vm4536_vm11 = vcmp.eq.f32.partialorder %v4535_v58, 8.507059e+37  ;;  %v4543_v63 = vsub.f32 1.0, %v4542_v13  ;;  %v5350_v13 = vpop.f32.mrf.mxu3 }
 0x7ed   : > { %v4539_v21 = vsel %vm4536_vm11, %v4538_v20, %v4534_v62  ;;  %vm4547_vm12 = vweird.f32 %v12570_v9  ;;  %v4552_v44 = vand.u32 2147483648, %v14716_v49  ;;  %v4557_v56 = vmul.f32 %v12583_v34, %v14717_v6 }
 0x7ee   : > { %v4849_v46 = vunpack.c.l.b16 %v4785_v30  ;;  %v4544_v31 = vmul.f32 %v12570_v9, %v4543_v63  ;;  %v4550_v42 = vand.u32 2147483647, %v14716_v49  ;;  %v4754_v2 = vmul.f32 %v4539_v21, %v14728_v57 }
 0x7ef   : > { %v12637_v53 = vpop.eup %8662  ;;  %v4722_v18 = vmul.f32 %v12627_v55, %v12549_v25  ;;  %v12643_v24 = vsel %vm2136_vm8, %v5493_v11, %v14674_v1  ;;  %v12648_v40 = vsel %vm14729_vm14, %v12505_v26, %v14673_v16  ;;  %v4558_v61 = vsub.f32 1.0, %v4557_v56 }
 0x7f0   : > { %7927 = vmatmul.msk.bf16.gmra.mxu1 %vm3788_vm7, %v12643_v24  ;;  %v12652_v33 = vpack.c.b16 %v4849_v46, %v4848_v4  ;;  %v4545_v58 = vadd.f32 %v12570_v9, %v4544_v31  ;;  %vm4546_vm3 = vweird.f32 %v14716_v49  ;;  %v4553_v60 = vor.u32 1.1754944e-38, %v4552_v44  ;;  %v4977_v49 = vpop.f32.mrf.mxu2  ;;  %v14731_v44 = vld [vmem:[#allocation25_spill] sm:$0xff]  ;;  %v5680_v46 = vpop.f32.mrf.mxu1  ;;  %v14732_v31 = vld [vmem:[#allocation52_spill] sm:$0xff] }
 0x7f1   : > { %vm4548_vm15 = vmor %vm4546_vm3, %vm4547_vm12  ;;  %v4559_v3 = vmul.f32 %v12583_v34, %v4558_v61  ;;  %vm4562_vm4 = vweird.f32 %v12583_v34  ;;  %v4567_v26 = vand.u32 2147483648, %v14717_v6  ;;  %v4572_v47 = vmul.f32 %v12591_v52, %v14721_v0 }
 0x7f2   : > { %14730 = vst [vmem:[#allocation32_spill] sm:$0xff] %v12652_v33  ;;  %v4549_v11 = vsel %vm4548_vm15, %v12570_v9, %v4545_v58  ;;  %vm4551_vm5 = vcmp.eq.f32.partialorder %v4550_v42, 8.507059e+37  ;;  %v4786_v4 = vpack.c.bf16 %v4754_v2, %v4754_v2  ;;  %v4565_v20 = vand.u32 2147483647, %v14717_v6 }
 0x7f3   : > { %7872 = vmatmul.msk.bf16.gmra.mxu3 %vm3788_vm7, %v12648_v40  ;;  %7982 = vmatmul.msk.bf16.gmra.mxu0 %vm3788_vm7, %v12648_v40  ;;  %v5351_v30 = vadd.f32 %v5350_v13, %v4977_v49  ;;  %v4554_v62 = vsel %vm4551_vm5, %v4553_v60, %v4549_v11  ;;  %v4560_v63 = vadd.f32 %v12583_v34, %v4559_v3  ;;  %vm4561_vm0 = vweird.f32 %v14717_v6 }
 0x7f4   : > { %v4708_v21 = vsub.f32 1.0, %v12619_v15  ;;  %v5121_v56 = vshrl.u32 %v14731_v44, 16  ;;  %v4755_v57 = vmul.f32 %v4554_v62, %v14732_v31  ;;  %vm4563_vm1 = vmor %vm4561_vm0, %vm4562_vm4  ;;  %v4573_v9 = vsub.f32 1.0, %v4572_v47 }
 0x7f5   : > { %v4723_v42 = vsub.f32 1.0, %v4722_v18  ;;  %v12676_v2 = vadd.f32 %v5680_v46, %v5351_v30  ;;  %v4564_v61 = vsel %vm4563_vm1, %v12583_v34, %v4560_v63  ;;  %v4568_v58 = vor.u32 1.1754944e-38, %v4567_v26  ;;  %v14733_v26 = vld [vmem:[#allocation17_spill] sm:$0xff] }
 0x7f6   : > { %v5124_v60 = vshll.u32 %v14731_v44, 16  ;;  %v4850_v6 = vunpack.c.l.b16 %v4786_v4  ;;  %vm4566_vm13 = vcmp.eq.f32.partialorder %v4565_v20, 8.507059e+37  ;;  %vm4577_vm2 = vweird.f32 %v12591_v52 }
 0x7f7   : > { %v4787_v15 = vpack.c.bf16 %v4755_v57, %v4755_v57  ;;  %v4569_v3 = vsel %vm4566_vm13, %v4568_v58, %v4564_v61  ;;  %v4574_v49 = vmul.f32 %v12591_v52, %v4573_v9  ;;  %v4580_v13 = vand.u32 2147483647, %v14721_v0 }
 0x7f8   : > { %8664 = vrcp.f32 %v12493_v51  ;;  %v12686_v18 = vrot.slane %v5121_v56, 7  ;;  %v4582_v34 = vand.u32 2147483648, %v14721_v0  ;;  %v4756_v47 = vmul.f32 %v4569_v3, %v14733_v26  ;;  %v12707_v31 = vpop.f32.mrf.mxu2  ;;  %v14735_v3 = vld [vmem:[#allocation54_spill] sm:$0xff] }
 0x7f9   : > { %v4851_v11 = vunpack.c.l.b16 %v4787_v15  ;;  %v4575_v4 = vadd.f32 %v12591_v52, %v4574_v49  ;;  %vm4576_vm6 = vweird.f32 %v14721_v0  ;;  %v4587_v20 = vmul.f32 %v12608_v37, %v12370_v19  ;;  %v8332_v0 = vld [vmem:[%s14139_s10 + $0x90] sm:$0xff] }
 0x7fa   : > { %vm4711_vm9 = vweird.f32 %v12523_v54  ;;  %v4709_v30 = vmul.f32 %v12599_v45, %v4708_v21  ;;  %v4724_v62 = vmul.f32 %v12627_v55, %v4723_v42  ;;  %v12697_v63 = vrot.slane %v5124_v60, 1  ;;  %vm4578_vm10 = vmor %vm4576_vm6, %vm4577_vm2  ;;  %v12709_v21 = vpop.f32.mrf.mxu3  ;;  %6094 = vmatpush.bf16.msrb.mxu2 %v8332_v0 }
 0x7fb   : > { %v4583_v46 = vor.u32 1.1754944e-38, %v4582_v34  ;;  %vm4726_vm11 = vweird.f32 %v12549_v25  ;;  %7838 = vmatmul.msk.bf16.gmra.mxu2 %vm3788_vm7, %v14731_v44  ;;  %v12711_v57 = vpack.c.b16 %v4851_v11, %v4850_v6  ;;  %v4579_v9 = vsel %vm4578_vm10, %v12591_v52, %v4575_v4 }
 0x7fc   : > { %vm4581_vm12 = vcmp.eq.f32.partialorder %v4580_v13, 8.507059e+37  ;;  %v4588_v42 = vsub.f32 1.0, %v4587_v20  ;;  %vm4712_vm14 = vweird.f32 %v12599_v45  ;;  %v5126_v61 = vor.u32 %v5124_v60, %v12686_v18 }
 0x7fd   : > { %14734 = vst [vmem:[#allocation45_spill] sm:$0xff] %v12711_v57  ;;  %v4584_v58 = vsel %vm4581_vm12, %v4583_v46, %v4579_v9  ;;  %v4788_v15 = vpack.c.bf16 %v4756_v47, %v4756_v47  ;;  %v4595_v26 = vand.u32 2147483647, %v12370_v19  ;;  %v4597_v6 = vand.u32 2147483648, %v12370_v19  ;;  %vm12767_vm6 = vmor %vm4711_vm9, %vm4712_vm14 }
 0x7fe   : > { %v4757_v49 = vmul.f32 %v4584_v58, %v14735_v3  ;;  %v4589_v34 = vmul.f32 %v12608_v37, %v4588_v42  ;;  %v12720_v11 = vpop.eup %8664  ;;  %v4710_v52 = vadd.f32 %v12599_v45, %v4709_v30  ;;  %vm4727_vm3 = vweird.f32 %v12627_v55 }
 0x7ff   : > { %vm4592_vm15 = vweird.f32 %v12608_v37  ;;  %v4602_v60 = vmul.f32 %v12615_v28, %v12385_v27  ;;  %vm12729_vm4 = vcmp.eq.f32.partialorder %v4715_v10, 8.507059e+37  ;;  %v4725_v47 = vadd.f32 %v12627_v55, %v4724_v62  ;;  %vm12778_vm12 = vmor %vm4726_vm11, %vm4727_vm3 }
 0x800   : > { %v12737_v4 = vsel %vm2136_vm8, %v14674_v1, %v12697_v63  ;;  %v4789_v20 = vpack.c.bf16 %v4757_v49, %v4757_v49  ;;  %v4590_v30 = vadd.f32 %v12608_v37, %v4589_v34  ;;  %vm14738_vm5 = vsmask.f32 256  ;;  %v4982_v34 = vpop.f32.mrf.mxu2 }
 0x801   : > { %7928 = vmatmul.msk.bf16.gmra.mxu1 %vm3788_vm7, %v12737_v4  ;;  %v12744_v46 = vsel %vm14738_vm5, %v14673_v16, %v5126_v61  ;;  %v4852_v10 = vunpack.c.l.b16 %v4788_v15  ;;  %vm4591_vm0 = vweird.f32 %v12370_v19  ;;  %v4603_v0 = vsub.f32 1.0, %v4602_v60 }
 0x802   : > { %vm12747_vm1 = vmor %vm4591_vm0, %vm4592_vm15  ;;  %vm4596_vm13 = vcmp.eq.f32.partialorder %v4595_v26, 8.507059e+37  ;;  %v4598_v9 = vor.u32 1.1754944e-38, %v4597_v6  ;;  %vm4607_vm2 = vweird.f32 %v12615_v28  ;;  %v4612_v42 = vand.u32 2147483648, %v12385_v27  ;;  %v5355_v26 = vpop.f32.mrf.mxu3 }
 0x803   : > { %7873 = vmatmul.msk.bf16.gmra.mxu3 %vm3788_vm7, %v12744_v46  ;;  %7983 = vmatmul.msk.bf16.gmra.mxu0 %vm3788_vm7, %v12744_v46  ;;  %v4853_v61 = vunpack.c.l.b16 %v4789_v20  ;;  %v4594_v19 = vsel %vm12747_vm1, %v12608_v37, %v4590_v30  ;;  %v4604_v58 = vmul.f32 %v12615_v28, %v4603_v0  ;;  %v4610_v15 = vand.u32 2147483647, %v12385_v27  ;;  %v14746_v30 = vld [vmem:[#allocation24_spill] sm:$0xff]  ;;  %vm14750_vm15 = vmmov %vm14738_vm5 }
 0x804   : > { %8666 = vrcp.f32 %v12520_v38  ;;  %v4718_v49 = vor.u32 1.1754944e-38, %v4717_v14  ;;  %v4599_v37 = vsel %vm4596_vm13, %v4598_v9, %v4594_v19  ;;  %vm4606_vm10 = vweird.f32 %v12385_v27 }
 0x805   : > { %v12782_v60 = vpack.c.b16 %v4853_v61, %v4852_v10  ;;  %v4605_v20 = vadd.f32 %v12615_v28, %v4604_v58  ;;  %v4758_v54 = vmul.f32 %v4599_v37, %v14746_v30  ;;  %v4617_v14 = vmul.f32 %v12637_v53, %v12458_v5  ;;  %vm4608_vm11 = vmor %vm4606_vm10, %vm4607_vm2 }
 0x806   : > { %v4714_v27 = vsel %vm12767_vm6, %v12599_v45, %v4710_v52  ;;  %vm12793_vm9 = vcmp.eq.f32.partialorder %v4730_v35, 8.507059e+37  ;;  %v4733_v10 = vor.u32 1.1754944e-38, %v4732_v50  ;;  %v4613_v62 = vor.u32 1.1754944e-38, %v4612_v42  ;;  %v14749_v50 = vld [vmem:[#allocation22_spill] sm:$0xff] }
 0x807   : > { %14745 = vst [vmem:[#allocation79_spill] sm:$0xff] %v12782_v60  ;;  %v4729_v9 = vsel %vm12778_vm12, %v12627_v55, %v4725_v47  ;;  %v4609_v61 = vsel %vm4608_vm11, %v12615_v28, %v4605_v20  ;;  %vm4611_vm14 = vcmp.eq.f32.partialorder %v4610_v15, 8.507059e+37  ;;  %v4625_v45 = vand.u32 2147483647, %v12458_v5 }
 0x808   : > { %8668 = vrcp.f32 %v12546_v59  ;;  %v4614_v35 = vsel %vm4611_vm14, %v4613_v62, %v4609_v61  ;;  %v4790_v52 = vpack.c.bf16 %v4758_v54, %v4758_v54  ;;  %v4618_v19 = vsub.f32 1.0, %v4617_v14  ;;  %v4983_v34 = vpop.f32.mrf.mxu2 }
 0x809   : > { %8670 = vrcp.f32 %v12577_v29  ;;  %v4719_v25 = vsel %vm12729_vm4, %v4718_v49, %v4714_v27  ;;  %v4759_v42 = vmul.f32 %v4614_v35, %v14749_v50  ;;  %v4627_v58 = vand.u32 2147483648, %v12458_v5  ;;  %v14755_v34 = vld [vmem:[#allocation29_spill] sm:$0xff] }
 0x80a   : > { %v12812_v55 = vpop.eup %8666  ;;  %v4734_v28 = vsel %vm12793_vm9, %v4733_v10, %v4729_v9  ;;  %v4619_v47 = vmul.f32 %v12637_v53, %v4618_v19  ;;  %vm4622_vm3 = vweird.f32 %v12637_v53  ;;  %v4632_v15 = vmul.f32 %v12720_v11, %v12493_v51  ;;  %v5356_v26 = vpop.f32.mrf.mxu3 }
 0x80b   : > { %v5497_v13 = vor.u32 %v12697_v63, %v5121_v56  ;;  %v12826_v3 = vsel %vm14750_vm15, %v12686_v18, %v14673_v16  ;;  %vm4621_vm4 = vweird.f32 %v12458_v5  ;;  %vm12829_vm5 = vcmp.eq.f32.partialorder %v4625_v45, 8.507059e+37  ;;  %5005 = vmatmul.bf16.gmra.mxu2 %v14653_v17 }
 0x80c   : > { %v4791_v37 = vpack.c.bf16 %v4759_v42, %v4759_v42  ;;  %v4854_v6 = vunpack.c.l.b16 %v4790_v52  ;;  %v4620_v20 = vadd.f32 %v12637_v53, %v4619_v47  ;;  %v4633_v56 = vsub.f32 1.0, %v4632_v15  ;;  %vm4623_vm0 = vmor %vm4621_vm4, %vm4622_vm3  ;;  %v14754_v52 = vld [vmem:[#allocation26_spill] sm:$0xff] }
 0x80d   : > { %v4628_v63 = vor.u32 1.1754944e-38, %v4627_v58  ;;  %vm4637_vm1 = vweird.f32 %v12720_v11  ;;  %v4642_v18 = vand.u32 2147483648, %v12493_v51  ;;  %v4647_v5 = vmul.f32 %v12812_v55, %v12520_v38 }
 0x80e   : > { %v12839_v30 = vpop.eup %8668  ;;  %v4855_v54 = vunpack.c.l.b16 %v4791_v37  ;;  %v4624_v14 = vsel %vm4623_vm0, %v12637_v53, %v4620_v20  ;;  %v4634_v27 = vmul.f32 %v12720_v11, %v4633_v56  ;;  %v4640_v0 = vand.u32 2147483647, %v12493_v51  ;;  %v14756_v37 = vld [vmem:[#allocation21_spill] sm:$0xff]  ;;  %v14757_v20 = vld [vmem:[#allocation34_spill] sm:$0xff] }
 0x80f   : > { %v12844_v10 = vpop.eup %8670  ;;  %v12848_v62 = vsel %vm2136_vm8, %v5497_v13, %v14674_v1  ;;  %v4629_v9 = vsel %vm12829_vm5, %v4628_v63, %v4624_v14  ;;  %vm4636_vm13 = vweird.f32 %v12493_v51  ;;  %v4648_v61 = vsub.f32 1.0, %v4647_v5 }
 0x810   : > { %v12853_v45 = vpack.c.b16 %v4855_v54, %v4854_v6  ;;  %v4635_v53 = vadd.f32 %v12720_v11, %v4634_v27  ;;  %v4643_v35 = vor.u32 1.1754944e-38, %v4642_v18  ;;  %v4760_v19 = vmul.f32 %v4629_v9, %v14754_v52  ;;  %vm4638_vm2 = vmor %vm4636_vm13, %vm4637_vm1 }
 0x811   : > { %7929 = vmatmul.msk.bf16.gmra.mxu1 %vm3788_vm7, %v12848_v62  ;;  %v4649_v50 = vmul.f32 %v12812_v55, %v4648_v61  ;;  %vm4652_vm6 = vweird.f32 %v12812_v55  ;;  %v4657_v51 = vand.u32 2147483648, %v12520_v38  ;;  %v4662_v42 = vmul.f32 %v12839_v30, %v12546_v59  ;;  %v14758_v61 = vld [vmem:[#allocation60_spill] sm:$0xff] }
 0x812   : > { %14753 = vst [vmem:[#allocation43_spill] sm:$0xff] %v12853_v45  ;;  %v4639_v58 = vsel %vm4638_vm2, %v12720_v11, %v4635_v53  ;;  %vm4641_vm10 = vcmp.eq.f32.partialorder %v4640_v0, 8.507059e+37  ;;  %v4792_v47 = vpack.c.bf16 %v4760_v19, %v4760_v19  ;;  %v4655_v15 = vand.u32 2147483647, %v12520_v38 }
 0x813   : > { %8672 = vrcp.f32 %v12586_v43  ;;  %7874 = vmatmul.msk.bf16.gmra.mxu3 %vm3788_vm7, %v12826_v3  ;;  %7984 = vmatmul.msk.bf16.gmra.mxu0 %vm3788_vm7, %v12826_v3  ;;  %v4644_v13 = vsel %vm4641_vm10, %v4643_v35, %v4639_v58  ;;  %v4650_v49 = vadd.f32 %v12812_v55, %v4649_v50  ;;  %vm4651_vm12 = vweird.f32 %v12520_v38 }
 0x814   : > { %v4766_v26 = vmul.f32 %v4719_v25, %v14755_v34  ;;  %v5129_v11 = vshrl.u32 %v12338_v32, 16  ;;  %v4761_v6 = vmul.f32 %v4644_v13, %v14756_v37  ;;  %vm4653_vm9 = vmor %vm4651_vm12, %vm4652_vm6  ;;  %v4767_v56 = vmul.f32 %v4734_v28, %v14757_v20 }
 0x815   : > { %v4654_v63 = vsel %vm4653_vm9, %v12812_v55, %v4650_v49  ;;  %v4658_v18 = vor.u32 1.1754944e-38, %v4657_v51  ;;  %v4663_v5 = vsub.f32 1.0, %v4662_v42  ;;  %v5132_v54 = vshll.u32 %v12338_v32, 16 }
 0x816   : > { %v4856_v14 = vunpack.c.l.b16 %v4792_v47  ;;  %vm4656_vm11 = vcmp.eq.f32.partialorder %v4655_v15, 8.507059e+37  ;;  %vm4667_vm14 = vweird.f32 %v12839_v30  ;;  %v4793_v38 = vpack.c.bf16 %v4761_v6, %v4761_v6  ;;  %v14760_v6 = vld [vmem:[#allocation23_spill] sm:$0xff] }
 0x817   : > { %v4659_v25 = vsel %vm4656_vm11, %v4658_v18, %v4654_v63  ;;  %v4664_v27 = vmul.f32 %v12839_v30, %v4663_v5  ;;  %v4670_v0 = vand.u32 2147483647, %v12546_v59  ;;  %v4798_v9 = vpack.c.bf16 %v4766_v26, %v4766_v26 }
 0x818   : > { %v12888_v28 = vrot.slane %v5129_v11, 7  ;;  %v4672_v55 = vand.u32 2147483648, %v12546_v59  ;;  %v4762_v53 = vmul.f32 %v4659_v25, %v14758_v61  ;;  %v4857_v52 = vunpack.c.l.b16 %v4793_v38 }
 0x819   : > { %v8673_v35 = vpop.eup %8672  ;;  %v4665_v19 = vadd.f32 %v12839_v30, %v4664_v27  ;;  %vm4666_vm3 = vweird.f32 %v12546_v59  ;;  %v4677_v50 = vmul.f32 %v12844_v10, %v12577_v29  ;;  %v4799_v51 = vpack.c.bf16 %v4767_v56, %v4767_v56 }
 0x81a   : > { %v5499_v42 = vrot.slane %v5132_v54, 1  ;;  %vm4668_vm15 = vmor %vm4666_vm3, %vm4667_vm14  ;;  %vm4671_vm4 = vcmp.eq.f32.partialorder %v4670_v0, 8.507059e+37  ;;  %v4673_v58 = vor.u32 1.1754944e-38, %v4672_v55  ;;  %v12898_v47 = vpack.c.b16 %v4857_v52, %v4856_v14 }
 0x81b   : > { %v4669_v15 = vsel %vm4668_vm15, %v12839_v30, %v4665_v19  ;;  %v4794_v13 = vpack.c.bf16 %v4762_v53, %v4762_v53  ;;  %v4678_v49 = vsub.f32 1.0, %v4677_v50  ;;  %v4862_v34 = vunpack.c.l.b16 %v4798_v9  ;;  %7839 = vmatmul.msk.bf16.gmra.mxu2 %vm3788_vm7, %v12338_v32 }
 0x81c   : > { %14759 = vst [vmem:[#allocation20_spill] sm:$0xff] %v12898_v47  ;;  %v5134_v59 = vor.u32 %v5132_v54, %v12888_v28  ;;  %v4674_v26 = vsel %vm4671_vm4, %v4673_v58, %v4669_v15  ;;  %v4692_v37 = vmul.f32 %v8673_v35, %v12586_v43  ;;  %v4685_v63 = vand.u32 2147483647, %v12577_v29  ;;  %v14763_v15 = vld [vmem:[#allocation62_spill] sm:$0xff] }
 0x81d   : > { %v4763_v20 = vmul.f32 %v4674_v26, %v14760_v6  ;;  %v4679_v56 = vmul.f32 %v12844_v10, %v4678_v49  ;;  %v4687_v18 = vand.u32 2147483648, %v12577_v29  ;;  %v4863_v30 = vunpack.c.l.b16 %v4799_v51 }
 0x81e   : > { %v12911_v5 = vsel %vm2136_vm8, %v14674_v1, %v5499_v42  ;;  %vm4682_vm5 = vweird.f32 %v12844_v10  ;;  %v4693_v14 = vsub.f32 1.0, %v4692_v37  ;;  %v4858_v38 = vunpack.c.l.b16 %v4794_v13 }
 0x81f   : > { %v4795_v54 = vpack.c.bf16 %v4763_v20, %v4763_v20  ;;  %v4680_v25 = vadd.f32 %v12844_v10, %v4679_v56  ;;  %vm4681_vm0 = vweird.f32 %v12577_v29  ;;  %vm4697_vm1 = vweird.f32 %v8673_v35 }
 0x820   : > { %v4694_v27 = vmul.f32 %v8673_v35, %v4693_v14  ;;  %v4700_v0 = vand.u32 2147483647, %v12586_v43  ;;  %v4702_v9 = vand.u32 2147483648, %v12586_v43  ;;  %vm14761_vm13 = vsmask.f32 256  ;;  %vm4683_vm2 = vmor %vm4681_vm0, %vm4682_vm5 }
 0x821   : > { %7930 = vmatmul.msk.bf16.gmra.mxu1 %vm3788_vm7, %v12911_v5  ;;  %v12922_v55 = vsel %vm14761_vm13, %v14673_v16, %v5134_v59  ;;  %vm4686_vm6 = vcmp.eq.f32.partialorder %v4685_v63, 8.507059e+37  ;;  %v4688_v61 = vor.u32 1.1754944e-38, %v4687_v18  ;;  %v4859_v53 = vunpack.c.l.b16 %v4795_v54  ;;  %vm14768_vm11 = vmmov %vm14761_vm13 }
 0x822   : > { %v4684_v52 = vsel %vm4683_vm2, %v12844_v10, %v4680_v25  ;;  %v4695_v29 = vadd.f32 %v8673_v35, %v4694_v27  ;;  %vm4696_vm10 = vweird.f32 %v12586_v43  ;;  %vm4701_vm9 = vcmp.eq.f32.partialorder %v4700_v0, 8.507059e+37  ;;  %v14765_v43 = vld [vmem:[#allocation31_spill] sm:$0xff]  ;;  %vm14769_vm14 = vmmov %vm14768_vm11 }
 0x823   : > { %7875 = vmatmul.msk.bf16.gmra.mxu3 %vm3788_vm7, %v12922_v55  ;;  %7985 = vmatmul.msk.bf16.gmra.mxu0 %vm3788_vm7, %v12922_v55  ;;  %v4689_v19 = vsel %vm4686_vm6, %v4688_v61, %v4684_v52  ;;  %vm4698_vm12 = vmor %vm4696_vm10, %vm4697_vm1  ;;  %v4703_v50 = vor.u32 1.1754944e-38, %v4702_v9  ;;  %v12931_v51 = vpack.c.b16 %v4859_v53, %v4858_v38  ;;  %v12934_v10 = vpack.c.b16 %v4863_v30, %v4862_v34 }
 0x824   : > { %v4699_v58 = vsel %vm4698_vm12, %v8673_v35, %v4695_v29  ;;  %v4764_v13 = vmul.f32 %v4689_v19, %v14763_v15  ;;  %v5501_v35 = vor.u32 %v5499_v42, %v5129_v11  ;;  %v12962_v54 = vsel %vm14768_vm11, %v12888_v28, %v14673_v16  ;;  %v12968_v11 = vpop.f32.mrf.mxu1  ;;  %vm14770_vm3 = vmmov %vm14768_vm11 }
 0x825   : > { %14762 = vst [vmem:[#allocation33_spill] sm:$0xff] %v12931_v51  ;;  %v4704_v49 = vsel %vm4701_vm9, %v4703_v50, %v4699_v58  ;;  %v14265_v37 = vshll.u32 %v12934_v10, 16  ;;  %v14266_v63 = vshrl.u32 %v12934_v10, 16  ;;  %v5137_v42 = vshrl.u32 %v12412_v36, 16  ;;  %vm14771_vm15 = vmmov %vm14770_vm3 }
 0x826   : > { %14764 = vst [vmem:[#allocation82_spill] sm:$0xff] %v12934_v10  ;;  %v4765_v59 = vmul.f32 %v4704_v49, %v14765_v43  ;;  %v4796_v26 = vpack.c.bf16 %v4764_v13, %v4764_v13  ;;  %v12955_v14 = vsel %vm2136_vm8, %v5501_v35, %v14674_v1  ;;  %v5140_v38 = vshll.u32 %v12412_v36, 16  ;;  %vm14774_vm4 = vmmov %vm14770_vm3 }
 0x827   : > { %v12940_v56 = vrot.slane %v14265_v37, 1  ;;  %v5139_v25 = vrot.slane %v5137_v42, 7  ;;  %vm14778_vm5 = vmmov %vm14770_vm3 }
 0x828   : > { %v4797_v6 = vpack.c.bf16 %v4765_v59, %v4765_v59  ;;  %v4860_v20 = vunpack.c.l.b16 %v4796_v26  ;;  %v5503_v27 = vrot.slane %v5140_v38, 1  ;;  %vm14781_vm0 = vmmov %vm14770_vm3 }
 0x829   : > { %v12949_v34 = vor.u32 %v14266_v63, %v12940_v56  ;;  %v5142_v28 = vor.u32 %v5140_v38, %v5139_v25  ;;  %v13002_v35 = vsel %vm14770_vm3, %v5139_v25, %v14673_v16  ;;  %vm14785_vm1 = vmmov %vm14781_vm0 }
 0x82a   : > { %v4861_v18 = vunpack.c.l.b16 %v4797_v6  ;;  %v12976_v53 = vsel %vm2136_vm8, %v14674_v1, %v5503_v27  ;;  %vm14788_vm13 = vmmov %vm14781_vm0 }
 0x82b   : > { %5013 = vmatmul.bf16.gmra.mxu2 %v14653_v17  ;;  %14766 = vst [vmem:[#allocation50_spill] sm:$0xff] %v12949_v34  ;;  %v12985_v29 = vsel %vm14769_vm14, %v14673_v16, %v5142_v28  ;;  %vm14792_vm2 = vmmov %vm14781_vm0 }
 0x82c   : > { %v12951_v30 = vpack.c.b16 %v4861_v18, %v4860_v20  ;;  %vm14795_vm6 = vmmov %vm14781_vm0 }
 0x82d   : > { %vm14799_vm10 = vmmov %vm14781_vm0 }
 0x82e   : > { %14767 = vst [vmem:[#allocation48_spill] sm:$0xff] %v12951_v30  ;;  %vm14802_vm12 = vmmov %vm14781_vm0 }
 0x82f   : > { %vm14806_vm9 = vmmov %vm14781_vm0 }
 0x830   : > { %vm14809_vm11 = vmmov %vm14781_vm0 }
 0x831   : > { %7931 = vmatmul.msk.bf16.gmra.mxu1 %vm3788_vm7, %v12955_v14  ;;  %vm14813_vm14 = vmmov %vm14781_vm0 }
 0x832   : > { %vm14816_vm3 = vmmov %vm14781_vm0 }
 0x833   : > { %7876 = vmatmul.msk.bf16.gmra.mxu3 %vm3788_vm7, %v12962_v54  ;;  %7986 = vmatmul.msk.bf16.gmra.mxu0 %vm3788_vm7, %v12962_v54 }
 0x83b   : > { %7840 = vmatmul.msk.bf16.gmra.mxu2 %vm3788_vm7, %v12412_v36 }
 0x83d   : > { %v5685_v0 = vpop.f32.mrf.mxu1 }
 0x83e   : > { %v4985_v9 = vpop.f32.mrf.mxu2 }
 0x840   : > { %v5894_v61 = vpop.f32.mrf.mxu0 }
 0x841   : > { %v12979_v52 = vadd.f32 %v5894_v61, %v12676_v2  ;;  %7932 = vmatmul.msk.bf16.gmra.mxu1 %vm3788_vm7, %v12976_v53  ;;  %v5505_v2 = vor.u32 %v5503_v27, %v5137_v42  ;;  %v5145_v27 = vshrl.u32 %v12475_v22, 16  ;;  %v5148_v61 = vshll.u32 %v12475_v22, 16 }
 0x843   : > { %7877 = vmatmul.msk.bf16.gmra.mxu3 %vm3788_vm7, %v12985_v29  ;;  %7987 = vmatmul.msk.bf16.gmra.mxu0 %vm3788_vm7, %v12985_v29  ;;  %v12996_v18 = vsel %vm2136_vm8, %v5505_v2, %v14674_v1  ;;  %v5507_v25 = vrot.slane %v5148_v61, 1 }
 0x845   : > { %v5686_v50 = vpop.f32.mrf.mxu1 }
 0x846   : > { %v5358_v19 = vpop.f32.mrf.mxu3  ;;  %v4987_v15 = vpop.f32.mrf.mxu2 }
 0x847   : > { %v5359_v58 = vadd.f32 %v5358_v19, %v4985_v9  ;;  %v5147_v19 = vrot.slane %v5145_v27, 7 }
 0x848   : > { %v12991_v13 = vpop.f32.mrf.mxu0 }
 0x84b   : > { %5021 = vmatmul.bf16.gmra.mxu2 %v14653_v17 }
 0x84d   : > { %v5688_v43 = vpop.f32.mrf.mxu1 }
 0x84e   : > { %v5360_v49 = vpop.f32.mrf.mxu3  ;;  %v5810_v26 = vadd.f32 %v5688_v43, %v5359_v58  ;;  %v4990_v6 = vpop.f32.mrf.mxu2  ;;  %v13014_v43 = vsel %vm2136_vm8, %v14674_v1, %v5507_v25 }
 0x84f   : > { %v5361_v59 = vadd.f32 %v5360_v49, %v4987_v15  ;;  %v5150_v15 = vor.u32 %v5148_v61, %v5147_v19  ;;  %v5509_v61 = vor.u32 %v5507_v25, %v5145_v27 }
 0x850   : > { %v5899_v20 = vpop.f32.mrf.mxu0 }
 0x851   : > { %7933 = vmatmul.msk.bf16.gmra.mxu1 %vm3788_vm7, %v12996_v18  ;;  %v13033_v34 = vsel %vm2136_vm8, %v5509_v61, %v14674_v1 }
 0x852   : > { %14773 = vst [vmem:[#allocation53_spill] sm:$0xff] %v13033_v34 }
 0x853   : > { %7878 = vmatmul.msk.bf16.gmra.mxu3 %vm3788_vm7, %v13002_v35  ;;  %7988 = vmatmul.msk.bf16.gmra.mxu0 %vm3788_vm7, %v13002_v35 }
 0x855   : > { %v5690_v38 = vpop.f32.mrf.mxu1 }
 0x856   : > { %v5363_v42 = vpop.f32.mrf.mxu3  ;;  %v5811_v0 = vadd.f32 %v5690_v38, %v5361_v59  ;;  %v4991_v28 = vpop.f32.mrf.mxu2  ;;  %v13022_v59 = vsel %vm14771_vm15, %v14673_v16, %v5150_v15  ;;  %vm14820_vm15 = vmmov %vm14781_vm0 }
 0x858   : > { %v5900_v9 = vpop.f32.mrf.mxu0 }
 0x85b   : > { %7841 = vmatmul.msk.bf16.gmra.mxu2 %vm3788_vm7, %v12475_v22 }
 0x85d   : > { %v5693_v58 = vpop.f32.mrf.mxu1 }
 0x85e   : > { %v5364_v50 = vpop.f32.mrf.mxu3  ;;  %v4993_v2 = vpop.f32.mrf.mxu2 }
 0x860   : > { %v5902_v49 = vpop.f32.mrf.mxu0 }
 0x861   : > { %v13016_v6 = vadd.f32 %v5902_v49, %v5810_v26  ;;  %7934 = vmatmul.msk.bf16.gmra.mxu1 %vm3788_vm7, %v13014_v43 }
 0x863   : > { %7879 = vmatmul.msk.bf16.gmra.mxu3 %vm3788_vm7, %v13022_v59  ;;  %7989 = vmatmul.msk.bf16.gmra.mxu0 %vm3788_vm7, %v13022_v59 }
 0x865   : > { %v5694_v42 = vpop.f32.mrf.mxu1 }
 0x866   : > { %v5366_v20 = vpop.f32.mrf.mxu3  ;;  %v4995_v28 = vpop.f32.mrf.mxu2 }
 0x867   : > { %v5367_v38 = vadd.f32 %v5366_v20, %v4993_v2  ;;  %v8337_v20 = vld [vmem:[%s14139_s10 + $0xb8] sm:$0xff] }
 0x868   : > { %v5904_v9 = vpop.f32.mrf.mxu0  ;;  %6300 = vmatpush.bf16.msra.mxu3 %v8337_v20 }
 0x869   : > { %v13028_v26 = vadd.f32 %v5904_v9, %v5811_v0  ;;  %v13039_v0 = vsel %vm14774_vm4, %v5147_v19, %v14673_v16  ;;  %v5156_v19 = vshll.u32 %v12509_v23, 16  ;;  %v8331_v9 = vld [vmem:[%s14139_s10 + $0x88] sm:$0xff]  ;;  %vm14823_vm4 = vmmov %vm14781_vm0 }
 0x86a   : > { %14775 = vst [vmem:[#allocation85_spill] sm:$0xff] %v13039_v0  ;;  %6095 = vmatpush.bf16.msrb.mxu2 %v8331_v9 }
 0x86b   : > { %14772 = vst [vmem:[#allocation38_spill] sm:$0xff] %v13028_v26  ;;  %5029 = vmatmul.bf16.gmra.mxu2 %v14653_v17 }
 0x86d   : > { %v5696_v58 = vpop.f32.mrf.mxu1 }
 0x86e   : > { %v5368_v50 = vpop.f32.mrf.mxu3  ;;  %v5812_v49 = vadd.f32 %v5696_v58, %v5367_v38  ;;  %v4998_v37 = vpop.f32.mrf.mxu2 }
 0x86f   : > { %v5369_v15 = vadd.f32 %v5368_v50, %v4995_v28  ;;  %v5511_v28 = vrot.slane %v5156_v19, 1 }
 0x870   : > { %v5907_v63 = vpop.f32.mrf.mxu0 }
 0x871   : > { %7935 = vmatmul.msk.bf16.gmra.mxu1 %vm3788_vm7, %v13033_v34  ;;  %v5153_v63 = vshrl.u32 %v12509_v23, 16 }
 0x873   : > { %7880 = vmatmul.msk.bf16.gmra.mxu3 %vm3788_vm7, %v13039_v0  ;;  %7990 = vmatmul.msk.bf16.gmra.mxu0 %vm3788_vm7, %v13039_v0  ;;  %v5155_v38 = vrot.slane %v5153_v63, 7 }
 0x875   : > { %v5698_v37 = vpop.f32.mrf.mxu1  ;;  %v5158_v58 = vor.u32 %v5156_v19, %v5155_v38 }
 0x876   : > { %v5371_v27 = vpop.f32.mrf.mxu3  ;;  %v5813_v25 = vadd.f32 %v5698_v37, %v5369_v15  ;;  %v4999_v2 = vpop.f32.mrf.mxu2  ;;  %v13057_v37 = vsel %vm2136_vm8, %v14674_v1, %v5511_v28 }
 0x877   : > { %14776 = vst [vmem:[#allocation51_spill] sm:$0xff] %v13057_v37  ;;  %v13065_v20 = vsel %vm14778_vm5, %v14673_v16, %v5158_v58  ;;  %vm14827_vm5 = vmmov %vm14781_vm0 }
 0x878   : > { %v5908_v42 = vpop.f32.mrf.mxu0 }
 0x87b   : > { %7842 = vmatmul.msk.bf16.gmra.mxu2 %vm3788_vm7, %v12509_v23 }
 0x87e   : > { %v5372_v61 = vpop.f32.mrf.mxu3  ;;  %v5701_v50 = vpop.f32.mrf.mxu1 }
 0x87f   : > { %v5001_v15 = vpop.f32.mrf.mxu2 }
 0x880   : > { %v5910_v27 = vpop.f32.mrf.mxu0 }
 0x881   : > { %v13059_v2 = vadd.f32 %v5910_v27, %v5812_v49  ;;  %7936 = vmatmul.msk.bf16.gmra.mxu1 %vm3788_vm7, %v13057_v37  ;;  %v5513_v27 = vor.u32 %v5511_v28, %v5153_v63 }
 0x883   : > { %14777 = vst [vmem:[#allocation27_spill] sm:$0xff] %v13059_v2  ;;  %7881 = vmatmul.msk.bf16.gmra.mxu3 %vm3788_vm7, %v13065_v20  ;;  %7991 = vmatmul.msk.bf16.gmra.mxu0 %vm3788_vm7, %v13065_v20  ;;  %v13076_v0 = vsel %vm2136_vm8, %v5513_v27, %v14674_v1 }
 0x884   : > { %14780 = vst [vmem:[#allocation88_spill] sm:$0xff] %v13076_v0 }
 0x886   : > { %v5374_v42 = vpop.f32.mrf.mxu3  ;;  %v5702_v19 = vpop.f32.mrf.mxu1 }
 0x887   : > { %v5375_v9 = vadd.f32 %v5374_v42, %v5001_v15  ;;  %v5003_v61 = vpop.f32.mrf.mxu2 }
 0x888   : > { %v5912_v50 = vpop.f32.mrf.mxu0 }
 0x889   : > { %v13071_v49 = vadd.f32 %v5912_v50, %v5813_v25  ;;  %v13082_v25 = vsel %vm14781_vm0, %v5155_v38, %v14673_v16 }
 0x88a   : > { %14782 = vst [vmem:[#allocation58_spill] sm:$0xff] %v13082_v25 }
 0x88b   : > { %14779 = vst [vmem:[#allocation41_spill] sm:$0xff] %v13071_v49  ;;  %5037 = vmatmul.bf16.gmra.mxu2 %v14653_v17 }
 0x88e   : > { %v5376_v2 = vpop.f32.mrf.mxu3  ;;  %v5704_v23 = vpop.f32.mrf.mxu1 }
 0x88f   : > { %v5377_v58 = vadd.f32 %v5376_v2, %v5003_v61  ;;  %v5814_v37 = vadd.f32 %v5704_v23, %v5375_v9  ;;  %v5006_v26 = vpop.f32.mrf.mxu2  ;;  %v5164_v2 = vshll.u32 %v12572_v48, 16 }
 0x890   : > { %v5915_v34 = vpop.f32.mrf.mxu0 }
 0x891   : > { %7937 = vmatmul.msk.bf16.gmra.mxu1 %vm3788_vm7, %v13076_v0  ;;  %v5161_v34 = vshrl.u32 %v12572_v48, 16  ;;  %v5515_v38 = vrot.slane %v5164_v2, 1 }
 0x893   : > { %7882 = vmatmul.msk.bf16.gmra.mxu3 %vm3788_vm7, %v13082_v25  ;;  %7992 = vmatmul.msk.bf16.gmra.mxu0 %vm3788_vm7, %v13082_v25  ;;  %v5163_v42 = vrot.slane %v5161_v34, 7 }
 0x895   : > { %v5166_v61 = vor.u32 %v5164_v2, %v5163_v42 }
 0x896   : > { %v5379_v23 = vpop.f32.mrf.mxu3  ;;  %v5706_v26 = vpop.f32.mrf.mxu1 }
 0x897   : > { %v5815_v63 = vadd.f32 %v5706_v26, %v5377_v58  ;;  %v5007_v28 = vpop.f32.mrf.mxu2  ;;  %v13094_v23 = vsel %vm2136_vm8, %v14674_v1, %v5515_v38  ;;  %v13102_v58 = vsel %vm14785_vm1, %v14673_v16, %v5166_v61  ;;  %vm14830_vm1 = vmmov %vm14781_vm0 }
 0x898   : > { %v5916_v15 = vpop.f32.mrf.mxu0  ;;  %14783 = vst [vmem:[#allocation56_spill] sm:$0xff] %v13094_v23 }
 0x89b   : > { %7843 = vmatmul.msk.bf16.gmra.mxu2 %vm3788_vm7, %v12572_v48 }
 0x89e   : > { %v5380_v19 = vpop.f32.mrf.mxu3  ;;  %v5709_v9 = vpop.f32.mrf.mxu1 }
 0x89f   : > { %v5009_v50 = vpop.f32.mrf.mxu2  ;;  %v5517_v9 = vor.u32 %v5515_v38, %v5161_v34 }
 0x8a0   : > { %v5918_v27 = vpop.f32.mrf.mxu0 }
 0x8a1   : > { %v13096_v49 = vadd.f32 %v5918_v27, %v5814_v37  ;;  %7938 = vmatmul.msk.bf16.gmra.mxu1 %vm3788_vm7, %v13094_v23  ;;  %v13113_v25 = vsel %vm2136_vm8, %v5517_v9, %v14674_v1 }
 0x8a2   : > { %14787 = vst [vmem:[#allocation91_spill] sm:$0xff] %v13113_v25 }
 0x8a3   : > { %14784 = vst [vmem:[#allocation47_spill] sm:$0xff] %v13096_v49  ;;  %7883 = vmatmul.msk.bf16.gmra.mxu3 %vm3788_vm7, %v13102_v58  ;;  %7993 = vmatmul.msk.bf16.gmra.mxu0 %vm3788_vm7, %v13102_v58 }
 0x8a6   : > { %v5382_v26 = vpop.f32.mrf.mxu3  ;;  %v5710_v28 = vpop.f32.mrf.mxu1 }
 0x8a7   : > { %v5383_v15 = vadd.f32 %v5382_v26, %v5009_v50  ;;  %v5011_v2 = vpop.f32.mrf.mxu2  ;;  %v5172_v26 = vshll.u32 %v12652_v33, 16 }
 0x8a8   : > { %v5920_v19 = vpop.f32.mrf.mxu0 }
 0x8a9   : > { %v13108_v37 = vadd.f32 %v5920_v19, %v5815_v63  ;;  %v13119_v63 = vsel %vm14788_vm13, %v5163_v42, %v14673_v16  ;;  %v5519_v42 = vrot.slane %v5172_v26, 1  ;;  %vm14832_vm13 = vmmov %vm14781_vm0 }
 0x8aa   : > { %14789 = vst [vmem:[#allocation59_spill] sm:$0xff] %v13119_v63 }
 0x8ab   : > { %14786 = vst [vmem:[#allocation61_spill] sm:$0xff] %v13108_v37  ;;  %5045 = vmatmul.bf16.gmra.mxu2 %v14653_v17 }
 0x8ae   : > { %v5384_v27 = vpop.f32.mrf.mxu3  ;;  %v5712_v49 = vpop.f32.mrf.mxu1 }
 0x8af   : > { %v5385_v61 = vadd.f32 %v5384_v27, %v5011_v2  ;;  %v5816_v48 = vadd.f32 %v5712_v49, %v5383_v15  ;;  %v5014_v23 = vpop.f32.mrf.mxu2 }
 0x8b0   : > { %v5923_v0 = vpop.f32.mrf.mxu0 }
 0x8b1   : > { %7939 = vmatmul.msk.bf16.gmra.mxu1 %vm3788_vm7, %v13113_v25  ;;  %v5169_v0 = vshrl.u32 %v12652_v33, 16 }
 0x8b3   : > { %7884 = vmatmul.msk.bf16.gmra.mxu3 %vm3788_vm7, %v13119_v63  ;;  %7994 = vmatmul.msk.bf16.gmra.mxu0 %vm3788_vm7, %v13119_v63  ;;  %v5171_v28 = vrot.slane %v5169_v0, 7 }
 0x8b5   : > { %v5174_v19 = vor.u32 %v5172_v26, %v5171_v28 }
 0x8b6   : > { %v5387_v49 = vpop.f32.mrf.mxu3  ;;  %v5714_v34 = vpop.f32.mrf.mxu1 }
 0x8b7   : > { %v5817_v38 = vadd.f32 %v5714_v34, %v5385_v61  ;;  %v5015_v50 = vpop.f32.mrf.mxu2  ;;  %v13131_v49 = vsel %vm2136_vm8, %v14674_v1, %v5519_v42  ;;  %v13139_v61 = vsel %vm14792_vm2, %v14673_v16, %v5174_v19  ;;  %vm14836_vm2 = vmmov %vm14781_vm0 }
 0x8b8   : > { %v5924_v23 = vpop.f32.mrf.mxu0  ;;  %14790 = vst [vmem:[#allocation49_spill] sm:$0xff] %v13131_v49 }
 0x8bb   : > { %7844 = vmatmul.msk.bf16.gmra.mxu2 %vm3788_vm7, %v12652_v33 }
 0x8be   : > { %v5388_v15 = vpop.f32.mrf.mxu3  ;;  %v5717_v2 = vpop.f32.mrf.mxu1 }
 0x8bf   : > { %v5017_v9 = vpop.f32.mrf.mxu2  ;;  %v5521_v2 = vor.u32 %v5519_v42, %v5169_v0 }
 0x8c0   : > { %v5926_v27 = vpop.f32.mrf.mxu0 }
 0x8c1   : > { %v13133_v37 = vadd.f32 %v5926_v27, %v5816_v48  ;;  %7940 = vmatmul.msk.bf16.gmra.mxu1 %vm3788_vm7, %v13131_v49  ;;  %v13150_v63 = vsel %vm2136_vm8, %v5521_v2, %v14674_v1 }
 0x8c2   : > { %14794 = vst [vmem:[#allocation64_spill] sm:$0xff] %v13150_v63 }
 0x8c3   : > { %14791 = vst [vmem:[#allocation94_spill] sm:$0xff] %v13133_v37  ;;  %7885 = vmatmul.msk.bf16.gmra.mxu3 %vm3788_vm7, %v13139_v61  ;;  %7995 = vmatmul.msk.bf16.gmra.mxu0 %vm3788_vm7, %v13139_v61 }
 0x8c6   : > { %v5390_v34 = vpop.f32.mrf.mxu3  ;;  %v5718_v50 = vpop.f32.mrf.mxu1 }
 0x8c7   : > { %v5391_v23 = vadd.f32 %v5390_v34, %v5017_v9  ;;  %v5019_v26 = vpop.f32.mrf.mxu2  ;;  %v5180_v34 = vshll.u32 %v12711_v57, 16 }
 0x8c8   : > { %v5928_v15 = vpop.f32.mrf.mxu0 }
 0x8c9   : > { %v13145_v48 = vadd.f32 %v5928_v15, %v5817_v38  ;;  %v13156_v38 = vsel %vm14795_vm6, %v5171_v28, %v14673_v16  ;;  %v5523_v28 = vrot.slane %v5180_v34, 1  ;;  %vm14837_vm6 = vmmov %vm14781_vm0 }
 0x8ca   : > { %14796 = vst [vmem:[#allocation55_spill] sm:$0xff] %v13156_v38 }
 0x8cb   : > { %14793 = vst [vmem:[#allocation66_spill] sm:$0xff] %v13145_v48  ;;  %5053 = vmatmul.bf16.gmra.mxu2 %v14653_v17 }
 0x8ce   : > { %v5392_v27 = vpop.f32.mrf.mxu3  ;;  %v5720_v37 = vpop.f32.mrf.mxu1 }
 0x8cf   : > { %v5393_v19 = vadd.f32 %v5392_v27, %v5019_v26  ;;  %v5818_v33 = vadd.f32 %v5720_v37, %v5391_v23  ;;  %v5022_v49 = vpop.f32.mrf.mxu2 }
 0x8d0   : > { %v5931_v25 = vpop.f32.mrf.mxu0 }
 0x8d1   : > { %7941 = vmatmul.msk.bf16.gmra.mxu1 %vm3788_vm7, %v13150_v63  ;;  %v5177_v25 = vshrl.u32 %v12711_v57, 16 }
 0x8d3   : > { %7886 = vmatmul.msk.bf16.gmra.mxu3 %vm3788_vm7, %v13156_v38  ;;  %7996 = vmatmul.msk.bf16.gmra.mxu0 %vm3788_vm7, %v13156_v38  ;;  %v5179_v50 = vrot.slane %v5177_v25, 7 }
 0x8d5   : > { %v5182_v15 = vor.u32 %v5180_v34, %v5179_v50 }
 0x8d6   : > { %v5395_v37 = vpop.f32.mrf.mxu3  ;;  %v5722_v0 = vpop.f32.mrf.mxu1 }
 0x8d7   : > { %v5819_v42 = vadd.f32 %v5722_v0, %v5393_v19  ;;  %v5023_v9 = vpop.f32.mrf.mxu2  ;;  %v13168_v37 = vsel %vm2136_vm8, %v14674_v1, %v5523_v28  ;;  %v13176_v19 = vsel %vm14799_vm10, %v14673_v16, %v5182_v15 }
 0x8d8   : > { %v5932_v49 = vpop.f32.mrf.mxu0  ;;  %14797 = vst [vmem:[#allocation69_spill] sm:$0xff] %v13168_v37 }
 0x8db   : > { %7845 = vmatmul.msk.bf16.gmra.mxu2 %vm3788_vm7, %v12711_v57 }
 0x8de   : > { %v5396_v23 = vpop.f32.mrf.mxu3  ;;  %v5725_v26 = vpop.f32.mrf.mxu1 }
 0x8df   : > { %v5025_v2 = vpop.f32.mrf.mxu2  ;;  %v5525_v26 = vor.u32 %v5523_v28, %v5177_v25 }
 0x8e0   : > { %v5934_v27 = vpop.f32.mrf.mxu0 }
 0x8e1   : > { %v13170_v48 = vadd.f32 %v5934_v27, %v5818_v33  ;;  %7942 = vmatmul.msk.bf16.gmra.mxu1 %vm3788_vm7, %v13168_v37  ;;  %v13187_v38 = vsel %vm2136_vm8, %v5525_v26, %v14674_v1 }
 0x8e2   : > { %14801 = vst [vmem:[#allocation57_spill] sm:$0xff] %v13187_v38 }
 0x8e3   : > { %14798 = vst [vmem:[#allocation97_spill] sm:$0xff] %v13170_v48  ;;  %7887 = vmatmul.msk.bf16.gmra.mxu3 %vm3788_vm7, %v13176_v19  ;;  %7997 = vmatmul.msk.bf16.gmra.mxu0 %vm3788_vm7, %v13176_v19 }
 0x8e6   : > { %v5398_v0 = vpop.f32.mrf.mxu3  ;;  %v5726_v9 = vpop.f32.mrf.mxu1 }
 0x8e7   : > { %v5399_v49 = vadd.f32 %v5398_v0, %v5025_v2  ;;  %v5027_v34 = vpop.f32.mrf.mxu2 }
 0x8e8   : > { %v5936_v23 = vpop.f32.mrf.mxu0 }
 0x8e9   : > { %v13182_v33 = vadd.f32 %v5936_v23, %v5819_v42  ;;  %v13193_v42 = vsel %vm14802_vm12, %v5179_v50, %v14673_v16  ;;  %v5188_v50 = vshll.u32 %v12782_v60, 16 }
 0x8ea   : > { %14803 = vst [vmem:[#allocation100_spill] sm:$0xff] %v13193_v42 }
 0x8eb   : > { %14800 = vst [vmem:[#allocation67_spill] sm:$0xff] %v13182_v33  ;;  %5061 = vmatmul.bf16.gmra.mxu2 %v14653_v17 }
 0x8ee   : > { %v5400_v27 = vpop.f32.mrf.mxu3  ;;  %v5728_v48 = vpop.f32.mrf.mxu1 }
 0x8ef   : > { %v5401_v15 = vadd.f32 %v5400_v27, %v5027_v34  ;;  %v5820_v57 = vadd.f32 %v5728_v48, %v5399_v49  ;;  %v5030_v37 = vpop.f32.mrf.mxu2  ;;  %v5527_v49 = vrot.slane %v5188_v50, 1  ;;  %v8330_v34 = vld [vmem:[%s14139_s10 + $0x80] sm:$0xff] }
 0x8f0   : > { %v5939_v63 = vpop.f32.mrf.mxu0  ;;  %v8336_v37 = vld [vmem:[%s14139_s10 + $0xb0] sm:$0xff]  ;;  %6096 = vmatpush.bf16.msrb.mxu2 %v8330_v34 }
 0x8f1   : > { %7943 = vmatmul.msk.bf16.gmra.mxu1 %vm3788_vm7, %v13187_v38  ;;  %v5185_v63 = vshrl.u32 %v12782_v60, 16  ;;  %6301 = vmatpush.bf16.msra.mxu3 %v8336_v37 }
 0x8f3   : > { %7888 = vmatmul.msk.bf16.gmra.mxu3 %vm3788_vm7, %v13193_v42  ;;  %7998 = vmatmul.msk.bf16.gmra.mxu0 %vm3788_vm7, %v13193_v42  ;;  %v5187_v9 = vrot.slane %v5185_v63, 7 }
 0x8f5   : > { %v5190_v27 = vor.u32 %v5188_v50, %v5187_v9 }
 0x8f6   : > { %v5403_v48 = vpop.f32.mrf.mxu3  ;;  %v5730_v25 = vpop.f32.mrf.mxu1 }
 0x8f7   : > { %v5821_v28 = vadd.f32 %v5730_v25, %v5401_v15  ;;  %v5031_v2 = vpop.f32.mrf.mxu2  ;;  %v13211_v25 = vsel %vm2136_vm8, %v14674_v1, %v5527_v49  ;;  %v13219_v37 = vsel %vm14806_vm9, %v14673_v16, %v5190_v27 }
 0x8f8   : > { %v5940_v0 = vpop.f32.mrf.mxu0  ;;  %14804 = vst [vmem:[#allocation74_spill] sm:$0xff] %v13211_v25 }
 0x8fb   : > { %7846 = vmatmul.msk.bf16.gmra.mxu2 %vm3788_vm7, %v12782_v60 }
 0x8fe   : > { %v5404_v23 = vpop.f32.mrf.mxu3  ;;  %v5733_v26 = vpop.f32.mrf.mxu1 }
 0x8ff   : > { %v5033_v15 = vpop.f32.mrf.mxu2 }
 0x900   : > { %v5942_v48 = vpop.f32.mrf.mxu0 }
 0x901   : > { %v13213_v2 = vadd.f32 %v5942_v48, %v5820_v57  ;;  %7944 = vmatmul.msk.bf16.gmra.mxu1 %vm3788_vm7, %v13211_v25  ;;  %v5529_v48 = vor.u32 %v5527_v49, %v5185_v63 }
 0x903   : > { %14805 = vst [vmem:[#allocation72_spill] sm:$0xff] %v13213_v2  ;;  %7889 = vmatmul.msk.bf16.gmra.mxu3 %vm3788_vm7, %v13219_v37  ;;  %7999 = vmatmul.msk.bf16.gmra.mxu0 %vm3788_vm7, %v13219_v37  ;;  %v13230_v42 = vsel %vm2136_vm8, %v5529_v48, %v14674_v1 }
 0x904   : > { %14808 = vst [vmem:[#allocation77_spill] sm:$0xff] %v13230_v42 }
 0x906   : > { %v5406_v0 = vpop.f32.mrf.mxu3  ;;  %v5734_v50 = vpop.f32.mrf.mxu1 }
 0x907   : > { %v5407_v34 = vadd.f32 %v5406_v0, %v5033_v15  ;;  %v5035_v23 = vpop.f32.mrf.mxu2 }
 0x908   : > { %v5944_v26 = vpop.f32.mrf.mxu0 }
 0x909   : > { %v13225_v57 = vadd.f32 %v5944_v26, %v5821_v28  ;;  %v13236_v28 = vsel %vm14809_vm11, %v5187_v9, %v14673_v16 }
 0x90a   : > { %14810 = vst [vmem:[#allocation103_spill] sm:$0xff] %v13236_v28 }
 0x90b   : > { %14807 = vst [vmem:[#allocation63_spill] sm:$0xff] %v13225_v57  ;;  %5069 = vmatmul.bf16.gmra.mxu2 %v14653_v17 }
 0x90e   : > { %v5408_v2 = vpop.f32.mrf.mxu3  ;;  %v5736_v60 = vpop.f32.mrf.mxu1 }
 0x90f   : > { %v5409_v27 = vadd.f32 %v5408_v2, %v5035_v23  ;;  %v5822_v25 = vadd.f32 %v5736_v60, %v5407_v34  ;;  %v5038_v33 = vpop.f32.mrf.mxu2  ;;  %v5196_v2 = vshll.u32 %v12853_v45, 16 }
 0x910   : > { %v5947_v38 = vpop.f32.mrf.mxu0 }
 0x911   : > { %7945 = vmatmul.msk.bf16.gmra.mxu1 %vm3788_vm7, %v13230_v42  ;;  %v5193_v38 = vshrl.u32 %v12853_v45, 16  ;;  %v5531_v9 = vrot.slane %v5196_v2, 1 }
 0x913   : > { %7890 = vmatmul.msk.bf16.gmra.mxu3 %vm3788_vm7, %v13236_v28  ;;  %8000 = vmatmul.msk.bf16.gmra.mxu0 %vm3788_vm7, %v13236_v28  ;;  %v5195_v0 = vrot.slane %v5193_v38, 7 }
 0x915   : > { %v5198_v23 = vor.u32 %v5196_v2, %v5195_v0 }
 0x916   : > { %v5411_v60 = vpop.f32.mrf.mxu3  ;;  %v5738_v33 = vpop.f32.mrf.mxu1 }
 0x917   : > { %v5823_v63 = vadd.f32 %v5738_v33, %v5409_v27  ;;  %v5039_v49 = vpop.f32.mrf.mxu2  ;;  %v13248_v60 = vsel %vm2136_vm8, %v14674_v1, %v5531_v9  ;;  %v13256_v27 = vsel %vm14813_vm14, %v14673_v16, %v5198_v23 }
 0x918   : > { %v5948_v15 = vpop.f32.mrf.mxu0  ;;  %14811 = vst [vmem:[#allocation75_spill] sm:$0xff] %v13248_v60 }
 0x91b   : > { %7847 = vmatmul.msk.bf16.gmra.mxu2 %vm3788_vm7, %v12853_v45 }
 0x91e   : > { %v5412_v50 = vpop.f32.mrf.mxu3  ;;  %v5741_v34 = vpop.f32.mrf.mxu1 }
 0x91f   : > { %v5041_v26 = vpop.f32.mrf.mxu2  ;;  %v5533_v34 = vor.u32 %v5531_v9, %v5193_v38 }
 0x920   : > { %v5950_v48 = vpop.f32.mrf.mxu0 }
 0x921   : > { %v13250_v57 = vadd.f32 %v5950_v48, %v5822_v25  ;;  %7946 = vmatmul.msk.bf16.gmra.mxu1 %vm3788_vm7, %v13248_v60  ;;  %v13267_v28 = vsel %vm2136_vm8, %v5533_v34, %v14674_v1 }
 0x922   : > { %14815 = vst [vmem:[#allocation80_spill] sm:$0xff] %v13267_v28 }
 0x923   : > { %14812 = vst [vmem:[#allocation65_spill] sm:$0xff] %v13250_v57  ;;  %7891 = vmatmul.msk.bf16.gmra.mxu3 %vm3788_vm7, %v13256_v27  ;;  %8001 = vmatmul.msk.bf16.gmra.mxu0 %vm3788_vm7, %v13256_v27 }
 0x926   : > { %v5414_v33 = vpop.f32.mrf.mxu3  ;;  %v5742_v49 = vpop.f32.mrf.mxu1 }
 0x927   : > { %v5415_v15 = vadd.f32 %v5414_v33, %v5041_v26  ;;  %v5043_v2 = vpop.f32.mrf.mxu2  ;;  %v5204_v33 = vshll.u32 %v12898_v47, 16 }
 0x928   : > { %v5952_v50 = vpop.f32.mrf.mxu0 }
 0x929   : > { %v13262_v25 = vadd.f32 %v5952_v50, %v5823_v63  ;;  %v13273_v63 = vsel %vm14816_vm3, %v5195_v0, %v14673_v16  ;;  %v5535_v0 = vrot.slane %v5204_v33, 1 }
 0x92a   : > { %14817 = vst [vmem:[#allocation71_spill] sm:$0xff] %v13273_v63 }
 0x92b   : > { %14814 = vst [vmem:[#allocation81_spill] sm:$0xff] %v13262_v25  ;;  %5077 = vmatmul.bf16.gmra.mxu2 %v14653_v17 }
 0x92e   : > { %v5416_v48 = vpop.f32.mrf.mxu3  ;;  %v5744_v57 = vpop.f32.mrf.mxu1 }
 0x92f   : > { %v5417_v23 = vadd.f32 %v5416_v48, %v5043_v2  ;;  %v5824_v45 = vadd.f32 %v5744_v57, %v5415_v15  ;;  %v5046_v60 = vpop.f32.mrf.mxu2 }
 0x930   : > { %v5955_v42 = vpop.f32.mrf.mxu0 }
 0x931   : > { %7947 = vmatmul.msk.bf16.gmra.mxu1 %vm3788_vm7, %v13267_v28  ;;  %v5201_v42 = vshrl.u32 %v12898_v47, 16 }
 0x933   : > { %7892 = vmatmul.msk.bf16.gmra.mxu3 %vm3788_vm7, %v13273_v63  ;;  %8002 = vmatmul.msk.bf16.gmra.mxu0 %vm3788_vm7, %v13273_v63  ;;  %v5203_v49 = vrot.slane %v5201_v42, 7 }
 0x935   : > { %v5206_v50 = vor.u32 %v5204_v33, %v5203_v49 }
 0x936   : > { %v5419_v57 = vpop.f32.mrf.mxu3  ;;  %v5746_v38 = vpop.f32.mrf.mxu1 }
 0x937   : > { %v5825_v9 = vadd.f32 %v5746_v38, %v5417_v23  ;;  %v5047_v26 = vpop.f32.mrf.mxu2  ;;  %v13285_v57 = vsel %vm2136_vm8, %v14674_v1, %v5535_v0  ;;  %v13293_v23 = vsel %vm14820_vm15, %v14673_v16, %v5206_v50 }
 0x938   : > { %v5956_v60 = vpop.f32.mrf.mxu0  ;;  %14818 = vst [vmem:[#allocation84_spill] sm:$0xff] %v13285_v57 }
 0x93b   : > { %7848 = vmatmul.msk.bf16.gmra.mxu2 %vm3788_vm7, %v12898_v47 }
 0x93e   : > { %v5420_v15 = vpop.f32.mrf.mxu3  ;;  %v5749_v2 = vpop.f32.mrf.mxu1 }
 0x93f   : > { %v5049_v34 = vpop.f32.mrf.mxu2  ;;  %v5537_v2 = vor.u32 %v5535_v0, %v5201_v42 }
 0x940   : > { %v5958_v48 = vpop.f32.mrf.mxu0 }
 0x941   : > { %v13287_v25 = vadd.f32 %v5958_v48, %v5824_v45  ;;  %7948 = vmatmul.msk.bf16.gmra.mxu1 %vm3788_vm7, %v13285_v57  ;;  %v13304_v63 = vsel %vm2136_vm8, %v5537_v2, %v14674_v1 }
 0x942   : > { %14822 = vst [vmem:[#allocation87_spill] sm:$0xff] %v13304_v63 }
 0x943   : > { %14819 = vst [vmem:[#allocation83_spill] sm:$0xff] %v13287_v25  ;;  %7893 = vmatmul.msk.bf16.gmra.mxu3 %vm3788_vm7, %v13293_v23  ;;  %8003 = vmatmul.msk.bf16.gmra.mxu0 %vm3788_vm7, %v13293_v23 }
 0x946   : > { %v5422_v38 = vpop.f32.mrf.mxu3  ;;  %v5750_v26 = vpop.f32.mrf.mxu1 }
 0x947   : > { %v5423_v60 = vadd.f32 %v5422_v38, %v5049_v34  ;;  %v5051_v33 = vpop.f32.mrf.mxu2  ;;  %v5212_v38 = vshll.u32 %v12931_v51, 16 }
 0x948   : > { %v5960_v15 = vpop.f32.mrf.mxu0 }
 0x949   : > { %v13299_v45 = vadd.f32 %v5960_v15, %v5825_v9  ;;  %v13310_v9 = vsel %vm14823_vm4, %v5203_v49, %v14673_v16  ;;  %v5539_v49 = vrot.slane %v5212_v38, 1 }
 0x94a   : > { %14824 = vst [vmem:[#allocation86_spill] sm:$0xff] %v13310_v9 }
 0x94b   : > { %14821 = vst [vmem:[#allocation73_spill] sm:$0xff] %v13299_v45  ;;  %5085 = vmatmul.bf16.gmra.mxu2 %v14653_v17 }
 0x94e   : > { %v5424_v48 = vpop.f32.mrf.mxu3  ;;  %v5752_v25 = vpop.f32.mrf.mxu1 }
 0x94f   : > { %v5425_v50 = vadd.f32 %v5424_v48, %v5051_v33  ;;  %v5826_v47 = vadd.f32 %v5752_v25, %v5423_v60  ;;  %v5054_v57 = vpop.f32.mrf.mxu2 }
 0x950   : > { %v5963_v28 = vpop.f32.mrf.mxu0 }
 0x951   : > { %7949 = vmatmul.msk.bf16.gmra.mxu1 %vm3788_vm7, %v13304_v63  ;;  %v5209_v28 = vshrl.u32 %v12931_v51, 16 }
 0x953   : > { %7894 = vmatmul.msk.bf16.gmra.mxu3 %vm3788_vm7, %v13310_v9  ;;  %8004 = vmatmul.msk.bf16.gmra.mxu0 %vm3788_vm7, %v13310_v9  ;;  %v5211_v26 = vrot.slane %v5209_v28, 7 }
 0x955   : > { %v5214_v15 = vor.u32 %v5212_v38, %v5211_v26 }
 0x956   : > { %v5427_v25 = vpop.f32.mrf.mxu3  ;;  %v5754_v42 = vpop.f32.mrf.mxu1 }
 0x957   : > { %v5827_v0 = vadd.f32 %v5754_v42, %v5425_v50  ;;  %v5055_v34 = vpop.f32.mrf.mxu2  ;;  %v13322_v25 = vsel %vm2136_vm8, %v14674_v1, %v5539_v49  ;;  %v13330_v50 = vsel %vm14827_vm5, %v14673_v16, %v5214_v15 }
 0x958   : > { %v5964_v57 = vpop.f32.mrf.mxu0  ;;  %14825 = vst [vmem:[#allocation90_spill] sm:$0xff] %v13322_v25 }
 0x95b   : > { %7849 = vmatmul.msk.bf16.gmra.mxu2 %vm3788_vm7, %v12931_v51 }
 0x95e   : > { %v5428_v60 = vpop.f32.mrf.mxu3  ;;  %v5757_v33 = vpop.f32.mrf.mxu1 }
 0x95f   : > { %v5057_v2 = vpop.f32.mrf.mxu2  ;;  %v5541_v33 = vor.u32 %v5539_v49, %v5209_v28 }
 0x960   : > { %v5966_v48 = vpop.f32.mrf.mxu0 }
 0x961   : > { %v13324_v45 = vadd.f32 %v5966_v48, %v5826_v47  ;;  %7950 = vmatmul.msk.bf16.gmra.mxu1 %vm3788_vm7, %v13322_v25  ;;  %v13341_v9 = vsel %vm2136_vm8, %v5541_v33, %v14674_v1 }
 0x963   : > { %14826 = vst [vmem:[#allocation89_spill] sm:$0xff] %v13324_v45  ;;  %7895 = vmatmul.msk.bf16.gmra.mxu3 %vm3788_vm7, %v13330_v50  ;;  %8005 = vmatmul.msk.bf16.gmra.mxu0 %vm3788_vm7, %v13330_v50 }
 0x966   : > { %v5430_v42 = vpop.f32.mrf.mxu3  ;;  %v5758_v34 = vpop.f32.mrf.mxu1 }
 0x967   : > { %v5431_v57 = vadd.f32 %v5430_v42, %v5057_v2  ;;  %v5059_v38 = vpop.f32.mrf.mxu2 }
 0x968   : > { %v5968_v60 = vpop.f32.mrf.mxu0 }
 0x969   : > { %v13336_v47 = vadd.f32 %v5968_v60, %v5827_v0  ;;  %v13347_v0 = vsel %vm14781_vm0, %v5211_v26, %v14673_v16  ;;  %v5220_v26 = vshll.u32 %v12951_v30, 16 }
 0x96b   : > { %5093 = vmatmul.bf16.gmra.mxu2 %v14653_v17 }
 0x96e   : > { %v5432_v48 = vpop.f32.mrf.mxu3  ;;  %v5760_v45 = vpop.f32.mrf.mxu1 }
 0x96f   : > { %v5433_v15 = vadd.f32 %v5432_v48, %v5059_v38  ;;  %v5828_v51 = vadd.f32 %v5760_v45, %v5431_v57  ;;  %v5062_v25 = vpop.f32.mrf.mxu2  ;;  %v5543_v57 = vrot.slane %v5220_v26, 1  ;;  %v8349_v38 = vld [vmem:[%s14139_s10 + $0x118] sm:$0xff] }
 0x970   : > { %v5971_v63 = vpop.f32.mrf.mxu0  ;;  %v8335_v25 = vld [vmem:[%s14139_s10 + $0xa8] sm:$0xff]  ;;  %6906 = vmatpush.bf16.msra.mxu2 %v8349_v38 }
 0x971   : > { %7951 = vmatmul.msk.bf16.gmra.mxu1 %vm3788_vm7, %v13341_v9  ;;  %v5217_v63 = vshrl.u32 %v12951_v30, 16  ;;  %6302 = vmatpush.bf16.msra.mxu3 %v8335_v25  ;;  %v8334_v25 = vld [vmem:[%s14139_s10 + $0xa0] sm:$0xff] }
 0x973   : > { %7896 = vmatmul.msk.bf16.gmra.mxu3 %vm3788_vm7, %v13347_v0  ;;  %8006 = vmatmul.msk.bf16.gmra.mxu0 %vm3788_vm7, %v13347_v0  ;;  %v5219_v34 = vrot.slane %v5217_v63, 7 }
 0x975   : > { %v5222_v48 = vor.u32 %v5220_v26, %v5219_v34  ;;  %v8345_v26 = vld [vmem:[%s14139_s10 + $0xf8] sm:$0xff]  ;;  %6303 = vmatpush.bf16.msra.mxu3 %v8334_v25  ;;  %v5545_v25 = vor.u32 %v5543_v57, %v5217_v63  ;;  %v13408_v63 = vsel %vm14832_vm13, %v5219_v34, %v14673_v16 }
 0x976   : > { %v5435_v45 = vpop.f32.mrf.mxu3  ;;  %v5762_v28 = vpop.f32.mrf.mxu1  ;;  %6704 = vmatpush.bf16.msra.mxu0 %v8345_v26 }
 0x977   : > { %v5829_v49 = vadd.f32 %v5762_v28, %v5433_v15  ;;  %v5063_v2 = vpop.f32.mrf.mxu2  ;;  %v13365_v28 = vsel %vm2136_vm8, %v14674_v1, %v5543_v57  ;;  %v13382_v38 = vsel %vm14830_vm1, %v14673_v16, %v5222_v48 }
 0x978   : > { %v5972_v42 = vpop.f32.mrf.mxu0  ;;  %14828 = vst [vmem:[#allocation93_spill] sm:$0xff] %v13365_v28 }
 0x979   : > { %v8341_v42 = vld [vmem:[%s14139_s10 + $0xd8] sm:$0xff]  ;;  %14831 = vst [vmem:[#allocation96_spill] sm:$0xff] %v13382_v38 }
 0x97a   : > { %6502 = vmatpush.bf16.msra.mxu1 %v8341_v42 }
 0x97b   : > { %7850 = vmatmul.msk.bf16.gmra.mxu2 %vm3788_vm7, %v12951_v30 }
 0x97e   : > { %v5436_v60 = vpop.f32.mrf.mxu3  ;;  %v5765_v33 = vpop.f32.mrf.mxu1 }
 0x97f   : > { %v5065_v15 = vpop.f32.mrf.mxu2 }
 0x980   : > { %v5974_v45 = vpop.f32.mrf.mxu0 }
 0x981   : > { %v13367_v2 = vadd.f32 %v5974_v45, %v5828_v51  ;;  %7952 = vmatmul.msk.bf16.gmra.mxu1 %vm3788_vm7, %v13365_v28  ;;  %v8339_v28 = vld [vmem:[%s14139_s10 + $0xc8] sm:$0xff] }
 0x983   : > { %14829 = vst [vmem:[#allocation92_spill] sm:$0xff] %v13367_v2  ;;  %7897 = vmatmul.msk.bf16.gmra.mxu3 %vm3788_vm7, %v13382_v38  ;;  %8007 = vmatmul.msk.bf16.gmra.mxu0 %vm3788_vm7, %v13382_v38  ;;  %v8340_v2 = vld [vmem:[%s14139_s10 + $0xd0] sm:$0xff]  ;;  %v8338_v38 = vld [vmem:[%s14139_s10 + $0xc0] sm:$0xff] }
 0x984   : > { %6503 = vmatpush.bf16.msra.mxu1 %v8340_v2 }
 0x986   : > { %v5438_v51 = vpop.f32.mrf.mxu3  ;;  %v5766_v60 = vpop.f32.mrf.mxu1 }
 0x987   : > { %v5439_v33 = vadd.f32 %v5438_v51, %v5065_v15  ;;  %v5067_v45 = vpop.f32.mrf.mxu2 }
 0x988   : > { %v5976_v30 = vpop.f32.mrf.mxu0  ;;  %6504 = vmatpush.bf16.msra.mxu1 %v8339_v28 }
 0x989   : > { %v13391_v48 = vadd.f32 %v5976_v30, %v5829_v49  ;;  %v13402_v49 = vsel %vm2136_vm8, %v5545_v25, %v14674_v1  ;;  %v8344_v25 = vld [vmem:[%s14139_s10 + $0xf0] sm:$0xff] }
 0x98a   : > { %6705 = vmatpush.bf16.msra.mxu0 %v8344_v25 }
 0x98b   : > { %5101 = vmatmul.bf16.gmra.mxu2 %v14653_v17 }
 0x98c   : > { %6505 = vmatpush.bf16.msra.mxu1 %v8338_v38  ;;  %v8343_v38 = vld [vmem:[%s14139_s10 + $0xe8] sm:$0xff] }
 0x98e   : > { %v5440_v42 = vpop.f32.mrf.mxu3  ;;  %v5768_v26 = vpop.f32.mrf.mxu1  ;;  %6706 = vmatpush.bf16.msra.mxu0 %v8343_v38 }
 0x98f   : > { %v5441_v15 = vadd.f32 %v5440_v42, %v5067_v45  ;;  %v5830_v51 = vadd.f32 %v5768_v26, %v5439_v33  ;;  %v5070_v60 = vpop.f32.mrf.mxu2  ;;  %v14833_v42 = vshrl.u32 %v12934_v10, 16 }
 0x990   : > { %v5979_v30 = vpop.f32.mrf.mxu0 }
 0x991   : > { %7953 = vmatmul.msk.bf16.gmra.mxu1 %vm3788_vm7, %v13402_v49  ;;  %v5851_v34 = vrot.slane %v14833_v42, 7 }
 0x993   : > { %7898 = vmatmul.msk.bf16.gmra.mxu3 %vm3788_vm7, %v13408_v63  ;;  %8008 = vmatmul.msk.bf16.gmra.mxu0 %vm3788_vm7, %v13408_v63 }
 0x996   : > { %v5443_v57 = vpop.f32.mrf.mxu3  ;;  %v5770_v28 = vpop.f32.mrf.mxu1 }
 0x997   : > { %v5831_v2 = vadd.f32 %v5770_v28, %v5441_v15  ;;  %v5071_v33 = vpop.f32.mrf.mxu2  ;;  %v14834_v15 = vshll.u32 %v12934_v10, 16 }
 0x998   : > { %v5980_v45 = vpop.f32.mrf.mxu0  ;;  %v13429_v33 = vsel %vm2136_vm8, %v14674_v1, %v12940_v56 }
 0x999   : > { %v5852_v30 = vor.u32 %v5851_v34, %v14834_v15 }
 0x99b   : > { %8035 = vmatmul.msk.bf16.vlgmr.msrb.gmra.mxu2 %vm3788_vm7, %v12342_v41  ;;  %v8342_v41 = vld [vmem:[%s14139_s10 + $0xe0] sm:$0xff]  ;;  %v13440_v25 = vsel %vm14836_vm2, %v14673_v16, %v5852_v30 }
 0x99c   : > { %6707 = vmatpush.bf16.msra.mxu0 %v8342_v41 }
 0x99e   : > { %v5444_v26 = vpop.f32.mrf.mxu3  ;;  %v5773_v60 = vpop.f32.mrf.mxu1 }
 0x99f   : > { %v5073_v57 = vpop.f32.mrf.mxu2 }
 0x9a0   : > { %v5982_v28 = vpop.f32.mrf.mxu0 }
 0x9a1   : > { %v13431_v45 = vadd.f32 %v5982_v28, %v5830_v51  ;;  %7954 = vmatmul.msk.bf16.gmra.mxu1 %vm3788_vm7, %v13429_v33 }
 0x9a3   : > { %14835 = vst [vmem:[#allocation95_spill] sm:$0xff] %v13431_v45  ;;  %8009 = vmatmul.msk.bf16.gmra.mxu0 %vm3788_vm7, %v13440_v25  ;;  %8075 = vmatmul.msk.bf16.vlgmr.msra.gmra.mxu3 %vm3788_vm7, %v12444_v12  ;;  %v13453_v12 = vsel %vm14837_vm6, %v5851_v34, %v14673_v16 }
 0x9a6   : > { %v5446_v56 = vpop.f32.mrf.mxu3  ;;  %v5774_v51 = vpop.f32.mrf.mxu1 }
 0x9a7   : > { %v5447_v42 = vadd.f32 %v5446_v56, %v5073_v57  ;;  %v5075_v38 = vpop.f32.mrf.mxu2 }
 0x9a8   : > { %v5984_v26 = vpop.f32.mrf.mxu0 }
 0x9a9   : > { %v13446_v60 = vadd.f32 %v5984_v26, %v5831_v2 }
 0x9ab   : > { %6102 = vmatmul.bf16.gmra.mxu2 %v14653_v17 }
 0x9ae   : > { %v5448_v15 = vpop.f32.mrf.mxu3  ;;  %v5776_v28 = vpop.f32.mrf.mxu1 }
 0x9af   : > { %v5449_v30 = vadd.f32 %v5448_v15, %v5075_v38  ;;  %v5832_v1 = vadd.f32 %v5776_v28, %v5447_v42  ;;  %v5078_v45 = vpop.f32.mrf.mxu2 }
 0x9b0   : > { %v5987_v10 = vpop.f32.mrf.mxu0 }
 0x9b1   : > { %8131 = vmatmul.msk.bf16.vlgmr.msra.gmra.mxu1 %vm3788_vm7, %v12561_v8 }
 0x9b3   : > { %8010 = vmatmul.msk.bf16.gmra.mxu0 %vm3788_vm7, %v13453_v12  ;;  %8076 = vmatmul.msk.bf16.gmra.mxu3 %vm3788_vm7, %v12537_v39 }
 0x9b6   : > { %v5451_v2 = vpop.f32.mrf.mxu3  ;;  %v5778_v57 = vpop.f32.mrf.mxu1 }
 0x9b7   : > { %v5833_v41 = vadd.f32 %v5778_v57, %v5449_v30  ;;  %v5079_v56 = vpop.f32.mrf.mxu2 }
 0x9b8   : > { %v5988_v51 = vpop.f32.mrf.mxu0 }
 0x9bb   : > { %8036 = vmatmul.msk.bf16.gmra.mxu2 %vm3788_vm7, %v12446_v7 }
 0x9be   : > { %v5452_v10 = vpop.f32.mrf.mxu3  ;;  %v5781_v8 = vpop.f32.mrf.mxu1 }
 0x9bf   : > { %v5081_v45 = vpop.f32.mrf.mxu2 }
 0x9c0   : > { %v5990_v42 = vpop.f32.mrf.mxu0 }
 0x9c1   : > { %v13461_v34 = vadd.f32 %v5990_v42, %v5832_v1  ;;  %8132 = vmatmul.msk.bf16.gmra.mxu1 %vm3788_vm7, %v12648_v40 }
 0x9c3   : > { %8077 = vmatmul.msk.bf16.gmra.mxu3 %vm3788_vm7, %v12643_v24  ;;  %8187 = vmatmul.msk.bf16.vlgmr.msra.gmra.mxu0 %vm3788_vm7, %v12446_v7 }
 0x9c6   : > { %v5454_v39 = vpop.f32.mrf.mxu3  ;;  %v5782_v38 = vpop.f32.mrf.mxu1 }
 0x9c7   : > { %v5455_v26 = vadd.f32 %v5454_v39, %v5081_v45  ;;  %v5083_v15 = vpop.f32.mrf.mxu2 }
 0x9c8   : > { %v5992_v28 = vpop.f32.mrf.mxu0 }
 0x9c9   : > { %v13469_v30 = vadd.f32 %v5992_v28, %v5833_v41 }
 0x9cb   : > { %6110 = vmatmul.bf16.gmra.mxu2 %v14653_v17 }
 0x9ce   : > { %v5456_v1 = vpop.f32.mrf.mxu3  ;;  %v5784_v2 = vpop.f32.mrf.mxu1 }
 0x9cf   : > { %v5457_v57 = vadd.f32 %v5456_v1, %v5083_v15  ;;  %v5834_v56 = vadd.f32 %v5784_v2, %v5455_v26  ;;  %v5086_v40 = vpop.f32.mrf.mxu2 }
 0x9d0   : > { %v5995_v51 = vpop.f32.mrf.mxu0 }
 0x9d1   : > { %8133 = vmatmul.msk.bf16.gmra.mxu1 %vm3788_vm7, %v12744_v46 }
 0x9d3   : > { %8078 = vmatmul.msk.bf16.gmra.mxu3 %vm3788_vm7, %v12737_v4  ;;  %6713 = vmatmul.bf16.gmra.mxu0 %v14653_v17 }
 0x9d6   : > { %v5459_v7 = vpop.f32.mrf.mxu3  ;;  %v5786_v10 = vpop.f32.mrf.mxu1 }
 0x9d7   : > { %v5835_v41 = vadd.f32 %v5786_v10, %v5457_v57  ;;  %v5087_v8 = vpop.f32.mrf.mxu2 }
 0x9d8   : > { %v5996_v45 = vpop.f32.mrf.mxu0 }
 0x9db   : > { %8037 = vmatmul.msk.bf16.gmra.mxu2 %vm3788_vm7, %v14731_v44 }
 0x9de   : > { %v5460_v42 = vpop.f32.mrf.mxu3  ;;  %v5789_v39 = vpop.f32.mrf.mxu1 }
 0x9df   : > { %v5089_v38 = vpop.f32.mrf.mxu2 }
 0x9e0   : > { %v5998_v26 = vpop.f32.mrf.mxu0 }
 0x9e1   : > { %v13479_v15 = vadd.f32 %v5998_v26, %v5834_v56  ;;  %8134 = vmatmul.msk.bf16.gmra.mxu1 %vm3788_vm7, %v12826_v3 }
 0x9e3   : > { %8079 = vmatmul.msk.bf16.gmra.mxu3 %vm3788_vm7, %v12848_v62  ;;  %8188 = vmatmul.msk.bf16.gmra.mxu0 %vm3788_vm7, %v14731_v44 }
 0x9e6   : > { %v5462_v46 = vpop.f32.mrf.mxu3  ;;  %v5790_v28 = vpop.f32.mrf.mxu1 }
 0x9e7   : > { %v5463_v1 = vadd.f32 %v5462_v46, %v5089_v38  ;;  %v5091_v2 = vpop.f32.mrf.mxu2  ;;  %v8348_v38 = vld [vmem:[%s14139_s10 + $0x110] sm:$0xff] }
 0x9e8   : > { %v6000_v57 = vpop.f32.mrf.mxu0  ;;  %6907 = vmatpush.bf16.msra.mxu2 %v8348_v38 }
 0x9e9   : > { %v13487_v40 = vadd.f32 %v6000_v57, %v5835_v41 }
 0x9eb   : > { %6118 = vmatmul.bf16.gmra.mxu2 %v14653_v17 }
 0x9ee   : > { %v5464_v56 = vpop.f32.mrf.mxu3  ;;  %v5792_v51 = vpop.f32.mrf.mxu1 }
 0x9ef   : > { %v5465_v7 = vadd.f32 %v5464_v56, %v5091_v2  ;;  %v5836_v10 = vadd.f32 %v5792_v51, %v5463_v1  ;;  %v5094_v3 = vpop.f32.mrf.mxu2 }
 0x9f0   : > { %v6003_v8 = vpop.f32.mrf.mxu0 }
 0x9f1   : > { %8135 = vmatmul.msk.bf16.gmra.mxu1 %vm3788_vm7, %v12922_v55 }
 0x9f3   : > { %8080 = vmatmul.msk.bf16.gmra.mxu3 %vm3788_vm7, %v12911_v5  ;;  %6721 = vmatmul.bf16.gmra.mxu0 %v14653_v17 }
 0x9f6   : > { %v5467_v44 = vpop.f32.mrf.mxu3  ;;  %v5794_v45 = vpop.f32.mrf.mxu1 }
 0x9f7   : > { %v5837_v41 = vadd.f32 %v5794_v45, %v5465_v7  ;;  %v5095_v42 = vpop.f32.mrf.mxu2 }
 0x9f8   : > { %v6004_v39 = vpop.f32.mrf.mxu0 }
 0x9fb   : > { %8038 = vmatmul.msk.bf16.gmra.mxu2 %vm3788_vm7, %v12338_v32 }
 0x9fe   : > { %v5468_v26 = vpop.f32.mrf.mxu3  ;;  %v5797_v46 = vpop.f32.mrf.mxu1 }
 0x9ff   : > { %v5097_v55 = vpop.f32.mrf.mxu2 }
 0xa00   : > { %v6006_v28 = vpop.f32.mrf.mxu0 }
 0xa01   : > { %v13500_v1 = vadd.f32 %v6006_v28, %v5836_v10  ;;  %8136 = vmatmul.msk.bf16.gmra.mxu1 %vm3788_vm7, %v12962_v54 }
 0xa03   : > { %8081 = vmatmul.msk.bf16.gmra.mxu3 %vm3788_vm7, %v12955_v14  ;;  %8189 = vmatmul.msk.bf16.gmra.mxu0 %vm3788_vm7, %v12338_v32 }
 0xa06   : > { %v5470_v2 = vpop.f32.mrf.mxu3  ;;  %v5798_v57 = vpop.f32.mrf.mxu1 }
 0xa07   : > { %v5471_v56 = vadd.f32 %v5470_v2, %v5097_v55  ;;  %v5099_v51 = vpop.f32.mrf.mxu2  ;;  %v5353_v2 = vadd.f32 %v12709_v21, %v12707_v31 }
 0xa08   : > { %v6008_v7 = vpop.f32.mrf.mxu0 }
 0xa09   : > { %v13508_v3 = vadd.f32 %v6008_v7, %v5837_v41 }
 0xa0b   : > { %6126 = vmatmul.bf16.gmra.mxu2 %v14653_v17 }
 0xa0e   : > { %v5472_v10 = vpop.f32.mrf.mxu3  ;;  %v5800_v8 = vpop.f32.mrf.mxu1 }
 0xa0f   : > { %v5473_v44 = vadd.f32 %v5472_v10, %v5099_v51  ;;  %v5838_v45 = vadd.f32 %v5800_v8, %v5471_v56  ;;  %v5102_v54 = vpop.f32.mrf.mxu2  ;;  %v5809_v51 = vadd.f32 %v12968_v11, %v5353_v2 }
 0xa10   : > { %v6011_v42 = vpop.f32.mrf.mxu0 }
 0xa11   : > { %8137 = vmatmul.msk.bf16.gmra.mxu1 %vm3788_vm7, %v12985_v29  ;;  %v6023_v7 = vadd.f32 %v12991_v13, %v5809_v51  ;;  %v14839_v51 = vld [vmem:[#allocation53_spill] sm:$0xff] }
 0xa13   : > { %8082 = vmatmul.msk.bf16.gmra.mxu3 %vm3788_vm7, %v12976_v53  ;;  %6729 = vmatmul.bf16.gmra.mxu0 %v14653_v17 }
 0xa16   : > { %v5475_v32 = vpop.f32.mrf.mxu3  ;;  %v5802_v39 = vpop.f32.mrf.mxu1 }
 0xa17   : > { %v5839_v41 = vadd.f32 %v5802_v39, %v5473_v44  ;;  %v5103_v38 = vpop.f32.mrf.mxu2 }
 0xa18   : > { %v6012_v26 = vpop.f32.mrf.mxu0 }
 0xa1b   : > { %8039 = vmatmul.msk.bf16.gmra.mxu2 %vm3788_vm7, %v12412_v36 }
 0xa1e   : > { %v5476_v46 = vpop.f32.mrf.mxu3  ;;  %v5805_v55 = vpop.f32.mrf.mxu1 }
 0xa1f   : > { %v6098_v28 = vpop.f32.mrf.mxu2 }
 0xa20   : > { %v6226_v29 = vadd.f32 %v6098_v28, %v12979_v52  ;;  %v6014_v57 = vpop.f32.mrf.mxu0 }
 0xa21   : > { %v13521_v56 = vadd.f32 %v6014_v57, %v5838_v45  ;;  %8138 = vmatmul.msk.bf16.gmra.mxu1 %vm3788_vm7, %v13002_v35  ;;  %v14838_v57 = vld [vmem:[#allocation85_spill] sm:$0xff] }
 0xa23   : > { %8083 = vmatmul.msk.bf16.gmra.mxu3 %vm3788_vm7, %v12996_v18  ;;  %8190 = vmatmul.msk.bf16.gmra.mxu0 %vm3788_vm7, %v12412_v36 }
 0xa26   : > { %v5806_v10 = vpop.f32.mrf.mxu1  ;;  %v6305_v31 = vpop.f32.mrf.mxu3 }
 0xa27   : > { %v6433_v21 = vadd.f32 %v6305_v31, %v6226_v29  ;;  %v6100_v52 = vpop.f32.mrf.mxu2 }
 0xa28   : > { %v6227_v8 = vadd.f32 %v6100_v52, %v6023_v7  ;;  %v6016_v44 = vpop.f32.mrf.mxu0  ;;  %v14840_v52 = vld [vmem:[#allocation38_spill] sm:$0xff] }
 0xa29   : > { %v13531_v45 = vadd.f32 %v6016_v44, %v5839_v41 }
 0xa2b   : > { %6134 = vmatmul.bf16.gmra.mxu2 %v14653_v17 }
 0xa2e   : > { %v6307_v35 = vpop.f32.mrf.mxu3  ;;  %v6507_v54 = vpop.f32.mrf.mxu1 }
 0xa2f   : > { %v6434_v42 = vadd.f32 %v6307_v35, %v6227_v8  ;;  %v6635_v32 = vadd.f32 %v6507_v54, %v6433_v21  ;;  %v6103_v39 = vpop.f32.mrf.mxu2 }
 0xa30   : > { %v6019_v36 = vpop.f32.mrf.mxu0 }
 0xa31   : > { %8139 = vmatmul.msk.bf16.gmra.mxu1 %vm3788_vm7, %v13022_v59 }
 0xa33   : > { %8084 = vmatmul.msk.bf16.gmra.mxu3 %vm3788_vm7, %v13014_v43  ;;  %6737 = vmatmul.bf16.gmra.mxu0 %v14653_v17 }
 0xa36   : > { %v6310_v11 = vpop.f32.mrf.mxu3  ;;  %v6509_v13 = vpop.f32.mrf.mxu1 }
 0xa37   : > { %v6636_v41 = vadd.f32 %v6509_v13, %v6434_v42  ;;  %v6104_v38 = vpop.f32.mrf.mxu2 }
 0xa38   : > { %v6020_v26 = vpop.f32.mrf.mxu0 }
 0xa3b   : > { %8040 = vmatmul.msk.bf16.gmra.mxu2 %vm3788_vm7, %v12475_v22 }
 0xa3e   : > { %v6311_v46 = vpop.f32.mrf.mxu3  ;;  %v6512_v55 = vpop.f32.mrf.mxu1 }
 0xa3f   : > { %v6106_v28 = vpop.f32.mrf.mxu2  ;;  %v14842_v46 = vld [vmem:[#allocation37_spill] sm:$0xff] }
 0xa40   : > { %v6228_v2 = vadd.f32 %v6106_v28, %v13016_v6  ;;  %v6709_v29 = vpop.f32.mrf.mxu0 }
 0xa41   : > { %v13542_v59 = vadd.f32 %v6709_v29, %v6635_v32  ;;  %8140 = vmatmul.msk.bf16.gmra.mxu1 %vm3788_vm7, %v14838_v57  ;;  %v14843_v29 = vld [vmem:[#allocation27_spill] sm:$0xff] }
 0xa43   : > { %8085 = vmatmul.msk.bf16.gmra.mxu3 %vm3788_vm7, %v14839_v51  ;;  %8191 = vmatmul.msk.bf16.gmra.mxu0 %vm3788_vm7, %v12475_v22  ;;  %v14841_v22 = vld [vmem:[#allocation51_spill] sm:$0xff] }
 0xa46   : > { %v6313_v7 = vpop.f32.mrf.mxu3  ;;  %v6513_v10 = vpop.f32.mrf.mxu1 }
 0xa47   : > { %v6435_v31 = vadd.f32 %v6313_v7, %v6228_v2  ;;  %v6108_v21 = vpop.f32.mrf.mxu2  ;;  %v14844_v10 = vld [vmem:[#allocation58_spill] sm:$0xff] }
 0xa48   : > { %v6229_v8 = vadd.f32 %v6108_v21, %v14840_v52  ;;  %v6711_v44 = vpop.f32.mrf.mxu0 }
 0xa49   : > { %v13551_v6 = vadd.f32 %v6711_v44, %v6636_v41 }
 0xa4b   : > { %6142 = vmatmul.bf16.gmra.mxu2 %v14653_v17 }
 0xa4e   : > { %v6315_v35 = vpop.f32.mrf.mxu3  ;;  %v6515_v54 = vpop.f32.mrf.mxu1 }
 0xa4f   : > { %v6436_v42 = vadd.f32 %v6315_v35, %v6229_v8  ;;  %v6637_v32 = vadd.f32 %v6515_v54, %v6435_v31  ;;  %v6111_v39 = vpop.f32.mrf.mxu2  ;;  %v14845_v31 = vld [vmem:[#allocation88_spill] sm:$0xff]  ;;  %v14846_v35 = vld [vmem:[#allocation41_spill] sm:$0xff] }
 0xa50   : > { %v6714_v36 = vpop.f32.mrf.mxu0 }
 0xa51   : > { %8141 = vmatmul.msk.bf16.gmra.mxu1 %vm3788_vm7, %v13065_v20 }
 0xa53   : > { %8086 = vmatmul.msk.bf16.gmra.mxu3 %vm3788_vm7, %v14841_v22  ;;  %6745 = vmatmul.bf16.gmra.mxu0 %v14653_v17 }
 0xa56   : > { %v6318_v11 = vpop.f32.mrf.mxu3  ;;  %v6517_v13 = vpop.f32.mrf.mxu1 }
 0xa57   : > { %v6638_v41 = vadd.f32 %v6517_v13, %v6436_v42  ;;  %v6112_v38 = vpop.f32.mrf.mxu2 }
 0xa58   : > { %v6715_v26 = vpop.f32.mrf.mxu0 }
 0xa5b   : > { %8041 = vmatmul.msk.bf16.gmra.mxu2 %vm3788_vm7, %v14842_v46 }
 0xa5e   : > { %v6319_v55 = vpop.f32.mrf.mxu3  ;;  %v6520_v28 = vpop.f32.mrf.mxu1 }
 0xa5f   : > { %v6114_v2 = vpop.f32.mrf.mxu2 }
 0xa60   : > { %v6230_v57 = vadd.f32 %v6114_v2, %v14843_v29  ;;  %v6717_v7 = vpop.f32.mrf.mxu0  ;;  %v8351_v29 = vld [vmem:[%s14141_s12 + $0x8] sm:$0xff] }
 0xa61   : > { %v13562_v20 = vadd.f32 %v6717_v7, %v6637_v32  ;;  %8142 = vmatmul.msk.bf16.gmra.mxu1 %vm3788_vm7, %v14844_v10  ;;  %7197 = vmatpush.bf16.msrb.mxu3 %v8351_v29  ;;  %v14848_v7 = vld [vmem:[#allocation78_spill] sm:$0xff] }
 0xa63   : > { %8087 = vmatmul.msk.bf16.gmra.mxu3 %vm3788_vm7, %v14845_v31  ;;  %8192 = vmatmul.msk.bf16.gmra.mxu0 %vm3788_vm7, %v14842_v46  ;;  %v14847_v46 = vld [vmem:[#allocation56_spill] sm:$0xff] }
 0xa66   : > { %v6321_v21 = vpop.f32.mrf.mxu3  ;;  %v6521_v52 = vpop.f32.mrf.mxu1 }
 0xa67   : > { %v6437_v8 = vadd.f32 %v6321_v21, %v6230_v57  ;;  %v6116_v44 = vpop.f32.mrf.mxu2 }
 0xa68   : > { %v6231_v54 = vadd.f32 %v6116_v44, %v14846_v35  ;;  %v6719_v42 = vpop.f32.mrf.mxu0 }
 0xa69   : > { %v13571_v39 = vadd.f32 %v6719_v42, %v6638_v41  ;;  %v14850_v42 = vld [vmem:[#allocation59_spill] sm:$0xff] }
 0xa6b   : > { %6150 = vmatmul.bf16.gmra.mxu2 %v14653_v17 }
 0xa6e   : > { %v6323_v32 = vpop.f32.mrf.mxu3  ;;  %v6523_v36 = vpop.f32.mrf.mxu1 }
 0xa6f   : > { %v6438_v11 = vadd.f32 %v6323_v32, %v6231_v54  ;;  %v6639_v13 = vadd.f32 %v6523_v36, %v6437_v8  ;;  %v6119_v38 = vpop.f32.mrf.mxu2  ;;  %v14849_v8 = vld [vmem:[#allocation47_spill] sm:$0xff] }
 0xa70   : > { %v6722_v26 = vpop.f32.mrf.mxu0  ;;  %v14851_v32 = vld [vmem:[#allocation91_spill] sm:$0xff] }
 0xa71   : > { %8143 = vmatmul.msk.bf16.gmra.mxu1 %vm3788_vm7, %v13102_v58  ;;  %v8347_v58 = vld [vmem:[%s14139_s10 + $0x108] sm:$0xff] }
 0xa72   : > { %6908 = vmatpush.bf16.msra.mxu2 %v8347_v58 }
 0xa73   : > { %8088 = vmatmul.msk.bf16.gmra.mxu3 %vm3788_vm7, %v14847_v46  ;;  %6753 = vmatmul.bf16.gmra.mxu0 %v14653_v17 }
 0xa76   : > { %v6326_v55 = vpop.f32.mrf.mxu3  ;;  %v6525_v28 = vpop.f32.mrf.mxu1 }
 0xa77   : > { %v6640_v41 = vadd.f32 %v6525_v28, %v6438_v11  ;;  %v6120_v2 = vpop.f32.mrf.mxu2  ;;  %v14852_v55 = vld [vmem:[#allocation61_spill] sm:$0xff] }
 0xa78   : > { %v6723_v57 = vpop.f32.mrf.mxu0 }
 0xa7b   : > { %8042 = vmatmul.msk.bf16.gmra.mxu2 %vm3788_vm7, %v14848_v7 }
 0xa7e   : > { %v6327_v10 = vpop.f32.mrf.mxu3  ;;  %v6528_v21 = vpop.f32.mrf.mxu1 }
 0xa7f   : > { %v6122_v52 = vpop.f32.mrf.mxu2 }
 0xa80   : > { %v6232_v44 = vadd.f32 %v6122_v52, %v14849_v8  ;;  %v6725_v35 = vpop.f32.mrf.mxu0 }
 0xa81   : > { %v13588_v54 = vadd.f32 %v6725_v35, %v6639_v13  ;;  %8144 = vmatmul.msk.bf16.gmra.mxu1 %vm3788_vm7, %v14850_v42 }
 0xa83   : > { %8089 = vmatmul.msk.bf16.gmra.mxu3 %vm3788_vm7, %v14851_v32  ;;  %8193 = vmatmul.msk.bf16.gmra.mxu0 %vm3788_vm7, %v14848_v7  ;;  %v14853_v7 = vld [vmem:[#allocation49_spill] sm:$0xff] }
 0xa86   : > { %v6329_v36 = vpop.f32.mrf.mxu3  ;;  %v6529_v11 = vpop.f32.mrf.mxu1 }
 0xa87   : > { %v6439_v38 = vadd.f32 %v6329_v36, %v6232_v44  ;;  %v6124_v26 = vpop.f32.mrf.mxu2  ;;  %v14854_v36 = vld [vmem:[#allocation32_spill] sm:$0xff] }
 0xa88   : > { %v6233_v28 = vadd.f32 %v6124_v26, %v14852_v55  ;;  %v6727_v2 = vpop.f32.mrf.mxu0  ;;  %v14855_v55 = vld [vmem:[#allocation94_spill] sm:$0xff] }
 0xa89   : > { %v13597_v29 = vadd.f32 %v6727_v2, %v6640_v41 }
 0xa8b   : > { %6158 = vmatmul.bf16.gmra.mxu2 %v14653_v17 }
 0xa8e   : > { %v6331_v13 = vpop.f32.mrf.mxu3  ;;  %v6531_v57 = vpop.f32.mrf.mxu1 }
 0xa8f   : > { %v6440_v58 = vadd.f32 %v6331_v13, %v6233_v28  ;;  %v6641_v10 = vadd.f32 %v6531_v57, %v6439_v38  ;;  %v6127_v21 = vpop.f32.mrf.mxu2  ;;  %v14856_v13 = vld [vmem:[#allocation55_spill] sm:$0xff]  ;;  %v14857_v57 = vld [vmem:[#allocation64_spill] sm:$0xff] }
 0xa90   : > { %v6730_v52 = vpop.f32.mrf.mxu0 }
 0xa91   : > { %8145 = vmatmul.msk.bf16.gmra.mxu1 %vm3788_vm7, %v13139_v61 }
 0xa93   : > { %8090 = vmatmul.msk.bf16.gmra.mxu3 %vm3788_vm7, %v14853_v7  ;;  %6761 = vmatmul.bf16.gmra.mxu0 %v14653_v17 }
 0xa96   : > { %v6334_v8 = vpop.f32.mrf.mxu3  ;;  %v6533_v44 = vpop.f32.mrf.mxu1 }
 0xa97   : > { %v6642_v41 = vadd.f32 %v6533_v44, %v6440_v58  ;;  %v6128_v35 = vpop.f32.mrf.mxu2  ;;  %v14858_v44 = vld [vmem:[#allocation66_spill] sm:$0xff] }
 0xa98   : > { %v6731_v42 = vpop.f32.mrf.mxu0 }
 0xa9b   : > { %8043 = vmatmul.msk.bf16.gmra.mxu2 %vm3788_vm7, %v14854_v36 }
 0xa9e   : > { %v6335_v11 = vpop.f32.mrf.mxu3  ;;  %v6536_v38 = vpop.f32.mrf.mxu1 }
 0xa9f   : > { %v6130_v26 = vpop.f32.mrf.mxu2 }
 0xaa0   : > { %v6234_v28 = vadd.f32 %v6130_v26, %v14855_v55  ;;  %v6733_v2 = vpop.f32.mrf.mxu0 }
 0xaa1   : > { %v13608_v61 = vadd.f32 %v6733_v2, %v6641_v10  ;;  %8146 = vmatmul.msk.bf16.gmra.mxu1 %vm3788_vm7, %v14856_v13 }
 0xaa3   : > { %8091 = vmatmul.msk.bf16.gmra.mxu3 %vm3788_vm7, %v14857_v57  ;;  %8194 = vmatmul.msk.bf16.gmra.mxu0 %vm3788_vm7, %v14854_v36  ;;  %v14859_v36 = vld [vmem:[#allocation69_spill] sm:$0xff] }
 0xaa6   : > { %v6337_v58 = vpop.f32.mrf.mxu3  ;;  %v6537_v21 = vpop.f32.mrf.mxu1 }
 0xaa7   : > { %v6441_v52 = vadd.f32 %v6337_v58, %v6234_v28  ;;  %v6132_v8 = vpop.f32.mrf.mxu2 }
 0xaa8   : > { %v6235_v35 = vadd.f32 %v6132_v8, %v14858_v44  ;;  %v6735_v42 = vpop.f32.mrf.mxu0  ;;  %v14860_v44 = vld [vmem:[#allocation45_spill] sm:$0xff] }
 0xaa9   : > { %v13617_v11 = vadd.f32 %v6735_v42, %v6642_v41 }
 0xaab   : > { %6166 = vmatmul.bf16.gmra.mxu2 %v14653_v17 }
 0xaae   : > { %v6339_v10 = vpop.f32.mrf.mxu3  ;;  %v6539_v38 = vpop.f32.mrf.mxu1 }
 0xaaf   : > { %v6442_v26 = vadd.f32 %v6339_v10, %v6235_v35  ;;  %v6643_v55 = vadd.f32 %v6539_v38, %v6441_v52  ;;  %v6135_v2 = vpop.f32.mrf.mxu2  ;;  %v14861_v10 = vld [vmem:[#allocation97_spill] sm:$0xff] }
 0xab0   : > { %v6738_v13 = vpop.f32.mrf.mxu0 }
 0xab1   : > { %8147 = vmatmul.msk.bf16.gmra.mxu1 %vm3788_vm7, %v13176_v19  ;;  %v14863_v13 = vld [vmem:[#allocation100_spill] sm:$0xff] }
 0xab3   : > { %8092 = vmatmul.msk.bf16.gmra.mxu3 %vm3788_vm7, %v14859_v36  ;;  %6769 = vmatmul.bf16.gmra.mxu0 %v14653_v17  ;;  %v14864_v36 = vld [vmem:[#allocation57_spill] sm:$0xff] }
 0xab6   : > { %v6342_v28 = vpop.f32.mrf.mxu3  ;;  %v6541_v58 = vpop.f32.mrf.mxu1 }
 0xab7   : > { %v6644_v41 = vadd.f32 %v6541_v58, %v6442_v26  ;;  %v6136_v21 = vpop.f32.mrf.mxu2 }
 0xab8   : > { %v6739_v8 = vpop.f32.mrf.mxu0 }
 0xab9   : > { %v14865_v8 = vld [vmem:[#allocation67_spill] sm:$0xff] }
 0xabb   : > { %8044 = vmatmul.msk.bf16.gmra.mxu2 %vm3788_vm7, %v14860_v44 }
 0xabe   : > { %v6343_v35 = vpop.f32.mrf.mxu3  ;;  %v6544_v52 = vpop.f32.mrf.mxu1 }
 0xabf   : > { %v6138_v42 = vpop.f32.mrf.mxu2 }
 0xac0   : > { %v6236_v38 = vadd.f32 %v6138_v42, %v14861_v10  ;;  %v6741_v2 = vpop.f32.mrf.mxu0 }
 0xac1   : > { %v13628_v19 = vadd.f32 %v6741_v2, %v6643_v55  ;;  %8148 = vmatmul.msk.bf16.gmra.mxu1 %vm3788_vm7, %v14863_v13 }
 0xac3   : > { %14862 = vst [vmem:[#allocation108_spill] sm:$0xff] %v13628_v19  ;;  %8093 = vmatmul.msk.bf16.gmra.mxu3 %vm3788_vm7, %v14864_v36  ;;  %8195 = vmatmul.msk.bf16.gmra.mxu0 %vm3788_vm7, %v14860_v44  ;;  %v14866_v44 = vld [vmem:[#allocation74_spill] sm:$0xff] }
 0xac6   : > { %v6345_v26 = vpop.f32.mrf.mxu3  ;;  %v6545_v28 = vpop.f32.mrf.mxu1 }
 0xac7   : > { %v6443_v58 = vadd.f32 %v6345_v26, %v6236_v38  ;;  %v6140_v21 = vpop.f32.mrf.mxu2 }
 0xac8   : > { %v6237_v35 = vadd.f32 %v6140_v21, %v14865_v8  ;;  %v6743_v52 = vpop.f32.mrf.mxu0  ;;  %v14867_v8 = vld [vmem:[#allocation79_spill] sm:$0xff] }
 0xac9   : > { %v13637_v42 = vadd.f32 %v6743_v52, %v6644_v41 }
 0xacb   : > { %6174 = vmatmul.bf16.gmra.mxu2 %v14653_v17 }
 0xace   : > { %v6347_v55 = vpop.f32.mrf.mxu3  ;;  %v6547_v10 = vpop.f32.mrf.mxu1 }
 0xacf   : > { %v6444_v2 = vadd.f32 %v6347_v55, %v6237_v35  ;;  %v6645_v13 = vadd.f32 %v6547_v10, %v6443_v58  ;;  %v6143_v19 = vpop.f32.mrf.mxu2  ;;  %v14870_v10 = vld [vmem:[#allocation103_spill] sm:$0xff] }
 0xad0   : > { %v6746_v36 = vpop.f32.mrf.mxu0 }
 0xad1   : > { %8149 = vmatmul.msk.bf16.gmra.mxu1 %vm3788_vm7, %v13219_v37  ;;  %v14868_v36 = vld [vmem:[#allocation72_spill] sm:$0xff] }
 0xad3   : > { %8094 = vmatmul.msk.bf16.gmra.mxu3 %vm3788_vm7, %v14866_v44  ;;  %6777 = vmatmul.bf16.gmra.mxu0 %v14653_v17  ;;  %v14871_v44 = vld [vmem:[#allocation77_spill] sm:$0xff] }
 0xad6   : > { %v6350_v38 = vpop.f32.mrf.mxu3  ;;  %v6549_v26 = vpop.f32.mrf.mxu1 }
 0xad7   : > { %v6646_v41 = vadd.f32 %v6549_v26, %v6444_v2  ;;  %v6144_v28 = vpop.f32.mrf.mxu2 }
 0xad8   : > { %v6747_v21 = vpop.f32.mrf.mxu0 }
 0xad9   : > { %v14872_v21 = vld [vmem:[#allocation63_spill] sm:$0xff] }
 0xadb   : > { %8045 = vmatmul.msk.bf16.gmra.mxu2 %vm3788_vm7, %v14867_v8 }
 0xade   : > { %v6351_v35 = vpop.f32.mrf.mxu3  ;;  %v6552_v58 = vpop.f32.mrf.mxu1 }
 0xadf   : > { %v6146_v19 = vpop.f32.mrf.mxu2 }
 0xae0   : > { %v6238_v52 = vadd.f32 %v6146_v19, %v14868_v36  ;;  %v6749_v55 = vpop.f32.mrf.mxu0 }
 0xae1   : > { %v13648_v37 = vadd.f32 %v6749_v55, %v6645_v13  ;;  %8150 = vmatmul.msk.bf16.gmra.mxu1 %vm3788_vm7, %v14870_v10 }
 0xae3   : > { %14869 = vst [vmem:[#allocation109_spill] sm:$0xff] %v13648_v37  ;;  %8095 = vmatmul.msk.bf16.gmra.mxu3 %vm3788_vm7, %v14871_v44  ;;  %8196 = vmatmul.msk.bf16.gmra.mxu0 %vm3788_vm7, %v14867_v8  ;;  %v14873_v8 = vld [vmem:[#allocation75_spill] sm:$0xff] }
 0xae6   : > { %v6353_v2 = vpop.f32.mrf.mxu3  ;;  %v6553_v38 = vpop.f32.mrf.mxu1 }
 0xae7   : > { %v6445_v26 = vadd.f32 %v6353_v2, %v6238_v52  ;;  %v6148_v28 = vpop.f32.mrf.mxu2 }
 0xae8   : > { %v6239_v35 = vadd.f32 %v6148_v28, %v14872_v21  ;;  %v6751_v58 = vpop.f32.mrf.mxu0  ;;  %v14874_v21 = vld [vmem:[#allocation43_spill] sm:$0xff] }
 0xae9   : > { %v13657_v19 = vadd.f32 %v6751_v58, %v6646_v41 }
 0xaeb   : > { %6182 = vmatmul.bf16.gmra.mxu2 %v14653_v17 }
 0xaee   : > { %v6355_v13 = vpop.f32.mrf.mxu3  ;;  %v6555_v36 = vpop.f32.mrf.mxu1 }
 0xaef   : > { %v6446_v55 = vadd.f32 %v6355_v13, %v6239_v35  ;;  %v6647_v10 = vadd.f32 %v6555_v36, %v6445_v26  ;;  %v6151_v37 = vpop.f32.mrf.mxu2  ;;  %v14875_v35 = vld [vmem:[#allocation65_spill] sm:$0xff] }
 0xaf0   : > { %v6754_v44 = vpop.f32.mrf.mxu0 }
 0xaf1   : > { %8151 = vmatmul.msk.bf16.gmra.mxu1 %vm3788_vm7, %v13256_v27  ;;  %v8346_v44 = vld [vmem:[%s14139_s10 + $0x100] sm:$0xff] }
 0xaf2   : > { %6909 = vmatpush.bf16.msra.mxu2 %v8346_v44  ;;  %v14879_v44 = vld [vmem:[#allocation81_spill] sm:$0xff] }
 0xaf3   : > { %8096 = vmatmul.msk.bf16.gmra.mxu3 %vm3788_vm7, %v14873_v8  ;;  %6785 = vmatmul.bf16.gmra.mxu0 %v14653_v17 }
 0xaf6   : > { %v6358_v52 = vpop.f32.mrf.mxu3  ;;  %v6557_v2 = vpop.f32.mrf.mxu1 }
 0xaf7   : > { %v6648_v41 = vadd.f32 %v6557_v2, %v6446_v55  ;;  %v6152_v38 = vpop.f32.mrf.mxu2  ;;  %v14877_v52 = vld [vmem:[#allocation71_spill] sm:$0xff]  ;;  %v14878_v55 = vld [vmem:[#allocation80_spill] sm:$0xff] }
 0xaf8   : > { %v6755_v28 = vpop.f32.mrf.mxu0 }
 0xafb   : > { %8046 = vmatmul.msk.bf16.gmra.mxu2 %vm3788_vm7, %v14874_v21 }
 0xafe   : > { %v6359_v37 = vpop.f32.mrf.mxu3  ;;  %v6560_v26 = vpop.f32.mrf.mxu1 }
 0xaff   : > { %v6154_v27 = vpop.f32.mrf.mxu2 }
 0xb00   : > { %v6240_v58 = vadd.f32 %v6154_v27, %v14875_v35  ;;  %v6757_v13 = vpop.f32.mrf.mxu0 }
 0xb01   : > { %v13671_v36 = vadd.f32 %v6757_v13, %v6647_v10  ;;  %8152 = vmatmul.msk.bf16.gmra.mxu1 %vm3788_vm7, %v14877_v52 }
 0xb03   : > { %14876 = vst [vmem:[#allocation99_spill] sm:$0xff] %v13671_v36  ;;  %8097 = vmatmul.msk.bf16.gmra.mxu3 %vm3788_vm7, %v14878_v55  ;;  %8197 = vmatmul.msk.bf16.gmra.mxu0 %vm3788_vm7, %v14874_v21  ;;  %v14880_v21 = vld [vmem:[#allocation84_spill] sm:$0xff] }
 0xb06   : > { %v6361_v2 = vpop.f32.mrf.mxu3  ;;  %v6561_v38 = vpop.f32.mrf.mxu1 }
 0xb07   : > { %v6447_v28 = vadd.f32 %v6361_v2, %v6240_v58  ;;  %v6156_v37 = vpop.f32.mrf.mxu2 }
 0xb08   : > { %v6241_v26 = vadd.f32 %v6156_v37, %v14879_v44  ;;  %v6759_v8 = vpop.f32.mrf.mxu0  ;;  %v14881_v37 = vld [vmem:[#allocation20_spill] sm:$0xff] }
 0xb09   : > { %v13680_v27 = vadd.f32 %v6759_v8, %v6648_v41 }
 0xb0b   : > { %6190 = vmatmul.bf16.gmra.mxu2 %v14653_v17 }
 0xb0e   : > { %v6363_v10 = vpop.f32.mrf.mxu3  ;;  %v6563_v35 = vpop.f32.mrf.mxu1 }
 0xb0f   : > { %v6448_v13 = vadd.f32 %v6363_v10, %v6241_v26  ;;  %v6649_v52 = vadd.f32 %v6563_v35, %v6447_v28  ;;  %v6159_v36 = vpop.f32.mrf.mxu2  ;;  %v14884_v35 = vld [vmem:[#allocation86_spill] sm:$0xff] }
 0xb10   : > { %v6762_v55 = vpop.f32.mrf.mxu0 }
 0xb11   : > { %8153 = vmatmul.msk.bf16.gmra.mxu1 %vm3788_vm7, %v13293_v23  ;;  %v14882_v55 = vld [vmem:[#allocation83_spill] sm:$0xff] }
 0xb13   : > { %8098 = vmatmul.msk.bf16.gmra.mxu3 %vm3788_vm7, %v14880_v21  ;;  %6793 = vmatmul.bf16.gmra.mxu0 %v14653_v17  ;;  %v14885_v21 = vld [vmem:[#allocation87_spill] sm:$0xff] }
 0xb16   : > { %v6366_v58 = vpop.f32.mrf.mxu3  ;;  %v6565_v2 = vpop.f32.mrf.mxu1 }
 0xb17   : > { %v6650_v8 = vadd.f32 %v6565_v2, %v6448_v13  ;;  %v6160_v41 = vpop.f32.mrf.mxu2 }
 0xb18   : > { %v6763_v38 = vpop.f32.mrf.mxu0 }
 0xb19   : > { %v14886_v38 = vld [vmem:[#allocation73_spill] sm:$0xff] }
 0xb1b   : > { %8047 = vmatmul.msk.bf16.gmra.mxu2 %vm3788_vm7, %v14881_v37 }
 0xb1e   : > { %v6367_v44 = vpop.f32.mrf.mxu3  ;;  %v6568_v28 = vpop.f32.mrf.mxu1 }
 0xb1f   : > { %v6162_v36 = vpop.f32.mrf.mxu2 }
 0xb20   : > { %v6242_v26 = vadd.f32 %v6162_v36, %v14882_v55  ;;  %v6765_v10 = vpop.f32.mrf.mxu0 }
 0xb21   : > { %v13691_v23 = vadd.f32 %v6765_v10, %v6649_v52  ;;  %8154 = vmatmul.msk.bf16.gmra.mxu1 %vm3788_vm7, %v14884_v35 }
 0xb23   : > { %14883 = vst [vmem:[#allocation98_spill] sm:$0xff] %v13691_v23  ;;  %8099 = vmatmul.msk.bf16.gmra.mxu3 %vm3788_vm7, %v14885_v21  ;;  %8198 = vmatmul.msk.bf16.gmra.mxu0 %vm3788_vm7, %v14881_v37  ;;  %v14887_v37 = vld [vmem:[#allocation90_spill] sm:$0xff] }
 0xb26   : > { %v6369_v13 = vpop.f32.mrf.mxu3  ;;  %v6569_v58 = vpop.f32.mrf.mxu1 }
 0xb27   : > { %v6449_v2 = vadd.f32 %v6369_v13, %v6242_v26  ;;  %v6164_v41 = vpop.f32.mrf.mxu2 }
 0xb28   : > { %v6243_v44 = vadd.f32 %v6164_v41, %v14886_v38  ;;  %v6767_v28 = vpop.f32.mrf.mxu0  ;;  %v14888_v38 = vld [vmem:[#allocation33_spill] sm:$0xff] }
 0xb29   : > { %v13700_v36 = vadd.f32 %v6767_v28, %v6650_v8 }
 0xb2b   : > { %6198 = vmatmul.bf16.gmra.mxu2 %v14653_v17 }
 0xb2e   : > { %v6371_v52 = vpop.f32.mrf.mxu3  ;;  %v6571_v55 = vpop.f32.mrf.mxu1 }
 0xb2f   : > { %v6450_v10 = vadd.f32 %v6371_v52, %v6243_v44  ;;  %v6651_v35 = vadd.f32 %v6571_v55, %v6449_v2  ;;  %v6167_v23 = vpop.f32.mrf.mxu2 }
 0xb30   : > { %v6770_v21 = vpop.f32.mrf.mxu0 }
 0xb31   : > { %8155 = vmatmul.msk.bf16.gmra.mxu1 %vm3788_vm7, %v13330_v50  ;;  %v14889_v21 = vld [vmem:[#allocation89_spill] sm:$0xff] }
 0xb33   : > { %8100 = vmatmul.msk.bf16.gmra.mxu3 %vm3788_vm7, %v14887_v37  ;;  %6801 = vmatmul.bf16.gmra.mxu0 %v14653_v17 }
 0xb36   : > { %v6374_v26 = vpop.f32.mrf.mxu3  ;;  %v6573_v13 = vpop.f32.mrf.mxu1 }
 0xb37   : > { %v6652_v8 = vadd.f32 %v6573_v13, %v6450_v10  ;;  %v6168_v58 = vpop.f32.mrf.mxu2 }
 0xb38   : > { %v6771_v41 = vpop.f32.mrf.mxu0 }
 0xb3b   : > { %8048 = vmatmul.msk.bf16.gmra.mxu2 %vm3788_vm7, %v14888_v38 }
 0xb3e   : > { %v6375_v44 = vpop.f32.mrf.mxu3  ;;  %v6576_v2 = vpop.f32.mrf.mxu1 }
 0xb3f   : > { %v6170_v23 = vpop.f32.mrf.mxu2 }
 0xb40   : > { %v6244_v28 = vadd.f32 %v6170_v23, %v14889_v21  ;;  %v6773_v52 = vpop.f32.mrf.mxu0 }
 0xb41   : > { %v13711_v50 = vadd.f32 %v6773_v52, %v6651_v35  ;;  %8156 = vmatmul.msk.bf16.gmra.mxu1 %vm3788_vm7, %v13347_v0 }
 0xb43   : > { %14890 = vst [vmem:[#allocation102_spill] sm:$0xff] %v13711_v50  ;;  %8101 = vmatmul.msk.bf16.gmra.mxu3 %vm3788_vm7, %v13341_v9  ;;  %8199 = vmatmul.msk.bf16.gmra.mxu0 %vm3788_vm7, %v14888_v38  ;;  %v14891_v50 = vld [vmem:[#allocation96_spill] sm:$0xff]  ;;  %v14892_v38 = vld [vmem:[#allocation93_spill] sm:$0xff] }
 0xb46   : > { %v6377_v55 = vpop.f32.mrf.mxu3  ;;  %v6577_v10 = vpop.f32.mrf.mxu1 }
 0xb47   : > { %v6451_v26 = vadd.f32 %v6377_v55, %v6244_v28  ;;  %v6172_v13 = vpop.f32.mrf.mxu2 }
 0xb48   : > { %v6245_v58 = vadd.f32 %v6172_v13, %v13336_v47  ;;  %v6775_v41 = vpop.f32.mrf.mxu0  ;;  %v14893_v13 = vld [vmem:[#allocation48_spill] sm:$0xff] }
 0xb49   : > { %v13720_v44 = vadd.f32 %v6775_v41, %v6652_v8 }
 0xb4b   : > { %6206 = vmatmul.bf16.gmra.mxu2 %v14653_v17 }
 0xb4e   : > { %v6379_v35 = vpop.f32.mrf.mxu3  ;;  %v6579_v2 = vpop.f32.mrf.mxu1 }
 0xb4f   : > { %v6452_v0 = vadd.f32 %v6379_v35, %v6245_v58  ;;  %v6653_v23 = vadd.f32 %v6579_v2, %v6451_v26  ;;  %v6175_v21 = vpop.f32.mrf.mxu2  ;;  %v14894_v35 = vld [vmem:[#allocation92_spill] sm:$0xff] }
 0xb50   : > { %v6778_v52 = vpop.f32.mrf.mxu0 }
 0xb51   : > { %8157 = vmatmul.msk.bf16.gmra.mxu1 %vm3788_vm7, %v14891_v50 }
 0xb53   : > { %8102 = vmatmul.msk.bf16.gmra.mxu3 %vm3788_vm7, %v14892_v38  ;;  %6809 = vmatmul.bf16.gmra.mxu0 %v14653_v17 }
 0xb56   : > { %v6382_v47 = vpop.f32.mrf.mxu3  ;;  %v6581_v28 = vpop.f32.mrf.mxu1 }
 0xb57   : > { %v6654_v8 = vadd.f32 %v6581_v28, %v6452_v0  ;;  %v6176_v55 = vpop.f32.mrf.mxu2 }
 0xb58   : > { %v6779_v10 = vpop.f32.mrf.mxu0 }
 0xb5b   : > { %8049 = vmatmul.msk.bf16.gmra.mxu2 %vm3788_vm7, %v14893_v13 }
 0xb5e   : > { %v6383_v58 = vpop.f32.mrf.mxu3  ;;  %v6584_v26 = vpop.f32.mrf.mxu1 }
 0xb5f   : > { %v6178_v41 = vpop.f32.mrf.mxu2 }
 0xb60   : > { %v6246_v2 = vadd.f32 %v6178_v41, %v14894_v35  ;;  %v6781_v21 = vpop.f32.mrf.mxu0 }
 0xb61   : > { %v13731_v50 = vadd.f32 %v6781_v21, %v6653_v23  ;;  %8158 = vmatmul.msk.bf16.gmra.mxu1 %vm3788_vm7, %v13408_v63 }
 0xb63   : > { %8103 = vmatmul.msk.bf16.gmra.mxu3 %vm3788_vm7, %v13402_v49  ;;  %8200 = vmatmul.msk.bf16.gmra.mxu0 %vm3788_vm7, %v14893_v13 }
 0xb66   : > { %v6385_v0 = vpop.f32.mrf.mxu3  ;;  %v6585_v52 = vpop.f32.mrf.mxu1 }
 0xb67   : > { %v6453_v47 = vadd.f32 %v6385_v0, %v6246_v2  ;;  %v6180_v28 = vpop.f32.mrf.mxu2  ;;  %v8350_v0 = vld [vmem:[%s14141_s12] sm:$0xff] }
 0xb68   : > { %v6247_v55 = vadd.f32 %v6180_v28, %v13391_v48  ;;  %v6783_v10 = vpop.f32.mrf.mxu0  ;;  %7198 = vmatpush.bf16.msrb.mxu3 %v8350_v0 }
 0xb69   : > { %v13740_v58 = vadd.f32 %v6783_v10, %v6654_v8  ;;  %v14896_v10 = vld [vmem:[#allocation95_spill] sm:$0xff] }
 0xb6b   : > { %6214 = vmatmul.bf16.gmra.mxu2 %v14653_v17 }
 0xb6e   : > { %v6387_v23 = vpop.f32.mrf.mxu3  ;;  %v6587_v26 = vpop.f32.mrf.mxu1 }
 0xb6f   : > { %v6454_v63 = vadd.f32 %v6387_v23, %v6247_v55  ;;  %v6655_v41 = vadd.f32 %v6587_v26, %v6453_v47  ;;  %v6183_v35 = vpop.f32.mrf.mxu2  ;;  %v14895_v47 = vld [vmem:[#allocation82_spill] sm:$0xff] }
 0xb70   : > { %v6786_v21 = vpop.f32.mrf.mxu0 }
 0xb71   : > { %8159 = vmatmul.msk.bf16.gmra.mxu1 %vm3788_vm7, %v13440_v25  ;;  %v14899_v21 = vld [vmem:[#allocation50_spill] sm:$0xff] }
 0xb73   : > { %8104 = vmatmul.msk.bf16.gmra.mxu3 %vm3788_vm7, %v13429_v33  ;;  %6817 = vmatmul.bf16.gmra.mxu0 %v14653_v17 }
 0xb76   : > { %v6390_v48 = vpop.f32.mrf.mxu3  ;;  %v6589_v13 = vpop.f32.mrf.mxu1 }
 0xb77   : > { %v6656_v8 = vadd.f32 %v6589_v13, %v6454_v63  ;;  %v6184_v2 = vpop.f32.mrf.mxu2  ;;  %v14898_v63 = vld [vmem:[#allocation39_spill] sm:$0xff] }
 0xb78   : > { %v6787_v52 = vpop.f32.mrf.mxu0  ;;  %v13761_v48 = vsel %vm2136_vm8, %v14899_v21, %v14898_v63  ;;  %vm14900_vm8 = vcmask 261120  }
 0xb79   : > { %vm14901_vm10 = vmmov %vm14900_vm8 }
 0xb7a   : > { %vm14902_vm12 = vmmov %vm14900_vm8 }
 0xb7b   : > { %8050 = vmatmul.msk.bf16.gmra.mxu2 %vm3788_vm7, %v14895_v47  ;;  %vm14903_vm9 = vmmov %vm14900_vm8 }
 0xb7c   : > { %vm14904_vm11 = vmmov %vm14900_vm8 }
 0xb7d   : > { %vm14905_vm14 = vmmov %vm14900_vm8 }
 0xb7e   : > { %v6391_v28 = vpop.f32.mrf.mxu3  ;;  %v6592_v25 = vpop.f32.mrf.mxu1  ;;  %vm14906_vm3 = vmmov %vm14900_vm8 }
 0xb7f   : > { %v6186_v55 = vpop.f32.mrf.mxu2  ;;  %vm14907_vm15 = vmmov %vm14906_vm3 }
 0xb80   : > { %v6248_v23 = vadd.f32 %v6186_v55, %v14896_v10  ;;  %v6789_v26 = vpop.f32.mrf.mxu0  ;;  %vm14908_vm4 = vmmov %vm14906_vm3 }
 0xb81   : > { %v13754_v35 = vadd.f32 %v6789_v26, %v6655_v41  ;;  %8160 = vmatmul.msk.bf16.gmra.mxu1 %vm3788_vm7, %v13453_v12  ;;  %vm14911_vm5 = vmmov %vm14906_vm3 }
 0xb82   : > { %vm14915_vm0 = vmmov %vm14906_vm3 }
 0xb83   : > { %14897 = vst [vmem:[#allocation101_spill] sm:$0xff] %v13754_v35  ;;  %8105 = vmatmul.msk.bf16.gmra.mxu3 %vm3788_vm7, %v13761_v48  ;;  %8201 = vmatmul.msk.bf16.gmra.mxu0 %vm3788_vm7, %v14895_v47  ;;  %vm14919_vm1 = vmmov %vm14915_vm0 }
 0xb84   : > { %vm14923_vm13 = vmmov %vm14915_vm0 }
 0xb85   : > { %vm14925_vm2 = vmmov %vm14915_vm0 }
 0xb86   : > { %v6393_v13 = vpop.f32.mrf.mxu3  ;;  %v6593_v2 = vpop.f32.mrf.mxu1  ;;  %vm14927_vm6 = vmmov %vm14915_vm0 }
 0xb87   : > { %v6455_v0 = vadd.f32 %v6393_v13, %v6248_v23  ;;  %v6188_v52 = vpop.f32.mrf.mxu2 }
 0xb88   : > { %v6249_v41 = vadd.f32 %v6188_v52, %v13446_v60  ;;  %v6791_v28 = vpop.f32.mrf.mxu0 }
 0xb89   : > { %v13768_v25 = vadd.f32 %v6791_v28, %v6656_v8 }
 0xb8b   : > { %6222 = vmatmul.bf16.gmra.mxu2 %v14653_v17 }
 0xb8e   : > { %v6395_v12 = vpop.f32.mrf.mxu3  ;;  %v6595_v55 = vpop.f32.mrf.mxu1 }
 0xb8f   : > { %v6456_v10 = vadd.f32 %v6395_v12, %v6249_v41  ;;  %v6657_v26 = vadd.f32 %v6595_v55, %v6455_v0  ;;  %v6191_v21 = vpop.f32.mrf.mxu2  ;;  %v8691_v41 = vld [vmem:[%s8933_s15 + $0x8] sm:$0xff] }
 0xb90   : > { %v6794_v35 = vpop.f32.mrf.mxu0 }
 0xb91   : > { %8161 = vmatmul.msk.bf16.gmra.mxu1 %vm3788_vm7, %v14673_v16  ;;  %v8690_v35 = vld [vmem:[%s8933_s15] sm:$0xff] }
 0xb92   : > { %v7107_v28 = vpack.c.bf16 %v8691_v41, %v8690_v35  ;;  %v8693_v35 = vld [vmem:[%s8933_s15 + $0x18] sm:$0xff] }
 0xb93   : > { %8106 = vmatmul.msk.bf16.gmra.mxu3 %vm3788_vm7, %v14898_v63  ;;  %6825 = vmatmul.bf16.gmra.mxu0 %v14653_v17 }
 0xb96   : > { %v6398_v60 = vpop.f32.mrf.mxu3  ;;  %v6597_v8 = vpop.f32.mrf.mxu1 }
 0xb97   : > { %v6658_v47 = vadd.f32 %v6597_v8, %v6456_v10  ;;  %v6192_v23 = vpop.f32.mrf.mxu2 }
 0xb98   : > { %v6795_v13 = vpop.f32.mrf.mxu0 }
 0xb9b   : > { %8226 = vmatmul.msk.bf16.vlgmr.msra.gmra.mxu2 %vm3788_vm7, %v12643_v24 }
 0xb9e   : > { %v6399_v2 = vpop.f32.mrf.mxu3  ;;  %v6600_v0 = vpop.f32.mrf.mxu1 }
 0xb9f   : > { %v6194_v52 = vpop.f32.mrf.mxu2 }
 0xba0   : > { %v6250_v12 = vadd.f32 %v6194_v52, %v13461_v34  ;;  %v6797_v55 = vpop.f32.mrf.mxu0  ;;  %v8692_v52 = vld [vmem:[%s8933_s15 + $0x10] sm:$0xff] }
 0xba1   : > { %v13781_v21 = vadd.f32 %v6797_v55, %v6657_v26  ;;  %8162 = vmatmul.msk.bf16.gmra.mxu1 %vm3788_vm7, %v14673_v16  ;;  %v7108_v41 = vpack.c.bf16 %v8693_v35, %v8692_v52 }
 0xba3   : > { %6828 = vmatmul.bf16.gmra.mxu0 %v14653_v17  ;;  %8266 = vmatmul.msk.bf16.vlgmr.msrb.gmra.mxu3 %vm14900_vm8, %v7107_v28  ;;  %vm14928_vm8 = vmmov %vm14915_vm0 }
 0xba6   : > { %v6401_v24 = vpop.f32.mrf.mxu3  ;;  %v6601_v10 = vpop.f32.mrf.mxu1 }
 0xba7   : > { %v6457_v60 = vadd.f32 %v6401_v24, %v6250_v12  ;;  %v6196_v8 = vpop.f32.mrf.mxu2 }
 0xba8   : > { %v6251_v23 = vadd.f32 %v6196_v8, %v13469_v30  ;;  %v6799_v13 = vpop.f32.mrf.mxu0 }
 0xba9   : > { %v13788_v34 = vadd.f32 %v6799_v13, %v6658_v47  ;;  %v8694_v13 = vld [vmem:[%s8933_s15 + $0x20] sm:$0xff] }
 0xbab   : > { %8227 = vmatmul.msk.bf16.gmra.mxu2 %vm3788_vm7, %v12737_v4 }
 0xbae   : > { %v6403_v26 = vpop.f32.mrf.mxu3  ;;  %v6603_v2 = vpop.f32.mrf.mxu1 }
 0xbaf   : > { %v6659_v16 = vadd.f32 %v6603_v2, %v6457_v60  ;;  %v6199_v0 = vpop.f32.mrf.mxu2  ;;  %v6458_v30 = vadd.f32 %v6403_v26, %v6251_v23  ;;  %v8695_v2 = vld [vmem:[%s8933_s15 + $0x28] sm:$0xff] }
 0xbb0   : > { %v6802_v28 = vpop.f32.mrf.mxu0  ;;  %v7109_v0 = vpack.c.bf16 %v8695_v2, %v8694_v13 }
 0xbb3   : > { %8267 = vmatmul.msk.bf16.gmra.mxu3 %vm14901_vm10, %v7108_v41  ;;  %6833 = vmatmul.bf16.gmra.mxu0 %v14653_v17 }
 0xbb6   : > { %v6406_v47 = vpop.f32.mrf.mxu3  ;;  %v6605_v12 = vpop.f32.mrf.mxu1 }
 0xbb7   : > { %v6660_v55 = vadd.f32 %v6605_v12, %v6458_v30  ;;  %v6200_v24 = vpop.f32.mrf.mxu2 }
 0xbb8   : > { %v6803_v4 = vpop.f32.mrf.mxu0 }
 0xbbb   : > { %8228 = vmatmul.msk.bf16.gmra.mxu2 %vm3788_vm7, %v12848_v62 }
 0xbbe   : > { %v6407_v10 = vpop.f32.mrf.mxu3  ;;  %v6608_v60 = vpop.f32.mrf.mxu1 }
 0xbbf   : > { %v6202_v8 = vpop.f32.mrf.mxu2 }
 0xbc0   : > { %v6252_v52 = vadd.f32 %v6202_v8, %v13479_v15  ;;  %v6805_v35 = vpop.f32.mrf.mxu0 }
 0xbc1   : > { %v13801_v41 = vadd.f32 %v6805_v35, %v6659_v16  ;;  %v8697_v35 = vld [vmem:[%s8933_s15 + $0x38] sm:$0xff] }
 0xbc3   : > { %8268 = vmatmul.msk.bf16.gmra.mxu3 %vm14902_vm12, %v7109_v0 }
 0xbc6   : > { %v6409_v17 = vpop.f32.mrf.mxu3  ;;  %v6609_v23 = vpop.f32.mrf.mxu1 }
 0xbc7   : > { %v6459_v26 = vadd.f32 %v6409_v17, %v6252_v52  ;;  %v6204_v28 = vpop.f32.mrf.mxu2  ;;  %v8696_v52 = vld [vmem:[%s8933_s15 + $0x30] sm:$0xff] }
 0xbc8   : > { %v6253_v30 = vadd.f32 %v6204_v28, %v13487_v40  ;;  %v6807_v62 = vpop.f32.mrf.mxu0 }
 0xbc9   : > { %v13805_v47 = vadd.f32 %v6807_v62, %v6660_v55 }
 0xbcb   : > { %8229 = vmatmul.msk.bf16.gmra.mxu2 %vm3788_vm7, %v12911_v5  ;;  %v7110_v5 = vpack.c.bf16 %v8697_v35, %v8696_v52 }
 0xbce   : > { %v6411_v15 = vpop.f32.mrf.mxu3  ;;  %v6611_v12 = vpop.f32.mrf.mxu1 }
 0xbcf   : > { %v6661_v16 = vadd.f32 %v6611_v12, %v6459_v26  ;;  %v6207_v24 = vpop.f32.mrf.mxu2  ;;  %v6460_v10 = vadd.f32 %v6411_v15, %v6253_v30 }
 0xbd0   : > { %v6810_v4 = vpop.f32.mrf.mxu0 }
 0xbd3   : > { %8269 = vmatmul.msk.bf16.gmra.mxu3 %vm14903_vm9, %v7110_v5  ;;  %v8698_v5 = vld [vmem:[%s8933_s15 + $0x40] sm:$0xff] }
 0xbd6   : > { %v6414_v60 = vpop.f32.mrf.mxu3  ;;  %v6613_v8 = vpop.f32.mrf.mxu1 }
 0xbd7   : > { %v6662_v13 = vadd.f32 %v6613_v8, %v6460_v10  ;;  %v6208_v2 = vpop.f32.mrf.mxu2 }
 0xbd8   : > { %v6811_v0 = vpop.f32.mrf.mxu0 }
 0xbdb   : > { %8230 = vmatmul.msk.bf16.gmra.mxu2 %vm3788_vm7, %v12955_v14 }
 0xbde   : > { %v6415_v40 = vpop.f32.mrf.mxu3  ;;  %v6616_v55 = vpop.f32.mrf.mxu1 }
 0xbdf   : > { %v6210_v17 = vpop.f32.mrf.mxu2 }
 0xbe0   : > { %v6254_v23 = vadd.f32 %v6210_v17, %v13500_v1  ;;  %v6813_v26 = vpop.f32.mrf.mxu0  ;;  %v8699_v17 = vld [vmem:[%s8933_s15 + $0x48] sm:$0xff] }
 0xbe1   : > { %v13815_v28 = vadd.f32 %v6813_v26, %v6661_v16 }
 0xbe6   : > { %v6417_v30 = vpop.f32.mrf.mxu3  ;;  %v6617_v62 = vpop.f32.mrf.mxu1 }
 0xbe7   : > { %v6461_v15 = vadd.f32 %v6417_v30, %v6254_v23  ;;  %v6212_v12 = vpop.f32.mrf.mxu2 }
 0xbe8   : > { %v6255_v24 = vadd.f32 %v6212_v12, %v13508_v3  ;;  %v6815_v14 = vpop.f32.mrf.mxu0 }
 0xbe9   : > { %v13818_v4 = vadd.f32 %v6815_v14, %v6662_v13 }
 0xbeb   : > { %8231 = vmatmul.msk.bf16.gmra.mxu2 %vm3788_vm7, %v12976_v53  ;;  %v7111_v53 = vpack.c.bf16 %v8699_v17, %v8698_v5 }
 0xbed   : > { %8270 = vmatmul.msk.bf16.gmra.mxu3 %vm14904_vm11, %v7111_v53 }
 0xbee   : > { %v6419_v1 = vpop.f32.mrf.mxu3  ;;  %v6619_v10 = vpop.f32.mrf.mxu1 }
 0xbef   : > { %v6663_v60 = vadd.f32 %v6619_v10, %v6461_v15  ;;  %v6215_v8 = vpop.f32.mrf.mxu2  ;;  %v6462_v2 = vadd.f32 %v6419_v1, %v6255_v24 }
 0xbf0   : > { %v6818_v16 = vpop.f32.mrf.mxu0 }
 0xbf6   : > { %v6422_v0 = vpop.f32.mrf.mxu3  ;;  %v6621_v40 = vpop.f32.mrf.mxu1 }
 0xbf7   : > { %v6664_v55 = vadd.f32 %v6621_v40, %v6462_v2  ;;  %v6216_v52 = vpop.f32.mrf.mxu2 }
 0xbf8   : > { %v6819_v35 = vpop.f32.mrf.mxu0 }
 0xbfb   : > { %8232 = vmatmul.msk.bf16.gmra.mxu2 %vm3788_vm7, %v12996_v18 }
 0xbfe   : > { %v6423_v3 = vpop.f32.mrf.mxu3  ;;  %v6624_v13 = vpop.f32.mrf.mxu1 }
 0xbff   : > { %v6218_v23 = vpop.f32.mrf.mxu2  ;;  %v8701_v13 = vld [vmem:[%s8933_s15 + $0x58] sm:$0xff] }
 0xc00   : > { %v6256_v26 = vadd.f32 %v6218_v23, %v13521_v56  ;;  %v6821_v30 = vpop.f32.mrf.mxu0 }
 0xc01   : > { %v13828_v62 = vadd.f32 %v6821_v30, %v6663_v60 }
 0xc06   : > { %v6425_v15 = vpop.f32.mrf.mxu3  ;;  %v6625_v12 = vpop.f32.mrf.mxu1 }
 0xc07   : > { %v6463_v24 = vadd.f32 %v6425_v15, %v6256_v26  ;;  %v6220_v14 = vpop.f32.mrf.mxu2  ;;  %v13847_v15 = vld [vmem:[%s14140_s11] ss:$0 sm:$0xff] }
 0xc08   : > { %v6257_v1 = vadd.f32 %v6220_v14, %v13531_v45  ;;  %v6823_v18 = vpop.f32.mrf.mxu0 }
 0xc09   : > { %v13831_v10 = vadd.f32 %v6823_v18, %v6664_v55  ;;  %v8700_v55 = vld [vmem:[%s8933_s15 + $0x50] sm:$0xff] }
 0xc0a   : > { %v7112_v5 = vpack.c.bf16 %v8701_v13, %v8700_v55  ;;  %v8703_v13 = vld [vmem:[%s8933_s15 + $0x68] sm:$0xff] }
 0xc0b   : > { %8233 = vmatmul.msk.bf16.gmra.mxu2 %vm3788_vm7, %v13014_v43 }
 0xc0c   : > { %8271 = vmatmul.msk.bf16.gmra.mxu3 %vm14905_vm14, %v7112_v5 }
 0xc0e   : > { %v6427_v56 = vpop.f32.mrf.mxu3  ;;  %v6627_v8 = vpop.f32.mrf.mxu1 }
 0xc0f   : > { %v6665_v16 = vadd.f32 %v6627_v8, %v6463_v24  ;;  %v6223_v2 = vpop.f32.mrf.mxu2  ;;  %v6464_v0 = vadd.f32 %v6427_v56, %v6257_v1 }
 0xc10   : > { %v6826_v60 = vpop.f32.mrf.mxu0 }
 0xc16   : > { %v6430_v40 = vpop.f32.mrf.mxu3  ;;  %v6629_v52 = vpop.f32.mrf.mxu1 }
 0xc17   : > { %v6666_v35 = vadd.f32 %v6629_v52, %v6464_v0  ;;  %v6224_v3 = vpop.f32.mrf.mxu2 }
 0xc18   : > { %v6827_v45 = vpop.f32.mrf.mxu0 }
 0xc1b   : > { %8234 = vmatmul.msk.bf16.gmra.mxu2 %vm3788_vm7, %v14839_v51  ;;  %v13852_v51 = vld [vmem:[%s14142_s13] ss:$0 sm:$0xff] }
 0xc1e   : > { %v6431_v43 = vpop.f32.mrf.mxu3  ;;  %v6632_v17 = vpop.f32.mrf.mxu1 }
 0xc1f   : > { %v6911_v53 = vpop.f32.mrf.mxu2 }
 0xc20   : > { %v6829_v23 = vpop.f32.mrf.mxu0  ;;  %v7039_v30 = vadd.f32 %v6911_v53, %v13542_v59 }
 0xc21   : > { %v13840_v26 = vadd.f32 %v6829_v23, %v6665_v16 }
 0xc22   : > { %v7075_v14 = vadd.f32 %v13847_v15, %v7039_v30 }
 0xc26   : > { %v7200_v12 = vpop.f32.mrf.mxu3  ;;  %v6633_v24 = vpop.f32.mrf.mxu1 }
 0xc27   : > { %v7201_v1 = vadd.f32 %v13852_v51, %v7200_v12  ;;  %v6913_v18 = vpop.f32.mrf.mxu2 }
 0xc28   : > { %v6831_v59 = vpop.f32.mrf.mxu0  ;;  %v7040_v16 = vadd.f32 %v6913_v18, %v13551_v6  ;;  %v8702_v6 = vld [vmem:[%s8933_s15 + $0x60] sm:$0xff] }
 0xc29   : > { %v7280_v56 = vadd.f32 %v7201_v1, %v7075_v14  ;;  %v13858_v8 = vadd.f32 %v6831_v59, %v6666_v35 }
 0xc2a   : > { %v7076_v60 = vadd.f32 %v13847_v15, %v7040_v16  ;;  %v8705_v16 = vld [vmem:[%s8933_s15 + $0x78] sm:$0xff] }
 0xc2b   : > { %7312 = vst.msk [vmem:[%s13860_s26] sm:$0xff] %vm3788_vm7, %v7280_v56  ;;  %8235 = vmatmul.msk.bf16.gmra.mxu2 %vm3788_vm7, %v14841_v22  ;;  %v7113_v22 = vpack.c.bf16 %v8703_v13, %v8702_v6  ;;  %v8704_v56 = vld [vmem:[%s8933_s15 + $0x70] sm:$0xff] }
 0xc2d   : > { %8272 = vmatmul.msk.bf16.gmra.mxu3 %vm14906_vm3, %v7113_v22  ;;  %v8706_v22 = vld [vmem:[%s8933_s15 + $0x80] sm:$0xff] }
 0xc2e   : > { %v7202_v2 = vpop.f32.mrf.mxu3 }
 0xc2f   : > { %v7203_v0 = vadd.f32 %v13852_v51, %v7202_v2  ;;  %v6916_v40 = vpop.f32.mrf.mxu2 }
 0xc30   : > { %v6834_v52 = vpop.f32.mrf.mxu0 }
 0xc31   : > { %v7281_v35 = vadd.f32 %v7203_v0, %v7076_v60 }
 0xc33   : > { %7313 = vst.msk [vmem:[%s13860_s26 + $0x8] sm:$0xff] %vm3788_vm7, %v7281_v35 }
 0xc36   : > { %v7205_v55 = vpop.f32.mrf.mxu3 }
 0xc37   : > { %v6917_v3 = vpop.f32.mrf.mxu2  ;;  %v7206_v17 = vadd.f32 %v13852_v51, %v7205_v55 }
 0xc38   : > { %v6835_v45 = vpop.f32.mrf.mxu0 }
 0xc3b   : > { %8236 = vmatmul.msk.bf16.gmra.mxu2 %vm3788_vm7, %v14845_v31 }
 0xc3e   : > { %v7207_v30 = vpop.f32.mrf.mxu3 }
 0xc3f   : > { %v6919_v5 = vpop.f32.mrf.mxu2  ;;  %v7208_v24 = vadd.f32 %v13852_v51, %v7207_v30 }
 0xc40   : > { %v7041_v43 = vadd.f32 %v6919_v5, %v13562_v20  ;;  %v8707_v5 = vld [vmem:[%s8933_s15 + $0x88] sm:$0xff] }
 0xc42   : > { %v7077_v53 = vadd.f32 %v13847_v15, %v7041_v43 }
 0xc44   : > { %v7282_v23 = vadd.f32 %v7206_v17, %v7077_v53 }
 0xc46   : > { %7314 = vst.msk [vmem:[%s13860_s26 + $0x10] sm:$0xff] %vm3788_vm7, %v7282_v23  ;;  %v7210_v59 = vpop.f32.mrf.mxu3 }
 0xc47   : > { %v6921_v31 = vpop.f32.mrf.mxu2 }
 0xc48   : > { %v7042_v12 = vadd.f32 %v6921_v31, %v13571_v39  ;;  %v7114_v39 = vpack.c.bf16 %v8705_v16, %v8704_v56  ;;  %v8708_v56 = vld [vmem:[%s8933_s15 + $0x90] sm:$0xff]  ;;  %v8709_v16 = vld [vmem:[%s8933_s15 + $0x98] sm:$0xff] }
 0xc4a   : > { %v7078_v14 = vadd.f32 %v13847_v15, %v7042_v12  ;;  %8273 = vmatmul.msk.bf16.gmra.mxu3 %vm14907_vm15, %v7114_v39 }
 0xc4b   : > { %8237 = vmatmul.msk.bf16.gmra.mxu2 %vm3788_vm7, %v14847_v46  ;;  %v7211_v46 = vadd.f32 %v13852_v51, %v7210_v59  ;;  %v14910_v59 = vld [vmem:[#allocation57_spill] sm:$0xff] }
 0xc4c   : > { %v7283_v1 = vadd.f32 %v7208_v24, %v7078_v14 }
 0xc4e   : > { %7315 = vst.msk [vmem:[%s13860_s26 + $0x18] sm:$0xff] %vm3788_vm7, %v7283_v1  ;;  %v7212_v52 = vpop.f32.mrf.mxu3  ;;  %v14909_v1 = vld [vmem:[#allocation69_spill] sm:$0xff] }
 0xc4f   : > { %v6924_v20 = vpop.f32.mrf.mxu2  ;;  %v7213_v3 = vadd.f32 %v13852_v51, %v7212_v52 }
 0xc56   : > { %v7215_v13 = vpop.f32.mrf.mxu3 }
 0xc57   : > { %v6925_v18 = vpop.f32.mrf.mxu2 }
 0xc5b   : > { %8238 = vmatmul.msk.bf16.gmra.mxu2 %vm3788_vm7, %v14851_v32 }
 0xc5e   : > { %v7217_v30 = vpop.f32.mrf.mxu3 }
 0xc5f   : > { %v6927_v2 = vpop.f32.mrf.mxu2  ;;  %v7218_v12 = vadd.f32 %v13852_v51, %v7217_v30 }
 0xc60   : > { %v7043_v60 = vadd.f32 %v6927_v2, %v13588_v54  ;;  %v14912_v2 = vld [vmem:[#allocation108_spill] sm:$0xff] }
 0xc62   : > { %v7079_v0 = vadd.f32 %v13847_v15, %v7043_v60 }
 0xc64   : > { %v7284_v40 = vadd.f32 %v7211_v46, %v7079_v0 }
 0xc66   : > { %7316 = vst.msk [vmem:[%s13860_s26 + $0x20] sm:$0xff] %vm3788_vm7, %v7284_v40 }
 0xc67   : > { %v6929_v32 = vpop.f32.mrf.mxu2 }
 0xc68   : > { %v7044_v35 = vadd.f32 %v6929_v32, %v13597_v29  ;;  %v7115_v29 = vpack.c.bf16 %v8707_v5, %v8706_v22  ;;  %v14914_v5 = vld [vmem:[#allocation77_spill] sm:$0xff] }
 0xc6a   : > { %v7080_v45 = vadd.f32 %v13847_v15, %v7044_v35  ;;  %8274 = vmatmul.msk.bf16.gmra.mxu3 %vm14908_vm4, %v7115_v29  ;;  %v8710_v29 = vld [vmem:[%s8933_s15 + $0xa0] sm:$0xff] }
 0xc6b   : > { %8239 = vmatmul.msk.bf16.gmra.mxu2 %vm3788_vm7, %v14853_v7  ;;  %v7216_v7 = vadd.f32 %v13852_v51, %v7215_v13 }
 0xc6c   : > { %v7285_v55 = vadd.f32 %v7213_v3, %v7080_v45 }
 0xc6e   : > { %7317 = vst.msk [vmem:[%s13860_s26 + $0x28] sm:$0xff] %vm3788_vm7, %v7285_v55 }
 0xc6f   : > { %v6932_v54 = vpop.f32.mrf.mxu2 }
 0xc70   : > { %v7220_v18 = vpop.f32.mrf.mxu3  ;;  %v14913_v54 = vld [vmem:[#allocation74_spill] sm:$0xff] }
 0xc71   : > { %v7221_v46 = vadd.f32 %v13852_v51, %v7220_v18 }
 0xc77   : > { %v6933_v6 = vpop.f32.mrf.mxu2 }
 0xc78   : > { %v7222_v52 = vpop.f32.mrf.mxu3 }
 0xc79   : > { %v7223_v3 = vadd.f32 %v13852_v51, %v7222_v52 }
 0xc7b   : > { %8240 = vmatmul.msk.bf16.gmra.mxu2 %vm3788_vm7, %v14857_v57 }
 0xc7f   : > { %v6935_v43 = vpop.f32.mrf.mxu2 }
 0xc80   : > { %v7045_v17 = vadd.f32 %v6935_v43, %v13608_v61  ;;  %v8711_v43 = vld [vmem:[%s8933_s15 + $0xa8] sm:$0xff] }
 0xc82   : > { %v7081_v53 = vadd.f32 %v13847_v15, %v7045_v17 }
 0xc84   : > { %v7286_v23 = vadd.f32 %v7216_v7, %v7081_v53  ;;  %v14916_v7 = vld [vmem:[#allocation109_spill] sm:$0xff] }
 0xc86   : > { %7318 = vst.msk [vmem:[%s13860_s26 + $0x30] sm:$0xff] %vm3788_vm7, %v7286_v23 }
 0xc87   : > { %v6937_v57 = vpop.f32.mrf.mxu2 }
 0xc88   : > { %v7046_v31 = vadd.f32 %v6937_v57, %v13617_v11  ;;  %v7116_v11 = vpack.c.bf16 %v8709_v16, %v8708_v56  ;;  %v14918_v16 = vld [vmem:[#allocation80_spill] sm:$0xff] }
 0xc8a   : > { %v7082_v24 = vadd.f32 %v13847_v15, %v7046_v31  ;;  %8275 = vmatmul.msk.bf16.gmra.mxu3 %vm14911_vm5, %v7116_v11  ;;  %v8712_v11 = vld [vmem:[%s8933_s15 + $0xb0] sm:$0xff] }
 0xc8b   : > { %8241 = vmatmul.msk.bf16.gmra.mxu2 %vm3788_vm7, %v14909_v1 }
 0xc8c   : > { %v7287_v14 = vadd.f32 %v7218_v12, %v7082_v24 }
 0xc8e   : > { %7319 = vst.msk [vmem:[%s13860_s26 + $0x38] sm:$0xff] %vm3788_vm7, %v7287_v14 }
 0xc8f   : > { %v6940_v61 = vpop.f32.mrf.mxu2  ;;  %v7225_v22 = vpop.f32.mrf.mxu3 }
 0xc90   : > { %v7226_v23 = vadd.f32 %v13852_v51, %v7225_v22 }
 0xc97   : > { %v6941_v20 = vpop.f32.mrf.mxu2  ;;  %v7227_v31 = vpop.f32.mrf.mxu3 }
 0xc98   : > { %v7228_v14 = vadd.f32 %v13852_v51, %v7227_v31  ;;  %v14917_v20 = vld [vmem:[#allocation75_spill] sm:$0xff] }
 0xc9b   : > { %8242 = vmatmul.msk.bf16.gmra.mxu2 %vm3788_vm7, %v14910_v59 }
 0xc9f   : > { %v6943_v39 = vpop.f32.mrf.mxu2 }
 0xca0   : > { %v7047_v60 = vadd.f32 %v6943_v39, %v14912_v2  ;;  %v8713_v39 = vld [vmem:[%s8933_s15 + $0xb8] sm:$0xff] }
 0xca2   : > { %v7083_v0 = vadd.f32 %v13847_v15, %v7047_v60  ;;  %v14920_v60 = vld [vmem:[#allocation99_spill] sm:$0xff] }
 0xca4   : > { %v7288_v40 = vadd.f32 %v7221_v46, %v7083_v0 }
 0xca6   : > { %7320 = vst.msk [vmem:[%s13860_s26 + $0x40] sm:$0xff] %vm3788_vm7, %v7288_v40 }
 0xca7   : > { %v6945_v32 = vpop.f32.mrf.mxu2 }
 0xca8   : > { %v7048_v35 = vadd.f32 %v6945_v32, %v13637_v42  ;;  %v7117_v42 = vpack.c.bf16 %v8711_v43, %v8710_v29  ;;  %v14922_v29 = vld [vmem:[#allocation87_spill] sm:$0xff] }
 0xca9   : > { %v8714_v43 = vld [vmem:[%s8933_s15 + $0xc0] sm:$0xff] }
 0xcaa   : > { %v7084_v45 = vadd.f32 %v13847_v15, %v7048_v35  ;;  %8276 = vmatmul.msk.bf16.gmra.mxu3 %vm14915_vm0, %v7117_v42  ;;  %v8715_v42 = vld [vmem:[%s8933_s15 + $0xc8] sm:$0xff] }
 0xcab   : > { %8243 = vmatmul.msk.bf16.gmra.mxu2 %vm3788_vm7, %v14913_v54 }
 0xcac   : > { %v7289_v55 = vadd.f32 %v7223_v3, %v7084_v45 }
 0xcae   : > { %7321 = vst.msk [vmem:[%s13860_s26 + $0x48] sm:$0xff] %vm3788_vm7, %v7289_v55 }
 0xcaf   : > { %v6948_v6 = vpop.f32.mrf.mxu2 }
 0xcb0   : > { %v7230_v56 = vpop.f32.mrf.mxu3  ;;  %v14921_v6 = vld [vmem:[#allocation84_spill] sm:$0xff] }
 0xcb1   : > { %v7231_v0 = vadd.f32 %v13852_v51, %v7230_v56  ;;  %v8716_v56 = vld [vmem:[%s8933_s15 + $0xd0] sm:$0xff] }
 0xcb7   : > { %v6949_v13 = vpop.f32.mrf.mxu2 }
 0xcb8   : > { %v7232_v32 = vpop.f32.mrf.mxu3 }
 0xcb9   : > { %v7233_v45 = vadd.f32 %v13852_v51, %v7232_v32 }
 0xcbb   : > { %8244 = vmatmul.msk.bf16.gmra.mxu2 %vm3788_vm7, %v14914_v5 }
 0xcbf   : > { %v6951_v17 = vpop.f32.mrf.mxu2 }
 0xcc0   : > { %v7049_v53 = vadd.f32 %v6951_v17, %v14916_v7  ;;  %v14924_v7 = vld [vmem:[#allocation98_spill] sm:$0xff] }
 0xcc2   : > { %v7085_v30 = vadd.f32 %v13847_v15, %v7049_v53 }
 0xcc4   : > { %v7290_v57 = vadd.f32 %v7226_v23, %v7085_v30 }
 0xcc6   : > { %7322 = vst.msk [vmem:[%s13860_s26 + $0x50] sm:$0xff] %vm3788_vm7, %v7290_v57 }
 0xcc7   : > { %v6953_v12 = vpop.f32.mrf.mxu2 }
 0xcc8   : > { %v7050_v24 = vadd.f32 %v6953_v12, %v13657_v19  ;;  %v7118_v19 = vpack.c.bf16 %v8713_v39, %v8712_v11  ;;  %v14926_v39 = vld [vmem:[#allocation102_spill] sm:$0xff] }
 0xcca   : > { %v7086_v1 = vadd.f32 %v13847_v15, %v7050_v24  ;;  %8277 = vmatmul.msk.bf16.gmra.mxu3 %vm14919_vm1, %v7118_v19 }
 0xccb   : > { %8245 = vmatmul.msk.bf16.gmra.mxu2 %vm3788_vm7, %v14917_v20 }
 0xccc   : > { %v7291_v61 = vadd.f32 %v7228_v14, %v7086_v1 }
 0xccd   : > { %v7235_v5 = vpop.f32.mrf.mxu3 }
 0xcce   : > { %7323 = vst.msk [vmem:[%s13860_s26 + $0x58] sm:$0xff] %vm3788_vm7, %v7291_v61  ;;  %v7236_v23 = vadd.f32 %v13852_v51, %v7235_v5 }
 0xccf   : > { %v6956_v18 = vpop.f32.mrf.mxu2 }
 0xcd5   : > { %v7237_v31 = vpop.f32.mrf.mxu3 }
 0xcd6   : > { %v7238_v14 = vadd.f32 %v13852_v51, %v7237_v31  ;;  %v14929_v31 = vld [vmem:[#allocation101_spill] sm:$0xff] }
 0xcd7   : > { %v6957_v59 = vpop.f32.mrf.mxu2 }
 0xcdb   : > { %8246 = vmatmul.msk.bf16.gmra.mxu2 %vm3788_vm7, %v14918_v16  ;;  %v8717_v16 = vld [vmem:[%s8933_s15 + $0xd8] sm:$0xff] }
 0xcdf   : > { %v6959_v2 = vpop.f32.mrf.mxu2 }
 0xce0   : > { %v7051_v46 = vadd.f32 %v6959_v2, %v14920_v60 }
 0xce2   : > { %v7087_v40 = vadd.f32 %v13847_v15, %v7051_v46 }
 0xce4   : > { %v7292_v52 = vadd.f32 %v7231_v0, %v7087_v40 }
 0xce6   : > { %7324 = vst.msk [vmem:[%s13860_s26 + $0x60] sm:$0xff] %vm3788_vm7, %v7292_v52 }
 0xce7   : > { %v6961_v35 = vpop.f32.mrf.mxu2 }
 0xce8   : > { %v7052_v3 = vadd.f32 %v6961_v35, %v13680_v27  ;;  %v7119_v27 = vpack.c.bf16 %v8715_v42, %v8714_v43 }
 0xcea   : > { %v7088_v55 = vadd.f32 %v13847_v15, %v7052_v3  ;;  %8278 = vmatmul.msk.bf16.gmra.mxu3 %vm14923_vm13, %v7119_v27 }
 0xceb   : > { %8247 = vmatmul.msk.bf16.gmra.mxu2 %vm3788_vm7, %v14921_v6 }
 0xcec   : > { %v7293_v54 = vadd.f32 %v7233_v45, %v7088_v55  ;;  %v8718_v55 = vld [vmem:[%s8933_s15 + $0xe0] sm:$0xff] }
 0xced   : > { %v7240_v59 = vpop.f32.mrf.mxu3 }
 0xcee   : > { %7325 = vst.msk [vmem:[%s13860_s26 + $0x68] sm:$0xff] %vm3788_vm7, %v7293_v54  ;;  %v8719_v54 = vld [vmem:[%s8933_s15 + $0xe8] sm:$0xff] }
 0xcef   : > { %v6964_v13 = vpop.f32.mrf.mxu2 }
 0xcf5   : > { %v7242_v46 = vpop.f32.mrf.mxu3 }
 0xcf6   : > { %v7243_v40 = vadd.f32 %v13852_v51, %v7242_v46 }
 0xcf7   : > { %v6965_v22 = vpop.f32.mrf.mxu2 }
 0xcfb   : > { %8248 = vmatmul.msk.bf16.gmra.mxu2 %vm3788_vm7, %v14922_v29 }
 0xcff   : > { %v6967_v17 = vpop.f32.mrf.mxu2 }
 0xd00   : > { %v7053_v53 = vadd.f32 %v6967_v17, %v14924_v7 }
 0xd02   : > { %v7089_v30 = vadd.f32 %v13847_v15, %v7053_v53 }
 0xd04   : > { %v7294_v57 = vadd.f32 %v7236_v23, %v7089_v30  ;;  %v8720_v23 = vld [vmem:[%s8933_s15 + $0xf0] sm:$0xff]  ;;  %v8721_v30 = vld [vmem:[%s8933_s15 + $0xf8] sm:$0xff]  ;;  %s8352_s15 = sshll.u32 %s8889_s17, 8  ;;  %s7345_s17 = scalar_lea.sflag [#allocation3], %s469_s27 }
 0xd05   : > { %s7356_s18 = scalar_lea.hbm %s14143_s14, %s8352_s15 }
 0xd06   : > { %7326 = vst.msk [vmem:[%s13860_s26 + $0x70] sm:$0xff] %vm3788_vm7, %v7294_v57  ;;  %s7359_s21 = sshll.u32 %s7356_s18, 4  ;;  %s8742_s18 = scalar_lea.hbm %s14143_s14, 512  ;;  %s7360_s21 = int_to_ptr.hbm [resolvable:$true] %s7359_s21 }
 0xd07   : > { %v6969_v12 = vpop.f32.mrf.mxu2  ;;  %s8736_s25 = sshra.s32 %s7360_s21, 4  ;;  %s8737_s25 = int_to_ptr.hbm [resolvable:$true] %s8736_s25 }
 0xd08   : > { %v7054_v24 = vadd.f32 %v6969_v12, %v13700_v36  ;;  %v7120_v36 = vpack.c.bf16 %v8717_v16, %v8716_v56  ;;  %s8738_s15 = scalar_lea.hbm %s8737_s25, 256  ;;  %p8743_p0 = scmp.lt.s32.totalorder %s8737_s25, %s14143_s14 }
 0xd09   : > { %p8739_p11 = scmp.ne.s32.totalorder %s8737_s25, %s8738_s15  ;;  %p8744_p1 = scmp.lt.s32.totalorder %s8742_s18, %s8738_s15 }
 0xd0a   : > { %v7090_v1 = vadd.f32 %v13847_v15, %v7054_v24  ;;  %8279 = vmatmul.msk.bf16.gmra.mxu3 %vm14925_vm2, %v7120_v36 }
 0xd0b   : > { %8249 = vmatmul.msk.bf16.gmra.mxu2 %vm3788_vm7, %v14887_v37  ;;  %v7241_v37 = vadd.f32 %v13852_v51, %v7240_v59  ;;  %p8740_p12 = pnand %p8739_p11, %p8906_p5  ;;  %p8745_p2 = por %p8744_p1, %p8743_p0 }
 0xd0c   : > { %v7295_v61 = vadd.f32 %v7238_v14, %v7090_v1 }
 0xd0d   : > { %v7245_v45 = vpop.f32.mrf.mxu3  ;;  %p8741_p13 = pneg %p8740_p12 }
 0xd0e   : > { %7327 = vst.msk [vmem:[%s13860_s26 + $0x78] sm:$0xff] %vm3788_vm7, %v7295_v61 }
 0xd0f   : > { %v6972_v20 = vpop.f32.mrf.mxu2  ;;  %p8746_p3 = pnand %p8745_p2, %p8741_p13 }
 0xd15   : > { %v7247_v29 = vpop.f32.mrf.mxu3 }
 0xd16   : > { %v7248_v42 = vadd.f32 %v13852_v51, %v7247_v29 }
 0xd17   : > { %v6973_v18 = vpop.f32.mrf.mxu2 }
 0xd1b   : > { %8250 = vmatmul.msk.bf16.gmra.mxu2 %vm3788_vm7, %v13341_v9 }
 0xd1f   : > { %v6975_v11 = vpop.f32.mrf.mxu2 }
 0xd20   : > { %v7055_v19 = vadd.f32 %v6975_v11, %v14926_v39 }
 0xd22   : > { %v7091_v2 = vadd.f32 %v13847_v15, %v7055_v19 }
 0xd24   : > { %v7296_v60 = vadd.f32 %v7241_v37, %v7091_v2 }
 0xd26   : > { %7328 = vst.msk [vmem:[%s13860_s26 + $0x80] sm:$0xff] %vm3788_vm7, %v7296_v60 }
 0xd27   : > { %v6977_v9 = vpop.f32.mrf.mxu2 }
 0xd28   : > { %v7056_v0 = vadd.f32 %v6977_v9, %v13720_v44  ;;  %v7121_v44 = vpack.c.bf16 %v8719_v54, %v8718_v55 }
 0xd2a   : > { %v7092_v52 = vadd.f32 %v13847_v15, %v7056_v0  ;;  %8280 = vmatmul.msk.bf16.gmra.mxu3 %vm14927_vm6, %v7121_v44 }
 0xd2b   : > { %8251 = vmatmul.msk.bf16.gmra.mxu2 %vm3788_vm7, %v14892_v38  ;;  %v7246_v38 = vadd.f32 %v13852_v51, %v7245_v45 }
 0xd2c   : > { %v7297_v32 = vadd.f32 %v7243_v40, %v7092_v52 }
 0xd2d   : > { %v7250_v53 = vpop.f32.mrf.mxu3 }
 0xd2e   : > { %7329 = vst.msk [vmem:[%s13860_s26 + $0x88] sm:$0xff] %vm3788_vm7, %v7297_v32 }
 0xd2f   : > { %v6980_v35 = vpop.f32.mrf.mxu2 }
 0xd35   : > { %v7252_v1 = vpop.f32.mrf.mxu3 }
 0xd36   : > { %v7253_v20 = vadd.f32 %v13852_v51, %v7252_v1 }
 0xd37   : > { %v6981_v3 = vpop.f32.mrf.mxu2 }
 0xd3b   : > { %8252 = vmatmul.msk.bf16.gmra.mxu2 %vm3788_vm7, %v13402_v49 }
 0xd3f   : > { %v6983_v6 = vpop.f32.mrf.mxu2 }
 0xd40   : > { %v7057_v13 = vadd.f32 %v6983_v6, %v13731_v50 }
 0xd42   : > { %v7093_v22 = vadd.f32 %v13847_v15, %v7057_v13 }
 0xd44   : > { %v7298_v5 = vadd.f32 %v7246_v38, %v7093_v22 }
 0xd46   : > { %7330 = vst.msk [vmem:[%s13860_s26 + $0x90] sm:$0xff] %vm3788_vm7, %v7298_v5 }
 0xd47   : > { %v6985_v49 = vpop.f32.mrf.mxu2 }
 0xd48   : > { %v7058_v43 = vadd.f32 %v6985_v49, %v13740_v58  ;;  %v7122_v58 = vpack.c.bf16 %v8721_v30, %v8720_v23 }
 0xd4a   : > { %v7094_v27 = vadd.f32 %v13847_v15, %v7058_v43  ;;  %8281 = vmatmul.msk.bf16.gmra.mxu3 %vm14928_vm8, %v7122_v58 }
 0xd4b   : > { %8253 = vmatmul.msk.bf16.gmra.mxu2 %vm3788_vm7, %v13429_v33  ;;  %v7251_v33 = vadd.f32 %v13852_v51, %v7250_v53 }
 0xd4c   : > { %v7299_v17 = vadd.f32 %v7248_v42, %v7094_v27 }
 0xd4d   : > { %v7255_v36 = vpop.f32.mrf.mxu3 }
 0xd4e   : > { %7331 = vst.msk [vmem:[%s13860_s26 + $0x98] sm:$0xff] %vm3788_vm7, %v7299_v17  ;;  %v7256_v39 = vadd.f32 %v13852_v51, %v7255_v36 }
 0xd4f   : > { %v6988_v50 = vpop.f32.mrf.mxu2 }
 0xd55   : > { %v7257_v2 = vpop.f32.mrf.mxu3 }
 0xd56   : > { %v7258_v9 = vadd.f32 %v13852_v51, %v7257_v2 }
 0xd57   : > { %v6989_v7 = vpop.f32.mrf.mxu2 }
 0xd5b   : > { %8254 = vmatmul.msk.bf16.gmra.mxu2 %vm3788_vm7, %v13761_v48 }
 0xd5f   : > { %v6991_v57 = vpop.f32.mrf.mxu2 }
 0xd60   : > { %v7059_v12 = vadd.f32 %v6991_v57, %v14929_v31 }
 0xd62   : > { %v7095_v24 = vadd.f32 %v13847_v15, %v7059_v12 }
 0xd64   : > { %v7300_v14 = vadd.f32 %v7251_v33, %v7095_v24 }
 0xd66   : > { %7332 = vst.msk [vmem:[%s13860_s26 + $0xa0] sm:$0xff] %vm3788_vm7, %v7300_v14 }
 0xd67   : > { %v6993_v61 = vpop.f32.mrf.mxu2 }
 0xd68   : > { %v7060_v48 = vadd.f32 %v6993_v61, %v13768_v25 }
 0xd6a   : > { %v7096_v18 = vadd.f32 %v13847_v15, %v7060_v48 }
 0xd6b   : > { %8255 = vmatmul.msk.bf16.gmra.mxu2 %vm3788_vm7, %v14898_v63 }
 0xd6c   : > { %v7301_v59 = vadd.f32 %v7253_v20, %v7096_v18 }
 0xd6d   : > { %v7260_v32 = vpop.f32.mrf.mxu3 }
 0xd6e   : > { %7333 = vst.msk [vmem:[%s13860_s26 + $0xa8] sm:$0xff] %vm3788_vm7, %v7301_v59  ;;  %v7261_v45 = vadd.f32 %v13852_v51, %v7260_v32 }
 0xd6f   : > { %v6996_v56 = vpop.f32.mrf.mxu2 }
 0xd75   : > { %v7262_v54 = vpop.f32.mrf.mxu3 }
 0xd76   : > { %v7263_v6 = vadd.f32 %v13852_v51, %v7262_v54 }
 0xd77   : > { %v6997_v16 = vpop.f32.mrf.mxu2 }
 0xd7b   : > { %8256 = vmatmul.msk.bf16.gmra.mxu2 %vm3788_vm7, %v14898_v63 }
 0xd7f   : > { %v6999_v11 = vpop.f32.mrf.mxu2 }
 0xd80   : > { %v7061_v25 = vadd.f32 %v6999_v11, %v13781_v21 }
 0xd82   : > { %v7097_v19 = vadd.f32 %v13847_v15, %v7061_v25 }
 0xd84   : > { %v7302_v37 = vadd.f32 %v7256_v39, %v7097_v19 }
 0xd86   : > { %7334 = vst.msk [vmem:[%s13860_s26 + $0xb0] sm:$0xff] %vm3788_vm7, %v7302_v37 }
 0xd87   : > { %v7001_v60 = vpop.f32.mrf.mxu2 }
 0xd88   : > { %v7062_v46 = vadd.f32 %v7001_v60, %v13788_v34 }
 0xd8a   : > { %v7098_v0 = vadd.f32 %v13847_v15, %v7062_v46 }
 0xd8b   : > { %8257 = vmatmul.msk.bf16.gmra.mxu2 %vm3788_vm7, %v14898_v63 }
 0xd8c   : > { %v7303_v40 = vadd.f32 %v7258_v9, %v7098_v0 }
 0xd8d   : > { %v7265_v5 = vpop.f32.mrf.mxu3 }
 0xd8e   : > { %7335 = vst.msk [vmem:[%s13860_s26 + $0xb8] sm:$0xff] %vm3788_vm7, %v7303_v40  ;;  %v7266_v43 = vadd.f32 %v13852_v51, %v7265_v5 }
 0xd8f   : > { %v7004_v21 = vpop.f32.mrf.mxu2 }
 0xd97   : > { %v7005_v52 = vpop.f32.mrf.mxu2 }
 0xd9f   : > { %v7007_v35 = vpop.f32.mrf.mxu2 }
 0xda0   : > { %v7063_v3 = vadd.f32 %v7007_v35, %v13801_v41 }
 0xda2   : > { %v7099_v34 = vadd.f32 %v13847_v15, %v7063_v3 }
 0xda4   : > { %v7304_v55 = vadd.f32 %v7261_v45, %v7099_v34 }
 0xda6   : > { %7336 = vst.msk [vmem:[%s13860_s26 + $0xc0] sm:$0xff] %vm3788_vm7, %v7304_v55 }
 0xda7   : > { %v7009_v44 = vpop.f32.mrf.mxu2 }
 0xda8   : > { %v7064_v63 = vadd.f32 %v7009_v44, %v13805_v47  ;;  %v7267_v47 = vpop.f32.mrf.mxu3 }
 0xda9   : > { %v7268_v7 = vadd.f32 %v13852_v51, %v7267_v47 }
 0xdaa   : > { %v7100_v13 = vadd.f32 %v13847_v15, %v7064_v63 }
 0xdac   : > { %v7305_v38 = vadd.f32 %v7263_v6, %v7100_v13 }
 0xdae   : > { %7337 = vst.msk [vmem:[%s13860_s26 + $0xc8] sm:$0xff] %vm3788_vm7, %v7305_v38 }
 0xdaf   : > { %v7012_v41 = vpop.f32.mrf.mxu2 }
 0xdb0   : > { %v7270_v58 = vpop.f32.mrf.mxu3 }
 0xdb1   : > { %v7271_v12 = vadd.f32 %v13852_v51, %v7270_v58 }
 0xdb7   : > { %v7013_v22 = vpop.f32.mrf.mxu2 }
 0xdbf   : > { %v7015_v29 = vpop.f32.mrf.mxu2 }
 0xdc0   : > { %v7065_v49 = vadd.f32 %v7015_v29, %v13815_v28 }
 0xdc2   : > { %v7101_v42 = vadd.f32 %v13847_v15, %v7065_v49 }
 0xdc4   : > { %v7306_v27 = vadd.f32 %v7266_v43, %v7101_v42 }
 0xdc6   : > { %7338 = vst.msk [vmem:[%s13860_s26 + $0xd0] sm:$0xff] %vm3788_vm7, %v7306_v27 }
 0xdc7   : > { %v7017_v17 = vpop.f32.mrf.mxu2 }
 0xdc8   : > { %v7066_v50 = vadd.f32 %v7017_v17, %v13818_v4  ;;  %v7272_v4 = vpop.f32.mrf.mxu3 }
 0xdc9   : > { %v7273_v61 = vadd.f32 %v13852_v51, %v7272_v4 }
 0xdca   : > { %v7102_v53 = vadd.f32 %v13847_v15, %v7066_v50 }
 0xdcc   : > { %v7307_v23 = vadd.f32 %v7268_v7, %v7102_v53 }
 0xdce   : > { %7339 = vst.msk [vmem:[%s13860_s26 + $0xd8] sm:$0xff] %vm3788_vm7, %v7307_v23 }
 0xdcf   : > { %v7020_v28 = vpop.f32.mrf.mxu2 }
 0xdd0   : > { %v7275_v59 = vpop.f32.mrf.mxu3 }
 0xdd1   : > { %v7276_v36 = vadd.f32 %v13852_v51, %v7275_v59 }
 0xdd7   : > { %v7021_v30 = vpop.f32.mrf.mxu2 }
 0xdd8   : > { %v7277_v25 = vpop.f32.mrf.mxu3 }
 0xddf   : > { %v7023_v57 = vpop.f32.mrf.mxu2 }
 0xde0   : > { %v7067_v31 = vadd.f32 %v7023_v57, %v13828_v62 }
 0xde2   : > { %v7103_v33 = vadd.f32 %v13847_v15, %v7067_v31 }
 0xde4   : > { %v7308_v24 = vadd.f32 %v7271_v12, %v7103_v33 }
 0xde6   : > { %7340 = vst.msk [vmem:[%s13860_s26 + $0xe0] sm:$0xff] %vm3788_vm7, %v7308_v24 }
 0xde7   : > { %v7025_v14 = vpop.f32.mrf.mxu2 }
 0xde8   : > { %v7068_v1 = vadd.f32 %v7025_v14, %v13831_v10 }
 0xdea   : > { %v7104_v48 = vadd.f32 %v13847_v15, %v7068_v1 }
 0xdec   : > { %v7309_v20 = vadd.f32 %v7273_v61, %v7104_v48 }
 0xdee   : > { %7341 = vst.msk [vmem:[%s13860_s26 + $0xe8] sm:$0xff] %vm3788_vm7, %v7309_v20 }
 0xdef   : > { %v7028_v62 = vpop.f32.mrf.mxu2 }
 0xdf7   : > { %v7029_v18 = vpop.f32.mrf.mxu2 }
 0xdff   : > { %v7031_v56 = vpop.f32.mrf.mxu2 }
 0xe00   : > { %v7069_v16 = vadd.f32 %v7031_v56, %v13840_v26  ;;  %v7278_v26 = vadd.f32 %v13852_v51, %v7277_v25 }
 0xe02   : > { %v7105_v10 = vadd.f32 %v13847_v15, %v7069_v16 }
 0xe04   : > { %v7310_v11 = vadd.f32 %v7276_v36, %v7105_v10 }
 0xe06   : > { %7342 = vst.msk [vmem:[%s13860_s26 + $0xf0] sm:$0xff] %vm3788_vm7, %v7310_v11 }
 0xe07   : > { %v7033_v39 = vpop.f32.mrf.mxu2 }
 0xe08   : > { %v7070_v19 = vadd.f32 %v7033_v39, %v13858_v8 }
 0xe0a   : > { %v7106_v37 = vadd.f32 %v13847_v15, %v7070_v19 }
 0xe0c   : > { %v7311_v2 = vadd.f32 %v7278_v26, %v7106_v37 }
 0xe0e   : > { %7343 = vst.msk [vmem:[%s13860_s26 + $0xf8] sm:$0xff] %vm3788_vm7, %v7311_v2 }
 0xe0f   : > { %v7036_v60 = vpop.f32.mrf.mxu2 }
 0xe10   : > { %8749 = shalt.err (!%p8746_p3)
}
 0xe11   : > { %s8791_s27 = smov 128   ;;  %s8792_s26 = smov 8  }
 0xe12   : > { %8359 = dma.vmem_to_hbm [thread:$0]  (%p8906_p5), %s7358_s20, 4096, %s7360_s21, %s7345_s17, %s8791_s27, %s8791_s27, %s8792_s26  }
 0xe17   : > { %v7037_v15 = vpop.f32.mrf.mxu2 }
 0xe18 PF: > { %p8365_p4 = scmp.ge.s32.totalorder %s8784_s16, 2  ;;  %s7374_s22 = sand.u32 1, %s8772_s29  }
 0xe19   : > { %s7375_s0 = scalar_lea.sflag [#allocation3], %s7374_s22 }
 0xe1a   : > { %p8362_p7 = pnand %p8365_p4, %p8910_p6 }
 0xe1c   : > { %p8363_p8 = pneg %p8362_p7 }
 0xe1e   : > { %8767 = dma.done.wait (%p8363_p8), %s7375_s0, 4096  }
 0xe1f   : > { %8769 = vsyncadd (%p8363_p8), %s7375_s0, 4294963200  ;;  %s14930_s1 = sld [smem:[#allocation5_spill]]  ;;  %p24_p9 = scmp.ge.s32.totalorder %s8893_s19, 4  }
 0xe20   : > { %s14931_s15 = sld [smem:[#allocation6_spill]]  ;;  %s14932_s29 = smov %s8776_s30 }
 0xe21   : > { %s14934_s16 = smov %s8893_s19  ;;  %26 = sbr.rel (!%p24_p9) target bundleno = 6 (0x6), region = 130 }
 0xe25   : > { %s14933_s30 = smov %s14930_s1 }
 0xe26   :  { %7381 = vsyncpa [#allocation3], 1 }
 0xe27   :  { %7383 = vsyncpa [#allocation3 + $0x1], 1 }

</bundles_post_ra>
